<compile_context>
chip_gen: v5e
topology: v5e:2x2
jax: 0.10.0
libtpu: 0.0.40
codegen_flags: <defaults>
</compile_context>

<pallas_src>
import jax
import jax.numpy as jnp
from jax import lax
from jax.experimental import pallas as pl
from jax.experimental.pallas import tpu as pltpu

H = W = 32
CIN = 3
COUT = 64
NUM_CLASSES = 10
FLAT = COUT * H * W            # 65536 features into the PyTorch Linear

# "wide" internal geometry: rows padded by 1 (-> 34), cols padded by (1, 3) (-> 36)
# so one (h, j) slab row is 32*36 = 1152 lanes = 9 full vregs (lane-dense).  The 4
# extra columns per row carry wrap garbage from the shifted-row conv trick and are
# nulled by zero-padding the Linear weight at those positions.
WPAD = 36
HPAD = 34
QWIDE = H * WPAD               # 1152 wide pixels per (sample, channel)
FLAT_WIDE = COUT * QWIDE       # 73728 columns of the zero-padded Linear weight
XFLAT = 1280                   # padded flat length of one (sample, channel) plane
KTAPS = 9 * CIN                # 27 im2col rows


# ----------------------------- Pallas kernels ------------------------------

def conv_relu_kernel(x_ref, wc_ref, bc_ref, o_ref, patches_ref):
    # x_ref:  (NB, CIN, XFLAT) bf16   flat zero-padded CHW images of NB samples
    # wc_ref: (COUT, 27) bf16         conv weights, columns ordered (dy, dx, cin)
    # bc_ref: (COUT, 1) f32
    # o_ref:  (NB, COUT, QWIDE) bf16  lane-dense conv+ReLU output (channel-major)
    # patches_ref: VMEM (27, NB*QWIDE) bf16 scratch (in-kernel im2col slab)
    nb = x_ref.shape[0]
    for n in range(nb):                       # static unroll: NB*9 shifted slices
        for t in range(9):
            dy, dx = divmod(t, 3)
            base = dy * WPAD + dx
            patches_ref[3 * t:3 * t + 3, n * QWIDE:(n + 1) * QWIDE] = (
                x_ref[n, :, base:base + QWIDE])
    # single bf16 MXU matmul for the whole block of samples, f32 accumulation
    y = jnp.dot(wc_ref[...], patches_ref[...],
                preferred_element_type=jnp.float32)          # (COUT, NB*QWIDE)
    y = jnp.maximum(y + bc_ref[...], 0.0)
    for n in range(nb):                       # 128-aligned lane-slice stores
        o_ref[n] = y[:, n * QWIDE:(n + 1) * QWIDE].astype(o_ref.dtype)


def linear_kernel(x_ref, w_ref, b_ref, o_ref, acc_ref):
    # x_ref: (tm, tk) bf16   w_ref: (NUM_CLASSES, tk) bf16 (lane-dense)
    # b_ref: (1, NUM_CLASSES) f32   o_ref: (tm, NUM_CLASSES) f32
    # acc_ref: VMEM (tm, NUM_CLASSES) f32
    k = pl.program_id(1)

    @pl.when(k == 0)
    def _():
        acc_ref[...] = jnp.zeros_like(acc_ref)

    # Contract last axes (x @ w.T) so the (10, tk) weight tile stays lane-dense.
    acc_ref[...] += lax.dot_general(
        x_ref[...], w_ref[...],
        dimension_numbers=(((1,), (1,)), ((), ())),
        preferred_element_type=jnp.float32)

    @pl.when(k == pl.num_programs(1) - 1)
    def _():
        o_ref[...] = acc_ref[...] + b_ref[...]


# ------------------------------- wrappers -----------------------------------

def conv3x3_relu(x_flat, wc_mat, bc_col, nb):
    """x_flat: (N_pad, CIN, XFLAT) bf16 -> (N_pad, COUT, QWIDE) bf16."""
    n_pad = x_flat.shape[0]
    assert n_pad % nb == 0
    return pl.pallas_call(
        conv_relu_kernel,
        out_shape=jax.ShapeDtypeStruct((n_pad, COUT, QWIDE), jnp.bfloat16),
        grid_spec=pltpu.PrefetchScalarGridSpec(
            num_scalar_prefetch=0,
            grid=(n_pad // nb,),
            in_specs=[
                pl.BlockSpec((nb, CIN, XFLAT), lambda g: (g, 0, 0)),
                pl.BlockSpec((COUT, KTAPS), lambda g: (0, 0)),
                pl.BlockSpec((COUT, 1), lambda g: (0, 0)),
            ],
            out_specs=pl.BlockSpec((nb, COUT, QWIDE), lambda g: (g, 0, 0)),
            scratch_shapes=[pltpu.VMEM((KTAPS, nb * QWIDE), jnp.bfloat16)],
        ),
        compiler_params=pltpu.CompilerParams(
            dimension_semantics=("parallel",)),
    )(x_flat, wc_mat, bc_col)


def linear(x_flat, w_wide, b_row, *, tk=18432, tm_cap=256):
    """x_flat: (N, FLAT_WIDE) bf16; w_wide: (NUM_CLASSES, FLAT_WIDE) bf16."""
    N, K = x_flat.shape
    assert K % tk == 0
    tm = N if N <= tm_cap else tm_cap
    grid_m = pl.cdiv(N, tm)
    # Note: if N > tm_cap and N % tm != 0, the last M tile's out-of-range rows feed
    # padded data into acc_ref; those rows are never stored, so results are correct.
    return pl.pallas_call(
        linear_kernel,
        out_shape=jax.ShapeDtypeStruct((N, NUM_CLASSES), jnp.float32),
        grid_spec=pltpu.PrefetchScalarGridSpec(
            num_scalar_prefetch=0,
            grid=(grid_m, K // tk),
            in_specs=[
                pl.BlockSpec((tm, tk), lambda m, k: (m, k)),
                pl.BlockSpec((NUM_CLASSES, tk), lambda m, k: (0, k)),
                pl.BlockSpec((1, NUM_CLASSES), lambda m, k: (0, 0)),
            ],
            out_specs=pl.BlockSpec((tm, NUM_CLASSES), lambda m, k: (m, 0)),
            scratch_shapes=[pltpu.VMEM((tm, NUM_CLASSES), jnp.float32)],
        ),
        compiler_params=pltpu.CompilerParams(
            dimension_semantics=("parallel", "arbitrary")),
    )(x_flat, w_wide, b_row)


def resnet18_forward(x_nchw, params, *, conv_nb=8, lin_tk=18432, lin_tm_cap=256):
    w_conv, b_conv, w_lin, b_lin = params
    N = x_nchw.shape[0]
    nb = min(conv_nb, N)
    n_pad = -(-N // nb) * nb            # round batch up to a multiple of nb

    # ---- trace-time layout prep (weights are static; input prep is tiny glue) ----
    # conv weight (COUT, CIN, 3, 3) -> (COUT, 27) bf16, column order (dy, dx, cin)
    wc_mat = jnp.transpose(w_conv, (0, 2, 3, 1)).reshape(COUT, KTAPS).astype(jnp.bfloat16)
    bc_col = b_conv.reshape(COUT, 1).astype(jnp.float32)

    # zero-padded CHW image (bf16), flattened per channel so the kernel builds the
    # im2col taps with plain lane slices; extra zero columns absorb the row wrap.
    x_pad = jnp.pad(x_nchw.astype(jnp.bfloat16),
                    ((0, n_pad - N), (0, 0), (1, 1), (1, WPAD - W - 1)))
    x_flat = x_pad.reshape(n_pad, CIN, HPAD * WPAD)
    x_flat = jnp.pad(x_flat, ((0, 0), (0, 0), (0, XFLAT - HPAD * WPAD)))

    # Linear weight: PyTorch flatten order is (c, h, w).  Re-index its columns once
    # (statically) to the kernel's wide (c, h, j) order, zero the 4 dead columns per
    # row, and cast to bf16 (it is part of the dominant HBM traffic).
    w4 = w_lin.reshape(NUM_CLASSES, COUT, H, W)
    w4 = jnp.pad(w4, ((0, 0), (0, 0), (0, 0), (0, WPAD - W)))
    w_wide = w4.reshape(NUM_CLASSES, FLAT_WIDE).astype(jnp.bfloat16)
    b_row = b_lin.reshape(1, NUM_CLASSES).astype(jnp.float32)

    act = conv3x3_relu(x_flat, wc_mat, bc_col, nb)     # (n_pad, COUT, QWIDE) bf16
    act2 = act.reshape(n_pad, FLAT_WIDE)               # contiguous -> free reshape
    out = linear(act2, w_wide, b_row, tk=lin_tk, tm_cap=lin_tm_cap)
    return out[:N]                                     # drop batch-padding rows


# --------------------------- deterministic params ---------------------------

def init_params(key):
    k1, k2, k3, k4 = jax.random.split(key, 4)
    fan_conv = CIN * 3 * 3
    w_conv = jax.random.normal(k1, (COUT, CIN, 3, 3), jnp.float32) / jnp.sqrt(fan_conv)
    b_conv = jax.random.normal(k2, (COUT,), jnp.float32) * 0.01
    w_lin = jax.random.normal(k3, (NUM_CLASSES, FLAT), jnp.float32) / jnp.sqrt(FLAT)
    b_lin = jax.random.normal(k4, (NUM_CLASSES,), jnp.float32) * 0.01
    return w_conv, b_conv, w_lin, b_lin


def reference_forward(x_nchw, params):
    """Pure-JAX f32 reference with PyTorch semantics."""
    w_conv, b_conv, w_lin, b_lin = params
    y = jax.lax.conv_general_dilated(
        x_nchw, w_conv, window_strides=(1, 1), padding=((1, 1), (1, 1)),
        dimension_numbers=("NCHW", "OIHW", "NCHW"))
    y = jnp.maximum(y + b_conv[None, :, None, None], 0.0)
    y = y.reshape(x_nchw.shape[0], -1)
    return y @ w_lin.T + b_lin[None, :]


# ----------------------------------- main ------------------------------------

if __name__ == "__main__":
    key = jax.random.PRNGKey(0)
    kx, kp = jax.random.split(key)
    # Module hard-wires 3 input channels and 32x32 spatial (Linear in = 64*32*32).
    x = jax.random.normal(kx, (2, CIN, H, W), jnp.float32)
    params = init_params(kp)

    fwd = jax.jit(resnet18_forward)
    out = jax.block_until_ready(fwd(x, params))
    assert out.shape == (2, NUM_CLASSES)

    ref = jax.block_until_ready(reference_forward(x, params))
    # bf16 inputs/weights/activations with f32 MXU accumulation over the 65536-long
    # contraction: ~5e-3 rms deviation vs the f32 reference; 3e-2 tolerance is ample.
    assert jnp.allclose(out, ref, rtol=3e-2, atol=3e-2), "mismatch vs JAX reference"

    print("KERNEL_OK")
</pallas_src>

<mosaic_0001>
module attributes {stable_mosaic.version = 11 : i64} {
  func.func @conv_relu_kernel(%arg0: i32, %arg1: memref<2x3x1280xbf16, #tpu.memory_space<vmem>>, %arg2: memref<64x27xbf16, #tpu.memory_space<vmem>>, %arg3: memref<64x1xf32, #tpu.memory_space<vmem>>, %arg4: memref<2x64x1152xbf16, #tpu.memory_space<vmem>>, %arg5: memref<27x2304xbf16, #tpu.memory_space<vmem>>) attributes {dimension_semantics = [#tpu.dimension_semantics<parallel>], iteration_bounds = array<i64: 1>, scalar_prefetch = 0 : i64, scratch_operands = 1 : i64, tpu.core_type = #tpu.core_type<tc>, window_params = [{transform_indices = @transform_0, window_bounds = array<i64: 2, 3, 1280>}, {pipeline_mode = #tpu.pipeline_mode<synchronous>, transform_indices = @transform_1, window_bounds = array<i64: 64, 27>}, {pipeline_mode = #tpu.pipeline_mode<synchronous>, transform_indices = @transform_2, window_bounds = array<i64: 64, 1>}, {transform_indices = @transform_3, window_bounds = array<i64: 2, 64, 1152>}]} {
    %c0 = arith.constant 0 : index
    %c0_0 = arith.constant 0 : index
    %c0_1 = arith.constant 0 : index
    %0 = vector.load %arg1[%c0, %c0_0, %c0_1] : memref<2x3x1280xbf16, #tpu.memory_space<vmem>>, vector<1x3x1152xbf16>
    %1 = vector.shape_cast %0 : vector<1x3x1152xbf16> to vector<3x1152xbf16>
    %c0_2 = arith.constant 0 : index
    %c0_3 = arith.constant 0 : index
    %2 = vector.load %arg5[%c0_2, %c0_3] : memref<27x2304xbf16, #tpu.memory_space<vmem>>, vector<3x1152xbf16>
    tpu.vector_store %arg5[%c0_2, %c0_3], %1 {strides = array<i32>} : memref<27x2304xbf16, #tpu.memory_space<vmem>>, vector<3x1152xbf16>,
    %c0_4 = arith.constant 0 : index
    %c0_5 = arith.constant 0 : index
    %c1 = arith.constant 1 : index
    %3 = vector.load %arg1[%c0_4, %c0_5, %c1] : memref<2x3x1280xbf16, #tpu.memory_space<vmem>>, vector<1x3x1152xbf16>
    %4 = vector.shape_cast %3 : vector<1x3x1152xbf16> to vector<3x1152xbf16>
    %c3 = arith.constant 3 : index
    %c0_6 = arith.constant 0 : index
    %5 = vector.load %arg5[%c3, %c0_6] : memref<27x2304xbf16, #tpu.memory_space<vmem>>, vector<3x1152xbf16>
    tpu.vector_store %arg5[%c3, %c0_6], %4 {strides = array<i32>} : memref<27x2304xbf16, #tpu.memory_space<vmem>>, vector<3x1152xbf16>,
    %c0_7 = arith.constant 0 : index
    %c0_8 = arith.constant 0 : index
    %c2 = arith.constant 2 : index
    %6 = vector.load %arg1[%c0_7, %c0_8, %c2] : memref<2x3x1280xbf16, #tpu.memory_space<vmem>>, vector<1x3x1152xbf16>
    %7 = vector.shape_cast %6 : vector<1x3x1152xbf16> to vector<3x1152xbf16>
    %c6 = arith.constant 6 : index
    %c0_9 = arith.constant 0 : index
    %8 = vector.load %arg5[%c6, %c0_9] : memref<27x2304xbf16, #tpu.memory_space<vmem>>, vector<3x1152xbf16>
    tpu.vector_store %arg5[%c6, %c0_9], %7 {strides = array<i32>} : memref<27x2304xbf16, #tpu.memory_space<vmem>>, vector<3x1152xbf16>,
    %c0_10 = arith.constant 0 : index
    %c0_11 = arith.constant 0 : index
    %c36 = arith.constant 36 : index
    %9 = vector.load %arg1[%c0_10, %c0_11, %c36] : memref<2x3x1280xbf16, #tpu.memory_space<vmem>>, vector<1x3x1152xbf16>
    %10 = vector.shape_cast %9 : vector<1x3x1152xbf16> to vector<3x1152xbf16>
    %c9 = arith.constant 9 : index
    %c0_12 = arith.constant 0 : index
    %11 = vector.load %arg5[%c9, %c0_12] : memref<27x2304xbf16, #tpu.memory_space<vmem>>, vector<3x1152xbf16>
    tpu.vector_store %arg5[%c9, %c0_12], %10 {strides = array<i32>} : memref<27x2304xbf16, #tpu.memory_space<vmem>>, vector<3x1152xbf16>,
    %c0_13 = arith.constant 0 : index
    %c0_14 = arith.constant 0 : index
    %c37 = arith.constant 37 : index
    %12 = vector.load %arg1[%c0_13, %c0_14, %c37] : memref<2x3x1280xbf16, #tpu.memory_space<vmem>>, vector<1x3x1152xbf16>
    %13 = vector.shape_cast %12 : vector<1x3x1152xbf16> to vector<3x1152xbf16>
    %c12 = arith.constant 12 : index
    %c0_15 = arith.constant 0 : index
    %14 = vector.load %arg5[%c12, %c0_15] : memref<27x2304xbf16, #tpu.memory_space<vmem>>, vector<3x1152xbf16>
    tpu.vector_store %arg5[%c12, %c0_15], %13 {strides = array<i32>} : memref<27x2304xbf16, #tpu.memory_space<vmem>>, vector<3x1152xbf16>,
    %c0_16 = arith.constant 0 : index
    %c0_17 = arith.constant 0 : index
    %c38 = arith.constant 38 : index
    %15 = vector.load %arg1[%c0_16, %c0_17, %c38] : memref<2x3x1280xbf16, #tpu.memory_space<vmem>>, vector<1x3x1152xbf16>
    %16 = vector.shape_cast %15 : vector<1x3x1152xbf16> to vector<3x1152xbf16>
    %c15 = arith.constant 15 : index
    %c0_18 = arith.constant 0 : index
    %17 = vector.load %arg5[%c15, %c0_18] : memref<27x2304xbf16, #tpu.memory_space<vmem>>, vector<3x1152xbf16>
    tpu.vector_store %arg5[%c15, %c0_18], %16 {strides = array<i32>} : memref<27x2304xbf16, #tpu.memory_space<vmem>>, vector<3x1152xbf16>,
    %c0_19 = arith.constant 0 : index
    %c0_20 = arith.constant 0 : index
    %c72 = arith.constant 72 : index
    %18 = vector.load %arg1[%c0_19, %c0_20, %c72] : memref<2x3x1280xbf16, #tpu.memory_space<vmem>>, vector<1x3x1152xbf16>
    %19 = vector.shape_cast %18 : vector<1x3x1152xbf16> to vector<3x1152xbf16>
    %c18 = arith.constant 18 : index
    %c0_21 = arith.constant 0 : index
    %20 = vector.load %arg5[%c18, %c0_21] : memref<27x2304xbf16, #tpu.memory_space<vmem>>, vector<3x1152xbf16>
    tpu.vector_store %arg5[%c18, %c0_21], %19 {strides = array<i32>} : memref<27x2304xbf16, #tpu.memory_space<vmem>>, vector<3x1152xbf16>,
    %c0_22 = arith.constant 0 : index
    %c0_23 = arith.constant 0 : index
    %c73 = arith.constant 73 : index
    %21 = vector.load %arg1[%c0_22, %c0_23, %c73] : memref<2x3x1280xbf16, #tpu.memory_space<vmem>>, vector<1x3x1152xbf16>
    %22 = vector.shape_cast %21 : vector<1x3x1152xbf16> to vector<3x1152xbf16>
    %c21 = arith.constant 21 : index
    %c0_24 = arith.constant 0 : index
    %23 = vector.load %arg5[%c21, %c0_24] : memref<27x2304xbf16, #tpu.memory_space<vmem>>, vector<3x1152xbf16>
    tpu.vector_store %arg5[%c21, %c0_24], %22 {strides = array<i32>} : memref<27x2304xbf16, #tpu.memory_space<vmem>>, vector<3x1152xbf16>,
    %c0_25 = arith.constant 0 : index
    %c0_26 = arith.constant 0 : index
    %c74 = arith.constant 74 : index
    %24 = vector.load %arg1[%c0_25, %c0_26, %c74] : memref<2x3x1280xbf16, #tpu.memory_space<vmem>>, vector<1x3x1152xbf16>
    %25 = vector.shape_cast %24 : vector<1x3x1152xbf16> to vector<3x1152xbf16>
    %c24 = arith.constant 24 : index
    %c0_27 = arith.constant 0 : index
    %26 = vector.load %arg5[%c24, %c0_27] : memref<27x2304xbf16, #tpu.memory_space<vmem>>, vector<3x1152xbf16>
    tpu.vector_store %arg5[%c24, %c0_27], %25 {strides = array<i32>} : memref<27x2304xbf16, #tpu.memory_space<vmem>>, vector<3x1152xbf16>,
    %c1_28 = arith.constant 1 : index
    %c0_29 = arith.constant 0 : index
    %c0_30 = arith.constant 0 : index
    %27 = vector.load %arg1[%c1_28, %c0_29, %c0_30] : memref<2x3x1280xbf16, #tpu.memory_space<vmem>>, vector<1x3x1152xbf16>
    %28 = vector.shape_cast %27 : vector<1x3x1152xbf16> to vector<3x1152xbf16>
    %c0_31 = arith.constant 0 : index
    %c1152 = arith.constant 1152 : index
    %29 = vector.load %arg5[%c0_31, %c1152] : memref<27x2304xbf16, #tpu.memory_space<vmem>>, vector<3x1152xbf16>
    tpu.vector_store %arg5[%c0_31, %c1152], %28 {strides = array<i32>} : memref<27x2304xbf16, #tpu.memory_space<vmem>>, vector<3x1152xbf16>,
    %c1_32 = arith.constant 1 : index
    %c0_33 = arith.constant 0 : index
    %c1_34 = arith.constant 1 : index
    %30 = vector.load %arg1[%c1_32, %c0_33, %c1_34] : memref<2x3x1280xbf16, #tpu.memory_space<vmem>>, vector<1x3x1152xbf16>
    %31 = vector.shape_cast %30 : vector<1x3x1152xbf16> to vector<3x1152xbf16>
    %c3_35 = arith.constant 3 : index
    %c1152_36 = arith.constant 1152 : index
    %32 = vector.load %arg5[%c3_35, %c1152_36] : memref<27x2304xbf16, #tpu.memory_space<vmem>>, vector<3x1152xbf16>
    tpu.vector_store %arg5[%c3_35, %c1152_36], %31 {strides = array<i32>} : memref<27x2304xbf16, #tpu.memory_space<vmem>>, vector<3x1152xbf16>,
    %c1_37 = arith.constant 1 : index
    %c0_38 = arith.constant 0 : index
    %c2_39 = arith.constant 2 : index
    %33 = vector.load %arg1[%c1_37, %c0_38, %c2_39] : memref<2x3x1280xbf16, #tpu.memory_space<vmem>>, vector<1x3x1152xbf16>
    %34 = vector.shape_cast %33 : vector<1x3x1152xbf16> to vector<3x1152xbf16>
    %c6_40 = arith.constant 6 : index
    %c1152_41 = arith.constant 1152 : index
    %35 = vector.load %arg5[%c6_40, %c1152_41] : memref<27x2304xbf16, #tpu.memory_space<vmem>>, vector<3x1152xbf16>
    tpu.vector_store %arg5[%c6_40, %c1152_41], %34 {strides = array<i32>} : memref<27x2304xbf16, #tpu.memory_space<vmem>>, vector<3x1152xbf16>,
    %c1_42 = arith.constant 1 : index
    %c0_43 = arith.constant 0 : index
    %c36_44 = arith.constant 36 : index
    %36 = vector.load %arg1[%c1_42, %c0_43, %c36_44] : memref<2x3x1280xbf16, #tpu.memory_space<vmem>>, vector<1x3x1152xbf16>
    %37 = vector.shape_cast %36 : vector<1x3x1152xbf16> to vector<3x1152xbf16>
    %c9_45 = arith.constant 9 : index
    %c1152_46 = arith.constant 1152 : index
    %38 = vector.load %arg5[%c9_45, %c1152_46] : memref<27x2304xbf16, #tpu.memory_space<vmem>>, vector<3x1152xbf16>
    tpu.vector_store %arg5[%c9_45, %c1152_46], %37 {strides = array<i32>} : memref<27x2304xbf16, #tpu.memory_space<vmem>>, vector<3x1152xbf16>,
    %c1_47 = arith.constant 1 : index
    %c0_48 = arith.constant 0 : index
    %c37_49 = arith.constant 37 : index
    %39 = vector.load %arg1[%c1_47, %c0_48, %c37_49] : memref<2x3x1280xbf16, #tpu.memory_space<vmem>>, vector<1x3x1152xbf16>
    %40 = vector.shape_cast %39 : vector<1x3x1152xbf16> to vector<3x1152xbf16>
    %c12_50 = arith.constant 12 : index
    %c1152_51 = arith.constant 1152 : index
    %41 = vector.load %arg5[%c12_50, %c1152_51] : memref<27x2304xbf16, #tpu.memory_space<vmem>>, vector<3x1152xbf16>
    tpu.vector_store %arg5[%c12_50, %c1152_51], %40 {strides = array<i32>} : memref<27x2304xbf16, #tpu.memory_space<vmem>>, vector<3x1152xbf16>,
    %c1_52 = arith.constant 1 : index
    %c0_53 = arith.constant 0 : index
    %c38_54 = arith.constant 38 : index
    %42 = vector.load %arg1[%c1_52, %c0_53, %c38_54] : memref<2x3x1280xbf16, #tpu.memory_space<vmem>>, vector<1x3x1152xbf16>
    %43 = vector.shape_cast %42 : vector<1x3x1152xbf16> to vector<3x1152xbf16>
    %c15_55 = arith.constant 15 : index
    %c1152_56 = arith.constant 1152 : index
    %44 = vector.load %arg5[%c15_55, %c1152_56] : memref<27x2304xbf16, #tpu.memory_space<vmem>>, vector<3x1152xbf16>
    tpu.vector_store %arg5[%c15_55, %c1152_56], %43 {strides = array<i32>} : memref<27x2304xbf16, #tpu.memory_space<vmem>>, vector<3x1152xbf16>,
    %c1_57 = arith.constant 1 : index
    %c0_58 = arith.constant 0 : index
    %c72_59 = arith.constant 72 : index
    %45 = vector.load %arg1[%c1_57, %c0_58, %c72_59] : memref<2x3x1280xbf16, #tpu.memory_space<vmem>>, vector<1x3x1152xbf16>
    %46 = vector.shape_cast %45 : vector<1x3x1152xbf16> to vector<3x1152xbf16>
    %c18_60 = arith.constant 18 : index
    %c1152_61 = arith.constant 1152 : index
    %47 = vector.load %arg5[%c18_60, %c1152_61] : memref<27x2304xbf16, #tpu.memory_space<vmem>>, vector<3x1152xbf16>
    tpu.vector_store %arg5[%c18_60, %c1152_61], %46 {strides = array<i32>} : memref<27x2304xbf16, #tpu.memory_space<vmem>>, vector<3x1152xbf16>,
    %c1_62 = arith.constant 1 : index
    %c0_63 = arith.constant 0 : index
    %c73_64 = arith.constant 73 : index
    %48 = vector.load %arg1[%c1_62, %c0_63, %c73_64] : memref<2x3x1280xbf16, #tpu.memory_space<vmem>>, vector<1x3x1152xbf16>
    %49 = vector.shape_cast %48 : vector<1x3x1152xbf16> to vector<3x1152xbf16>
    %c21_65 = arith.constant 21 : index
    %c1152_66 = arith.constant 1152 : index
    %50 = vector.load %arg5[%c21_65, %c1152_66] : memref<27x2304xbf16, #tpu.memory_space<vmem>>, vector<3x1152xbf16>
    tpu.vector_store %arg5[%c21_65, %c1152_66], %49 {strides = array<i32>} : memref<27x2304xbf16, #tpu.memory_space<vmem>>, vector<3x1152xbf16>,
    %c1_67 = arith.constant 1 : index
    %c0_68 = arith.constant 0 : index
    %c74_69 = arith.constant 74 : index
    %51 = vector.load %arg1[%c1_67, %c0_68, %c74_69] : memref<2x3x1280xbf16, #tpu.memory_space<vmem>>, vector<1x3x1152xbf16>
    %52 = vector.shape_cast %51 : vector<1x3x1152xbf16> to vector<3x1152xbf16>
    %c24_70 = arith.constant 24 : index
    %c1152_71 = arith.constant 1152 : index
    %53 = vector.load %arg5[%c24_70, %c1152_71] : memref<27x2304xbf16, #tpu.memory_space<vmem>>, vector<3x1152xbf16>
    tpu.vector_store %arg5[%c24_70, %c1152_71], %52 {strides = array<i32>} : memref<27x2304xbf16, #tpu.memory_space<vmem>>, vector<3x1152xbf16>,
    %c0_72 = arith.constant 0 : index
    %c0_73 = arith.constant 0 : index
    %54 = vector.load %arg2[%c0_72, %c0_73] : memref<64x27xbf16, #tpu.memory_space<vmem>>, vector<64x27xbf16>
    %c0_74 = arith.constant 0 : index
    %c0_75 = arith.constant 0 : index
    %55 = vector.load %arg5[%c0_74, %c0_75] : memref<27x2304xbf16, #tpu.memory_space<vmem>>, vector<27x2304xbf16>
    %cst = arith.constant dense<0.000000e+00> : vector<64x2304xf32>
    %56 = tpu.matmul %54, %55, %cst {dimension_numbers = #tpu.dot_dimension_numbers<[1], [0], [0], [1], [0, 0, 1, 1], [], []>} : vector<64x27xbf16>, vector<27x2304xbf16>, vector<64x2304xf32> -> vector<64x2304xf32>
    %c0_76 = arith.constant 0 : index
    %c0_77 = arith.constant 0 : index
    %57 = vector.load %arg3[%c0_76, %c0_77] : memref<64x1xf32, #tpu.memory_space<vmem>>, vector<64x1xf32>
    %58 = vector.broadcast %57 : vector<64x1xf32> to vector<64x2304xf32>
    %59 = arith.addf %56, %58 : vector<64x2304xf32>
    %cst_78 = arith.constant 0.000000e+00 : f32
    %60 = vector.broadcast %cst_78 : f32 to vector<64x2304xf32>
    %61 = arith.maximumf %59, %60 : vector<64x2304xf32>
    %62 = vector.extract_strided_slice %61 {offsets = [0, 0], sizes = [64, 1152], strides = [1, 1]} : vector<64x2304xf32> to vector<64x1152xf32>
    %63 = arith.truncf %62 : vector<64x1152xf32> to vector<64x1152xbf16>
    %c0_79 = arith.constant 0 : index
    %c0_80 = arith.constant 0 : index
    %c0_81 = arith.constant 0 : index
    %64 = vector.load %arg4[%c0_79, %c0_80, %c0_81] : memref<2x64x1152xbf16, #tpu.memory_space<vmem>>, vector<1x64x1152xbf16>
    %65 = vector.shape_cast %64 : vector<1x64x1152xbf16> to vector<64x1152xbf16>
    %66 = vector.shape_cast %63 : vector<64x1152xbf16> to vector<1x64x1152xbf16>
    tpu.vector_store %arg4[%c0_79, %c0_80, %c0_81], %66 {strides = array<i32>} : memref<2x64x1152xbf16, #tpu.memory_space<vmem>>, vector<1x64x1152xbf16>,
    %67 = vector.extract_strided_slice %61 {offsets = [0, 1152], sizes = [64, 1152], strides = [1, 1]} : vector<64x2304xf32> to vector<64x1152xf32>
    %68 = arith.truncf %67 : vector<64x1152xf32> to vector<64x1152xbf16>
    %c1_82 = arith.constant 1 : index
    %c0_83 = arith.constant 0 : index
    %c0_84 = arith.constant 0 : index
    %69 = vector.load %arg4[%c1_82, %c0_83, %c0_84] : memref<2x64x1152xbf16, #tpu.memory_space<vmem>>, vector<1x64x1152xbf16>
    %70 = vector.shape_cast %69 : vector<1x64x1152xbf16> to vector<64x1152xbf16>
    %71 = vector.shape_cast %68 : vector<64x1152xbf16> to vector<1x64x1152xbf16>
    tpu.vector_store %arg4[%c1_82, %c0_83, %c0_84], %71 {strides = array<i32>} : memref<2x64x1152xbf16, #tpu.memory_space<vmem>>, vector<1x64x1152xbf16>,
    return
  }
  func.func @transform_0(%arg0: i32) -> (i32, i32, i32) {
    %c0_i32 = arith.constant 0 : i32
    %c0_i32_0 = arith.constant 0 : i32
    %c0_i32_1 = arith.constant 0 : i32
    return %arg0, %c0_i32, %c0_i32_0 : i32, i32, i32
  }
  func.func @transform_1(%arg0: i32) -> (i32, i32) {
    %c0_i32 = arith.constant 0 : i32
    %c0_i32_0 = arith.constant 0 : i32
    %c0_i32_1 = arith.constant 0 : i32
    return %c0_i32, %c0_i32_0 : i32, i32
  }
  func.func @transform_2(%arg0: i32) -> (i32, i32) {
    %c0_i32 = arith.constant 0 : i32
    %c0_i32_0 = arith.constant 0 : i32
    %c0_i32_1 = arith.constant 0 : i32
    return %c0_i32, %c0_i32_0 : i32, i32
  }
  func.func @transform_3(%arg0: i32) -> (i32, i32, i32) {
    %c0_i32 = arith.constant 0 : i32
    %c0_i32_0 = arith.constant 0 : i32
    %c0_i32_1 = arith.constant 0 : i32
    return %arg0, %c0_i32, %c0_i32_0 : i32, i32, i32
  }
}

module attributes {stable_mosaic.version = 11 : i64} {
  func.func @linear_kernel(%arg0: i32, %arg1: i32, %arg2: memref<2x18432xbf16, #tpu.memory_space<vmem>>, %arg3: memref<10x18432xbf16, #tpu.memory_space<vmem>>, %arg4: memref<1x10xf32, #tpu.memory_space<vmem>>, %arg5: memref<2x10xf32, #tpu.memory_space<vmem>>, %arg6: memref<2x10xf32, #tpu.memory_space<vmem>>) attributes {dimension_semantics = [#tpu.dimension_semantics<parallel>, #tpu.dimension_semantics<arbitrary>], iteration_bounds = array<i64: 1, 4>, scalar_prefetch = 0 : i64, scratch_operands = 1 : i64, tpu.core_type = #tpu.core_type<tc>, window_params = [{transform_indices = @transform_0, window_bounds = array<i64: 2, 18432>}, {transform_indices = @transform_1, window_bounds = array<i64: 10, 18432>}, {pipeline_mode = #tpu.pipeline_mode<synchronous>, transform_indices = @transform_2, window_bounds = array<i64: 1, 10>}, {transform_indices = @transform_3, window_bounds = array<i64: 2, 10>}]} {
    %c0_i32 = arith.constant 0 : i32
    %0 = arith.cmpi eq, %arg1, %c0_i32 : i32
    %1 = arith.extui %0 : i1 to i32
    %c0_i32_0 = arith.constant 0 : i32
    %2 = arith.cmpi ne, %1, %c0_i32_0 : i32
    scf.if %2 {
      %cst_9 = arith.constant 0.000000e+00 : f32
      %12 = vector.broadcast %cst_9 : f32 to vector<2x10xf32>
      %c0_10 = arith.constant 0 : index
      %c0_11 = arith.constant 0 : index
      %13 = vector.load %arg6[%c0_10, %c0_11] : memref<2x10xf32, #tpu.memory_space<vmem>>, vector<2x10xf32>
      tpu.vector_store %arg6[%c0_10, %c0_11], %12 {strides = array<i32>} : memref<2x10xf32, #tpu.memory_space<vmem>>, vector<2x10xf32>,
    } else {
    }
    %c0 = arith.constant 0 : index
    %c0_1 = arith.constant 0 : index
    %3 = vector.load %arg6[%c0, %c0_1] : memref<2x10xf32, #tpu.memory_space<vmem>>, vector<2x10xf32>
    %c0_2 = arith.constant 0 : index
    %c0_3 = arith.constant 0 : index
    %4 = vector.load %arg2[%c0_2, %c0_3] : memref<2x18432xbf16, #tpu.memory_space<vmem>>, vector<2x18432xbf16>
    %c0_4 = arith.constant 0 : index
    %c0_5 = arith.constant 0 : index
    %5 = vector.load %arg3[%c0_4, %c0_5] : memref<10x18432xbf16, #tpu.memory_space<vmem>>, vector<10x18432xbf16>
    %cst = arith.constant dense<0.000000e+00> : vector<2x10xf32>
    %6 = tpu.matmul %4, %5, %cst {dimension_numbers = #tpu.dot_dimension_numbers<[1], [1], [0], [0], [0, 0, 1, 0], [], []>} : vector<2x18432xbf16>, vector<10x18432xbf16>, vector<2x10xf32> -> vector<2x10xf32>
    %7 = arith.addf %3, %6 : vector<2x10xf32>
    %c0_6 = arith.constant 0 : index
    %c0_7 = arith.constant 0 : index
    %8 = vector.load %arg6[%c0_6, %c0_7] : memref<2x10xf32, #tpu.memory_space<vmem>>, vector<2x10xf32>
    tpu.vector_store %arg6[%c0_6, %c0_7], %7 {strides = array<i32>} : memref<2x10xf32, #tpu.memory_space<vmem>>, vector<2x10xf32>,
    %c3_i32 = arith.constant 3 : i32
    %9 = arith.cmpi eq, %arg1, %c3_i32 : i32
    %10 = arith.extui %9 : i1 to i32
    %c0_i32_8 = arith.constant 0 : i32
    %11 = arith.cmpi ne, %10, %c0_i32_8 : i32
    scf.if %11 {
      %c0_9 = arith.constant 0 : index
      %c0_10 = arith.constant 0 : index
      %12 = vector.load %arg6[%c0_9, %c0_10] : memref<2x10xf32, #tpu.memory_space<vmem>>, vector<2x10xf32>
      %c0_11 = arith.constant 0 : index
      %c0_12 = arith.constant 0 : index
      %13 = vector.load %arg4[%c0_11, %c0_12] : memref<1x10xf32, #tpu.memory_space<vmem>>, vector<1x10xf32>
      %14 = vector.broadcast %13 : vector<1x10xf32> to vector<2x10xf32>
      %15 = arith.addf %12, %14 : vector<2x10xf32>
      %c0_13 = arith.constant 0 : index
      %c0_14 = arith.constant 0 : index
      %16 = vector.load %arg5[%c0_13, %c0_14] : memref<2x10xf32, #tpu.memory_space<vmem>>, vector<2x10xf32>
      tpu.vector_store %arg5[%c0_13, %c0_14], %15 {strides = array<i32>} : memref<2x10xf32, #tpu.memory_space<vmem>>, vector<2x10xf32>,
    } else {
    }
    return
  }
  func.func @transform_0(%arg0: i32, %arg1: i32) -> (i32, i32) {
    %c0_i32 = arith.constant 0 : i32
    return %arg0, %arg1 : i32, i32
  }
  func.func @transform_1(%arg0: i32, %arg1: i32) -> (i32, i32) {
    %c0_i32 = arith.constant 0 : i32
    %c0_i32_0 = arith.constant 0 : i32
    return %c0_i32, %arg1 : i32, i32
  }
  func.func @transform_2(%arg0: i32, %arg1: i32) -> (i32, i32) {
    %c0_i32 = arith.constant 0 : i32
    %c0_i32_0 = arith.constant 0 : i32
    %c0_i32_1 = arith.constant 0 : i32
    return %c0_i32, %c0_i32_0 : i32, i32
  }
  func.func @transform_3(%arg0: i32, %arg1: i32) -> (i32, i32) {
    %c0_i32 = arith.constant 0 : i32
    %c0_i32_0 = arith.constant 0 : i32
    return %arg0, %c0_i32 : i32, i32
  }
}

</mosaic_0001>

<bundles_post_ra>
// kernel: resnet18_forward.2
= control target key start
LH: loop header
LB: loop body
LE: loop exit
PB: predicated region body
PF: predicated region fallthrough
CT: control target
= control target key end

     0   :  { %s3146_s16 = smov 127   ;;  %s3147_s17 = smov 126   ;;  %vm36_vm0 = vcmask 1041408   ;;  %vm37_vm1 = vsmask.f32 1280  ;;  %vm5251_vm2 = vcmask 1045508   ;;  %s5242_s0 = inlined_call_operand.vmem [shape: bf16[2,3,1280], index: 0, kind: input, shape index: {}]   ;;  %s5243_s1 = inlined_call_operand.vmem [shape: bf16[64,27], index: 1, kind: input, shape index: {}]   ;;  %s5244_s2 = inlined_call_operand.vmem [shape: f32[64,1], index: 2, kind: input, shape index: {}]   ;;  %s5245_s3 = inlined_call_operand.vmem [shape: bf16[2,64,1152], index: 3, kind: output, shape index: {}]  }
   0x1   :  { %v3179_v0 = vld [vmem:[%s5242_s0] sm:$0xff]  ;;  %v3184_v1 = vld [vmem:[%s5242_s0 + $0x8] sm:$0xff]  ;;  %v17_v28 = vld [vmem:[%s5242_s0 + $0x10] sm:$0x3]  ;;  %s3148_s22 = smov 92   ;;  %s3149_s25 = smov 91  }
   0x2   :  { %19 = vst [vmem:[#allocation1] ss:$2 sm:$0xff] %v3179_v0  ;;  %v60_v41 = vld [vmem:[%s5242_s0 + $0x10] sm:$0xf]  ;;  %s3150_s28 = smov 90   ;;  %s3151_s29 = smov 56   ;;  %vm3366_vm4 = vmand %vm36_vm0, %vm37_vm1 }
   0x3   :  { %22 = vst [vmem:[#allocation1 + $0x10] ss:$2 sm:$0xff] %v3184_v1  ;;  %v164_v49 = vld [vmem:[%s5242_s0 + $0x10] sm:$0xf]  ;;  %s3152_s11 = smov 55   ;;  %s3153_s14 = smov 54  }
   0x4   :  { %25 = vst [vmem:[#allocation1 + $0x20] ss:$2 sm:$0xff] %v17_v28  ;;  %v281_v63 = vld [vmem:[%s5242_s0 + $0x10] sm:$0xf]  ;;  %vm40_vm3 = vsmask.f32 5376 }
   0x5   :  { %vm41_vm5 = vmand %vm5251_vm2, %vm40_vm3  ;;  %vm5249_vm7 = vcmask 1042433   ;;  %vm141_vm8 = vsmask.f32 7942  ;;  %vm5248_vm9 = vcmask 1046533   ;;  %vm144_vm10 = vsmask.f32 7958 }
   0x6   :  { %vm3375_vm6 = vmor %vm41_vm5, %vm3366_vm4  ;;  %vm5260_vm13 = vcmask 1043456   ;;  %vm5246_vm14 = vcmask 1039360   ;;  %vm428_vm1 = vsmask.f32 3328  ;;  %vm5247_vm3 = vcmask 1043458  }
   0x7   :  { %vm3465_vm11 = vmand %vm5249_vm7, %vm141_vm8  ;;  %vm5250_vm5 = vcmask 1047558   ;;  %vm431_vm8 = vsmask.f32 7424  ;;  %vm261_vm7 = vsmask.f32 4352 }
   0x8   :  { %vm145_vm12 = vmand %vm5248_vm9, %vm144_vm10  ;;  %vm5258_vm10 = vcmask 1031168   ;;  %vm260_vm9 = vcmask 1044484  }
   0x9   :  { %v3188_v2 = vld.sshfl [vmem:[#allocation1] sm:$0xff pattern:$0x75643120]  ;;  %v3190_v3 = vld.sshfl [vmem:[#allocation1 + $0x8] sm:$0xff pattern:$0x75643120]  ;;  %vm3480_vm15 = vmor %vm145_vm12, %vm3465_vm11 }
   0xa   :  { %62 = vst [vmem:[#allocation1] ss:$2 sm:$0xff] %v3179_v0  ;;  %v3193_v4 = vld.sshfl [vmem:[#allocation1 + $0x10] sm:$0xff pattern:$0x75643120]  ;;  %vm3507_vm12 = vmand %vm5247_vm3, %vm428_vm1  ;;  %vm257_vm1 = vcmask 1040384  }
   0xb   :  { %v3195_v5 = vld.sshfl [vmem:[#allocation1 + $0x18] sm:$0xff pattern:$0x75643120]  ;;  %v3231_v42 = vld.sshfl [vmem:[#allocation1 + $0x20] sm:$0xff pattern:$0x75643120] }
   0xc   :  { %65 = vst [vmem:[#allocation1 + $0x10] ss:$2 sm:$0xff] %v3184_v1  ;;  %vm258_vm3 = vsmask.f32 256 }
   0xd   :  { %68 = vst [vmem:[#allocation1 + $0x20] ss:$2 sm:$0xff] %v60_v41  ;;  %v3283_v41 = vld [vmem:[%s5242_s0 + $0x14] sm:$0xff]  ;;  %vm3534_vm2 = vmand %vm257_vm1, %vm258_vm3  ;;  %vm357_vm3 = vsmask.f32 7954 }
  0x11   :  { %v70_v6 = vld.sshfl [vmem:[#allocation1 + $0x8] sm:$0xff pattern:$0x75643120]  ;;  %v69_v7 = vld.sshfl [vmem:[#allocation1] sm:$0xff pattern:$0x75643120] }
  0x12   :  { %v81_v8 = vshrl.u32 %v70_v6, 16  ;;  %v84_v9 = vshll.u32 %v70_v6, 16  ;;  %v74_v10 = vshrl.u32 %v69_v7, 16  ;;  %v77_v11 = vshll.u32 %v69_v7, 16  ;;  %166 = vst [vmem:[#allocation1] ss:$2 sm:$0xff] %v3179_v0 }
  0x13   :  { %v3199_v12 = vld.sshfl [vmem:[#allocation1 + $0x10] sm:$0xff pattern:$0x75643120]  ;;  %v3201_v13 = vld.sshfl [vmem:[#allocation1 + $0x18] sm:$0xff pattern:$0x75643120] }
  0x14   :  { %v83_v14 = vrot.slane %v81_v8, 6  ;;  %v86_v15 = vrot.slane %v84_v9, 7  ;;  %v76_v16 = vrot.slane %v74_v10, 6  ;;  %v79_v17 = vrot.slane %v77_v11, 7  ;;  %169 = vst [vmem:[#allocation1 + $0x10] ss:$2 sm:$0xff] %v3184_v1 }
  0x15   :  { %v3243_v50 = vld.sshfl [vmem:[#allocation1 + $0x20] sm:$0xff pattern:$0x75643120] }
  0x16   :  { %v87_v18 = vor.u32 %v86_v15, %v83_v14  ;;  %v80_v19 = vor.u32 %v79_v17, %v76_v16  ;;  %172 = vst [vmem:[#allocation1 + $0x20] ss:$2 sm:$0xff] %v164_v49 }
  0x18   :  { %111 = vrot.lane.b32.xlu1 %v87_v18, %s3146_s16  ;;  %109 = vrot.lane.b32.xlu0 %v80_v19, %s3146_s16  ;;  %v377_v19 = vld [vmem:[%s5242_s0 + $0x10] sm:$0xf] }
  0x19   :  { %v173_v20 = vld.sshfl [vmem:[#allocation1] sm:$0xff pattern:$0x75643120]  ;;  %v175_v21 = vld.sshfl [vmem:[#allocation1 + $0x8] sm:$0xff pattern:$0x75643120] }
  0x1a   :  { %v183_v22 = vrot.slane %v173_v20, 5  ;;  %283 = vst [vmem:[#allocation1] ss:$2 sm:$0xff] %v3179_v0  ;;  %v184_v26 = vrot.slane %v175_v21, 5 }
  0x1b   :  { %v3207_v23 = vld.sshfl [vmem:[#allocation1 + $0x10] sm:$0xff pattern:$0x75643120]  ;;  %v3209_v24 = vld.sshfl [vmem:[#allocation1 + $0x18] sm:$0xff pattern:$0x75643120] }
  0x1c   :  { %193 = vrot.lane.b32.xlu2 %v183_v22, %s3147_s17  ;;  %v188_v25 = vrot.slane %v183_v22, 4  ;;  %v185_v27 = vrot.slane %v3207_v23, 5  ;;  %286 = vst [vmem:[#allocation1 + $0x10] ss:$2 sm:$0xff] %v3184_v1  ;;  %v189_v30 = vrot.slane %v184_v26, 4 }
  0x1d   :  { %v3253_v62 = vld.sshfl [vmem:[#allocation1 + $0x20] sm:$0xff pattern:$0x75643120] }
  0x1e   :  { %v190_v29 = vrot.slane %v185_v27, 4  ;;  %289 = vst [vmem:[#allocation1 + $0x20] ss:$2 sm:$0xff] %v281_v63 }
  0x20   :  { %203 = vrot.lane.b32.xlu1 %v188_v25, %s3147_s17  ;;  %195 = vrot.lane.b32.xlu0 %v184_v26, %s3147_s17 }
  0x21   :  { %v290_v31 = vld.sshfl [vmem:[#allocation1] sm:$0xff pattern:$0x75643120]  ;;  %v291_v32 = vld.sshfl [vmem:[#allocation1 + $0x8] sm:$0xff pattern:$0x75643120] }
  0x22   :  { %v295_v33 = vshrl.u32 %v290_v31, 16  ;;  %v298_v34 = vshll.u32 %v290_v31, 16  ;;  %v301_v35 = vshrl.u32 %v291_v32, 16  ;;  %v304_v36 = vshll.u32 %v291_v32, 16  ;;  %380 = vst [vmem:[#allocation1 + $0x1] ss:$2 sm:$0xff] %v3179_v0 }
  0x23   :  { %v3222_v37 = vld.sshfl [vmem:[#allocation1 + $0x10] sm:$0xff pattern:$0x75643120]  ;;  %v3224_v38 = vld.sshfl [vmem:[#allocation1 + $0x18] sm:$0xff pattern:$0x75643120] }
  0x24   :  { %207 = vrot.lane.b32.xlu2 %v190_v29, %s3147_s17  ;;  %v297_v39 = vrot.slane %v295_v33, 7  ;;  %v303_v40 = vrot.slane %v301_v35, 7  ;;  %383 = vst [vmem:[#allocation1 + $0x11] ss:$2 sm:$0xff] %v3184_v1 }
  0x25   :  { %v3263_v18 = vld.sshfl [vmem:[#allocation1 + $0x20] sm:$0xff pattern:$0x75643120] }
  0x26   :  { %v306_v43 = vor.u32 %v304_v36, %v303_v40  ;;  %v300_v44 = vor.u32 %v298_v34, %v297_v39  ;;  %386 = vst [vmem:[#allocation1 + $0x21] ss:$2 sm:$0xff] %v377_v19  ;;  %v451_v36 = vld [vmem:[%s5242_s0 + $0x10] sm:$0xf] }
  0x28   :  { %205 = vrot.lane.b32.xlu1 %v189_v30, %s3147_s17  ;;  %327 = vrot.lane.b32.xlu0 %v306_v43, %s3148_s22 }
  0x29   :  { %v387_v45 = vld.sshfl [vmem:[#allocation1] sm:$0xff pattern:$0x75643120]  ;;  %v389_v46 = vld.sshfl [vmem:[#allocation1 + $0x8] sm:$0xff pattern:$0x75643120] }
  0x2a   :  { %453 = vst [vmem:[#allocation1] ss:$2 sm:$0xff] %v3179_v0 }
  0x2b   :  { %v391_v47 = vld.sshfl [vmem:[#allocation1 + $0x10] sm:$0xff pattern:$0x75643120]  ;;  %v3236_v48 = vld.sshfl [vmem:[#allocation1 + $0x18] sm:$0xff pattern:$0x75643120] }
  0x2c   :  { %325 = vrot.lane.b32.xlu2 %v300_v44, %s3148_s22  ;;  %456 = vst [vmem:[#allocation1 + $0x10] ss:$2 sm:$0xff] %v3184_v1 }
  0x30   :  { %401 = vrot.lane.b32.xlu0 %v391_v47, %s3149_s25 }
  0x31   :  { %v460_v51 = vld.sshfl [vmem:[#allocation1] sm:$0xff pattern:$0x75643120]  ;;  %v461_v52 = vld.sshfl [vmem:[#allocation1 + $0x8] sm:$0xff pattern:$0x75643120] }
  0x32   :  { %v465_v53 = vshll.u32 %v460_v51, 16  ;;  %v468_v54 = vshll.u32 %v461_v52, 16  ;;  %595 = vst [vmem:[#allocation1] ss:$2 sm:$0xff] %v3179_v0  ;;  %v480_v55 = vshrl.u32 %v460_v51, 16  ;;  %v485_v61 = vshrl.u32 %v461_v52, 16 }
  0x33   :  { %v3247_v56 = vld.sshfl [vmem:[#allocation1 + $0x10] sm:$0xff pattern:$0x75643120]  ;;  %v3249_v57 = vld.sshfl [vmem:[#allocation1 + $0x18] sm:$0xff pattern:$0x75643120] }
  0x34   :  { %397 = vrot.lane.b32.xlu2 %v387_v45, %s3149_s25  ;;  %v467_v58 = vrot.slane %v465_v53, 5  ;;  %v470_v59 = vrot.slane %v468_v54, 5  ;;  %v482_v60 = vrot.slane %v480_v55, 4  ;;  %598 = vst [vmem:[#allocation1 + $0x10] ss:$2 sm:$0xff] %v3184_v1  ;;  %v487_v8 = vrot.slane %v485_v61, 4 }
  0x35   :  { %v593_v54 = vld [vmem:[%s5242_s0 + $0x10] sm:$0xf]  ;;  %v490_v61 = vshrl.u32 %v3247_v56, 16 }
  0x36   :  { %v3124_v6 = vpack.i.bf16 %v470_v59, %v467_v58  ;;  %v483_v7 = vor.u32 %v482_v60, %v467_v58  ;;  %v488_v17 = vor.u32 %v487_v8, %v470_v59  ;;  %v471_v60 = vshll.u32 %v3247_v56, 16 }
  0x38   :  { %3125 = vrot.lane.b32.xlu1 %v3124_v6, %s3150_s28  ;;  %v484_v16 = vrot.slane %v483_v7, 4  ;;  %v489_v20 = vrot.slane %v488_v17, 4  ;;  %v186_v7 = vrot.slane %v3209_v24, 5  ;;  %v473_v56 = vrot.slane %v471_v60, 5 }
  0x39   :  { %v602_v9 = vld.sshfl [vmem:[#allocation1] sm:$0xff pattern:$0x75643120]  ;;  %v604_v10 = vld.sshfl [vmem:[#allocation1 + $0x8] sm:$0xff pattern:$0x75643120] }
  0x3a   :  { %v612_v11 = vrot.slane %v602_v9, 7  ;;  %671 = vst [vmem:[#allocation1] ss:$2 sm:$0xff] %v3179_v0  ;;  %v613_v21 = vrot.slane %v604_v10, 7  ;;  %v191_v17 = vrot.slane %v186_v7, 4  ;;  %v98_v60 = vshll.u32 %v3201_v13, 16 }
  0x3b   :  { %v606_v14 = vld.sshfl [vmem:[#allocation1 + $0x10] sm:$0xff pattern:$0x75643120]  ;;  %v608_v15 = vld.sshfl [vmem:[#allocation1 + $0x18] sm:$0xff pattern:$0x75643120] }
  0x3c   :  { %399 = vrot.lane.b32.xlu2 %v389_v46, %s3149_s25  ;;  %617 = vrot.lane.b32.xlu0 %v612_v11, %s3151_s29  ;;  %674 = vst [vmem:[#allocation1 + $0x10] ss:$2 sm:$0xff] %v3184_v1  ;;  %v614_v26 = vrot.slane %v606_v14, 7  ;;  %v615_v47 = vrot.slane %v608_v15, 7  ;;  %v492_v11 = vrot.slane %v490_v61, 4  ;;  %v307_v15 = vshrl.u32 %v3222_v37, 16 }
  0x3d   :  { %v669_v14 = vld [vmem:[%s5242_s0 + $0x10] sm:$0xf]  ;;  %v495_v61 = vshrl.u32 %v3249_v57, 16 }
  0x40   :  { %515 = vrot.lane.b32.xlu1 %v484_v16, %s3150_s28 }
  0x41   :  { %v678_v22 = vld.sshfl [vmem:[#allocation1] sm:$0xff pattern:$0x75643120]  ;;  %v679_v25 = vld.sshfl [vmem:[#allocation1 + $0x8] sm:$0xff pattern:$0x75643120] }
  0x42   :  { %v683_v28 = vshrl.u32 %v678_v22, 16  ;;  %v686_v29 = vshll.u32 %v678_v22, 16  ;;  %772 = vst [vmem:[#allocation1] ss:$2 sm:$0xff] %v3179_v0  ;;  %v690_v52 = vshrl.u32 %v679_v25, 16  ;;  %v693_v53 = vshll.u32 %v679_v25, 16 }
  0x43   :  { %v680_v30 = vld.sshfl [vmem:[#allocation1 + $0x10] sm:$0xff pattern:$0x75643120]  ;;  %v3270_v31 = vld.sshfl [vmem:[#allocation1 + $0x18] sm:$0xff pattern:$0x75643120] }
  0x44   :  { %517 = vrot.lane.b32.xlu2 %v489_v20, %s3150_s28  ;;  %619 = vrot.lane.b32.xlu0 %v613_v21, %s3151_s29  ;;  %v697_v32 = vshrl.u32 %v680_v30, 16  ;;  %v700_v33 = vshll.u32 %v680_v30, 16  ;;  %v685_v34 = vrot.slane %v683_v28, 5  ;;  %v688_v35 = vrot.slane %v686_v29, 6  ;;  %775 = vst [vmem:[#allocation1 + $0x10] ss:$2 sm:$0xff] %v3184_v1 }
  0x45   :  { %v3278_v0 = vld.sshfl [vmem:[#allocation1 + $0x20] sm:$0xff pattern:$0x75643120]  ;;  %v692_v58 = vrot.slane %v690_v52, 5  ;;  %v695_v59 = vrot.slane %v693_v53, 6  ;;  %v309_v21 = vrot.slane %v307_v15, 7 }
  0x46   :  { %v699_v39 = vrot.slane %v697_v32, 5  ;;  %v702_v40 = vrot.slane %v700_v33, 6  ;;  %459 = vst [vmem:[#allocation1 + $0x20] ss:$2 sm:$0xff] %v451_v36  ;;  %v689_v44 = vor.u32 %v688_v35, %v685_v34  ;;  %v3289_v1 = vld [vmem:[%s5242_s0 + $0x1c] sm:$0xff]  ;;  %v88_v22 = vshrl.u32 %v3199_v12, 16 }
  0x47   :  { %v696_v10 = vor.u32 %v695_v59, %v692_v58  ;;  %v91_v25 = vshll.u32 %v3199_v12, 16  ;;  %v310_v30 = vshll.u32 %v3222_v37, 16  ;;  %v770_v32 = vld [vmem:[%s5242_s0 + $0x10] sm:$0xf]  ;;  %v474_v12 = vshll.u32 %v3249_v57, 16 }
  0x48   :  { %621 = vrot.lane.b32.xlu1 %v614_v26, %s3151_s29  ;;  %v703_v43 = vor.u32 %v702_v40, %v699_v39  ;;  %v90_v34 = vrot.slane %v88_v22, 6  ;;  %v43_v52 = vld [vmem:[#allocation2] sm:$0x33]  ;;  %v95_v59 = vshrl.u32 %v3201_v13, 16  ;;  %v497_v15 = vrot.slane %v495_v61, 4 }
  0x49   :  { %v779_v45 = vld.sshfl [vmem:[#allocation1] sm:$0xff pattern:$0x75643120]  ;;  %v781_v46 = vld.sshfl [vmem:[#allocation1 + $0x8] sm:$0xff pattern:$0x75643120]  ;;  %v312_v36 = vor.u32 %v310_v30, %v309_v21 }
  0x4a   :  { %839 = vst [vmem:[#allocation1] ss:$2 sm:$0xff] %v3283_v41  ;;  %v93_v35 = vrot.slane %v91_v25, 7  ;;  %v476_v40 = vrot.slane %v474_v12, 5  ;;  %v2776_v13 = vld [vmem:[%s5242_s0 + $0x24] sm:$0xf] }
  0x4b   :  { %v3292_v49 = vld.sshfl [vmem:[#allocation1 + $0x10] sm:$0xff pattern:$0x75643120]  ;;  %v3294_v51 = vld.sshfl [vmem:[#allocation1 + $0x18] sm:$0xff pattern:$0x75643120] }
  0x4c   :  { %722 = vrot.lane.b32.xlu2 %v703_v43, %s3152_s11  ;;  %718 = vrot.lane.b32.xlu0 %v689_v44, %s3152_s11  ;;  %842 = vst [vmem:[#allocation1 + $0x10] ss:$2 sm:$0xff] %v3289_v1  ;;  %v94_v43 = vor.u32 %v93_v35, %v90_v34  ;;  %v704_v44 = vshrl.u32 %v3270_v31, 16  ;;  %v3129_v53 = vpack.i.bf16 %v476_v40, %v473_v56  ;;  %v313_v21 = vshrl.u32 %v3224_v38, 16  ;;  %v2779_v30 = vld [vmem:[%s5242_s0 + $0x24] sm:$0xf] }
  0x4d   :  { %v3302_v55 = vld.sshfl [vmem:[#allocation1 + $0x20] sm:$0xff pattern:$0x75643120] }
  0x4e   :  { %601 = vst [vmem:[#allocation1 + $0x20] ss:$2 sm:$0xff] %v593_v54  ;;  %v706_v54 = vrot.slane %v704_v44, 5  ;;  %v315_v25 = vrot.slane %v313_v21, 7 }
  0x50   :  { %623 = vrot.lane.b32.xlu1 %v615_v47, %s3151_s29  ;;  %v4692_v47 = vld [vmem:[%s5243_s1] sm:$0xff] }
  0x51   :  { %v3307_v63 = vld.sshfl [vmem:[#allocation1] sm:$0xff pattern:$0x75643120]  ;;  %v3309_v6 = vld.sshfl [vmem:[#allocation1 + $0x8] sm:$0xff pattern:$0x75643120] }
  0x52   :  { %5306 = vst [vmem:[#allocation3_spill] sm:$0xff] %v3307_v63 }
  0x53   :  { %5307 = vst [vmem:[#allocation4_spill] sm:$0xff] %v3309_v6  ;;  %v3313_v8 = vld.sshfl [vmem:[#allocation1 + $0x10] sm:$0xff pattern:$0x75643120] }
  0x54   :  { %875 = vst [vmem:[#allocation1] ss:$2 sm:$0xff] %v3283_v41  ;;  %v3315_v9 = vld.sshfl [vmem:[#allocation1 + $0x18] sm:$0xff pattern:$0x75643120]  ;;  %789 = vrot.lane.b32.xlu2 %v779_v45, %s3153_s14  ;;  %403 = vrot.lane.b32.xlu0 %v3236_v48, %s3149_s25  ;;  %v493_v48 = vor.u32 %v492_v11, %v473_v56  ;;  %v707_v45 = vshll.u32 %v3270_v31, 16 }
  0x55   :  { %5308 = vst [vmem:[#allocation5_spill] sm:$0xff] %v3313_v8  ;;  %v3325_v16 = vld.sshfl [vmem:[#allocation1 + $0x20] sm:$0xff pattern:$0x75643120]  ;;  %v97_v11 = vrot.slane %v95_v59, 6 }
  0x56   :  { %5309 = vst [vmem:[#allocation6_spill] sm:$0xff] %v3315_v9  ;;  %v494_v29 = vrot.slane %v493_v48, 4  ;;  %v709_v58 = vrot.slane %v707_v45, 6  ;;  %v498_v48 = vor.u32 %v497_v15, %v476_v40  ;;  %v616_v23 = vrot.slane %v3325_v16, 7 }
  0x57   :  { %878 = vst [vmem:[#allocation1 + $0x10] ss:$2 sm:$0xff] %v3289_v1  ;;  %v5256_v40 = vrot.slane %v3253_v62, 5  ;;  %v5317_v15 = vmov 0 }
  0x58   :  { %677 = vst [vmem:[#allocation1 + $0x20] ss:$2 sm:$0xff] %v669_v14  ;;  %720 = vrot.lane.b32.xlu1 %v696_v10, %s3152_s11  ;;  %v44_v10 = vsel %vm3375_vm6, %v3188_v2, %v43_v52  ;;  %v710_v56 = vor.u32 %v709_v58, %v706_v54  ;;  %v100_v14 = vrot.slane %v98_v60, 7  ;;  %v499_v22 = vrot.slane %v498_v48, 4 }
  0x59   :  { %45 = vst [vmem:[#allocation2] sm:$0x33] %v44_v10  ;;  %v5318_v15 = vsel %vm3465_vm11, 4294967295, %v5317_v15 }
  0x5a   :  { %5319 = vst [vmem:[#allocation10_spill] sm:$0xff] %v5318_v15  ;;  %v46_v15 = vld [vmem:[#allocation2 + $0x8] sm:$0x33] }
  0x5b   :  { %v3330_v19 = vld.sshfl [vmem:[#allocation1] sm:$0xff pattern:$0x75643120]  ;;  %v3332_v20 = vld.sshfl [vmem:[#allocation1 + $0x8] sm:$0xff pattern:$0x75643120] }
  0x5c   :  { %970 = vst [vmem:[#allocation1] ss:$2 sm:$0xff] %v3283_v41  ;;  %209 = vrot.lane.b32.xlu2 %v191_v17, %s3147_s17  ;;  %791 = vrot.lane.b32.xlu0 %v781_v46, %s3153_s14  ;;  %v2773_v46 = vld [vmem:[%s5242_s0 + $0x24] sm:$0x3]  ;;  %v887_v6 = vshrl.u32 %v3330_v19, 16 }
  0x5e   :  { %v3337_v26 = vld.sshfl [vmem:[#allocation1 + $0x10] sm:$0xff pattern:$0x75643120]  ;;  %v3339_v28 = vld.sshfl [vmem:[#allocation1 + $0x18] sm:$0xff pattern:$0x75643120] }
  0x5f   :  { %973 = vst [vmem:[#allocation1 + $0x10] ss:$2 sm:$0xff] %v3289_v1  ;;  %v3349_v33 = vld.sshfl [vmem:[#allocation1 + $0x20] sm:$0xff pattern:$0x75643120] }
  0x60   :  { %778 = vst [vmem:[#allocation1 + $0x20] ss:$2 sm:$0xff] %v770_v32  ;;  %519 = vrot.lane.b32.xlu1 %v494_v29, %s3150_s28  ;;  %v316_v29 = vshll.u32 %v3224_v38, 16  ;;  %v477_v38 = vshll.u32 %v3302_v55, 16  ;;  %v711_v59 = vshrl.u32 %v3349_v33, 16  ;;  %v714_v60 = vshll.u32 %v3349_v33, 16 }
  0x62   :  { %v3428_v16 = vrot.slane %v477_v38, 5  ;;  %v713_v33 = vrot.slane %v711_v59, 5 }
  0x63   :  { %v3352_v39 = vld.sshfl [vmem:[#allocation1] sm:$0xff pattern:$0x75643120]  ;;  %v3354_v37 = vld.sshfl [vmem:[#allocation1 + $0x8] sm:$0xff pattern:$0x75643120] }
  0x64   :  { %1079 = vst [vmem:[#allocation1] ss:$2 sm:$0xff] %v3283_v41  ;;  %329 = vrot.lane.b32.xlu2 %v312_v36, %s3148_s22  ;;  %793 = vrot.lane.b32.xlu0 %v3292_v49, %s3153_s14  ;;  %v500_v36 = vshrl.u32 %v3302_v55, 16  ;;  %v192_v55 = vrot.slane %v5256_v40, 4  ;;  %v5254_v52 = vrot.slane %v3354_v37, 5 }
  0x66   :  { %v502_v44 = vrot.slane %v500_v36, 4  ;;  %v993_v24 = vrot.slane %v5254_v52, 4  ;;  %v3455_v10 = vld.sshfl [vmem:[#allocation1 + $0x10] sm:$0xff pattern:$0x75643120] }
  0x67   :  { %v3370_v31 = vld.sshfl [vmem:[#allocation1 + $0x20] sm:$0xff pattern:$0x75643120] }
  0x68   :  { %845 = vst [vmem:[#allocation1 + $0x20] ss:$2 sm:$0xff] %v2773_v46  ;;  %113 = vrot.lane.b32.xlu1 %v94_v43, %s3146_s16  ;;  %v2782_v43 = vld [vmem:[%s5242_s0 + $0x24] sm:$0xf]  ;;  %v503_v58 = vor.u32 %v502_v44, %v3428_v16  ;;  %v5255_v44 = vrot.slane %v3352_v39, 5 }
  0x6b   :  { %v3392_v17 = vld.sshfl [vmem:[#allocation1] sm:$0xff pattern:$0x75643120]  ;;  %v3396_v2 = vld.sshfl [vmem:[#allocation1 + $0x8] sm:$0xff pattern:$0x75643120] }
  0x6c   :  { %795 = vrot.lane.b32.xlu2 %v3294_v51, %s3153_s14  ;;  %3130 = vrot.lane.b32.xlu0 %v3129_v53, %s3150_s28  ;;  %v101_v51 = vor.u32 %v100_v14, %v97_v11  ;;  %1170 = vst [vmem:[#allocation1 + $0x1] ss:$2 sm:$0xff] %v3283_v41  ;;  %v716_v11 = vrot.slane %v714_v60, 6  ;;  %v105_v14 = vshll.u32 %v3243_v50, 16 }
  0x6f   :  { %v3394_v57 = vld.sshfl [vmem:[#allocation1 + $0x20] sm:$0xff pattern:$0x75643120] }
  0x70   :  { %5314 = vst [vmem:[#allocation7_spill] sm:$0xff] %v3394_v57  ;;  %724 = vrot.lane.b32.xlu1 %v710_v56, %s3152_s11  ;;  %v3457_v56 = vld.sshfl [vmem:[#allocation1 + $0x18] sm:$0xff pattern:$0x75643120] }
  0x71   :  { %881 = vst [vmem:[#allocation1 + $0x20] ss:$2 sm:$0xff] %v2776_v13 }
  0x72   :  { %1082 = vst [vmem:[#allocation1 + $0x10] ss:$2 sm:$0xff] %v3289_v1 }
  0x73   :  { %v3413_v34 = vld.sshfl [vmem:[#allocation1] sm:$0xff pattern:$0x75643120]  ;;  %v3417_v35 = vld.sshfl [vmem:[#allocation1 + $0x8] sm:$0xff pattern:$0x75643120] }
  0x74   :  { %115 = vrot.lane.b32.xlu2 %v101_v51, %s3146_s16  ;;  %197 = vrot.lane.b32.xlu0 %v185_v27, %s3147_s17  ;;  %v318_v27 = vor.u32 %v316_v29, %v315_v25  ;;  %1235 = vst [vmem:[#allocation1] ss:$2 sm:$0xff] %v3283_v41  ;;  %v147_v25 = vld [vmem:[#allocation2] sm:$0x66]  ;;  %v717_v29 = vor.u32 %v716_v11, %v713_v33 }
  0x76   :  { %v3409_v32 = vpop.permute.xlu2 %193 }
  0x77   :  { %v213_v38 = vrot.slane %v3409_v32, 4 }
  0x78   :  { %v3411_v12 = vld.sshfl [vmem:[#allocation1 + $0x20] sm:$0xff pattern:$0x75643120]  ;;  %521 = vrot.lane.b32.xlu1 %v499_v22, %s3150_s28 }
  0x79   :  { %5315 = vst [vmem:[#allocation8_spill] sm:$0xff] %v3411_v12  ;;  %v3496_v59 = vld.sshfl [vmem:[#allocation1 + $0x18] sm:$0xff pattern:$0x75643120] }
  0x7a   :  { %976 = vst [vmem:[#allocation1 + $0x20] ss:$2 sm:$0xff] %v2779_v30 }
  0x7b   :  { %v3440_v53 = vld.sshfl [vmem:[#allocation1] sm:$0xff pattern:$0x75643120]  ;;  %v3442_v54 = vld.sshfl [vmem:[#allocation1 + $0x8] sm:$0xff pattern:$0x75643120] }
  0x7c   :  { %625 = vrot.lane.b32.xlu2 %v616_v23, %s3151_s29  ;;  %331 = vrot.lane.b32.xlu0 %v318_v27, %s3148_s22  ;;  %1369 = vst [vmem:[#allocation1] ss:$2 sm:$0xff] %v3283_v41  ;;  %v107_v23 = vrot.slane %v105_v14, 7  ;;  %v5323_v14 = vmov 0 }
  0x7d   :  { %5322 = vst [vmem:[#allocation11_spill] sm:$0xff] %v3496_v59  ;;  %v5324_v14 = vsel %vm3507_vm12, 4294967295, %v5323_v14  ;;  %v49_v59 = vld [vmem:[#allocation2 + $0x10] sm:$0x33] }
  0x7e   :  { %v3430_v45 = vpop.permute.xlu2 %207  ;;  %5325 = vst [vmem:[#allocation12_spill] sm:$0xff] %v5324_v14  ;;  %v1097_v14 = vshrl.u32 %v3396_v2, 16 }
  0x80   :  { %199 = vrot.lane.b32.xlu1 %v186_v7, %s3147_s17  ;;  %v504_v7 = vrot.slane %v503_v58, 4  ;;  %v3494_v58 = vld.sshfl [vmem:[#allocation1 + $0x10] sm:$0xff pattern:$0x75643120] }
  0x81   :  { %v3432_v46 = vld.sshfl [vmem:[#allocation1 + $0x20] sm:$0xff pattern:$0x75643120]  ;;  %1173 = vst [vmem:[#allocation1 + $0x11] ss:$2 sm:$0xff] %v3289_v1 }
  0x82   :  { %5316 = vst [vmem:[#allocation9_spill] sm:$0xff] %v3432_v46 }
  0x83   :  { %1085 = vst [vmem:[#allocation1 + $0x20] ss:$2 sm:$0xff] %v2782_v43  ;;  %v3469_v13 = vld.sshfl [vmem:[#allocation1] sm:$0xff pattern:$0x75643120] }
  0x84   :  { %797 = vrot.lane.b32.xlu2 %v3370_v31, %s3153_s14  ;;  %211 = vrot.lane.b32.xlu0 %v192_v55, %s3147_s17  ;;  %v102_v31 = vshrl.u32 %v3243_v50, 16  ;;  %v3471_v51 = vld.sshfl [vmem:[#allocation1 + $0x8] sm:$0xff pattern:$0x75643120] }
  0x85   :  { %1439 = vst [vmem:[#allocation1] ss:$2 sm:$0xff] %v3283_v41 }
  0x86   :  { %v3453_v61 = vpop.permute.xlu2 %325  ;;  %v104_v30 = vrot.slane %v102_v31, 6 }
  0x88   :  { %405 = vrot.lane.b32.xlu1 %v3278_v0, %s3149_s25  ;;  %v108_v60 = vor.u32 %v107_v23, %v104_v30  ;;  %v5326_v30 = vmov 0  ;;  %v3553_v57 = vld.sshfl [vmem:[#allocation1 + $0x10] sm:$0xff pattern:$0x75643120] }
  0x8a   :  { %v3475_v48 = vpop.permute.xlu1 %111  ;;  %v110_v50 = vpop.permute.xlu0 %109 }
  0x8b   :  { %v5253_v21 = vrot.slane %v3475_v48, 4  ;;  %v119_v0 = vrot.slane %v110_v50, 4 }
  0x8c   :  { %1009 = vrot.lane.b32.xlu2 %v993_v24, %s3147_s17  ;;  %523 = vrot.lane.b32.xlu0 %v504_v7, %s3150_s28  ;;  %v3499_v24 = vld.sshfl [vmem:[#allocation1 + $0x8] sm:$0xff pattern:$0x75643120]  ;;  %v1446_v7 = vld.sshfl [vmem:[#allocation1] sm:$0xff pattern:$0x75643120] }
  0x8d   :  { %v125_v27 = vsel %vm5260_vm13, %v119_v0, %v5253_v21  ;;  %1534 = vst [vmem:[#allocation1] ss:$2 sm:$0xff] %v3283_v41  ;;  %v992_v41 = vrot.slane %v5255_v44, 4  ;;  %v264_v21 = vld [vmem:[#allocation2 + $0x48] sm:$0x11] }
  0x8e   :  { %v127_v36 = vsel %vm5246_vm14, %v110_v50, %v125_v27  ;;  %v398_v43 = vpop.permute.xlu2 %397  ;;  %vm432_vm14 = vmand %vm5250_vm5, %vm431_vm8  ;;  %vm5259_vm8 = vcmask 744448   ;;  %v434_v27 = vld [vmem:[#allocation2 + $0x48] sm:$0xcc] }
  0x8f   :  { %v148_v55 = vsel %vm3480_vm15, %v127_v36, %v147_v25  ;;  %v407_v50 = vrot.slane %v398_v43, 4  ;;  %vm3528_vm5 = vmor %vm432_vm14, %vm3507_vm12  ;;  %v1387_v36 = vrot.slane %v3471_v51, 7  ;;  %v322_v51 = vshll.u32 %v3263_v18, 16 }
  0x90   :  { %149 = vst [vmem:[#allocation2] sm:$0x66] %v148_v55  ;;  %726 = vrot.lane.b32.xlu1 %v717_v29, %s3152_s11  ;;  %v5327_v30 = vsel %vm3528_vm5, 4294967295, %v5326_v30  ;;  %v1451_v55 = vshrl.u32 %v1446_v7, 16  ;;  %vm262_vm14 = vmand %vm260_vm9, %vm261_vm7  ;;  %vm355_vm9 = vsmask.f32 7938 }
  0x91   :  { %vm3557_vm7 = vmor %vm262_vm14, %vm3534_vm2  ;;  %vm5337_vm14 = vcmask 1045508   ;;  %vm5288_vm12 = vcmask 457728  }
  0x92   :  { %v204_v33 = vpop.permute.xlu1 %203  ;;  %v3501_v11 = vpop.permute.xlu0 %195  ;;  %vm3588_vm1 = vmand %vm36_vm0, %vm355_vm9  ;;  %vm5341_vm9 = vcmask 744448  }
  0x93   :  { %v5252_v31 = vrot.slane %v3501_v11, 4 }
  0x94   :  { %117 = vrot.lane.b32.xlu2 %v108_v60, %s3146_s16  ;;  %1187 = vrot.lane.b32.xlu0 %v3413_v34, %s3149_s25  ;;  %v319_v34 = vshrl.u32 %v3263_v18, 16  ;;  %v1454_v60 = vshll.u32 %v1446_v7, 16  ;;  %v1453_v18 = vrot.slane %v1451_v55, 5 }
  0x95   :  { %v223_v0 = vsel %vm5260_vm13, %v213_v38, %v5252_v31  ;;  %v1386_v38 = vrot.slane %v3469_v13, 7 }
  0x96   :  { %v225_v25 = vsel %vm5258_vm10, %v3409_v32, %v223_v0  ;;  %v3523_v29 = vpop.permute.xlu2 %399  ;;  %v5328_v32 = vmov 0  ;;  %v321_v13 = vrot.slane %v319_v34, 7  ;;  %v1247_v0 = vshll.u32 %v3440_v53, 16 }
  0x97   :  { %252 = vst [vmem:[#allocation2] sm:$0x88] %v225_v25  ;;  %v5257_v23 = vrot.slane %v3523_v29, 4  ;;  %v5329_v32 = vsel %vm3534_vm2, 4294967295, %v5328_v32  ;;  %v218_v25 = vrot.slane %v204_v33, 4 }
  0x98   :  { %1007 = vrot.lane.b32.xlu1 %v992_v41, %s3147_s17  ;;  %5330 = vst [vmem:[#allocation13_spill] sm:$0xff] %v5329_v32 }
  0x99   :  { %v412_v31 = vsel %vm5260_vm13, %v407_v50, %v5257_v23  ;;  %v1456_v50 = vrot.slane %v1454_v60, 6  ;;  %v3579_v60 = vrot.slane %v1247_v0, 5 }
  0x9a   :  { %v414_v41 = vsel %vm5259_vm8, %v398_v43, %v412_v31  ;;  %v206_v52 = vpop.permute.xlu1 %205  ;;  %v3547_v44 = vpop.permute.xlu0 %327  ;;  %v5331_v43 = vmov 0  ;;  %v267_v31 = vld [vmem:[#allocation2 + $0x50] sm:$0x11]  ;;  %vm5262_vm8 = vcmask 752640  }
  0x9b   :  { %v435_v7 = vsel %vm3528_vm5, %v414_v41, %v434_v27  ;;  %v219_v40 = vrot.slane %v206_v52, 4  ;;  %v5332_v43 = vsel %vm3557_vm7, 4294967295, %v5331_v43  ;;  %v5333_v27 = vrot.slane %v3430_v45, 4 }
  0x9c   :  { %436 = vst [vmem:[#allocation2 + $0x48] sm:$0xcc] %v435_v7  ;;  %1391 = vrot.lane.b32.xlu2 %v1386_v38, %s3151_s29  ;;  %1393 = vrot.lane.b32.xlu0 %v1387_v36, %s3151_s29  ;;  %v3567_v7 = vld.sshfl [vmem:[#allocation1 + $0x18] sm:$0xff pattern:$0x75643120]  ;;  %v324_v38 = vor.u32 %v322_v51, %v321_v13  ;;  %v335_v36 = vrot.slane %v3453_v61, 4 }
  0x9d   :  { %v233_v34 = vsel %vm5260_vm13, %v218_v25, %v219_v40  ;;  %v235_v41 = vsel %vm5260_vm13, %v219_v40, %v5333_v27  ;;  %1238 = vst [vmem:[#allocation1 + $0x10] ss:$2 sm:$0xff] %v3289_v1  ;;  %v1458_v25 = vshrl.u32 %v3499_v24, 16  ;;  %v1461_v13 = vshll.u32 %v3499_v24, 16  ;;  %v437_v51 = vld [vmem:[#allocation2 + $0x50] sm:$0xcc] }
  0x9e   :  { %v234_v23 = vsel %vm5258_vm10, %v204_v33, %v233_v34  ;;  %v236_v9 = vsel %vm5258_vm10, %v206_v52, %v235_v41  ;;  %v3571_v8 = vpop.permute.xlu2 %517  ;;  %v5264_v33 = vrot.slane %v3547_v44, 4  ;;  %v1457_v52 = vor.u32 %v1456_v50, %v1453_v18  ;;  %vm358_vm10 = vmand %vm5337_vm14, %vm357_vm3 }
  0x9f   :  { %v265_v55 = vsel %vm3557_vm7, %v234_v23, %v264_v21  ;;  %v268_v40 = vsel %vm3557_vm7, %v236_v9, %v267_v31  ;;  %v5334_v21 = vmov 0  ;;  %v3134_v23 = vpack.i.bf16 %v3579_v60, %v3428_v16  ;;  %vm3608_vm0 = vmor %vm358_vm10, %vm3588_vm1 }
  0xa0   :  { %266 = vst [vmem:[#allocation2 + $0x48] sm:$0x11] %v265_v55  ;;  %1189 = vrot.lane.b32.xlu1 %v3417_v35, %s3149_s25  ;;  %v5335_v21 = vsel %vm3588_vm1, 4294967295, %v5334_v21  ;;  %v1250_v24 = vshll.u32 %v3442_v54, 16  ;;  %v340_v0 = vsel %vm5260_vm13, %v335_v36, %v5264_v33  ;;  %v1460_v31 = vrot.slane %v1458_v25, 5 }
  0xa1   :  { %269 = vst [vmem:[#allocation2 + $0x50] sm:$0x11] %v268_v40  ;;  %v1463_v18 = vrot.slane %v1461_v13, 6  ;;  %v1267_v50 = vshrl.u32 %v3442_v54, 16  ;;  %v5340_v16 = vrot.slane %v3523_v29, 4  ;;  %vm564_vm3 = vcmask 1043459  }
  0xa2   :  { %5336 = vst [vmem:[#allocation14_spill] sm:$0xff] %v5335_v21  ;;  %v3594_v9 = vpop.permute.xlu0 %401  ;;  %vm565_vm10 = vsmask.f32 7950  ;;  %vm567_vm14 = vcmask 1047559   ;;  %v342_v40 = vsel %vm5262_vm8, %v3453_v61, %v340_v0  ;;  %v1262_v25 = vshrl.u32 %v3440_v53, 16 }
  0xa3   :  { %v5261_v35 = vrot.slane %v3594_v9, 4  ;;  %v5342_v61 = vmov 0  ;;  %v5278_v21 = vrot.slane %v3571_v8, 4 }
  0xa4   :  { %1486 = vrot.lane.b32.xlu2 %v1457_v52, %s3152_s11  ;;  %333 = vrot.lane.b32.xlu0 %v324_v38, %s3148_s22  ;;  %v3617_v41 = vld.sshfl [vmem:[#allocation1 + $0x10] sm:$0xff pattern:$0x75643120]  ;;  %v3619_v38 = vld.sshfl [vmem:[#allocation1 + $0x18] sm:$0xff pattern:$0x75643120] }
  0xa5   :  { %v415_v27 = vsel %vm5260_vm13, %v5340_v16, %v5261_v35  ;;  %1372 = vst [vmem:[#allocation1 + $0x10] ss:$2 sm:$0xff] %v3289_v1  ;;  %vm568_vm13 = vsmask.f32 7966  ;;  %v3634_v16 = vrot.slane %v1250_v24, 5 }
  0xa6   :  { %v3621_v36 = vpop.permute.xlu2 %722  ;;  %v416_v54 = vsel %vm5341_vm9, %v3523_v29, %v415_v27  ;;  %v1464_v29 = vor.u32 %v1463_v18, %v1460_v31  ;;  %v1269_v27 = vrot.slane %v1267_v50, 4  ;;  %v1543_v35 = vld.sshfl [vmem:[#allocation1 + $0x8] sm:$0xff pattern:$0x75643120]  ;;  %vm3638_vm9 = vmand %vm564_vm3, %vm565_vm10  ;;  %vm5270_vm3 = vcmask 736256  }
  0xa7   :  { %v360_v55 = vld [vmem:[#allocation2 + $0x48] sm:$0x33]  ;;  %v438_v52 = vsel %vm3528_vm5, %v416_v54, %v437_v51  ;;  %v5343_v61 = vsel %vm3638_vm9, 4294967295, %v5342_v61  ;;  %vm569_vm8 = vmand %vm567_vm14, %vm568_vm13  ;;  %v1264_v51 = vrot.slane %v1262_v25, 4  ;;  %vm5347_vm10 = vcmask 1043456  }
  0xa8   :  { %v361_v13 = vsel %vm3608_vm0, %v342_v40, %v360_v55  ;;  %439 = vst [vmem:[#allocation2 + $0x50] sm:$0xcc] %v438_v52  ;;  %3135 = vrot.lane.b32.xlu1 %v3134_v23, %s3150_s28  ;;  %v1541_v24 = vld.sshfl [vmem:[#allocation1] sm:$0xff pattern:$0x75643120]  ;;  %v1270_v31 = vor.u32 %v1269_v27, %v3634_v16  ;;  %vm3658_vm13 = vmor %vm569_vm8, %vm3638_vm9  ;;  %v1091_v27 = vshrl.u32 %v3392_v17, 16 }
  0xa9   :  { %362 = vst [vmem:[#allocation2 + $0x48] sm:$0x33] %v361_v13  ;;  %vm647_vm8 = vsmask.f32 2304  ;;  %vm649_vm14 = vsmask.f32 6400 }
  0xaa   :  { %5344 = vst [vmem:[#allocation15_spill] sm:$0xff] %v5343_v61  ;;  %v3642_v0 = vpop.permute.xlu1 %3125  ;;  %v1271_v33 = vrot.slane %v1270_v31, 4  ;;  %v890_v61 = vshll.u32 %v3330_v19, 16  ;;  %v1093_v12 = vrot.slane %v1091_v27, 7  ;;  %v5351_v19 = vrot.slane %v3253_v62, 5 }
  0xab   :  { %v5263_v53 = vunpack.i.h.bf16 %v3642_v0  ;;  %v3127_v23 = vunpack.i.l.bf16 %v3642_v0  ;;  %vm5352_vm9 = vcmask 1046533   ;;  %v270_v27 = vld [vmem:[#allocation2 + $0x58] sm:$0x11]  ;;  %v652_v62 = vld [vmem:[#allocation2 + $0x90] sm:$0x66] }
  0xac   :  { %1553 = vrot.lane.b32.xlu2 %v1543_v35, %s3153_s14  ;;  %1488 = vrot.lane.b32.xlu0 %v1464_v29, %s3152_s11  ;;  %v3654_v54 = vld.sshfl [vmem:[#allocation1 + $0x10] sm:$0xff pattern:$0x75643120]  ;;  %v3664_v25 = vld.sshfl [vmem:[#allocation1 + $0x18] sm:$0xff pattern:$0x75643120]  ;;  %v1265_v29 = vor.u32 %v1264_v51, %v3579_v60  ;;  %vm650_vm1 = vmand %vm5352_vm9, %vm649_vm14 }
  0xad   :  { %v3652_v18 = vrot.slane %v5263_v53, 4  ;;  %v525_v50 = vrot.slane %v3127_v23, 4  ;;  %v571_v35 = vld [vmem:[#allocation2 + $0x48] sm:$0x88]  ;;  %1442 = vst [vmem:[#allocation1 + $0x10] ss:$2 sm:$0xff] %v3289_v1 }
  0xae   :  { %v3662_v40 = vpop.permute.xlu2 %789  ;;  %v618_v52 = vpop.permute.xlu0 %617  ;;  %v1266_v63 = vrot.slane %v1265_v29, 4  ;;  %v892_v31 = vrot.slane %v890_v61, 7 }
  0xaf   :  { %v535_v13 = vsel %vm5347_vm10, %v525_v50, %v3652_v18  ;;  %vm5348_vm10 = vcmask 1042433   ;;  %v627_v61 = vrot.slane %v618_v52, 4 }
  0xb0   :  { %v537_v53 = vsel %vm5270_vm3, %v3127_v23, %v535_v13  ;;  %1551 = vrot.lane.b32.xlu1 %v1541_v24, %s3153_s14  ;;  %v1094_v23 = vshll.u32 %v3392_v17, 16  ;;  %vm3680_vm3 = vmand %vm5348_vm10, %vm647_vm8  ;;  %v5349_v24 = vmov 0  ;;  %v897_v13 = vshll.u32 %v3332_v20, 16 }
  0xb1   :  { %v572_v50 = vsel %vm3658_vm13, %v537_v53, %v571_v35  ;;  %v5350_v24 = vsel %vm3680_vm3, 4294967295, %v5349_v24  ;;  %v889_v53 = vrot.slane %v887_v6, 6  ;;  %v894_v35 = vshrl.u32 %v3332_v20, 16  ;;  %vm3702_vm9 = vmor %vm650_vm1, %vm3680_vm3 }
  0xb2   :  { %573 = vst [vmem:[#allocation2 + $0x48] sm:$0x88] %v572_v50  ;;  %v516_v60 = vpop.permute.xlu1 %515  ;;  %vm5353_vm8 = vcmask 1043456   ;;  %vm5354_vm10 = vcmask 736256   ;;  %v1096_v46 = vor.u32 %v1094_v23, %v1093_v12  ;;  %vm5360_vm1 = vcmask 1031168  }
  0xb3   :  { %v530_v51 = vrot.slane %v516_v60, 4  ;;  %vm5359_vm14 = vmmov %vm5353_vm8 }
  0xb4   :  { %1299 = vrot.lane.b32.xlu2 %v1271_v33, %s3150_s28  ;;  %201 = vrot.lane.b32.xlu0 %v5351_v19, %s3147_s17  ;;  %v3697_v6 = vld.sshfl [vmem:[#allocation1 + $0x18] sm:$0xff pattern:$0x75643120]  ;;  %v3708_v32 = vld.sshfl [vmem:[#allocation1 + $0x10] sm:$0xff pattern:$0x75643120] }
  0xb5   :  { %v545_v17 = vsel %vm5353_vm8, %v530_v51, %v5278_v21  ;;  %v899_v21 = vrot.slane %v897_v13, 7  ;;  %1537 = vst [vmem:[#allocation1 + $0x10] ss:$2 sm:$0xff] %v3289_v1  ;;  %v1100_v1 = vshll.u32 %v3396_v2, 16 }
  0xb6   :  { %v546_v29 = vsel %vm5354_vm10, %v516_v60, %v545_v17  ;;  %v3695_v33 = vpop.permute.xlu2 %209  ;;  %v620_v50 = vpop.permute.xlu0 %619  ;;  %v893_v60 = vor.u32 %v892_v31, %v889_v53  ;;  %v896_v17 = vrot.slane %v894_v35, 6  ;;  %vm5361_vm10 = vmmov %vm5353_vm8 }
  0xb7   :  { %5355 = vst [vmem:[#allocation16_spill] sm:$0xff] %v3695_v33  ;;  %v5301_v20 = vrot.slane %v3695_v33, 4  ;;  %v628_v19 = vrot.slane %v620_v50, 4 }
  0xb8   :  { %586 = vst [vmem:[#allocation2 + $0x90] sm:$0x11] %v546_v29  ;;  %1297 = vrot.lane.b32.xlu1 %v1266_v63, %s3150_s28  ;;  %v5358_v29 = vrot.slane %v3430_v45, 4 }
  0xb9   :  { %v632_v23 = vsel %vm5353_vm8, %v627_v61, %v628_v19  ;;  %v47_v61 = vsel %vm3375_vm6, %v3190_v3, %v46_v15 }
  0xba   :  { %v237_v12 = vsel %vm5359_vm14, %v5358_v29, %v5301_v20  ;;  %v634_v53 = vsel %vm5288_vm12, %v618_v52, %v632_v23  ;;  %v622_v31 = vpop.permute.xlu1 %621  ;;  %v655_v29 = vld [vmem:[#allocation2 + $0x98] sm:$0x66]  ;;  %v1099_v52 = vrot.slane %v1097_v14, 7  ;;  %48 = vst [vmem:[#allocation2 + $0x8] sm:$0x33] %v47_v61  ;;  %vm5363_vm14 = vmmov %vm5353_vm8  ;;  %vm5364_vm8 = vcmask 752640  }
  0xbb   :  { %v238_v63 = vsel %vm5360_vm1, %v3430_v45, %v237_v12  ;;  %v653_v13 = vsel %vm3702_vm9, %v634_v53, %v652_v62  ;;  %v629_v33 = vrot.slane %v622_v31, 4  ;;  %v900_v45 = vor.u32 %v899_v21, %v896_v17  ;;  %v658_v23 = vld [vmem:[#allocation2 + $0xa0] sm:$0x66]  ;;  %vm5366_vm1 = vmmov %vm5361_vm10 }
  0xbc   :  { %v271_v35 = vsel %vm3557_vm7, %v238_v63, %v270_v27  ;;  %1121 = vrot.lane.b32.xlu2 %v1096_v46, %s3148_s22  ;;  %922 = vrot.lane.b32.xlu0 %v893_v60, %s3146_s16  ;;  %v50_v27 = vsel %vm3375_vm6, %v3193_v4, %v49_v59  ;;  %654 = vst [vmem:[#allocation2 + $0x90] sm:$0x66] %v653_v13  ;;  %v5362_v4 = vrot.slane %v3547_v44, 4  ;;  %v5365_v63 = vrot.slane %v3352_v39, 5 }
  0xbd   :  { %272 = vst [vmem:[#allocation2 + $0x58] sm:$0x11] %v271_v35  ;;  %v635_v62 = vsel %vm5361_vm10, %v628_v19, %v629_v33  ;;  %v1102_v2 = vor.u32 %v1100_v1, %v1099_v52  ;;  %v5302_v53 = vrot.slane %v3455_v10, 5  ;;  %vm748_vm10 = vsmask.f32 7946 }
  0xbe   :  { %v636_v12 = vsel %vm5288_vm12, %v620_v50, %v635_v62  ;;  %v3735_v3 = vpop.permute.xlu2 %329  ;;  %v719_v15 = vpop.permute.xlu0 %718  ;;  %51 = vst [vmem:[#allocation2 + $0x10] sm:$0x33] %v50_v27  ;;  %v363_v50 = vld [vmem:[#allocation2 + $0x50] sm:$0x33]  ;;  %v1465_v52 = vshrl.u32 %v3708_v32, 16  ;;  %v1468_v1 = vshll.u32 %v3708_v32, 16 }
  0xbf   :  { %v656_v46 = vsel %vm3702_vm9, %v636_v12, %v655_v29  ;;  %v337_v14 = vrot.slane %v3735_v3, 4  ;;  %v440_v29 = vld [vmem:[#allocation2 + $0x58] sm:$0xcc]  ;;  %v5370_v27 = vrot.slane %v3594_v9, 4  ;;  %vm5372_vm7 = vcmask 1047558  }
  0xc0   :  { %657 = vst [vmem:[#allocation2 + $0x98] sm:$0x66] %v656_v46  ;;  %924 = vrot.lane.b32.xlu1 %v900_v45, %s3146_s16  ;;  %v3787_v12 = vld.sshfl [vmem:[#allocation1 + $0x20] sm:$0xff pattern:$0x75643120] }
  0xc1   :  { %v343_v59 = vsel %vm5363_vm14, %v5362_v4, %v337_v14  ;;  %vm750_vm14 = vsmask.f32 7962  ;;  %v2785_v46 = vld [vmem:[%s5242_s0 + $0x24] sm:$0xf]  ;;  %v150_v20 = vld [vmem:[#allocation2 + $0x8] sm:$0x66] }
  0xc2   :  { %v344_v21 = vsel %vm5364_vm8, %v3547_v44, %v343_v59  ;;  %v3748_v19 = vpop.permute.xlu1 %623  ;;  %vm5367_vm8 = vcmask 1043458   ;;  %vm751_vm2 = vmand %vm5372_vm7, %vm750_vm14  ;;  %v1272_v59 = vshrl.u32 %v3617_v41, 16  ;;  %1176 = vst [vmem:[#allocation1 + $0x21] ss:$2 sm:$0xff] %v2785_v46  ;;  %vm5377_vm14 = vcmask 1043456  }
  0xc3   :  { %v364_v60 = vsel %vm3608_vm0, %v344_v21, %v363_v50  ;;  %v630_v17 = vrot.slane %v3748_v19, 4  ;;  %v728_v21 = vrot.slane %v719_v15, 4  ;;  %v753_v46 = vld [vmem:[#allocation2 + $0x90] sm:$0xcc] }
  0xc4   :  { %365 = vst [vmem:[#allocation2 + $0x50] sm:$0x33] %v364_v60  ;;  %997 = vrot.lane.b32.xlu2 %v5365_v63, %s3147_s17  ;;  %1123 = vrot.lane.b32.xlu0 %v1102_v2, %s3148_s22  ;;  %v730_v2 = vrot.slane %v3621_v36, 4  ;;  %v1467_v63 = vrot.slane %v1465_v52, 5 }
  0xc5   :  { %v637_v44 = vsel %vm5366_vm1, %v629_v33, %v630_v17  ;;  %vm3772_vm1 = vmand %vm5367_vm8, %vm748_vm10  ;;  %v5368_v33 = vmov 0  ;;  %vm5373_vm10 = vcmask 744448   ;;  %vm5296_vm8 = vcmask 441344  }
  0xc6   :  { %v638_v35 = vsel %vm5288_vm12, %v622_v31, %v637_v44  ;;  %v3762_v13 = vpop.permute.xlu2 %795  ;;  %v3764_v61 = vpop.permute.xlu0 %403  ;;  %v5369_v33 = vsel %vm3772_vm1, 4294967295, %v5368_v33  ;;  %v994_v31 = vrot.slane %v5302_v53, 4  ;;  %vm5371_vm12 = vcmask 1043456   ;;  %vm3800_vm7 = vmor %vm751_vm2, %vm3772_vm1 }
  0xc7   :  { %v659_v39 = vsel %vm3702_vm9, %v638_v35, %v658_v23  ;;  %v5293_v45 = vrot.slane %v3764_v61, 4  ;;  %v1470_v44 = vrot.slane %v1468_v1, 6  ;;  %v799_v35 = vrot.slane %v3662_v40, 4  ;;  %vm5378_vm2 = vmmov %vm5377_vm14 }
  0xc8   :  { %660 = vst [vmem:[#allocation2 + $0xa0] sm:$0x66] %v659_v39  ;;  %1289 = vrot.lane.b32.xlu1 %v3634_v16, %s3150_s28  ;;  %v1253_v16 = vshll.u32 %v3617_v41, 16  ;;  %v1388_v41 = vrot.slane %v3654_v54, 7  ;;  %v1274_v1 = vrot.slane %v1272_v59, 4  ;;  %vm5387_vm1 = vcmask 441344  }
  0xc9   :  { %v417_v62 = vsel %vm5371_vm12, %v5370_v27, %v5293_v45  ;;  %vm5295_vm12 = vcmask 449536   ;;  %v55_v59 = vld [vmem:[#allocation2 + $0x20] sm:$0x3]  ;;  %v825_v45 = vld [vmem:[#allocation2 + $0xe8] sm:$0x33] }
  0xca   :  { %v418_v32 = vsel %vm5373_vm10, %v3594_v9, %v417_v62  ;;  %v721_v4 = vpop.permute.xlu1 %720  ;;  %v5376_v9 = vrot.slane %v3354_v37, 5  ;;  %v3814_v27 = vrot.slane %v1253_v16, 5  ;;  %v52_v62 = vld [vmem:[#allocation2 + $0x18] sm:$0x33]  ;;  %vm1882_vm10 = vcmask 1044480  }
  0xcb   :  { %v441_v50 = vsel %vm3528_vm5, %v418_v32, %v440_v29  ;;  %v729_v60 = vrot.slane %v721_v4, 4  ;;  %v756_v32 = vld [vmem:[#allocation2 + $0x98] sm:$0xcc]  ;;  %vm5388_vm5 = vmmov %vm5387_vm1 }
  0xcc   :  { %442 = vst [vmem:[#allocation2 + $0x58] sm:$0xcc] %v441_v50  ;;  %1011 = vrot.lane.b32.xlu2 %v994_v31, %s3147_s17  ;;  %999 = vrot.lane.b32.xlu0 %v5376_v9, %s3147_s17  ;;  %v56_v9 = vsel %vm3366_vm4, %v3231_v42, %v55_v59  ;;  %v1103_v42 = vshrl.u32 %v3494_v58, 16 }
  0xcd   :  { %v733_v39 = vsel %vm5377_vm14, %v728_v21, %v729_v60  ;;  %v736_v29 = vsel %vm5378_vm2, %v729_v60, %v730_v2  ;;  %v53_v21 = vsel %vm3375_vm6, %v3195_v5, %v52_v62  ;;  %v1471_v60 = vor.u32 %v1470_v44, %v1467_v63  ;;  %vm5379_vm14 = vmmov %vm5378_vm2  ;;  %57 = vst [vmem:[#allocation2 + $0x20] sm:$0x3] %v56_v9 }
  0xce   :  { %v735_v31 = vsel %vm5295_vm12, %v719_v15, %v733_v39  ;;  %v737_v37 = vsel %vm5295_vm12, %v721_v4, %v736_v29  ;;  %v3818_v54 = vpop.permute.xlu2 %115  ;;  %v3820_v52 = vpop.permute.xlu0 %791  ;;  %v819_v15 = vld [vmem:[#allocation2 + $0xd8] sm:$0x33]  ;;  %54 = vst [vmem:[#allocation2 + $0x18] sm:$0x33] %v53_v21  ;;  %v5294_v62 = vrot.slane %v3457_v56, 5  ;;  %vm1883_vm2 = vcmask 1045504  }
  0xcf   :  { %v754_v16 = vsel %vm3800_vm7, %v735_v31, %v753_v46  ;;  %v757_v50 = vsel %vm3800_vm7, %v737_v37, %v756_v32  ;;  %v800_v4 = vrot.slane %v3820_v52, 4  ;;  %v1275_v31 = vor.u32 %v1274_v1, %v3814_v27  ;;  %v3845_v37 = vld.sshfl [vmem:[#allocation1 + $0x20] sm:$0xff pattern:$0x75643120]  ;;  %v664_v21 = vld [vmem:[#allocation2 + $0xb0] sm:$0x6] }
  0xd0   :  { %755 = vst [vmem:[#allocation2 + $0x90] sm:$0xcc] %v754_v16  ;;  %1395 = vrot.lane.b32.xlu1 %v1388_v41, %s3151_s29  ;;  %v3154_v44 = vmov 65535   ;;  %v802_v46 = vrot.slane %v3762_v13, 4  ;;  %v5380_v32 = vrot.slane %v3571_v8, 4  ;;  %v995_v59 = vrot.slane %v5294_v62, 4 }
  0xd1   :  { %758 = vst [vmem:[#allocation2 + $0x98] sm:$0xcc] %v757_v50  ;;  %v804_v5 = vsel %vm5379_vm14, %v799_v35, %v800_v4  ;;  %v1884_v35 = vsel %vm1882_vm10, 4294967295, %v3154_v44  ;;  %v2788_v16 = vld [vmem:[%s5242_s0 + $0x24] sm:$0xf]  ;;  %vm5381_vm10 = vcmask 736256  }
  0xd2   :  { %v806_v39 = vsel %vm5296_vm8, %v3662_v40, %v804_v5  ;;  %v3837_v29 = vpop.permute.xlu1 %519  ;;  %v1389_v40 = vrot.slane %v3664_v25, 7  ;;  %v3865_v5 = vsel %vm1883_vm2, %v1884_v35, 0  ;;  %1241 = vst [vmem:[#allocation1 + $0x20] ss:$2 sm:$0xff] %v2788_v16  ;;  %v1105_v44 = vrot.slane %v1103_v42, 7  ;;  %vm5382_vm2 = vmmov %vm5379_vm14 }
  0xd3   :  { %v820_v41 = vsel %vm3375_vm6, %v806_v39, %v819_v15  ;;  %v532_v63 = vrot.slane %v3837_v29, 4  ;;  %v661_v15 = vld [vmem:[#allocation2 + $0xa8] sm:$0x66]  ;;  %v904_v62 = vshll.u32 %v3337_v26, 16  ;;  %vm5385_vm12 = vmmov %vm5382_vm2 }
  0xd4   :  { %821 = vst [vmem:[#allocation2 + $0xd8] sm:$0x33] %v820_v41  ;;  %1490 = vrot.lane.b32.xlu2 %v1471_v60, %s3152_s11  ;;  %1191 = vrot.lane.b32.xlu0 %v3553_v57, %s3149_s25  ;;  %v822_v60 = vld [vmem:[#allocation2 + $0xe0] sm:$0x33]  ;;  %v1276_v41 = vrot.slane %v1275_v31, 4 }
  0xd5   :  { %v547_v1 = vsel %vm5379_vm14, %v5380_v32, %v532_v63  ;;  %v122_v32 = vrot.slane %v3818_v54, 4  ;;  %vm5383_vm14 = vcmask 457728  }
  0xd6   :  { %v548_v50 = vsel %vm5381_vm10, %v3571_v8, %v547_v1  ;;  %v626_v57 = vpop.permute.xlu2 %625  ;;  %v794_v25 = vpop.permute.xlu0 %793  ;;  %v1106_v8 = vshll.u32 %v3494_v58, 16  ;;  %v901_v1 = vshrl.u32 %v3337_v26, 16  ;;  %vm5384_vm10 = vmmov %vm5382_vm2 }
  0xd7   :  { %587 = vst [vmem:[#allocation2 + $0x98] sm:$0x11] %v548_v50  ;;  %v631_v9 = vrot.slane %v626_v57, 4  ;;  %v801_v39 = vrot.slane %v794_v25, 4  ;;  %vm5386_vm8 = vmmov %vm5383_vm14 }
  0xd8   :  { %1397 = vrot.lane.b32.xlu1 %v1389_v40, %s3151_s29  ;;  %v1545_v50 = vld.sshfl [vmem:[#allocation1 + $0x10] sm:$0xff pattern:$0x75643120] }
  0xd9   :  { %v639_v35 = vsel %vm5382_vm2, %v630_v17, %v631_v9  ;;  %v641_v16 = vsel %vm5383_vm14, %v626_v57, %v631_v9  ;;  %v807_v31 = vsel %vm5384_vm10, %v800_v4, %v801_v39  ;;  %v809_v42 = vsel %vm5385_vm12, %v801_v39, %v802_v46  ;;  %v153_v57 = vld [vmem:[#allocation2 + $0x10] sm:$0x66] }
  0xda   :  { %v640_v58 = vsel %vm5386_vm8, %v3748_v19, %v639_v35  ;;  %v665_v40 = vsel %vm3680_vm3, %v641_v16, %v664_v21  ;;  %v808_v26 = vsel %vm5387_vm1, %v3820_v52, %v807_v31  ;;  %v810_v17 = vsel %vm5388_vm5, %v794_v25, %v809_v42  ;;  %v114_v9 = vpop.permute.xlu1 %113  ;;  %v2888_v4 = vld [vmem:[#allocation2 + $0x90] sm:$0xf]  ;;  %v3092_v25 = vld [vmem:[#allocation2 + $0x94] sm:$0xf]  ;;  %vm5390_vm5 = vmmov %vm5382_vm2 }
  0xdb   :  { %v662_v53 = vsel %vm3702_vm9, %v640_v58, %v661_v15  ;;  %666 = vst [vmem:[#allocation2 + $0xb0] sm:$0x6] %v665_v40  ;;  %v823_v39 = vsel %vm3375_vm6, %v808_v26, %v822_v60  ;;  %v826_v19 = vsel %vm3375_vm6, %v810_v17, %v825_v45  ;;  %v121_v21 = vrot.slane %v114_v9, 4  ;;  %v3101_v35 = vld [vmem:[#allocation2 + $0xd4] sm:$0x30]  ;;  %vm5391_vm1 = vmmov %vm5382_vm2 }
  0xdc   :  { %663 = vst [vmem:[#allocation2 + $0xa8] sm:$0x66] %v662_v53  ;;  %1013 = vrot.lane.b32.xlu2 %v995_v59, %s3147_s17  ;;  %1555 = vrot.lane.b32.xlu0 %v1545_v50, %s3153_s14  ;;  %v2889_v52 = vor.u32 %v3101_v35, %v2888_v4  ;;  %v2890_v16 = vld [vmem:[#allocation2 + $0xd8] sm:$0x30]  ;;  %v5389_v15 = vrot.slane %v3475_v48, 4  ;;  %vm5392_vm12 = vcmask 1039360   ;;  %v1108_v17 = vor.u32 %v1106_v8, %v1105_v44  ;;  %vm5394_vm2 = vmmov %vm5391_vm1 }
  0xdd   :  { %824 = vst [vmem:[#allocation2 + $0xe0] sm:$0x33] %v823_v39  ;;  %v130_v60 = vsel %vm5391_vm1, %v121_v21, %v122_v32  ;;  %v2893_v45 = vor.u32 %v3092_v25, %v2890_v16  ;;  %v3083_v42 = vld [vmem:[#allocation2 + $0x44] sm:$0xf0]  ;;  %vm5393_vm8 = vmmov %vm5392_vm12  ;;  %v831_v50 = vld [vmem:[#allocation2 + $0xf8] sm:$0x3] }
  0xde   :  { %v128_v31 = vsel %vm5390_vm5, %v5389_v15, %v121_v21  ;;  %827 = vst [vmem:[#allocation2 + $0xe8] sm:$0x33] %v826_v19  ;;  %v131_v59 = vsel %vm5393_vm8, %v114_v9, %v130_v60  ;;  %v798_v58 = vpop.permute.xlu2 %797  ;;  %v3904_v40 = vpop.permute.xlu0 %3130  ;;  %v1887_v26 = vand.u32 %v2889_v52, %v3865_v5  ;;  %v2816_v4 = vld [vmem:[#allocation2] sm:$0xf]  ;;  %v2818_v39 = vld [vmem:[#allocation2 + $0x48] sm:$0xf0]  ;;  %vm5397_vm5 = vmmov %vm5391_vm1 }
  0xdf   :  { %v129_v53 = vsel %vm5392_vm12, %v3475_v48, %v128_v31  ;;  %v154_v19 = vsel %vm3480_vm15, %v131_v59, %v153_v57  ;;  %v803_v35 = vrot.slane %v798_v58, 4  ;;  %v3133_v48 = vunpack.i.h.bf16 %v3904_v40  ;;  %v3912_v25 = vld.sshfl [vmem:[#allocation1 + $0x20] sm:$0xff pattern:$0x75643120]  ;;  %v828_v52 = vld [vmem:[#allocation2 + $0xf0] sm:$0x33] }
  0xe0   :  { %v151_v21 = vsel %vm3480_vm15, %v129_v53, %v150_v20  ;;  %v2791_v9 = vld [vmem:[%s5242_s0 + $0x24] sm:$0xf]  ;;  %v3132_v44 = vunpack.i.l.bf16 %v3904_v40  ;;  %1301 = vrot.lane.b32.xlu1 %v1276_v41, %s3150_s28  ;;  %1946 = vmatpush.bf16.msra.mxu0 %v1887_v26  ;;  %v1890_v20 = vand.u32 %v2893_v45, %v3865_v5  ;;  %v903_v8 = vrot.slane %v901_v1, 6  ;;  %155 = vst [vmem:[#allocation2 + $0x10] sm:$0x66] %v154_v19  ;;  %v1641_v40 = vld [vmem:[%s5244_s2 + $0x10] sm:$0xff] }
  0xe1   :  { %152 = vst [vmem:[#allocation2 + $0x8] sm:$0x66] %v151_v21  ;;  %v906_v57 = vrot.slane %v904_v62, 7  ;;  %v811_v16 = vsel %vm5394_vm2, %v802_v46, %v803_v35  ;;  %vm5395_vm14 = vcmask 441344   ;;  %v3926_v31 = vrot.slane %v3133_v48, 4  ;;  %3110 = vmatpush.bf16.msra.mxu2 %v1887_v26 }
  0xe2   :  { %v813_v15 = vsel %vm5395_vm14, %v798_v58, %v803_v35  ;;  %v2817_v60 = vor.u32 %v3083_v42, %v2816_v4  ;;  %vm5396_vm10 = vmmov %vm5395_vm14  ;;  %v527_v62 = vrot.slane %v3132_v44, 4  ;;  %1975 = vmatpush.bf16.msra.mxu1 %v1890_v20  ;;  %3112 = vmatpush.bf16.msra.mxu3 %v1890_v20  ;;  %v3932_v45 = vpop.permute.xlu1 %724  ;;  %v3074_v46 = vld [vmem:[#allocation2 + $0x4] sm:$0xf]  ;;  %v1472_v53 = vshrl.u32 %v3697_v6, 16  ;;  %1375 = vst [vmem:[#allocation1 + $0x20] ss:$2 sm:$0xff] %v2791_v9 }
  0xe3   :  { %v812_v41 = vsel %vm5396_vm10, %v3762_v13, %v811_v16  ;;  %v832_v1 = vsel %vm3366_vm4, %v813_v15, %v831_v50  ;;  %v574_v42 = vld [vmem:[#allocation2 + $0x50] sm:$0x88]  ;;  %v731_v58 = vrot.slane %v3932_v45, 4  ;;  %v2821_v13 = vor.u32 %v3074_v46, %v2818_v39  ;;  %v3941_v50 = vld [vmem:[%s5243_s1 + $0x10] sm:$0xff]  ;;  %v3954_v35 = vld [vmem:[%s5243_s1] sm:$0xff] }
  0xe4   :  { %v829_v59 = vsel %vm3375_vm6, %v812_v41, %v828_v52  ;;  %833 = vst [vmem:[#allocation2 + $0xf8] sm:$0x3] %v832_v1  ;;  %v1475_v26 = vshll.u32 %v3697_v6, 16  ;;  %v538_v4 = vsel %vm5397_vm5, %v3652_v18, %v527_v62  ;;  %v540_v21 = vsel %vm5391_vm1, %v527_v62, %v3926_v31  ;;  %1125 = vrot.lane.b32.xlu2 %v1108_v17, %s3148_s22  ;;  %v3102_v19 = vld [vmem:[#allocation2 + $0xdc] sm:$0x30]  ;;  %vm5401_vm14 = vmmov %vm5391_vm1 }
  0xe5   :  { %830 = vst [vmem:[#allocation2 + $0xf0] sm:$0x33] %v829_v59  ;;  %1193 = vrot.lane.b32.xlu0 %v3567_v7, %s3149_s25  ;;  %vm5303_vm12 = vcmask 220160   ;;  %v907_v39 = vor.u32 %v906_v57, %v903_v8  ;;  %v577_v6 = vld [vmem:[#allocation2 + $0x58] sm:$0x88]  ;;  %v5398_v9 = vunpack.i.h.bf16 %v3642_v0  ;;  %vm5399_vm8 = vcmask 736256   ;;  %1947 = vmatpush.bf16.msra.mxu0 %v2817_v60  ;;  %vm5404_vm5 = vmmov %vm5391_vm1 }
  0xe6   :  { %vm5400_vm2 = vmmov %vm5399_vm8  ;;  %v759_v20 = vld [vmem:[#allocation2 + $0xa0] sm:$0xcc]  ;;  %v738_v7 = vsel %vm5401_vm14, %v730_v2, %v731_v58  ;;  %3111 = vmatpush.bf16.msra.mxu2 %v2817_v60  ;;  %v2898_v17 = vld [vmem:[#allocation2 + $0xe0] sm:$0x30]  ;;  %vm5402_vm10 = vcmask 449536   ;;  %1976 = vmatpush.bf16.msra.mxu1 %v2821_v13  ;;  %v3973_v16 = vpop.permute.xlu0 %197  ;;  %v1474_v41 = vrot.slane %v1472_v53, 5 }
  0xe7   :  { %v539_v18 = vsel %vm5399_vm8, %v5398_v9, %v538_v4  ;;  %v541_v52 = vsel %vm5400_vm2, %v3132_v44, %v540_v21  ;;  %v739_v57 = vsel %vm5402_vm10, %v3621_v36, %v738_v7  ;;  %3113 = vmatpush.bf16.msra.mxu3 %v2821_v13  ;;  %v3971_v44 = vpop.permute.xlu2 %1009  ;;  %v2896_v15 = vld [vmem:[#allocation2 + $0x98] sm:$0xf]  ;;  %v3093_v2 = vld [vmem:[#allocation2 + $0x9c] sm:$0xf]  ;;  %v215_v1 = vrot.slane %v3973_v16, 4  ;;  %vm5406_vm8 = vmmov %vm5404_vm5 }
  0xe8   :  { %v575_v8 = vsel %vm3658_vm13, %v539_v18, %v574_v42  ;;  %v578_v0 = vsel %vm3658_vm13, %v541_v52, %v577_v6  ;;  %v760_v60 = vsel %vm3800_vm7, %v739_v57, %v759_v20  ;;  %v2897_v62 = vor.u32 %v3102_v19, %v2896_v15  ;;  %v2794_v36 = vld [vmem:[%s5242_s0 + $0x24] sm:$0xf]  ;;  %926 = vrot.lane.b32.xlu1 %v907_v39, %s3146_s16  ;;  %v1547_v18 = vld.sshfl [vmem:[#allocation1 + $0x18] sm:$0xff pattern:$0x75643120]  ;;  %vm5408_vm14 = vmmov %vm5404_vm5 }
  0xe9   :  { %576 = vst [vmem:[#allocation2 + $0x50] sm:$0x88] %v575_v8  ;;  %v1477_v46 = vrot.slane %v1475_v26, 6  ;;  %2960 = vmatmul.msk.bf16.vlgmr.msra.gmra.mxu2 %vm5303_vm12, %v3941_v50  ;;  %v2901_v59 = vor.u32 %v3093_v2, %v2898_v17  ;;  %v908_v53 = vshrl.u32 %v3339_v28, 16  ;;  %v1256_v42 = vshll.u32 %v3619_v38, 16  ;;  %2958 = vmatmul.msk.bf16.vlgmr.msra.gmra.mxu0 %vm5303_vm12, %v3954_v35 }
  0xea   :  { %579 = vst [vmem:[#allocation2 + $0x58] sm:$0x88] %v578_v0  ;;  %v1277_v13 = vshrl.u32 %v3619_v38, 16  ;;  %v5403_v26 = vrot.slane %v3501_v11, 4  ;;  %v1893_v21 = vand.u32 %v2897_v62, %v3865_v5  ;;  %v911_v19 = vshll.u32 %v3339_v28, 16  ;;  %2964 = vmatmul.msk.bf16.vlgmr.msra.gmra.mxu3 %vm5303_vm12, %v3941_v50  ;;  %v4003_v9 = vpop.permute.xlu1 %521  ;;  %2962 = vmatmul.msk.bf16.vlgmr.msra.gmra.mxu1 %vm5303_vm12, %v3954_v35  ;;  %v5407_v62 = vld [vmem:[#allocation11_spill] sm:$0xff] }
  0xeb   :  { %761 = vst [vmem:[#allocation2 + $0xa0] sm:$0xcc] %v760_v60  ;;  %v3994_v6 = vld.sshfl [vmem:[#allocation1 + $0x20] sm:$0xff pattern:$0x75643120]  ;;  %vm5405_vm1 = vcmask 1031168   ;;  %v1896_v39 = vand.u32 %v2901_v59, %v3865_v5  ;;  %v1478_v52 = vor.u32 %v1477_v46, %v1474_v41 }
  0xec   :  { %v226_v4 = vsel %vm5404_vm5, %v5403_v26, %v215_v1  ;;  %1445 = vst [vmem:[#allocation1 + $0x20] ss:$2 sm:$0xff] %v2794_v36  ;;  %2004 = vmatpush.bf16.msrb.mxu2 %v1893_v21  ;;  %v533_v28 = vrot.slane %v4003_v9, 4  ;;  %v4010_v20 = vrot.slane %v1256_v42, 5  ;;  %1557 = vrot.lane.b32.xlu2 %v1547_v18, %s3153_s14  ;;  %v910_v17 = vrot.slane %v908_v53, 6  ;;  %v5411_v26 = vld [vmem:[#allocation10_spill] sm:$0xff] }
  0xed   :  { %v227_v38 = vsel %vm5405_vm1, %v3501_v11, %v226_v4  ;;  %2033 = vmatpush.bf16.msrb.mxu3 %v1896_v39  ;;  %1291 = vrot.lane.b32.xlu0 %v3814_v27, %s3150_s28  ;;  %v1279_v11 = vrot.slane %v1277_v13, 4  ;;  %v913_v8 = vrot.slane %v911_v19, 7  ;;  %v159_v27 = vld [vmem:[#allocation2 + $0x20] sm:$0x6]  ;;  %v156_v60 = vld [vmem:[#allocation2 + $0x18] sm:$0x66] }
  0xee   :  { %253 = vst [vmem:[#allocation2 + $0x8] sm:$0x88] %v227_v38  ;;  %v549_v7 = vsel %vm5406_vm8, %v532_v63, %v533_v28  ;;  %v4020_v15 = vpop.permute.xlu0 %331  ;;  %v1109_v46 = vshrl.u32 %v5407_v62, 16  ;;  %vm5409_vm10 = vcmask 1039360   ;;  %v366_v59 = vld [vmem:[#allocation2 + $0x58] sm:$0x33] }
  0xef   :  { %v550_v0 = vsel %vm5400_vm2, %v3837_v29, %v549_v7  ;;  %v118_v57 = vpop.permute.xlu2 %117  ;;  %v338_v41 = vrot.slane %v4020_v15, 4  ;;  %v1280_v63 = vor.u32 %v1279_v11, %v4010_v20  ;;  %v914_v42 = vor.u32 %v913_v8, %v910_v17  ;;  %vm5410_vm1 = vmmov %vm5409_vm10 }
  0xf0   :  { %588 = vst [vmem:[#allocation2 + $0xa0] sm:$0x11] %v550_v0  ;;  %v123_v2 = vrot.slane %v118_v57, 4  ;;  %1492 = vrot.lane.b32.xlu1 %v1478_v52, %s3152_s11  ;;  %vm5412_vm8 = vcmask 752640   ;;  %v3084_v38 = vld [vmem:[#allocation2 + $0x4c] sm:$0xf0]  ;;  %vm5414_vm2 = vmmov %vm5404_vm5 }
  0xf1   :  { %v345_v53 = vsel %vm5404_vm5, %v337_v14, %v338_v41  ;;  %v2826_v11 = vld [vmem:[#allocation2 + $0x50] sm:$0xf0]  ;;  %v5413_v7 = vrot.slane %v3455_v10, 5  ;;  %v1281_v8 = vrot.slane %v1280_v63, 4  ;;  %v1111_v0 = vrot.slane %v1109_v46, 7 }
  0xf2   :  { %v132_v36 = vsel %vm5408_vm14, %v122_v32, %v123_v2  ;;  %v134_v29 = vsel %vm5409_vm10, %v118_v57, %v123_v2  ;;  %v346_v21 = vsel %vm5412_vm8, %v3735_v3, %v345_v53  ;;  %v4041_v32 = vpop.permute.xlu1 %199  ;;  %v4051_v3 = vld [vmem:[%s5243_s1 + $0x18] sm:$0xff]  ;;  %v1112_v57 = vshll.u32 %v5407_v62, 16  ;;  %v276_v10 = vld [vmem:[#allocation2 + $0x68] sm:$0x1]  ;;  %v2797_v63 = vld [vmem:[%s5242_s0 + $0x24] sm:$0xf] }
  0xf3   :  { %v133_v13 = vsel %vm5410_vm1, %v3818_v54, %v132_v36  ;;  %v160_v4 = vsel %vm3465_vm11, %v134_v29, %v159_v27  ;;  %v367_v14 = vsel %vm3608_vm0, %v346_v21, %v366_v59  ;;  %v216_v54 = vrot.slane %v4041_v32, 4  ;;  %v4060_v27 = vld [vmem:[%s5243_s1 + $0x8] sm:$0xff]  ;;  %v2906_v53 = vld [vmem:[#allocation2 + $0xe8] sm:$0x30]  ;;  %vm5418_vm10 = vmmov %vm5414_vm2 }
  0xf4   :  { %v157_v18 = vsel %vm3480_vm15, %v133_v13, %v156_v60  ;;  %161 = vst [vmem:[#allocation2 + $0x20] sm:$0x6] %v160_v4  ;;  %928 = vrot.lane.b32.xlu2 %v914_v42, %s3146_s16  ;;  %v3103_v60 = vld [vmem:[#allocation2 + $0xe4] sm:$0x30]  ;;  %vm5415_vm14 = vcmask 1031168   ;;  %vm5438_vm11 = vnez %v5369_v33 }
  0xf5   :  { %v2824_v19 = vld [vmem:[#allocation2 + $0x8] sm:$0xf]  ;;  %v3075_v39 = vld [vmem:[#allocation2 + $0xc] sm:$0xf]  ;;  %158 = vst [vmem:[#allocation2 + $0x18] sm:$0x66] %v157_v18  ;;  %1001 = vrot.lane.b32.xlu0 %v5413_v7, %s3147_s17  ;;  %v228_v2 = vsel %vm5414_vm2, %v215_v1, %v216_v54  ;;  %vm5419_vm5 = vmmov %vm5415_vm14  ;;  %vm5423_vm2 = vnez %v5332_v43 }
  0xf6   :  { %v2825_v52 = vor.u32 %v3084_v38, %v2824_v19  ;;  %v2829_v17 = vor.u32 %v3075_v39, %v2826_v11  ;;  %368 = vst [vmem:[#allocation2 + $0x58] sm:$0x33] %v367_v14  ;;  %v229_v62 = vsel %vm5415_vm14, %v3973_v16, %v228_v2  ;;  %v212_v36 = vpop.permute.xlu0 %211  ;;  %v4075_v42 = vld.sshfl [vmem:[#allocation1 + $0x20] sm:$0xff pattern:$0x75643120]  ;;  %v1114_v16 = vor.u32 %v1112_v57, %v1111_v0  ;;  %v5416_v19 = vld [vmem:[#allocation16_spill] sm:$0xff]  ;;  %vm5420_vm1 = vmmov %vm5419_vm5 }
  0xf7   :  { %v4073_v46 = vpop.permute.xlu2 %1391  ;;  %v2904_v29 = vld [vmem:[#allocation2 + $0xa0] sm:$0xf]  ;;  %v3094_v59 = vld [vmem:[#allocation2 + $0xa4] sm:$0xf]  ;;  %254 = vst [vmem:[#allocation2 + $0x10] sm:$0x88] %v229_v62  ;;  %vm5425_vm14 = vmmov %vm5418_vm10 }
  0xf8   :  { %2005 = vmatpush.bf16.msrb.mxu2 %v2825_v52  ;;  %2034 = vmatpush.bf16.msrb.mxu3 %v2829_v17  ;;  %v222_v1 = vrot.slane %v212_v36, 4  ;;  %v2905_v13 = vor.u32 %v3103_v60, %v2904_v29  ;;  %v2909_v4 = vor.u32 %v3094_v59, %v2906_v53  ;;  %v273_v21 = vld [vmem:[#allocation2 + $0x60] sm:$0x11]  ;;  %1540 = vst [vmem:[#allocation1 + $0x20] ss:$2 sm:$0xff] %v2797_v63  ;;  %v5417_v38 = vrot.slane %v5416_v19, 4 }
  0xf9   :  { %2961 = vmatmul.msk.bf16.gmra.mxu2 %vm5303_vm12, %v4051_v3  ;;  %1303 = vrot.lane.b32.xlu1 %v1281_v8, %s3150_s28  ;;  %v5421_v7 = vld [vmem:[#allocation13_spill] sm:$0xff]  ;;  %v446_v57 = vld [vmem:[#allocation2 + $0x68] sm:$0xc]  ;;  %v443_v60 = vld [vmem:[#allocation2 + $0x60] sm:$0xcc]  ;;  %v1259_v59 = vshll.u32 %v3912_v25, 16 }
  0xfa   :  { %v239_v39 = vsel %vm5418_vm10, %v5417_v38, %v222_v1  ;;  %v241_v18 = vsel %vm5419_vm5, %v212_v36, %v222_v1  ;;  %v1899_v14 = vand.u32 %v2905_v13, %v3865_v5  ;;  %v1902_v52 = vand.u32 %v2909_v4, %v3865_v5  ;;  %2965 = vmatmul.msk.bf16.gmra.mxu3 %vm5303_vm12, %v4051_v3  ;;  %v406_v8 = vpop.permute.xlu1 %405  ;;  %v5429_v13 = vld [vmem:[#allocation12_spill] sm:$0xff] }
  0xfb   :  { %v240_v11 = vsel %vm5420_vm1, %v5416_v19, %v239_v39  ;;  %vm5422_vm8 = vnez %v5421_v7  ;;  %2959 = vmatmul.msk.bf16.gmra.mxu0 %vm5303_vm12, %v4060_v27  ;;  %2963 = vmatmul.msk.bf16.gmra.mxu1 %vm5303_vm12, %v4060_v27  ;;  %v411_v2 = vrot.slane %v406_v8, 4  ;;  %vm5426_vm10 = vcmask 744448  }
  0xfc   :  { %v277_v17 = vsel %vm5422_vm8, %v241_v18, %v276_v10  ;;  %v274_v0 = vsel %vm5423_vm2, %v240_v11, %v273_v21  ;;  %2062 = vmatpush.bf16.msrb.mxu0 %v1899_v14  ;;  %2091 = vmatpush.bf16.msrb.mxu1 %v1902_v52  ;;  %v5424_v10 = vrot.slane %v3764_v61, 4  ;;  %v5427_v36 = vrot.slane %v3457_v56, 5  ;;  %vm5428_vm5 = vmmov %vm5426_vm10  ;;  %v5432_v52 = vld [vmem:[#allocation9_spill] sm:$0xff] }
  0xfd   :  { %278 = vst [vmem:[#allocation2 + $0x68] sm:$0x1] %v277_v17  ;;  %1127 = vrot.lane.b32.xlu0 %v1114_v16, %s3148_s22  ;;  %v421_v62 = vsel %vm5426_vm10, %v406_v8, %v411_v2  ;;  %v3085_v29 = vld [vmem:[#allocation2 + $0x54] sm:$0xf0]  ;;  %v1282_v53 = vshrl.u32 %v3912_v25, 16  ;;  %vm5430_vm1 = vnez %v5429_v13  ;;  %v991_v25 = vrot.slane %v5432_v52, 5 }
  0xfe   :  { %275 = vst [vmem:[#allocation2 + $0x60] sm:$0x11] %v274_v0  ;;  %v419_v63 = vsel %vm5425_vm14, %v5424_v10, %v411_v2  ;;  %1003 = vrot.lane.b32.xlu2 %v5427_v36, %s3147_s17  ;;  %v447_v4 = vsel %vm5430_vm1, %v421_v62, %v446_v57  ;;  %v524_v16 = vpop.permute.xlu0 %523  ;;  %v2832_v19 = vld [vmem:[#allocation2 + $0x10] sm:$0xf]  ;;  %v3076_v38 = vld [vmem:[#allocation2 + $0x14] sm:$0xf]  ;;  %vm5431_vm14 = vnez %v5327_v30 }
  0xff   :  { %v420_v1 = vsel %vm5428_vm5, %v3764_v61, %v419_v63  ;;  %v4112_v21 = vpop.permute.xlu2 %1486  ;;  %448 = vst [vmem:[#allocation2 + $0x68] sm:$0xc] %v447_v4  ;;  %v534_v39 = vrot.slane %v524_v16, 4  ;;  %v2833_v18 = vor.u32 %v3085_v29, %v2832_v19  ;;  %v2834_v14 = vld [vmem:[#allocation2 + $0x58] sm:$0xf0]  ;;  %v3155_v11 = vmov 0  }
 0x100   :  { %v444_v56 = vsel %vm5431_vm14, %v420_v1, %v443_v60  ;;  %3139 = vset.pattern.permute.xlu1 %v3155_v11  ;;  %3141 = vset.pattern.permute.xlu0 %v3155_v11  ;;  %v2837_v61 = vor.u32 %v3076_v38, %v2834_v14  ;;  %v1390_v17 = vrot.slane %v3994_v6, 7  ;;  %v1479_v8 = vshrl.u32 %v4075_v42, 16  ;;  %v765_v36 = vld [vmem:[#allocation2 + $0xb0] sm:$0xc]  ;;  %v5440_v38 = vld [vmem:[#allocation8_spill] sm:$0xff] }
 0x101   :  { %445 = vst [vmem:[#allocation2 + $0x60] sm:$0xcc] %v444_v56  ;;  %1293 = vrot.lane.b32.xlu1 %v4010_v20, %s3150_s28  ;;  %v1482_v0 = vshll.u32 %v4075_v42, 16  ;;  %3140 = vset.pattern.permute.xlu2 %v3155_v11  ;;  %vm5433_vm10 = vcmask 1043456   ;;  %vm5434_vm5 = vcmask 736256   ;;  %v4126_v60 = vrot.slane %v1259_v59, 5 }
 0x102   :  { %v551_v57 = vsel %vm5433_vm10, %v533_v28, %v534_v39  ;;  %v553_v2 = vsel %vm5434_vm5, %v524_v16, %v534_v39  ;;  %2063 = vmatpush.bf16.msrb.mxu0 %v2833_v18  ;;  %v1284_v10 = vrot.slane %v1282_v53, 4  ;;  %vm5435_vm12 = vmmov %vm5434_vm5  ;;  %2092 = vmatpush.bf16.msrb.mxu1 %v2837_v61  ;;  %v727_v6 = vpop.permute.xlu1 %726  ;;  %v996_v42 = vrot.slane %v991_v25, 4  ;;  %v762_v53 = vld [vmem:[#allocation2 + $0xa8] sm:$0xcc] }
 0x103   :  { %v552_v20 = vsel %vm5435_vm12, %v4003_v9, %v551_v57  ;;  %590 = vst [vmem:[#allocation2 + $0xb0] sm:$0x1] %v553_v2  ;;  %v732_v63 = vrot.slane %v727_v6, 4  ;;  %v1481_v28 = vrot.slane %v1479_v8, 5  ;;  %v1484_v62 = vrot.slane %v1482_v0, 6 }
 0x104   :  { %589 = vst [vmem:[#allocation2 + $0xa8] sm:$0x11] %v552_v20  ;;  %vm5436_vm5 = vcmask 449536   ;;  %v1285_v9 = vor.u32 %v1284_v10, %v4126_v60  ;;  %v918_v56 = vshll.u32 %v5440_v38, 16  ;;  %v1023_v14 = vrot.slane %v3971_v44, 4 }
 0x105   :  { %1399 = vrot.lane.b32.xlu0 %v1390_v17, %s3151_s29  ;;  %v740_v29 = vsel %vm5433_vm10, %v731_v58, %v732_v63  ;;  %v742_v59 = vsel %vm5436_vm5, %v727_v6, %v732_v63  ;;  %vm5437_vm12 = vmmov %vm5436_vm5  ;;  %vm5439_vm10 = vcmask 220160   ;;  %v1115_v61 = vshrl.u32 %v3787_v12, 16  ;;  %v1060_v17 = vld [vmem:[#allocation2 + $0x6c] sm:$0x11]  ;;  %v3105_v20 = vld [vmem:[#allocation2 + $0xf4] sm:$0x30] }
 0x106   :  { %1195 = vrot.lane.b32.xlu2 %v3845_v37, %s3149_s25  ;;  %v741_v1 = vsel %vm5437_vm12, %v3932_v45, %v740_v29  ;;  %v766_v4 = vsel %vm5438_vm11, %v742_v59, %v765_v36  ;;  %v4146_v19 = vpop.permute.xlu0 %1187  ;;  %v1485_v37 = vor.u32 %v1484_v62, %v1481_v28  ;;  %v915_v45 = vshrl.u32 %v5440_v38, 16  ;;  %vm5441_vm5 = vmmov %vm5439_vm10  ;;  %v1549_v10 = vld.sshfl [vmem:[#allocation1 + $0x20] sm:$0xff pattern:$0x75643120]  ;;  %v3104_v62 = vld [vmem:[#allocation2 + $0xec] sm:$0x30] }
 0x107   :  { %v4144_v16 = vpop.permute.xlu2 %1553  ;;  %v763_v58 = vsel %vm3800_vm7, %v741_v1, %v762_v53  ;;  %767 = vst [vmem:[#allocation2 + $0xb0] sm:$0xc] %v766_v4  ;;  %v1286_v39 = vrot.slane %v1285_v9, 4  ;;  %vm5442_vm12 = vmmov %vm5441_vm5  ;;  %v920_v0 = vrot.slane %v918_v56, 7  ;;  %v1401_v57 = vrot.slane %v4073_v46, 4 }
 0x108   :  { %764 = vst [vmem:[#allocation2 + $0xa8] sm:$0xcc] %v763_v58  ;;  %vm5443_vm11 = vmmov %vm5441_vm5  ;;  %v917_v8 = vrot.slane %v915_v45, 6  ;;  %v2914_v36 = vld [vmem:[#allocation2 + $0xf0] sm:$0x30]  ;;  %v1117_v4 = vrot.slane %v1115_v61, 7 }
 0x109   :  { %2966 = vmatmul.msk.bf16.vlgmr.msrb.gmra.mxu2 %vm5439_vm10, %v3954_v35  ;;  %1015 = vrot.lane.b32.xlu1 %v996_v42, %s3147_s17  ;;  %vm5444_vm10 = vcmask 1043456   ;;  %v1420_v58 = vld [vmem:[#allocation2 + $0xb4] sm:$0x66]  ;;  %v1118_v56 = vshll.u32 %v3787_v12, 16 }
 0x10a   :  { %2970 = vmatmul.msk.bf16.vlgmr.msrb.gmra.mxu3 %vm5441_vm5, %v3954_v35  ;;  %v1008_v18 = vpop.permute.xlu1 %1007  ;;  %vm5446_vm5 = vmmov %vm5444_vm10 }
 0x10b   :  { %2974 = vmatmul.msk.bf16.vlgmr.msrb.gmra.mxu0 %vm5442_vm12, %v3954_v35  ;;  %2978 = vmatmul.msk.bf16.vlgmr.msrb.gmra.mxu1 %vm5443_vm11, %v3954_v35  ;;  %v1022_v11 = vrot.slane %v1008_v18, 4  ;;  %vm5445_vm11 = vcmask 1031168   ;;  %vm5447_vm12 = vcmask 457728  }
 0x10d   :  { %1494 = vrot.lane.b32.xlu0 %v1485_v37, %s3152_s11  ;;  %v1036_v2 = vsel %vm5444_vm10, %v1022_v11, %v1023_v14  ;;  %v921_v37 = vor.u32 %v920_v0, %v917_v8  ;;  %v856_v11 = vld [vmem:[#allocation2 + $0x24] sm:$0x33]  ;;  %vm5449_vm10 = vmmov %vm5446_vm5 }
 0x10e   :  { %1305 = vrot.lane.b32.xlu2 %v1286_v39, %s3150_s28  ;;  %v1037_v6 = vsel %vm5445_vm11, %v1008_v18, %v1036_v2  ;;  %v4172_v42 = vpop.permute.xlu0 %1393  ;;  %v2920_v28 = vld [vmem:[#allocation2 + $0xb0] sm:$0xf]  ;;  %v5448_v0 = vld [vmem:[#allocation3_spill] sm:$0xff]  ;;  %vm5450_vm11 = vcmask 744448  }
 0x10f   :  { %v4170_v63 = vpop.permute.xlu2 %1299  ;;  %v1061_v29 = vsel %vm5423_vm2, %v1037_v6, %v1060_v17  ;;  %v1402_v59 = vrot.slane %v4172_v42, 4  ;;  %v2921_v9 = vor.u32 %v3105_v20, %v2920_v28  ;;  %v2912_v53 = vld [vmem:[#allocation2 + $0xa8] sm:$0xf]  ;;  %v3095_v1 = vld [vmem:[#allocation2 + $0xac] sm:$0xf]  ;;  %v857_v12 = vsel %vm3375_vm6, %v5448_v0, %v856_v11  ;;  %v1639_v11 = vld [vmem:[%s5244_s2] sm:$0xff] }
 0x110   :  { %1062 = vst [vmem:[#allocation2 + $0x6c] sm:$0x11] %v1061_v29  ;;  %v2913_v38 = vor.u32 %v3104_v62, %v2912_v53  ;;  %v2917_v45 = vor.u32 %v3095_v1, %v2914_v36  ;;  %v1120_v6 = vor.u32 %v1118_v56, %v1117_v4  ;;  %v372_v1 = vld [vmem:[#allocation2 + $0x68] sm:$0x3]  ;;  %v369_v4 = vld [vmem:[#allocation2 + $0x60] sm:$0x33] }
 0x111   :  { %1559 = vrot.lane.b32.xlu1 %v1549_v10, %s3153_s14  ;;  %v1406_v39 = vsel %vm5446_vm5, %v1401_v57, %v1402_v59  ;;  %v1911_v18 = vand.u32 %v2921_v9, %v3865_v5  ;;  %v1197_v10 = vrot.slane %v4146_v19, 4  ;;  %858 = vst [vmem:[#allocation2 + $0x24] sm:$0x33] %v857_v12  ;;  %vm5451_vm5 = vcmask 220160   ;;  %v1640_v56 = vld [vmem:[%s5244_s2 + $0x8] sm:$0xff] }
 0x112   :  { %v1407_v17 = vsel %vm5447_vm12, %v4073_v46, %v1406_v39  ;;  %v4185_v61 = vpop.permute.xlu1 %1189  ;;  %v1905_v2 = vand.u32 %v2913_v38, %v3865_v5  ;;  %v1908_v8 = vand.u32 %v2917_v45, %v3865_v5  ;;  %v1216_v46 = vld [vmem:[#allocation2 + $0x6c] sm:$0xcc]  ;;  %vm5452_vm12 = vmmov %vm5449_vm10  ;;  %v1496_v39 = vrot.slane %v4112_v21, 4 }
 0x113   :  { %v1421_v57 = vsel %vm3702_vm9, %v1407_v17, %v1420_v58  ;;  %v1198_v20 = vrot.slane %v4185_v61, 4  ;;  %2178 = vmatpush.bf16.msra.mxu0 %v1911_v18 }
 0x114   :  { %1422 = vst [vmem:[#allocation2 + $0xb4] sm:$0x66] %v1421_v57  ;;  %2120 = vmatpush.bf16.msra.mxu2 %v1905_v2  ;;  %2149 = vmatpush.bf16.msra.mxu3 %v1908_v8  ;;  %v583_v8 = vld [vmem:[#allocation2 + $0x68] sm:$0x8]  ;;  %v5462_v57 = vld [vmem:[#allocation15_spill] sm:$0xff] }
 0x115   :  { %930 = vrot.lane.b32.xlu0 %v921_v37, %s3146_s16  ;;  %v1202_v28 = vsel %vm5449_vm10, %v1197_v10, %v1198_v20  ;;  %vm5453_vm10 = vcmask 752640   ;;  %v5456_v37 = vld [vmem:[#allocation14_spill] sm:$0xff]  ;;  %v580_v10 = vld [vmem:[#allocation2 + $0x60] sm:$0x88] }
 0x116   :  { %1295 = vrot.lane.b32.xlu2 %v4126_v60, %s3150_s28  ;;  %v1203_v62 = vsel %vm5450_vm11, %v4146_v19, %v1202_v28  ;;  %v334_v29 = vpop.permute.xlu0 %333  ;;  %vm5454_vm11 = vmmov %vm5451_vm5  ;;  %vm5457_vm3 = vnez %v5456_v37 }
 0x117   :  { %v4204_v36 = vpop.permute.xlu2 %1121  ;;  %v1217_v9 = vsel %vm5431_vm14, %v1203_v62, %v1216_v46  ;;  %v339_v53 = vrot.slane %v334_v29, 4  ;;  %vm5455_vm8 = vmmov %vm5453_vm10 }
 0x118   :  { %1218 = vst [vmem:[#allocation2 + $0x6c] sm:$0xcc] %v1217_v9  ;;  %v1643_v9 = vld [vmem:[%s5244_s2 + $0x20] sm:$0xff] }
 0x119   :  { %2967 = vmatmul.msk.bf16.gmra.mxu2 %vm5451_vm5, %v4060_v27  ;;  %1129 = vrot.lane.b32.xlu1 %v1120_v6, %s3148_s22  ;;  %v347_v60 = vsel %vm5452_vm12, %v338_v41, %v339_v53  ;;  %v349_v19 = vsel %vm5453_vm10, %v334_v29, %v339_v53  ;;  %vm5458_vm12 = vmmov %vm5451_vm5  ;;  %vm5460_vm10 = vcmask 736256   ;;  %v1562_v6 = vrot.slane %v4144_v16, 4 }
 0x11a   :  { %2971 = vmatmul.msk.bf16.gmra.mxu3 %vm5454_vm11, %v4060_v27  ;;  %v348_v58 = vsel %vm5455_vm8, %v4020_v15, %v347_v60  ;;  %v373_v38 = vsel %vm5457_vm3, %v349_v19, %v372_v1  ;;  %v4221_v45 = vpop.permute.xlu1 %3135  ;;  %vm5459_vm8 = vcmask 1043456   ;;  %vm5461_vm11 = vmmov %vm5460_vm10  ;;  %v1580_v60 = vld [vmem:[#allocation2 + $0xfc] sm:$0x33] }
 0x11b   :  { %2975 = vmatmul.msk.bf16.gmra.mxu0 %vm5451_vm5, %v4060_v27  ;;  %2979 = vmatmul.msk.bf16.gmra.mxu1 %vm5458_vm12, %v4060_v27  ;;  %v370_v41 = vsel %vm3608_vm0, %v348_v58, %v369_v4  ;;  %374 = vst [vmem:[#allocation2 + $0x68] sm:$0x3] %v373_v38  ;;  %v3137_v15 = vunpack.i.l.bf16 %v4221_v45  ;;  %vm5463_vm5 = vnez %v5462_v57  ;;  %vm5464_vm12 = vmmov %vm5459_vm8 }
 0x11c   :  { %371 = vst [vmem:[#allocation2 + $0x60] sm:$0x33] %v370_v41 }
 0x11d   :  { %1005 = vrot.lane.b32.xlu0 %v991_v25, %s3147_s17  ;;  %v529_v18 = vrot.slane %v3137_v15, 4 }
 0x11e   :  { %1654 = vperm.xlu2 %3140, %v1640_v56   ;;  %v4242_v2 = vpop.permute.xlu0 %1488 }
 0x11f   :  { %v4240_v17 = vpop.permute.xlu2 %997  ;;  %v542_v0 = vsel %vm5459_vm8, %v3926_v31, %v529_v18  ;;  %v544_v12 = vsel %vm5460_vm10, %v3137_v15, %v529_v18  ;;  %v1497_v52 = vrot.slane %v4242_v2, 4  ;;  %vm5465_vm8 = vcmask 449536   ;;  %vm5466_vm10 = vmmov %vm5464_vm12 }
 0x120   :  { %v543_v25 = vsel %vm5461_vm11, %v3133_v48, %v542_v0  ;;  %v584_v46 = vsel %vm5463_vm5, %v544_v12, %v583_v8  ;;  %v1515_v48 = vld [vmem:[#allocation2 + $0xb4] sm:$0xcc]  ;;  %vm5467_vm11 = vcmask 441344   ;;  %v1313_v18 = vrot.slane %v4170_v63, 4 }
 0x121   :  { %1649 = vperm.xlu1 %3139, %v1639_v11   ;;  %v581_v28 = vsel %vm3658_vm13, %v543_v25, %v580_v10  ;;  %585 = vst [vmem:[#allocation2 + $0x68] sm:$0x8] %v584_v46  ;;  %v1501_v31 = vsel %vm5464_vm12, %v1496_v39, %v1497_v52  ;;  %v1063_v39 = vld [vmem:[#allocation2 + $0x74] sm:$0x11]  ;;  %vm5468_vm12 = vcmask 220160  }
 0x122   :  { %582 = vst [vmem:[#allocation2 + $0x60] sm:$0x88] %v581_v28  ;;  %v1502_v62 = vsel %vm5465_vm8, %v4112_v21, %v1501_v31  ;;  %v1552_v29 = vpop.permute.xlu1 %1551  ;;  %v1642_v21 = vld [vmem:[%s5244_s2 + $0x18] sm:$0xff]  ;;  %vm5469_vm8 = vmmov %vm5466_vm10  ;;  %v1644_v28 = vld [vmem:[%s5244_s2 + $0x28] sm:$0xff] }
 0x123   :  { %v1516_v53 = vsel %vm3800_vm7, %v1502_v62, %v1515_v48  ;;  %v1561_v1 = vrot.slane %v1552_v29, 4  ;;  %v1646_v12 = vld [vmem:[%s5244_s2 + $0x38] sm:$0xff] }
 0x124   :  { %1517 = vst [vmem:[#allocation2 + $0xb4] sm:$0xcc] %v1516_v53 }
 0x125   :  { %1659 = vperm.xlu0 %3141, %v1641_v40   ;;  %v1566_v19 = vsel %vm5466_vm10, %v1561_v1, %v1562_v6  ;;  %vm5470_vm10 = vmmov %vm5469_vm8 }
 0x126   :  { %1669 = vperm.xlu2 %3140, %v1643_v9   ;;  %v1567_v4 = vsel %vm5467_vm11, %v1552_v29, %v1566_v19  ;;  %v202_v38 = vpop.permute.xlu0 %201  ;;  %vm5471_vm11 = vcmask 1031168  }
 0x127   :  { %v4276_v58 = vpop.permute.xlu2 %1011  ;;  %v1581_v56 = vsel %vm3375_vm6, %v1567_v4, %v1580_v60  ;;  %v217_v15 = vrot.slane %v202_v38, 4  ;;  %vm5472_vm3 = vmmov %vm5471_vm11 }
 0x128   :  { %v1024_v41 = vrot.slane %v4276_v58, 4  ;;  %1582 = vst [vmem:[#allocation2 + $0xfc] sm:$0x33] %v1581_v56  ;;  %vm5473_vm5 = vmmov %vm5472_vm3  ;;  %v3087_v62 = vld [vmem:[#allocation2 + $0x64] sm:$0xf0] }
 0x129   :  { %2968 = vmatmul.msk.bf16.gmra.mxu2 %vm5468_vm12, %v3941_v50  ;;  %1664 = vperm.xlu1 %3139, %v1642_v21   ;;  %v230_v8 = vsel %vm5470_vm10, %v216_v54, %v217_v15  ;;  %v232_v0 = vsel %vm5471_vm11, %v202_v38, %v217_v15  ;;  %v1645_v54 = vld [vmem:[%s5244_s2 + $0x30] sm:$0xff]  ;;  %v3086_v29 = vld [vmem:[#allocation2 + $0x5c] sm:$0xf0]  ;;  %v2842_v19 = vld [vmem:[#allocation2 + $0x60] sm:$0xf0] }
 0x12a   :  { %v1038_v11 = vsel %vm5469_vm8, %v1023_v14, %v1024_v41  ;;  %2972 = vmatmul.msk.bf16.gmra.mxu3 %vm5468_vm12, %v3941_v50  ;;  %v231_v10 = vsel %vm5473_vm5, %v4041_v32, %v230_v8  ;;  %256 = vst [vmem:[#allocation2 + $0x20] sm:$0x8] %v232_v0  ;;  %v1298_v14 = vpop.permute.xlu1 %1297  ;;  %vm5474_vm8 = vmmov %vm5468_vm12  ;;  %vm5477_vm5 = vcmask 736256   ;;  %v951_v15 = vld [vmem:[#allocation2 + $0x24] sm:$0x66]  ;;  %v3138_v8 = vunpack.i.h.bf16 %v4221_v45 }
 0x12b   :  { %v1039_v25 = vsel %vm5472_vm3, %v3971_v44, %v1038_v11  ;;  %2976 = vmatmul.msk.bf16.gmra.mxu0 %vm5474_vm8, %v3941_v50  ;;  %vm5475_vm10 = vmmov %vm5474_vm8  ;;  %255 = vst [vmem:[#allocation2 + $0x18] sm:$0x88] %v231_v10  ;;  %v1312_v44 = vrot.slane %v1298_v14, 4  ;;  %vm5476_vm3 = vcmask 1043456   ;;  %vm5479_vm12 = vcmask 1039360  }
 0x12c   :  { %2980 = vmatmul.msk.bf16.gmra.mxu1 %vm5475_vm10, %v3941_v50  ;;  %v1064_v46 = vsel %vm5423_vm2, %v1039_v25, %v1063_v39  ;;  %v1131_v39 = vrot.slane %v4204_v36, 4  ;;  %vm5478_vm11 = vmmov %vm5476_vm3 }
 0x12d   :  { %1065 = vst [vmem:[#allocation2 + $0x74] sm:$0x11] %v1064_v46  ;;  %1684 = vperm.xlu0 %3141, %v1646_v12   ;;  %v1326_v32 = vsel %vm5476_vm3, %v1312_v44, %v1313_v18  ;;  %vm5480_vm10 = vmmov %vm5476_vm3 }
 0x12e   :  { %1679 = vperm.xlu2 %3140, %v1645_v54   ;;  %v1327_v31 = vsel %vm5477_vm5, %v1298_v14, %v1326_v32  ;;  %v923_v50 = vpop.permute.xlu0 %922  ;;  %vm5481_vm5 = vmmov %vm5474_vm8 }
 0x12f   :  { %v4318_v40 = vpop.permute.xlu2 %1490  ;;  %1360 = vst [vmem:[#allocation2 + $0xb4] sm:$0x11] %v1327_v31  ;;  %v932_v21 = vrot.slane %v923_v50, 4  ;;  %v2922_v14 = vld [vmem:[#allocation2 + $0xf8] sm:$0x30] }
 0x130   :  { %v3106_v31 = vld [vmem:[#allocation2 + $0xfc] sm:$0x30] }
 0x131   :  { %1674 = vperm.xlu1 %3139, %v1644_v28   ;;  %v2848_v48 = vld [vmem:[#allocation2 + $0x20] sm:$0xf] }
 0x132   :  { %v4320_v9 = vpop.permute.xlu1 %924  ;;  %v2849_v53 = vor.u32 %v3087_v62, %v2848_v48  ;;  %v2840_v1 = vld [vmem:[#allocation2 + $0x18] sm:$0xf]  ;;  %v3077_v60 = vld [vmem:[#allocation2 + $0x1c] sm:$0xf] }
 0x133   :  { %v933_v4 = vrot.slane %v4320_v9, 4  ;;  %v2841_v38 = vor.u32 %v3086_v29, %v2840_v1  ;;  %v2845_v56 = vor.u32 %v3077_v60, %v2842_v19  ;;  %v1066_v48 = vld [vmem:[#allocation2 + $0x7c] sm:$0x11]  ;;  %v1150_v60 = vld [vmem:[#allocation2 + $0x6c] sm:$0x33] }
 0x134   :  { %2179 = vmatpush.bf16.msra.mxu0 %v2849_v53  ;;  %v859_v53 = vld [vmem:[#allocation2 + $0x2c] sm:$0x33] }
 0x135   :  { %v937_v11 = vsel %vm5478_vm11, %v932_v21, %v933_v4  ;;  %2121 = vmatpush.bf16.msra.mxu2 %v2841_v38  ;;  %2150 = vmatpush.bf16.msra.mxu3 %v2845_v56  ;;  %vm5482_vm11 = vcmask 1031168  }
 0x136   :  { %v938_v0 = vsel %vm5479_vm12, %v923_v50, %v937_v11  ;;  %v1124_v25 = vpop.permute.xlu0 %1123  ;;  %v3096_v10 = vld [vmem:[#allocation2 + $0xb4] sm:$0xf]  ;;  %v2928_v54 = vld [vmem:[#allocation2 + $0xb8] sm:$0xf]  ;;  %vm5483_vm12 = vcmask 752640  }
 0x137   :  { %v4329_v12 = vpop.permute.xlu2 %1013  ;;  %v952_v46 = vsel %vm3480_vm15, %v938_v0, %v951_v15  ;;  %v1132_v32 = vrot.slane %v1124_v25, 4  ;;  %v2925_v28 = vor.u32 %v3096_v10, %v2922_v14  ;;  %v2929_v45 = vor.u32 %v3106_v31, %v2928_v54  ;;  %v862_v11 = vld [vmem:[#allocation2 + $0x34] sm:$0x33] }
 0x138   :  { %v1025_v44 = vrot.slane %v4329_v12, 4  ;;  %953 = vst [vmem:[#allocation2 + $0x24] sm:$0x66] %v952_v46  ;;  %v1307_v15 = vrot.slane %v3138_v8, 4  ;;  %v1017_v0 = vrot.slane %v4240_v17, 4  ;;  %v5487_v14 = vld [vmem:[#allocation5_spill] sm:$0xff] }
 0x139   :  { %2969 = vmatmul.msk.bf16.gmra.mxu2 %vm5474_vm8, %v4051_v3  ;;  %v1136_v62 = vsel %vm5476_vm3, %v1131_v39, %v1132_v32  ;;  %v1914_v29 = vand.u32 %v2925_v28, %v3865_v5  ;;  %v1917_v38 = vand.u32 %v2929_v45, %v3865_v5  ;;  %vm5485_vm8 = vmmov %vm5481_vm5  ;;  %v863_v54 = vsel %vm3375_vm6, %v5487_v14, %v862_v11  ;;  %v1345_v28 = vld [vmem:[#allocation2 + $0x6c] sm:$0x88]  ;;  %v1219_v11 = vld [vmem:[#allocation2 + $0x74] sm:$0xcc] }
 0x13a   :  { %v1040_v50 = vsel %vm5480_vm10, %v1024_v41, %v1025_v44  ;;  %2973 = vmatmul.msk.bf16.gmra.mxu3 %vm5481_vm5, %v4051_v3  ;;  %v1137_v19 = vsel %vm5483_vm12, %v4204_v36, %v1136_v62  ;;  %v4349_v21 = vpop.permute.xlu1 %1289  ;;  %v5484_v41 = vld [vmem:[#allocation4_spill] sm:$0xff]  ;;  %vm5486_vm10 = vmmov %vm5481_vm5  ;;  %vm5488_vm5 = vcmask 736256   ;;  %864 = vst [vmem:[#allocation2 + $0x34] sm:$0x33] %v863_v54 }
 0x13b   :  { %v1041_v1 = vsel %vm5482_vm11, %v4276_v58, %v1040_v50  ;;  %v860_v56 = vsel %vm3375_vm6, %v5484_v41, %v859_v53  ;;  %2977 = vmatmul.msk.bf16.gmra.mxu0 %vm5485_vm8, %v4051_v3  ;;  %v1151_v58 = vsel %vm3608_vm0, %v1137_v19, %v1150_v60  ;;  %v1308_v36 = vrot.slane %v4349_v21, 4  ;;  %2207 = vmatpush.bf16.msra.mxu1 %v1914_v29  ;;  %vm5489_vm11 = vmmov %vm5476_vm3  ;;  %v1153_v29 = vld [vmem:[#allocation2 + $0x74] sm:$0x33]  ;;  %v1423_v41 = vld [vmem:[#allocation2 + $0xbc] sm:$0x66] }
 0x13c   :  { %v1067_v39 = vsel %vm5423_vm2, %v1041_v1, %v1066_v48  ;;  %861 = vst [vmem:[#allocation2 + $0x2c] sm:$0x33] %v860_v56  ;;  %2236 = vmatpush.bf16.msrb.mxu2 %v1917_v38  ;;  %2981 = vmatmul.msk.bf16.gmra.mxu1 %vm5486_vm10, %v4051_v3  ;;  %vm5490_vm12 = vmmov %vm5476_vm3  ;;  %vm5491_vm8 = vcmask 752640   ;;  %vm5492_vm10 = vcmask 1031168  }
 0x13d   :  { %1068 = vst [vmem:[#allocation2 + $0x7c] sm:$0x11] %v1067_v39  ;;  %v1317_v10 = vsel %vm5476_vm3, %v1307_v15, %v1308_v36 }
 0x13e   :  { %1152 = vst [vmem:[#allocation2 + $0x6c] sm:$0x33] %v1151_v58  ;;  %v1318_v46 = vsel %vm5488_vm5, %v3138_v8, %v1317_v10  ;;  %v4374_v48 = vpop.permute.xlu0 %999  ;;  %vm5493_vm5 = vcmask 457728   ;;  %v1498_v58 = vrot.slane %v4318_v40, 4 }
 0x13f   :  { %v4372_v31 = vpop.permute.xlu2 %1125  ;;  %v1346_v3 = vsel %vm3658_vm13, %v1318_v46, %v1345_v28  ;;  %v1018_v50 = vrot.slane %v4374_v48, 4 }
 0x140   :  { %v1133_v45 = vrot.slane %v4372_v31, 4  ;;  %1347 = vst [vmem:[#allocation2 + $0x6c] sm:$0x88] %v1346_v3 }
 0x141   :  { %v1027_v8 = vsel %vm5490_vm12, %v1017_v0, %v1018_v50  ;;  %vm5495_vm12 = vmmov %vm5476_vm3 }
 0x142   :  { %v1138_v62 = vsel %vm5489_vm11, %v1132_v32, %v1133_v45  ;;  %v1028_v1 = vsel %vm5492_vm10, %v4240_v17, %v1027_v8  ;;  %v1396_v60 = vpop.permute.xlu1 %1395  ;;  %vm5494_vm11 = vcmask 220160   ;;  %vm5497_vm10 = vcmask 744448   ;;  %v1426_v8 = vld [vmem:[#allocation2 + $0xc4] sm:$0x66] }
 0x143   :  { %v1139_v53 = vsel %vm5491_vm8, %v1124_v25, %v1138_v62  ;;  %1055 = vst [vmem:[#allocation2 + $0x24] sm:$0x88] %v1028_v1  ;;  %v1403_v38 = vrot.slane %v1396_v60, 4  ;;  %vm5496_vm8 = vmmov %vm5494_vm11 }
 0x144   :  { %v1154_v19 = vsel %vm3608_vm0, %v1139_v53, %v1153_v29 }
 0x145   :  { %1155 = vst [vmem:[#allocation2 + $0x74] sm:$0x33] %v1154_v19  ;;  %v1408_v32 = vsel %vm5476_vm3, %v1402_v59, %v1403_v38  ;;  %vm5498_vm3 = vmmov %vm5496_vm8 }
 0x146   :  { %v1409_v56 = vsel %vm5493_vm5, %v4172_v42, %v1408_v32  ;;  %v4396_v15 = vpop.permute.xlu0 %1191  ;;  %vm5499_vm5 = vmmov %vm5495_vm12 }
 0x147   :  { %v1424_v17 = vsel %vm3702_vm9, %v1409_v56, %v1423_v41  ;;  %v1199_v25 = vrot.slane %v4396_v15, 4  ;;  %v4401_v39 = vpop.permute.xlu2 %1557  ;;  %v2850_v59 = vld [vmem:[#allocation2 + $0x68] sm:$0xf0]  ;;  %v3088_v46 = vld [vmem:[#allocation2 + $0x6c] sm:$0xf0] }
 0x148   :  { %1425 = vst [vmem:[#allocation2 + $0xbc] sm:$0x66] %v1424_v17  ;;  %v1564_v29 = vrot.slane %v4401_v39, 4 }
 0x149   :  { %2982 = vmatmul.msk.bf16.vlgmr.msra.gmra.mxu2 %vm5494_vm11, %v3954_v35  ;;  %v1204_v42 = vsel %vm5495_vm12, %v1198_v20, %v1199_v25  ;;  %vm5500_vm11 = vmmov %vm5499_vm5  ;;  %vm5501_vm12 = vcmask 457728  }
 0x14a   :  { %2986 = vmatmul.msk.bf16.vlgmr.msra.gmra.mxu3 %vm5496_vm8, %v3954_v35  ;;  %v1205_v0 = vsel %vm5497_vm10, %v4185_v61, %v1204_v42  ;;  %v4413_v10 = vpop.permute.xlu1 %1397  ;;  %v3078_v14 = vld [vmem:[#allocation2 + $0x24] sm:$0xf]  ;;  %v2856_v54 = vld [vmem:[#allocation2 + $0x28] sm:$0xf]  ;;  %v1503_v61 = vsel %vm5499_vm5, %v1497_v52, %v1498_v58  ;;  %vm5502_vm8 = vcmask 449536   ;;  %vm5503_vm10 = vmmov %vm5498_vm3 }
 0x14b   :  { %2990 = vmatmul.msk.bf16.vlgmr.msra.gmra.mxu0 %vm5498_vm3, %v3954_v35  ;;  %v1220_v28 = vsel %vm5431_vm14, %v1205_v0, %v1219_v11  ;;  %v1404_v20 = vrot.slane %v4413_v10, 4  ;;  %v2853_v3 = vor.u32 %v3078_v14, %v2850_v59  ;;  %v2857_v62 = vor.u32 %v3088_v46, %v2856_v54  ;;  %v1586_v42 = vld [vmem:[#allocation2 + $0x10c] sm:$0x33]  ;;  %vm5504_vm3 = vmmov %vm5499_vm5 }
 0x14c   :  { %1221 = vst [vmem:[#allocation2 + $0x74] sm:$0xcc] %v1220_v28  ;;  %v1504_v41 = vsel %vm5502_vm8, %v4242_v2, %v1503_v61  ;;  %vm5505_vm5 = vmmov %vm5504_vm3  ;;  %v1222_v61 = vld [vmem:[#allocation2 + $0x7c] sm:$0xcc] }
 0x14d   :  { %v1410_v53 = vsel %vm5500_vm11, %v1403_v38, %v1404_v20  ;;  %2208 = vmatpush.bf16.msra.mxu1 %v2853_v3  ;;  %2237 = vmatpush.bf16.msrb.mxu2 %v2857_v62  ;;  %v1583_v38 = vld [vmem:[#allocation2 + $0x104] sm:$0x33]  ;;  %vm5506_vm11 = vcmask 441344   ;;  %vm5508_vm8 = vmmov %vm5504_vm3 }
 0x14e   :  { %v1411_v1 = vsel %vm5501_vm12, %v1396_v60, %v1410_v53  ;;  %v1556_v19 = vpop.permute.xlu0 %1555  ;;  %vm5507_vm12 = vmmov %vm5506_vm11 }
 0x14f   :  { %v1518_v32 = vld [vmem:[#allocation2 + $0xbc] sm:$0xcc]  ;;  %v1427_v52 = vsel %vm3702_vm9, %v1411_v1, %v1426_v8  ;;  %v1563_v56 = vrot.slane %v1556_v19, 4  ;;  %v4434_v17 = vpop.permute.xlu2 %928 }
 0x150   :  { %v1519_v11 = vsel %vm3800_vm7, %v1504_v41, %v1518_v32  ;;  %1428 = vst [vmem:[#allocation2 + $0xc4] sm:$0x66] %v1427_v52  ;;  %2994 = vmatmul.msk.bf16.vlgmr.msra.gmra.mxu1 %vm5503_vm10, %v3954_v35  ;;  %vm5509_vm10 = vcmask 736256   ;;  %v935_v8 = vrot.slane %v4434_v17, 4  ;;  %v954_v41 = vld [vmem:[#allocation2 + $0x2c] sm:$0x66] }
 0x151   :  { %1520 = vst [vmem:[#allocation2 + $0xbc] sm:$0xcc] %v1519_v11  ;;  %v1568_v2 = vsel %vm5504_vm3, %v1562_v6, %v1563_v56  ;;  %v1570_v60 = vsel %vm5505_vm5, %v1563_v56, %v1564_v29  ;;  %vm5510_vm3 = vcmask 220160   ;;  %v957_v32 = vld [vmem:[#allocation2 + $0x34] sm:$0x66] }
 0x152   :  { %v1569_v59 = vsel %vm5506_vm11, %v4144_v16, %v1568_v2  ;;  %v1571_v0 = vsel %vm5507_vm12, %v1556_v19, %v1570_v60  ;;  %v4449_v14 = vpop.permute.xlu1 %1301  ;;  %vm5511_vm11 = vmmov %vm5510_vm3  ;;  %vm5512_vm12 = vcmask 744448  }
 0x153   :  { %v1584_v54 = vsel %vm3375_vm6, %v1569_v59, %v1583_v38  ;;  %v1587_v35 = vsel %vm3375_vm6, %v1571_v0, %v1586_v42  ;;  %v1314_v46 = vrot.slane %v4449_v14, 4 }
 0x154   :  { %1585 = vst [vmem:[#allocation2 + $0x104] sm:$0x33] %v1584_v54 }
 0x155   :  { %1588 = vst [vmem:[#allocation2 + $0x10c] sm:$0x33] %v1587_v35  ;;  %v1328_v16 = vsel %vm5508_vm8, %v1313_v18, %v1314_v46  ;;  %vm5513_vm8 = vmmov %vm5510_vm3 }
 0x156   :  { %v1329_v6 = vsel %vm5509_vm10, %v4170_v63, %v1328_v16  ;;  %vm5514_vm10 = vmmov %vm5505_vm5 }
 0x157   :  { %v1194_v28 = vpop.permute.xlu0 %1193  ;;  %1361 = vst [vmem:[#allocation2 + $0xbc] sm:$0x11] %v1329_v6  ;;  %v1521_v13 = vld [vmem:[#allocation2 + $0xc4] sm:$0xcc] }
 0x158   :  { %v1200_v3 = vrot.slane %v1194_v28, 4  ;;  %v4463_v62 = vpop.permute.xlu2 %1003 }
 0x159   :  { %2983 = vmatmul.msk.bf16.gmra.mxu2 %vm5510_vm3, %v4060_v27  ;;  %vm5515_vm3 = vmmov %vm5505_vm5 }
 0x15a   :  { %v1206_v53 = vsel %vm5505_vm5, %v1199_v25, %v1200_v3  ;;  %2987 = vmatmul.msk.bf16.gmra.mxu3 %vm5511_vm11, %v4060_v27  ;;  %v927_v63 = vpop.permute.xlu1 %926  ;;  %vm5516_vm5 = vcmask 1039360  }
 0x15b   :  { %v1207_v18 = vsel %vm5512_vm12, %v4396_v15, %v1206_v53  ;;  %2991 = vmatmul.msk.bf16.gmra.mxu0 %vm5513_vm8, %v4060_v27  ;;  %v934_v19 = vrot.slane %v927_v63, 4  ;;  %vm5517_vm11 = vmmov %vm5516_vm5  ;;  %v2930_v42 = vld [vmem:[#allocation2 + $0x100] sm:$0x30]  ;;  %v3107_v35 = vld [vmem:[#allocation2 + $0x104] sm:$0x30] }
 0x15c   :  { %v1223_v1 = vsel %vm5431_vm14, %v1207_v18, %v1222_v61  ;;  %vm5518_vm12 = vmmov %vm5513_vm8  ;;  %v1225_v53 = vld [vmem:[#allocation2 + $0x84] sm:$0xcc] }
 0x15d   :  { %1224 = vst [vmem:[#allocation2 + $0x7c] sm:$0xcc] %v1223_v1  ;;  %v939_v25 = vsel %vm5514_vm10, %v933_v4, %v934_v19  ;;  %v941_v52 = vsel %vm5515_vm3, %v934_v19, %v935_v8  ;;  %vm5519_vm8 = vmmov %vm5515_vm3  ;;  %vm5520_vm10 = vcmask 736256  }
 0x15e   :  { %v940_v15 = vsel %vm5516_vm5, %v4320_v9, %v939_v25  ;;  %v942_v56 = vsel %vm5517_vm11, %v927_v63, %v941_v52  ;;  %v3097_v38 = vld [vmem:[#allocation2 + $0xbc] sm:$0xf]  ;;  %v2936_v2 = vld [vmem:[#allocation2 + $0xc0] sm:$0xf]  ;;  %v1228_v9 = vld [vmem:[#allocation2 + $0x8c] sm:$0xc] }
 0x15f   :  { %v4486_v11 = vpop.permute.xlu0 %1291  ;;  %v955_v60 = vsel %vm3480_vm15, %v940_v15, %v954_v41  ;;  %v958_v4 = vsel %vm3480_vm15, %v942_v56, %v957_v32  ;;  %v2933_v54 = vor.u32 %v3097_v38, %v2930_v42  ;;  %v2937_v6 = vor.u32 %v3107_v35, %v2936_v2  ;;  %v1348_v63 = vld [vmem:[#allocation2 + $0x74] sm:$0x88]  ;;  %v865_v42 = vld [vmem:[#allocation2 + $0x3c] sm:$0x33] }
 0x160   :  { %v1309_v59 = vrot.slane %v4486_v11, 4  ;;  %v1196_v0 = vpop.permute.xlu2 %1195  ;;  %956 = vst [vmem:[#allocation2 + $0x2c] sm:$0x66] %v955_v60  ;;  %2995 = vmatmul.msk.bf16.gmra.mxu1 %vm5518_vm12, %v4060_v27  ;;  %vm5521_vm5 = vcmask 744448   ;;  %vm5523_vm12 = vmmov %vm5515_vm3 }
 0x161   :  { %v1201_v16 = vrot.slane %v1196_v0, 4  ;;  %959 = vst [vmem:[#allocation2 + $0x34] sm:$0x66] %v958_v4  ;;  %v1920_v18 = vand.u32 %v2933_v54, %v3865_v5  ;;  %v1923_v27 = vand.u32 %v2937_v6, %v3865_v5  ;;  %vm5522_vm11 = vmmov %vm5521_vm5 }
 0x162   :  { %v1319_v61 = vsel %vm5519_vm8, %v1308_v36, %v1309_v59  ;;  %v4505_v32 = vpop.permute.xlu1 %1492  ;;  %vm5527_vm8 = vmmov %vm5515_vm3 }
 0x163   :  { %v1320_v1 = vsel %vm5520_vm10, %v4349_v21, %v1319_v61  ;;  %v1208_v19 = vsel %vm5515_vm3, %v1200_v3, %v1201_v16  ;;  %v1210_v41 = vsel %vm5521_vm5, %v1196_v0, %v1201_v16  ;;  %v1499_v15 = vrot.slane %v4505_v32, 4  ;;  %2265 = vmatpush.bf16.msrb.mxu3 %v1920_v18  ;;  %2294 = vmatpush.bf16.msrb.mxu0 %v1923_v27  ;;  %v5525_v0 = vld [vmem:[#allocation6_spill] sm:$0xff]  ;;  %vm5528_vm10 = vmmov %vm5515_vm3  ;;  %v5529_v61 = vld [vmem:[#allocation7_spill] sm:$0xff] }
 0x164   :  { %v1349_v25 = vsel %vm3658_vm13, %v1320_v1, %v1348_v63  ;;  %v1209_v36 = vsel %vm5522_vm11, %v1194_v28, %v1208_v19  ;;  %v1229_v52 = vsel %vm5430_vm1, %v1210_v41, %v1228_v9  ;;  %v1020_v3 = vrot.slane %v4463_v62, 4  ;;  %v868_v9 = vld [vmem:[#allocation2 + $0x44] sm:$0x3] }
 0x165   :  { %1350 = vst [vmem:[#allocation2 + $0x74] sm:$0x88] %v1349_v25  ;;  %v1226_v21 = vsel %vm5431_vm14, %v1209_v36, %v1225_v53  ;;  %v1505_v28 = vsel %vm5523_vm12, %v1498_v58, %v1499_v15  ;;  %vm5524_vm1 = vcmask 449536   ;;  %v866_v54 = vsel %vm3375_vm6, %v5525_v0, %v865_v42 }
 0x166   :  { %1227 = vst [vmem:[#allocation2 + $0x84] sm:$0xcc] %v1226_v21  ;;  %v1506_v56 = vsel %vm5524_vm1, %v4318_v40, %v1505_v28  ;;  %v4524_v2 = vpop.f32.mrf.mxu0  ;;  %v4536_v40 = vld [vmem:[%s5243_s1 + $0x10] sm:$0xff]  ;;  %vm5526_vm14 = vcmask 220160   ;;  %v869_v53 = vsel %vm3366_vm4, %v5529_v61, %v868_v9  ;;  %vm5531_vm5 = vcmask 1031168  }
 0x167   :  { %1230 = vst [vmem:[#allocation2 + $0x8c] sm:$0xc] %v1229_v52  ;;  %v1002_v38 = vpop.permute.xlu0 %1001  ;;  %v1522_v30 = vsel %vm3800_vm7, %v1506_v56, %v1521_v13  ;;  %v4531_v35 = vpop.f32.mrf.mxu1  ;;  %vm5530_vm3 = vmmov %vm5526_vm14  ;;  %vm5533_vm12 = vcmask 736256  }
 0x168   :  { %v1019_v60 = vrot.slane %v1002_v38, 4  ;;  %v1306_v4 = vpop.permute.xlu2 %1305  ;;  %1523 = vst [vmem:[#allocation2 + $0xc4] sm:$0xcc] %v1522_v30  ;;  %vm5532_vm11 = vmmov %vm5531_vm5 }
 0x169   :  { %2984 = vmatmul.msk.bf16.gmra.mxu2 %vm5526_vm14, %v4536_v40  ;;  %v1316_v58 = vrot.slane %v1306_v4, 4  ;;  %867 = vst [vmem:[#allocation2 + $0x3c] sm:$0x33] %v866_v54  ;;  %vm5534_vm1 = vmmov %vm5530_vm3 }
 0x16a   :  { %v1029_v16 = vsel %vm5527_vm8, %v1018_v50, %v1019_v60  ;;  %v1031_v6 = vsel %vm5528_vm10, %v1019_v60, %v1020_v3  ;;  %2988 = vmatmul.msk.bf16.gmra.mxu3 %vm5530_vm3, %v4536_v40  ;;  %870 = vst [vmem:[#allocation2 + $0x44] sm:$0x3] %v869_v53  ;;  %vm5535_vm14 = vmmov %vm5527_vm8 }
 0x16b   :  { %v1030_v18 = vsel %vm5531_vm5, %v4374_v48, %v1029_v16  ;;  %v1032_v63 = vsel %vm5532_vm11, %v1002_v38, %v1031_v6  ;;  %v1334_v1 = vsel %vm5533_vm12, %v1306_v4, %v1316_v58  ;;  %v1304_v50 = vpop.permute.xlu1 %1303  ;;  %2992 = vmatmul.msk.bf16.gmra.mxu0 %vm5534_vm1, %v4536_v40  ;;  %vm5536_vm10 = vmmov %vm5533_vm12  ;;  %vm5540_vm12 = vcmask 752640  }
 0x16c   :  { %1056 = vst [vmem:[#allocation2 + $0x2c] sm:$0x88] %v1030_v18  ;;  %v1315_v19 = vrot.slane %v1304_v50, 4  ;;  %v4557_v41 = vpop.f32.mrf.mxu2  ;;  %vm5537_vm3 = vmmov %vm5536_vm10  ;;  %v2858_v30 = vld [vmem:[#allocation2 + $0x70] sm:$0xf0] }
 0x16d   :  { %1057 = vst [vmem:[#allocation2 + $0x34] sm:$0x88] %v1032_v63  ;;  %v4559_v27 = vpop.f32.mrf.mxu3  ;;  %vm5538_vm5 = vmmov %vm5534_vm1  ;;  %v3089_v9 = vld [vmem:[#allocation2 + $0x74] sm:$0xf0] }
 0x16e   :  { %1364 = vst [vmem:[#allocation2 + $0xd4] sm:$0x1] %v1334_v1  ;;  %v1330_v48 = vsel %vm5535_vm14, %v1314_v46, %v1315_v19  ;;  %v1332_v25 = vsel %vm5527_vm8, %v1315_v19, %v1316_v58  ;;  %v1951_v28 = vpop.f32.mrf.mxu0  ;;  %v1156_v46 = vld [vmem:[#allocation2 + $0x7c] sm:$0x33]  ;;  %vm5539_vm11 = vmmov %vm5527_vm8  ;;  %v1357_v60 = vld [vmem:[#allocation2 + $0x8c] sm:$0x8]  ;;  %vm5542_vm14 = vnez %v5462_v57 }
 0x16f   :  { %v1331_v36 = vsel %vm5536_vm10, %v4449_v14, %v1330_v48  ;;  %v1333_v52 = vsel %vm5537_vm3, %v1304_v50, %v1332_v25  ;;  %v4568_v21 = vpop.permute.xlu0 %1127  ;;  %v1980_v38 = vpop.f32.mrf.mxu1  ;;  %vm5541_vm1 = vmmov %vm5537_vm3  ;;  %v1351_v50 = vld [vmem:[#allocation2 + $0x7c] sm:$0x88]  ;;  %v2938_v48 = vld [vmem:[#allocation2 + $0x108] sm:$0x30] }
 0x170   :  { %1362 = vst [vmem:[#allocation2 + $0xc4] sm:$0x11] %v1331_v36  ;;  %v1134_v13 = vrot.slane %v4568_v21, 4  ;;  %v1296_v56 = vpop.permute.xlu2 %1295  ;;  %2996 = vmatmul.msk.bf16.gmra.mxu1 %vm5538_vm5, %v4536_v40  ;;  %vm5543_vm10 = vmmov %vm5527_vm8 }
 0x171   :  { %1363 = vst [vmem:[#allocation2 + $0xcc] sm:$0x11] %v1333_v52  ;;  %v1311_v42 = vrot.slane %v1296_v56, 4  ;;  %vm5544_vm3 = vmmov %vm5541_vm1  ;;  %v1354_v52 = vld [vmem:[#allocation2 + $0x84] sm:$0x88] }
 0x172   :  { %v1140_v14 = vsel %vm5539_vm11, %v1133_v45, %v1134_v13  ;;  %vm5545_vm5 = vmmov %vm5541_vm1  ;;  %vm5546_vm11 = vcmask 220160  }
 0x173   :  { %v1141_v4 = vsel %vm5540_vm12, %v4372_v31, %v1140_v14  ;;  %v1294_v0 = vpop.permute.xlu1 %1293  ;;  %v3079_v54 = vld [vmem:[#allocation2 + $0x2c] sm:$0xf]  ;;  %v2864_v58 = vld [vmem:[#allocation2 + $0x30] sm:$0xf]  ;;  %v1325_v16 = vsel %vm5541_vm1, %v1296_v56, %v1311_v42  ;;  %vm5548_vm12 = vcmask 457728   ;;  %vm5549_vm1 = vmmov %vm5546_vm11 }
 0x174   :  { %v1157_v6 = vsel %vm3608_vm0, %v1141_v4, %v1156_v46  ;;  %v1310_v61 = vrot.slane %v1294_v0, 4  ;;  %v4583_v53 = vpop.f32.mrf.mxu2  ;;  %v2861_v18 = vor.u32 %v3079_v54, %v2858_v30  ;;  %v2865_v63 = vor.u32 %v3089_v9, %v2864_v58  ;;  %v3108_v4 = vld [vmem:[#allocation2 + $0x10c] sm:$0x30] }
 0x175   :  { %1158 = vst [vmem:[#allocation2 + $0x7c] sm:$0x33] %v1157_v6  ;;  %v1358_v45 = vsel %vm5542_vm14, %v1325_v16, %v1357_v60  ;;  %v4587_v1 = vpop.f32.mrf.mxu3  ;;  %vm5550_vm14 = vmmov %vm5548_vm12 }
 0x176   :  { %v1321_v31 = vsel %vm5527_vm8, %v1309_v59, %v1310_v61  ;;  %2266 = vmatpush.bf16.msrb.mxu3 %v2861_v18  ;;  %2295 = vmatpush.bf16.msrb.mxu0 %v2865_v63  ;;  %v1323_v19 = vsel %vm5543_vm10, %v1310_v61, %v1311_v42  ;;  %1359 = vst [vmem:[#allocation2 + $0x8c] sm:$0x8] %v1358_v45  ;;  %v1432_v59 = vld [vmem:[#allocation2 + $0xd4] sm:$0x6]  ;;  %vm5552_vm10 = vmmov %vm5549_vm1 }
 0x177   :  { %v1322_v25 = vsel %vm5544_vm3, %v4486_v11, %v1321_v31  ;;  %v1400_v36 = vpop.permute.xlu0 %1399  ;;  %v1324_v57 = vsel %vm5545_vm5, %v1294_v0, %v1323_v19  ;;  %v3098_v56 = vld [vmem:[#allocation2 + $0xc4] sm:$0xf]  ;;  %v2944_v46 = vld [vmem:[#allocation2 + $0xc8] sm:$0xf]  ;;  %v1429_v11 = vld [vmem:[#allocation2 + $0xcc] sm:$0x66] }
 0x178   :  { %v1352_v14 = vsel %vm3658_vm13, %v1322_v25, %v1351_v50  ;;  %v1405_v30 = vrot.slane %v1400_v36, 4  ;;  %v1355_v60 = vsel %vm3658_vm13, %v1324_v57, %v1354_v52  ;;  %v2941_v42 = vor.u32 %v3098_v56, %v2938_v48  ;;  %v4600_v54 = vpop.permute.xlu2 %1654  ;;  %v4602_v58 = vpop.f32.mrf.mxu0  ;;  %v4607_v0 = vld [vmem:[%s5243_s1 + $0x18] sm:$0xff]  ;;  %vm5547_vm13 = vmmov %vm5527_vm8  ;;  %v1072_v19 = vld [vmem:[#allocation2 + $0x8c] sm:$0x1] }
 0x179   :  { %1353 = vst [vmem:[#allocation2 + $0x7c] sm:$0x88] %v1352_v14  ;;  %2985 = vmatmul.msk.bf16.gmra.mxu2 %vm5546_vm11, %v4607_v0  ;;  %v2945_v9 = vor.u32 %v3108_v4, %v2944_v46  ;;  %v1952_v55 = vadd.f32 %v1951_v28, %v4600_v54  ;;  %v1981_v16 = vadd.f32 %v1980_v38, %v4600_v54  ;;  %v4613_v6 = vpop.f32.mrf.mxu1  ;;  %vm5553_vm3 = vmmov %vm5547_vm13  ;;  %vm5554_vm5 = vcmask 1031168  }
 0x17a   :  { %v1412_v61 = vsel %vm5547_vm13, %v1404_v20, %v1405_v30  ;;  %v1414_v18 = vsel %vm5548_vm12, %v1400_v36, %v1405_v30  ;;  %1356 = vst [vmem:[#allocation2 + $0x84] sm:$0x88] %v1355_v60  ;;  %v1926_v63 = vand.u32 %v2941_v42, %v3865_v5  ;;  %2989 = vmatmul.msk.bf16.gmra.mxu3 %vm5549_vm1, %v4607_v0  ;;  %vm5557_vm13 = vmmov %vm5549_vm1  ;;  %vm5559_vm12 = vcmask 449536  }
 0x17b   :  { %v1413_v45 = vsel %vm5550_vm14, %v4413_v10, %v1412_v61  ;;  %vm5551_vm8 = vnez %v5350_v24  ;;  %v1016_v38 = vpop.permute.xlu1 %1015  ;;  %v1929_v31 = vand.u32 %v2945_v9, %v3865_v5  ;;  %v2480_v50 = vmax.f32 %v1952_v55, 0.0  ;;  %2993 = vmatmul.msk.bf16.gmra.mxu0 %vm5552_vm10, %v4607_v0  ;;  %v1069_v24 = vld [vmem:[#allocation2 + $0x84] sm:$0x11]  ;;  %v2872_v9 = vld [vmem:[#allocation2 + $0x38] sm:$0xf]  ;;  %vm5560_vm1 = vmmov %vm5559_vm12 }
 0x17c   :  { %v1433_v28 = vsel %vm5551_vm8, %v1414_v18, %v1432_v59  ;;  %v1430_v20 = vsel %vm3702_vm9, %v1413_v45, %v1429_v11  ;;  %v1026_v48 = vrot.slane %v1016_v38, 4  ;;  %v4631_v25 = vpop.f32.mrf.mxu2  ;;  %2323 = vmatpush.bf16.msrb.mxu1 %v1926_v63  ;;  %v2481_v10 = vmax.f32 %v1981_v16, 0.0  ;;  %vm5555_vm9 = vmmov %vm5554_vm5  ;;  %v3080_v59 = vld [vmem:[#allocation2 + $0x34] sm:$0xf] }
 0x17d   :  { %1434 = vst [vmem:[#allocation2 + $0xd4] sm:$0x6] %v1433_v28  ;;  %2352 = vmatpush.bf16.msra.mxu2 %v1929_v31  ;;  %v1993_v36 = vpop.f32.mrf.mxu3  ;;  %vm5556_vm11 = vnez %v5421_v7  ;;  %vm5561_vm14 = vnez %v5369_v33  ;;  %vm5563_vm10 = vcmask 441344  }
 0x17e   :  { %1431 = vst [vmem:[#allocation2 + $0xcc] sm:$0x66] %v1430_v20  ;;  %v1042_v57 = vsel %vm5553_vm3, %v1025_v44, %v1026_v48  ;;  %v1044_v52 = vsel %vm5554_vm5, %v1016_v38, %v1026_v48  ;;  %v2611_v56 = vpack.c.bf16 %v2481_v10, %v2480_v50  ;;  %v1589_v48 = vld [vmem:[#allocation2 + $0x114] sm:$0x33] }
 0x17f   :  { %v1043_v51 = vsel %vm5555_vm9, %v4329_v12, %v1042_v57  ;;  %v1073_v46 = vsel %vm5556_vm11, %v1044_v52, %v1072_v19  ;;  %v1495_v14 = vpop.permute.xlu0 %1494  ;;  %vm5570_vm11 = vnez %v5411_v26 }
 0x180   :  { %v1070_v30 = vsel %vm5423_vm2, %v1043_v51, %v1069_v24  ;;  %1074 = vst [vmem:[#allocation2 + $0x8c] sm:$0x1] %v1073_v46  ;;  %v1500_v60 = vrot.slane %v1495_v14, 4  ;;  %v2866_v42 = vld [vmem:[#allocation2 + $0x78] sm:$0xf0]  ;;  %v4643_v4 = vpop.permute.xlu2 %1669  ;;  %v4645_v44 = vpop.f32.mrf.mxu0  ;;  %2997 = vmatmul.msk.bf16.gmra.mxu1 %vm5557_vm13, %v4607_v0  ;;  %vm5558_vm2 = vmmov %vm5553_vm3 }
 0x181   :  { %1071 = vst [vmem:[#allocation2 + $0x84] sm:$0x11] %v1070_v30  ;;  %v2869_v11 = vor.u32 %v3080_v59, %v2866_v42  ;;  %v3090_v55 = vld [vmem:[#allocation2 + $0x7c] sm:$0xf0]  ;;  %v1960_v7 = vadd.f32 %v4557_v41, %v4643_v4  ;;  %v1989_v12 = vadd.f32 %v4559_v27, %v4643_v4  ;;  %v4653_v43 = vpop.f32.mrf.mxu1  ;;  %vm5562_vm8 = vmmov %vm5558_vm2  ;;  %v963_v51 = vld [vmem:[#allocation2 + $0x44] sm:$0x6] }
 0x182   :  { %v1507_v16 = vsel %vm5558_vm2, %v1499_v15, %v1500_v60  ;;  %v1509_v61 = vsel %vm5559_vm12, %v1495_v14, %v1500_v60  ;;  %v2873_v18 = vor.u32 %v3090_v55, %v2872_v9  ;;  %2651 = vst [vmem:[%s5245_s3 + $0x24] sm:$0xff] %v2611_v56  ;;  %v1592_v15 = vld [vmem:[#allocation2 + $0x11c] sm:$0x3]  ;;  %vm5564_vm3 = vmmov %vm5563_vm10  ;;  %vm5572_vm12 = vcmask 752640  }
 0x183   :  { %v1508_v27 = vsel %vm5560_vm1, %v4505_v32, %v1507_v16  ;;  %v1560_v63 = vpop.permute.xlu1 %1559  ;;  %2324 = vmatpush.bf16.msrb.mxu1 %v2869_v11  ;;  %v2534_v45 = vmax.f32 %v1960_v7, 0.0  ;;  %v2535_v28 = vmax.f32 %v1989_v12, 0.0  ;;  %vm5573_vm1 = vmmov %vm5572_vm12 }
 0x184   :  { %v1527_v41 = vld [vmem:[#allocation2 + $0xd4] sm:$0xc]  ;;  %v1565_v50 = vrot.slane %v1560_v63, 4  ;;  %v4666_v20 = vpop.f32.mrf.mxu2  ;;  %2353 = vmatpush.bf16.msra.mxu2 %v2873_v18 }
 0x185   :  { %v1524_v38 = vld [vmem:[#allocation2 + $0xcc] sm:$0xcc]  ;;  %v1528_v31 = vsel %vm5561_vm14, %v1509_v61, %v1527_v41  ;;  %v2626_v10 = vpack.c.bf16 %v2535_v28, %v2534_v45  ;;  %v4670_v32 = vpop.f32.mrf.mxu3 }
 0x186   :  { %v1525_v19 = vsel %vm3800_vm7, %v1508_v27, %v1524_v38  ;;  %1529 = vst [vmem:[#allocation2 + $0xd4] sm:$0xc] %v1528_v31  ;;  %v1572_v24 = vsel %vm5562_vm8, %v1564_v29, %v1565_v50  ;;  %v1574_v33 = vsel %vm5563_vm10, %v1560_v63, %v1565_v50  ;;  %vm5567_vm7 = vcmask 1039360   ;;  %vm5576_vm8 = vmmov %vm5558_vm2 }
 0x187   :  { %1526 = vst [vmem:[#allocation2 + $0xcc] sm:$0xcc] %v1525_v19  ;;  %v1573_v57 = vsel %vm5564_vm3, %v4401_v39, %v1572_v24  ;;  %v1593_v52 = vsel %vm3366_vm4, %v1574_v33, %v1592_v15  ;;  %v931_v23 = vpop.permute.xlu0 %930  ;;  %v960_v39 = vld [vmem:[#allocation2 + $0x3c] sm:$0x66]  ;;  %vm5565_vm4 = vmmov %vm5557_vm13  ;;  %v1162_v7 = vld [vmem:[#allocation2 + $0x8c] sm:$0x3] }
 0x188   :  { %2666 = vst [vmem:[%s5245_s3 + $0x90] sm:$0xff] %v2626_v10  ;;  %v1590_v56 = vsel %vm3375_vm6, %v1573_v57, %v1589_v48  ;;  %v936_v46 = vrot.slane %v931_v23, 4  ;;  %v4685_v29 = vpop.permute.xlu2 %1679  ;;  %v4687_v14 = vpop.f32.mrf.mxu0  ;;  %vm5566_vm6 = vmmov %vm5558_vm2  ;;  %v1159_v41 = vld [vmem:[#allocation2 + $0x84] sm:$0x33] }
 0x189   :  { %1594 = vst [vmem:[#allocation2 + $0x11c] sm:$0x3] %v1593_v52  ;;  %2998 = vmatmul.msk.bf16.vlgmr.msrb.gmra.mxu2 %vm5565_vm4, %v4692_v47  ;;  %v1965_v49 = vadd.f32 %v4631_v25, %v4685_v29  ;;  %v1994_v59 = vadd.f32 %v1993_v36, %v4685_v29  ;;  %v4699_v30 = vpop.f32.mrf.mxu1  ;;  %vm5568_vm5 = vmmov %vm5565_vm4 }
 0x18a   :  { %1591 = vst [vmem:[#allocation2 + $0x114] sm:$0x33] %v1590_v56  ;;  %v943_v60 = vsel %vm5566_vm6, %v935_v8, %v936_v46  ;;  %v945_v42 = vsel %vm5567_vm7, %v931_v23, %v936_v46  ;;  %3002 = vmatmul.msk.bf16.vlgmr.msrb.gmra.mxu3 %vm5568_vm5, %v4692_v47  ;;  %vm5569_vm9 = vmmov %vm5567_vm7 }
 0x18b   :  { %v944_v11 = vsel %vm5569_vm9, %v4434_v17, %v943_v60  ;;  %v964_v9 = vsel %vm5570_vm11, %v945_v42, %v963_v51  ;;  %v1130_v25 = vpop.permute.xlu1 %1129  ;;  %v2570_v55 = vmax.f32 %v1965_v49, 0.0  ;;  %v2571_v36 = vmax.f32 %v1994_v59, 0.0  ;;  %vm5571_vm13 = vmmov %vm5565_vm4 }
 0x18c   :  { %3006 = vmatmul.msk.bf16.vlgmr.msrb.gmra.mxu0 %vm5571_vm13, %v4692_v47  ;;  %v961_v8 = vsel %vm3480_vm15, %v944_v11, %v960_v39  ;;  %965 = vst [vmem:[#allocation2 + $0x44] sm:$0x6] %v964_v9  ;;  %v1135_v12 = vrot.slane %v1130_v25, 4  ;;  %v2007_v16 = vpop.f32.mrf.mxu2  ;;  %vm5574_vm15 = vnez %v5456_v37  ;;  %vm5575_vm14 = vmmov %vm5565_vm4 }
 0x18d   :  { %962 = vst [vmem:[#allocation2 + $0x3c] sm:$0x66] %v961_v8  ;;  %v3100_v61 = vld [vmem:[#allocation2 + $0xd4] sm:$0xf]  ;;  %v2636_v18 = vpack.c.bf16 %v2571_v36, %v2570_v55  ;;  %v2036_v17 = vpop.f32.mrf.mxu3  ;;  %vm5579_vm3 = vmmov %vm5565_vm4 }
 0x18e   :  { %v1142_v26 = vsel %vm5558_vm2, %v1134_v13, %v1135_v12  ;;  %v1144_v27 = vsel %vm5572_vm12, %v1130_v25, %v1135_v12  ;;  %v3099_v28 = vld [vmem:[#allocation2 + $0xcc] sm:$0xf]  ;;  %v2952_v48 = vld [vmem:[#allocation2 + $0xd0] sm:$0xf]  ;;  %vm5580_vm4 = vmmov %vm5579_vm3 }
 0x18f   :  { %v1143_v63 = vsel %vm5573_vm1, %v4568_v21, %v1142_v26  ;;  %v1163_v22 = vsel %vm5574_vm15, %v1144_v27, %v1162_v7  ;;  %v1006_v45 = vpop.permute.xlu0 %1005  ;;  %2676 = vst [vmem:[%s5245_s3 + $0xd8] sm:$0xff] %v2636_v18  ;;  %vm5581_vm6 = vmmov %vm5579_vm3 }
 0x190   :  { %v2954_v38 = vld [vmem:[#allocation2 + $0x118] sm:$0x30]  ;;  %v1160_v31 = vsel %vm3608_vm0, %v1143_v63, %v1159_v41  ;;  %1164 = vst [vmem:[#allocation2 + $0x8c] sm:$0x3] %v1163_v22  ;;  %v1021_v13 = vrot.slane %v1006_v45, 4  ;;  %v2067_v19 = vpop.f32.mrf.mxu0  ;;  %3010 = vmatmul.msk.bf16.vlgmr.msrb.gmra.mxu1 %vm5575_vm14, %v4692_v47  ;;  %vm5577_vm0 = vcmask 1031168   ;;  %vm5582_vm7 = vmmov %vm5579_vm3 }
 0x191   :  { %v2946_v15 = vld [vmem:[#allocation2 + $0x110] sm:$0x30]  ;;  %v2957_v50 = vor.u32 %v3100_v61, %v2954_v38  ;;  %1161 = vst [vmem:[#allocation2 + $0x84] sm:$0x33] %v1160_v31  ;;  %v3109_v37 = vld [vmem:[#allocation2 + $0x114] sm:$0x30]  ;;  %v4731_v10 = vadd.f32 %v2067_v19, %v4600_v54  ;;  %v2096_v24 = vpop.f32.mrf.mxu1  ;;  %vm5578_vm10 = vmmov %vm5577_vm0 }
 0x192   :  { %v2949_v21 = vor.u32 %v3099_v28, %v2946_v15  ;;  %v1033_v34 = vsel %vm5576_vm8, %v1020_v3, %v1021_v13  ;;  %v1035_v33 = vsel %vm5577_vm0, %v1006_v45, %v1021_v13  ;;  %v2953_v57 = vor.u32 %v3109_v37, %v2952_v48  ;;  %vm5583_vm5 = vmmov %vm5579_vm3 }
 0x193   :  { %v1938_v52 = vand.u32 %v2957_v50, %v3865_v5  ;;  %v1034_v23 = vsel %vm5578_vm10, %v4463_v62, %v1033_v34  ;;  %1059 = vst [vmem:[#allocation2 + $0x44] sm:$0x8] %v1035_v33  ;;  %v4740_v56 = vpop.permute.xlu1 %1649  ;;  %v2097_v46 = vadd.f32 %v2096_v24, %v4600_v54  ;;  %v2484_v62 = vmax.f32 %v4731_v10, 0.0  ;;  %vm5584_vm9 = vmmov %vm5579_vm3 }
 0x194   :  { %v1932_v51 = vand.u32 %v2949_v21, %v3865_v5  ;;  %1058 = vst [vmem:[#allocation2 + $0x3c] sm:$0x88] %v1034_v23  ;;  %v1950_v39 = vadd.f32 %v4524_v2, %v4740_v56  ;;  %v1979_v3 = vadd.f32 %v4531_v35, %v4740_v56  ;;  %v2009_v49 = vpop.f32.mrf.mxu2  ;;  %v1935_v59 = vand.u32 %v2953_v57, %v3865_v5  ;;  %vm5585_vm11 = vmmov %vm5579_vm3 }
 0x195   :  { %2439 = vmatpush.bf16.msra.mxu1 %v1938_v52  ;;  %v2010_v60 = vadd.f32 %v2009_v49, %v4600_v54  ;;  %v2008_v42 = vadd.f32 %v2007_v16, %v4740_v56  ;;  %v2037_v11 = vadd.f32 %v2036_v17, %v4740_v56  ;;  %v2066_v9 = vadd.f32 %v4687_v14, %v4740_v56  ;;  %v2038_v2 = vpop.f32.mrf.mxu3  ;;  %vm5586_vm13 = vmmov %vm5579_vm3 }
 0x196   :  { %2381 = vmatpush.bf16.msra.mxu3 %v1932_v51  ;;  %v2462_v25 = vmax.f32 %v1950_v39, 0.0  ;;  %v2463_v55 = vmax.f32 %v1979_v3, 0.0  ;;  %2410 = vmatpush.bf16.msra.mxu0 %v1935_v59  ;;  %v2095_v5 = vadd.f32 %v4699_v30, %v4740_v56  ;;  %v2039_v35 = vadd.f32 %v2038_v2, %v4600_v54  ;;  %v4767_v30 = vld [vmem:[%s5243_s1 + $0x8] sm:$0xff]  ;;  %vm5587_vm2 = vmmov %vm5579_vm3 }
 0x197   :  { %v2482_v36 = vmax.f32 %v2010_v60, 0.0  ;;  %v4758_v8 = vpop.permute.xlu0 %1659  ;;  %v2464_v7 = vmax.f32 %v2008_v42, 0.0  ;;  %v2465_v12 = vmax.f32 %v2037_v11, 0.0  ;;  %v2466_v16 = vmax.f32 %v2066_v9, 0.0  ;;  %v2882_v17 = vld [vmem:[#allocation2 + $0x88] sm:$0xf0]  ;;  %vm5588_vm12 = vmmov %vm5587_vm2 }
 0x198   :  { %v2606_v61 = vpack.c.bf16 %v2463_v55, %v2462_v25  ;;  %v1955_v18 = vadd.f32 %v4602_v58, %v4758_v8  ;;  %v1984_v14 = vadd.f32 %v4613_v6, %v4758_v8  ;;  %v2467_v41 = vmax.f32 %v2095_v5, 0.0  ;;  %v2070_v26 = vpop.f32.mrf.mxu0  ;;  %v2874_v27 = vld [vmem:[#allocation2 + $0x80] sm:$0xf0]  ;;  %v3091_v6 = vld [vmem:[#allocation2 + $0x84] sm:$0xf0]  ;;  %vm5589_vm1 = vmmov %vm5587_vm2 }
 0x199   :  { %2999 = vmatmul.msk.bf16.gmra.mxu2 %vm5579_vm3, %v4767_v30  ;;  %v2607_v63 = vpack.c.bf16 %v2465_v12, %v2464_v7  ;;  %v2483_v22 = vmax.f32 %v2039_v35, 0.0  ;;  %v2485_v45 = vmax.f32 %v2097_v46, 0.0  ;;  %v2071_v58 = vadd.f32 %v2070_v26, %v4758_v8  ;;  %v2099_v28 = vpop.f32.mrf.mxu1  ;;  %vm5590_vm15 = vmmov %vm5589_vm1 }
 0x19a   :  { %2646 = vst [vmem:[%s5245_s3] sm:$0xff] %v2606_v61  ;;  %v2498_v38 = vmax.f32 %v1955_v18, 0.0  ;;  %v2499_v31 = vmax.f32 %v1984_v14, 0.0  ;;  %v3082_v13 = vld [vmem:[#allocation2 + $0x44] sm:$0xf]  ;;  %v2608_v15 = vpack.c.bf16 %v2467_v41, %v2466_v16  ;;  %3003 = vmatmul.msk.bf16.gmra.mxu3 %vm5580_vm4, %v4767_v30  ;;  %v2100_v50 = vadd.f32 %v2099_v28, %v4758_v8  ;;  %vm5591_vm14 = vmmov %vm5589_vm1 }
 0x19b   :  { %v4778_v19 = vpop.permute.xlu1 %1664  ;;  %v3081_v21 = vld [vmem:[#allocation2 + $0x3c] sm:$0xf]  ;;  %v2880_v48 = vld [vmem:[#allocation2 + $0x40] sm:$0xf]  ;;  %v2885_v37 = vor.u32 %v3082_v13, %v2882_v17  ;;  %2647 = vst [vmem:[%s5245_s3 + $0x8] sm:$0xff] %v2607_v63  ;;  %v2612_v10 = vpack.c.bf16 %v2483_v22, %v2482_v36  ;;  %v2613_v24 = vpack.c.bf16 %v2485_v45, %v2484_v62  ;;  %v2502_v34 = vmax.f32 %v2071_v58, 0.0  ;;  %vm5592_vm8 = vmmov %vm5589_vm1 }
 0x19c   :  { %3007 = vmatmul.msk.bf16.gmra.mxu0 %vm5581_vm6, %v4767_v30  ;;  %v2012_v33 = vpop.f32.mrf.mxu2  ;;  %v2877_v57 = vor.u32 %v3081_v21, %v2874_v27  ;;  %v2881_v52 = vor.u32 %v3091_v6, %v2880_v48  ;;  %v2616_v23 = vpack.c.bf16 %v2499_v31, %v2498_v38  ;;  %v1957_v51 = vadd.f32 %v4645_v44, %v4778_v19  ;;  %vm5593_vm0 = vmmov %vm5589_vm1 }
 0x19d   :  { %2648 = vst [vmem:[%s5245_s3 + $0x10] sm:$0xff] %v2608_v15  ;;  %v1986_v46 = vadd.f32 %v4653_v43, %v4778_v19  ;;  %2440 = vmatpush.bf16.msra.mxu1 %v2885_v37  ;;  %v2013_v39 = vadd.f32 %v2012_v33, %v4758_v8  ;;  %v2041_v3 = vpop.f32.mrf.mxu3  ;;  %v2503_v49 = vmax.f32 %v2100_v50, 0.0  ;;  %vm5594_vm10 = vmmov %vm5593_vm0 }
 0x19e   :  { %2652 = vst [vmem:[%s5245_s3 + $0x2c] sm:$0xff] %v2612_v10  ;;  %2382 = vmatpush.bf16.msra.mxu3 %v2877_v57  ;;  %2411 = vmatpush.bf16.msra.mxu0 %v2881_v52  ;;  %v2516_v44 = vmax.f32 %v1957_v51, 0.0  ;;  %v2042_v59 = vadd.f32 %v2041_v3, %v4758_v8  ;;  %vm5595_vm3 = vmmov %vm5593_vm0 }
 0x19f   :  { %2656 = vst [vmem:[%s5245_s3 + $0x48] sm:$0xff] %v2616_v23  ;;  %v4800_v62 = vpop.permute.xlu0 %1684  ;;  %v2517_v43 = vmax.f32 %v1986_v46, 0.0  ;;  %v2500_v60 = vmax.f32 %v2013_v39, 0.0  ;;  %v2618_v42 = vpack.c.bf16 %v2503_v49, %v2502_v34  ;;  %vm5596_vm4 = vmmov %vm5593_vm0 }
 0x1a0   :  { %2653 = vst [vmem:[%s5245_s3 + $0x34] sm:$0xff] %v2613_v24  ;;  %v1967_v11 = vadd.f32 %v4666_v20, %v4800_v62  ;;  %v1996_v9 = vadd.f32 %v4670_v32, %v4800_v62  ;;  %v2501_v2 = vmax.f32 %v2042_v59, 0.0  ;;  %v2072_v25 = vpop.f32.mrf.mxu0  ;;  %3011 = vmatmul.msk.bf16.gmra.mxu1 %vm5582_vm7, %v4767_v30  ;;  %vm5597_vm6 = vmmov %vm5593_vm0 }
 0x1a1   :  { %v2621_v55 = vpack.c.bf16 %v2517_v43, %v2516_v44  ;;  %2658 = vst [vmem:[%s5245_s3 + $0x58] sm:$0xff] %v2618_v42  ;;  %v2073_v5 = vadd.f32 %v2072_v25, %v4778_v19  ;;  %v2101_v35 = vpop.f32.mrf.mxu1  ;;  %vm5598_vm7 = vmmov %vm5593_vm0 }
 0x1a2   :  { %v2588_v36 = vmax.f32 %v1967_v11, 0.0  ;;  %v2589_v7 = vmax.f32 %v1996_v9, 0.0  ;;  %v2617_v12 = vpack.c.bf16 %v2501_v2, %v2500_v60  ;;  %v2102_v20 = vadd.f32 %v2101_v35, %v4778_v19 }
 0x1a3   :  { %v4816_v16 = vpop.permute.xlu1 %1674  ;;  %2661 = vst [vmem:[%s5245_s3 + $0x6c] sm:$0xff] %v2621_v55  ;;  %v2520_v32 = vmax.f32 %v2073_v5, 0.0 }
 0x1a4   :  { %v1962_v61 = vadd.f32 %v4583_v53, %v4816_v16  ;;  %v1991_v18 = vadd.f32 %v4587_v1, %v4816_v16  ;;  %v2014_v14 = vpop.f32.mrf.mxu2  ;;  %v2641_v17 = vpack.c.bf16 %v2589_v7, %v2588_v36  ;;  %2657 = vst [vmem:[%s5245_s3 + $0x50] sm:$0xff] %v2617_v12  ;;  %v2521_v41 = vmax.f32 %v2102_v20, 0.0 }
 0x1a5   :  { %v2015_v26 = vadd.f32 %v2014_v14, %v4778_v19  ;;  %v2043_v27 = vpop.f32.mrf.mxu3 }
 0x1a6   :  { %v2552_v63 = vmax.f32 %v1962_v61, 0.0  ;;  %v2553_v22 = vmax.f32 %v1991_v18, 0.0  ;;  %2681 = vst [vmem:[%s5245_s3 + $0xfc] sm:$0xff] %v2641_v17  ;;  %v2044_v53 = vadd.f32 %v2043_v27, %v4778_v19  ;;  %v2623_v45 = vpack.c.bf16 %v2521_v41, %v2520_v32 }
 0x1a7   :  { %v2518_v1 = vmax.f32 %v2015_v26, 0.0 }
 0x1a8   :  { %v2631_v58 = vpack.c.bf16 %v2553_v22, %v2552_v63  ;;  %v2519_v28 = vmax.f32 %v2044_v53, 0.0  ;;  %2663 = vst [vmem:[%s5245_s3 + $0x7c] sm:$0xff] %v2623_v45  ;;  %v2075_v6 = vpop.f32.mrf.mxu0 }
 0x1a9   :  { %3000 = vmatmul.msk.bf16.gmra.mxu2 %vm5583_vm5, %v4536_v40  ;;  %v2076_v38 = vadd.f32 %v2075_v6, %v4643_v4  ;;  %v2104_v31 = vpop.f32.mrf.mxu1  ;;  %vm5599_vm5 = vmmov %vm5593_vm0 }
 0x1aa   :  { %2671 = vst [vmem:[%s5245_s3 + $0xb4] sm:$0xff] %v2631_v58  ;;  %v2622_v13 = vpack.c.bf16 %v2519_v28, %v2518_v1  ;;  %3004 = vmatmul.msk.bf16.gmra.mxu3 %vm5584_vm9, %v4536_v40  ;;  %v2105_v15 = vadd.f32 %v2104_v31, %v4643_v4  ;;  %vm5600_vm9 = vmmov %vm5593_vm0 }
 0x1ab   :  { %v2538_v50 = vmax.f32 %v2076_v38, 0.0 }
 0x1ac   :  { %3008 = vmatmul.msk.bf16.gmra.mxu0 %vm5585_vm11, %v4536_v40  ;;  %v2017_v21 = vpop.f32.mrf.mxu2  ;;  %2662 = vst [vmem:[%s5245_s3 + $0x74] sm:$0xff] %v2622_v13  ;;  %v2539_v48 = vmax.f32 %v2105_v15, 0.0  ;;  %vm5601_vm11 = vmmov %vm5593_vm0 }
 0x1ad   :  { %v2018_v37 = vadd.f32 %v2017_v21, %v4643_v4  ;;  %v2046_v10 = vpop.f32.mrf.mxu3 }
 0x1ae   :  { %v2047_v24 = vadd.f32 %v2046_v10, %v4643_v4  ;;  %v2628_v34 = vpack.c.bf16 %v2539_v48, %v2538_v50 }
 0x1af   :  { %v2536_v33 = vmax.f32 %v2018_v37, 0.0 }
 0x1b0   :  { %v2537_v57 = vmax.f32 %v2047_v24, 0.0  ;;  %2668 = vst [vmem:[%s5245_s3 + $0xa0] sm:$0xff] %v2628_v34  ;;  %v2077_v52 = vpop.f32.mrf.mxu0  ;;  %3012 = vmatmul.msk.bf16.gmra.mxu1 %vm5586_vm13, %v4536_v40  ;;  %vm5602_vm13 = vmmov %vm5593_vm0 }
 0x1b1   :  { %v2078_v23 = vadd.f32 %v2077_v52, %v4816_v16  ;;  %v2106_v51 = vpop.f32.mrf.mxu1 }
 0x1b2   :  { %v2627_v46 = vpack.c.bf16 %v2537_v57, %v2536_v33  ;;  %v2107_v39 = vadd.f32 %v2106_v51, %v4816_v16 }
 0x1b3   :  { %v2556_v3 = vmax.f32 %v2078_v23, 0.0 }
 0x1b4   :  { %v2019_v49 = vpop.f32.mrf.mxu2  ;;  %2667 = vst [vmem:[%s5245_s3 + $0x98] sm:$0xff] %v2627_v46  ;;  %v2557_v44 = vmax.f32 %v2107_v39, 0.0 }
 0x1b5   :  { %v2020_v59 = vadd.f32 %v2019_v49, %v4816_v16  ;;  %v2048_v43 = vpop.f32.mrf.mxu3 }
 0x1b6   :  { %v2049_v60 = vadd.f32 %v2048_v43, %v4816_v16  ;;  %v2633_v42 = vpack.c.bf16 %v2557_v44, %v2556_v3 }
 0x1b7   :  { %v2554_v11 = vmax.f32 %v2020_v59, 0.0 }
 0x1b8   :  { %v2555_v9 = vmax.f32 %v2049_v60, 0.0  ;;  %2673 = vst [vmem:[%s5245_s3 + $0xc4] sm:$0xff] %v2633_v42  ;;  %v2080_v2 = vpop.f32.mrf.mxu0 }
 0x1b9   :  { %3001 = vmatmul.msk.bf16.gmra.mxu2 %vm5587_vm2, %v4607_v0  ;;  %v2081_v25 = vadd.f32 %v2080_v2, %v4685_v29  ;;  %v2109_v5 = vpop.f32.mrf.mxu1  ;;  %vm5603_vm2 = vmmov %vm5593_vm0 }
 0x1ba   :  { %v2632_v55 = vpack.c.bf16 %v2555_v9, %v2554_v11  ;;  %3005 = vmatmul.msk.bf16.gmra.mxu3 %vm5588_vm12, %v4607_v0  ;;  %v2110_v36 = vadd.f32 %v2109_v5, %v4685_v29  ;;  %vm5604_vm12 = vmmov %vm5593_vm0 }
 0x1bb   :  { %v2574_v35 = vmax.f32 %v2081_v25, 0.0 }
 0x1bc   :  { %3009 = vmatmul.msk.bf16.gmra.mxu0 %vm5589_vm1, %v4607_v0  ;;  %v2022_v7 = vpop.f32.mrf.mxu2  ;;  %2672 = vst [vmem:[%s5245_s3 + $0xbc] sm:$0xff] %v2632_v55  ;;  %v2575_v32 = vmax.f32 %v2110_v36, 0.0  ;;  %vm5605_vm1 = vmmov %vm5593_vm0 }
 0x1bd   :  { %v2023_v12 = vadd.f32 %v2022_v7, %v4685_v29  ;;  %v2051_v20 = vpop.f32.mrf.mxu3 }
 0x1be   :  { %v2052_v61 = vadd.f32 %v2051_v20, %v4685_v29  ;;  %v2638_v14 = vpack.c.bf16 %v2575_v32, %v2574_v35 }
 0x1bf   :  { %v2572_v18 = vmax.f32 %v2023_v12, 0.0 }
 0x1c0   :  { %v2573_v17 = vmax.f32 %v2052_v61, 0.0  ;;  %v2082_v41 = vpop.f32.mrf.mxu0  ;;  %2678 = vst [vmem:[%s5245_s3 + $0xe8] sm:$0xff] %v2638_v14  ;;  %3013 = vmatmul.msk.bf16.gmra.mxu1 %vm5590_vm15, %v4607_v0  ;;  %vm5606_vm15 = vmmov %vm5593_vm0 }
 0x1c1   :  { %v2083_v26 = vadd.f32 %v2082_v41, %v4800_v62  ;;  %v2111_v63 = vpop.f32.mrf.mxu1 }
 0x1c2   :  { %v2637_v27 = vpack.c.bf16 %v2573_v17, %v2572_v18  ;;  %v2112_v53 = vadd.f32 %v2111_v63, %v4800_v62 }
 0x1c3   :  { %v2592_v22 = vmax.f32 %v2083_v26, 0.0 }
 0x1c4   :  { %v2024_v45 = vpop.f32.mrf.mxu2  ;;  %2677 = vst [vmem:[%s5245_s3 + $0xe0] sm:$0xff] %v2637_v27  ;;  %v2593_v28 = vmax.f32 %v2112_v53, 0.0 }
 0x1c5   :  { %v2025_v1 = vadd.f32 %v2024_v45, %v4800_v62  ;;  %v2053_v58 = vpop.f32.mrf.mxu3 }
 0x1c6   :  { %v2054_v6 = vadd.f32 %v2053_v58, %v4800_v62  ;;  %v2643_v31 = vpack.c.bf16 %v2593_v28, %v2592_v22 }
 0x1c7   :  { %v2590_v38 = vmax.f32 %v2025_v1, 0.0 }
 0x1c8   :  { %v2591_v13 = vmax.f32 %v2054_v6, 0.0  ;;  %v2181_v15 = vpop.f32.mrf.mxu0  ;;  %2683 = vst [vmem:[%s5245_s3 + $0x10c] sm:$0xff] %v2643_v31 }
 0x1c9   :  { %3014 = vmatmul.msk.bf16.vlgmr.msra.gmra.mxu2 %vm5591_vm14, %v4692_v47  ;;  %v2182_v50 = vadd.f32 %v2181_v15, %v4740_v56 }
 0x1ca   :  { %v2642_v21 = vpack.c.bf16 %v2591_v13, %v2590_v38  ;;  %3018 = vmatmul.msk.bf16.vlgmr.msra.gmra.mxu3 %vm5592_vm8, %v4692_v47 }
 0x1cb   :  { %v2470_v48 = vmax.f32 %v2182_v50, 0.0 }
 0x1cc   :  { %3022 = vmatmul.msk.bf16.vlgmr.msra.gmra.mxu0 %vm5593_vm0, %v4692_v47  ;;  %v2123_v37 = vpop.f32.mrf.mxu2  ;;  %2682 = vst [vmem:[%s5245_s3 + $0x104] sm:$0xff] %v2642_v21 }
 0x1cd   :  { %v2124_v10 = vadd.f32 %v2123_v37, %v4740_v56  ;;  %v2152_v24 = vpop.f32.mrf.mxu3  ;;  %v2610_v34 = vpack.c.bf16 %v2470_v48, %v2470_v48  ;;  %v4907_v57 = vpop.f32.mrf.mxu1 }
 0x1ce   :  { %v2153_v33 = vadd.f32 %v2152_v24, %v4740_v56 }
 0x1cf   :  { %v2468_v52 = vmax.f32 %v2124_v10, 0.0  ;;  %2650 = vst [vmem:[%s5245_s3 + $0x20] sm:$0xf] %v2610_v34 }
 0x1d0   :  { %v2469_v23 = vmax.f32 %v2153_v33, 0.0  ;;  %v2183_v51 = vpop.f32.mrf.mxu0  ;;  %3026 = vmatmul.msk.bf16.vlgmr.msra.gmra.mxu1 %vm5594_vm10, %v4692_v47 }
 0x1d1   :  { %v2184_v46 = vadd.f32 %v2183_v51, %v4600_v54 }
 0x1d2   :  { %v2609_v39 = vpack.c.bf16 %v2469_v23, %v2468_v52 }
 0x1d3   :  { %v2488_v3 = vmax.f32 %v2184_v46, 0.0 }
 0x1d4   :  { %v2125_v49 = vpop.f32.mrf.mxu2  ;;  %2649 = vst [vmem:[%s5245_s3 + $0x18] sm:$0xff] %v2609_v39 }
 0x1d5   :  { %v2126_v44 = vadd.f32 %v2125_v49, %v4600_v54  ;;  %v2154_v59 = vpop.f32.mrf.mxu3  ;;  %v2615_v43 = vpack.c.bf16 %v2488_v3, %v2488_v3  ;;  %v4920_v42 = vpop.f32.mrf.mxu1 }
 0x1d6   :  { %v2155_v60 = vadd.f32 %v2154_v59, %v4600_v54 }
 0x1d7   :  { %v2486_v11 = vmax.f32 %v2126_v44, 0.0  ;;  %2655 = vst [vmem:[%s5245_s3 + $0x44] sm:$0xf] %v2615_v43 }
 0x1d8   :  { %v2487_v47 = vmax.f32 %v2155_v60, 0.0  ;;  %v2186_v9 = vpop.f32.mrf.mxu0 }
 0x1d9   :  { %3015 = vmatmul.msk.bf16.gmra.mxu2 %vm5595_vm3, %v4767_v30  ;;  %v2187_v2 = vadd.f32 %v2186_v9, %v4758_v8 }
 0x1da   :  { %v2614_v25 = vpack.c.bf16 %v2487_v47, %v2486_v11  ;;  %3019 = vmatmul.msk.bf16.gmra.mxu3 %vm5596_vm4, %v4767_v30 }
 0x1db   :  { %v2506_v55 = vmax.f32 %v2187_v2, 0.0 }
 0x1dc   :  { %3023 = vmatmul.msk.bf16.gmra.mxu0 %vm5597_vm6, %v4767_v30  ;;  %v2128_v5 = vpop.f32.mrf.mxu2  ;;  %2654 = vst [vmem:[%s5245_s3 + $0x3c] sm:$0xff] %v2614_v25 }
 0x1dd   :  { %v2129_v35 = vadd.f32 %v2128_v5, %v4758_v8  ;;  %v2157_v36 = vpop.f32.mrf.mxu3  ;;  %v2620_v7 = vpack.c.bf16 %v2506_v55, %v2506_v55  ;;  %v4937_v20 = vpop.f32.mrf.mxu1 }
 0x1de   :  { %v2158_v12 = vadd.f32 %v2157_v36, %v4758_v8 }
 0x1df   :  { %v2504_v32 = vmax.f32 %v2129_v35, 0.0  ;;  %2660 = vst [vmem:[%s5245_s3 + $0x68] sm:$0xf] %v2620_v7 }
 0x1e0   :  { %v2505_v61 = vmax.f32 %v2158_v12, 0.0  ;;  %v2188_v18 = vpop.f32.mrf.mxu0  ;;  %3027 = vmatmul.msk.bf16.gmra.mxu1 %vm5598_vm7, %v4767_v30 }
 0x1e1   :  { %v2189_v14 = vadd.f32 %v2188_v18, %v4778_v19 }
 0x1e2   :  { %v2619_v17 = vpack.c.bf16 %v2505_v61, %v2504_v32 }
 0x1e3   :  { %v2524_v41 = vmax.f32 %v2189_v14, 0.0 }
 0x1e4   :  { %v2130_v26 = vpop.f32.mrf.mxu2  ;;  %2659 = vst [vmem:[%s5245_s3 + $0x60] sm:$0xff] %v2619_v17 }
 0x1e5   :  { %v2131_v27 = vadd.f32 %v2130_v26, %v4778_v19  ;;  %v2159_v63 = vpop.f32.mrf.mxu3  ;;  %v2625_v22 = vpack.c.bf16 %v2524_v41, %v2524_v41  ;;  %v4950_v45 = vpop.f32.mrf.mxu1 }
 0x1e6   :  { %v2160_v53 = vadd.f32 %v2159_v63, %v4778_v19 }
 0x1e7   :  { %v2522_v1 = vmax.f32 %v2131_v27, 0.0  ;;  %2665 = vst [vmem:[%s5245_s3 + $0x8c] sm:$0xf] %v2625_v22 }
 0x1e8   :  { %v2523_v30 = vmax.f32 %v2160_v53, 0.0  ;;  %v2191_v58 = vpop.f32.mrf.mxu0 }
 0x1e9   :  { %3016 = vmatmul.msk.bf16.gmra.mxu2 %vm5599_vm5, %v4536_v40  ;;  %v2192_v28 = vadd.f32 %v2191_v58, %v4643_v4 }
 0x1ea   :  { %v2624_v6 = vpack.c.bf16 %v2523_v30, %v2522_v1  ;;  %3020 = vmatmul.msk.bf16.gmra.mxu3 %vm5600_vm9, %v4536_v40  ;;  %v2211_v30 = vadd.f32 %v4907_v57, %v4740_v56  ;;  %v2213_v57 = vadd.f32 %v4920_v42, %v4600_v54 }
 0x1eb   :  { %v2542_v38 = vmax.f32 %v2192_v28, 0.0 }
 0x1ec   :  { %3024 = vmatmul.msk.bf16.gmra.mxu0 %vm5601_vm11, %v4536_v40  ;;  %v2133_v31 = vpop.f32.mrf.mxu2  ;;  %2664 = vst [vmem:[%s5245_s3 + $0x84] sm:$0xff] %v2624_v6 }
 0x1ed   :  { %v2134_v13 = vadd.f32 %v2133_v31, %v4643_v4  ;;  %v2162_v15 = vpop.f32.mrf.mxu3  ;;  %v2630_v50 = vpack.c.bf16 %v2542_v38, %v2542_v38  ;;  %v4967_v48 = vpop.f32.mrf.mxu1 }
 0x1ee   :  { %v2163_v21 = vadd.f32 %v2162_v15, %v4643_v4  ;;  %v2471_v15 = vmax.f32 %v2211_v30, 0.0 }
 0x1ef   :  { %v2540_v37 = vmax.f32 %v2134_v13, 0.0  ;;  %2670 = vst [vmem:[%s5245_s3 + $0xb0] sm:$0xf] %v2630_v50 }
 0x1f0   :  { %v2541_v10 = vmax.f32 %v2163_v21, 0.0  ;;  %v2193_v24 = vpop.f32.mrf.mxu0  ;;  %3028 = vmatmul.msk.bf16.gmra.mxu1 %vm5602_vm13, %v4536_v40 }
 0x1f1   :  { %v2194_v34 = vadd.f32 %v2193_v24, %v4816_v16 }
 0x1f2   :  { %v2629_v33 = vpack.c.bf16 %v2541_v10, %v2540_v37 }
 0x1f3   :  { %v2560_v52 = vmax.f32 %v2194_v34, 0.0 }
 0x1f4   :  { %v2135_v23 = vpop.f32.mrf.mxu2  ;;  %2669 = vst [vmem:[%s5245_s3 + $0xa8] sm:$0xff] %v2629_v33 }
 0x1f5   :  { %v2136_v51 = vadd.f32 %v2135_v23, %v4816_v16  ;;  %v2164_v46 = vpop.f32.mrf.mxu3  ;;  %v2635_v39 = vpack.c.bf16 %v2560_v52, %v2560_v52  ;;  %v4980_v49 = vpop.f32.mrf.mxu1 }
 0x1f6   :  { %v2165_v3 = vadd.f32 %v2164_v46, %v4816_v16 }
 0x1f7   :  { %v2558_v44 = vmax.f32 %v2136_v51, 0.0  ;;  %2675 = vst [vmem:[%s5245_s3 + $0xd4] sm:$0xf] %v2635_v39  ;;  %v2489_v39 = vmax.f32 %v2213_v57, 0.0 }
 0x1f8   :  { %v2559_v40 = vmax.f32 %v2165_v3, 0.0  ;;  %v2196_v59 = vpop.f32.mrf.mxu0 }
 0x1f9   :  { %3017 = vmatmul.msk.bf16.gmra.mxu2 %vm5603_vm2, %v4607_v0  ;;  %v2197_v43 = vadd.f32 %v2196_v59, %v4685_v29 }
 0x1fa   :  { %v2634_v60 = vpack.c.bf16 %v2559_v40, %v2558_v44  ;;  %3021 = vmatmul.msk.bf16.gmra.mxu3 %vm5604_vm12, %v4607_v0 }
 0x1fb   :  { %v2578_v11 = vmax.f32 %v2197_v43, 0.0 }
 0x1fc   :  { %3025 = vmatmul.msk.bf16.gmra.mxu0 %vm5605_vm1, %v4607_v0  ;;  %v2138_v47 = vpop.f32.mrf.mxu2  ;;  %2674 = vst [vmem:[%s5245_s3 + $0xcc] sm:$0xff] %v2634_v60 }
 0x1fd   :  { %v2139_v9 = vadd.f32 %v2138_v47, %v4685_v29  ;;  %v2167_v2 = vpop.f32.mrf.mxu3  ;;  %v2640_v25 = vpack.c.bf16 %v2578_v11, %v2578_v11  ;;  %v4997_v5 = vpop.f32.mrf.mxu1  ;;  %v2216_v11 = vadd.f32 %v4937_v20, %v4758_v8 }
 0x1fe   :  { %v2168_v55 = vadd.f32 %v2167_v2, %v4685_v29 }
 0x1ff   :  { %v2576_v35 = vmax.f32 %v2139_v9, 0.0  ;;  %2680 = vst [vmem:[%s5245_s3 + $0xf8] sm:$0xf] %v2640_v25 }
 0x200   :  { %v2577_v36 = vmax.f32 %v2168_v55, 0.0  ;;  %v2198_v7 = vpop.f32.mrf.mxu0  ;;  %3029 = vmatmul.msk.bf16.gmra.mxu1 %vm5606_vm15, %v4607_v0 }
 0x201   :  { %v2199_v12 = vadd.f32 %v2198_v7, %v4800_v62 }
 0x202   :  { %v2639_v32 = vpack.c.bf16 %v2577_v36, %v2576_v35  ;;  %v2507_v36 = vmax.f32 %v2216_v11, 0.0 }
 0x203   :  { %v2596_v61 = vmax.f32 %v2199_v12, 0.0 }
 0x204   :  { %v2140_v18 = vpop.f32.mrf.mxu2  ;;  %2679 = vst [vmem:[%s5245_s3 + $0xf0] sm:$0xff] %v2639_v32 }
 0x205   :  { %v2141_v14 = vadd.f32 %v2140_v18, %v4800_v62  ;;  %v2169_v17 = vpop.f32.mrf.mxu3  ;;  %v2645_v41 = vpack.c.bf16 %v2596_v61, %v2596_v61  ;;  %v5010_v27 = vpop.f32.mrf.mxu1  ;;  %v2218_v18 = vadd.f32 %v4950_v45, %v4778_v19 }
 0x206   :  { %v2170_v26 = vadd.f32 %v2169_v17, %v4800_v62 }
 0x207   :  { %v2594_v63 = vmax.f32 %v2141_v14, 0.0  ;;  %2685 = vst [vmem:[%s5245_s3 + $0x11c] sm:$0xf] %v2645_v41 }
 0x208   :  { %v2595_v0 = vmax.f32 %v2170_v26, 0.0 }
 0x209   :  { %v2297_v22 = vpop.f32.mrf.mxu0 }
 0x20a   :  { %v2644_v53 = vpack.c.bf16 %v2595_v0, %v2594_v63  ;;  %v2298_v1 = vadd.f32 %v2297_v22, %v4740_v56  ;;  %v2525_v22 = vmax.f32 %v2218_v18, 0.0 }
 0x20c   :  { %v2239_v58 = vpop.f32.mrf.mxu2  ;;  %2684 = vst [vmem:[%s5245_s3 + $0x114] sm:$0xff] %v2644_v53  ;;  %v2474_v31 = vmax.f32 %v2298_v1, 0.0 }
 0x20d   :  { %v2240_v28 = vadd.f32 %v2239_v58, %v4740_v56  ;;  %v2268_v6 = vpop.f32.mrf.mxu3  ;;  %v5023_v13 = vpop.f32.mrf.mxu1 }
 0x20e   :  { %v2269_v38 = vadd.f32 %v2268_v6, %v4740_v56 }
 0x20f   :  { %v2472_v50 = vmax.f32 %v2240_v28, 0.0 }
 0x210   :  { %v2473_v21 = vmax.f32 %v2269_v38, 0.0  ;;  %v2221_v38 = vadd.f32 %v4967_v48, %v4643_v4 }
 0x211   :  { %v2299_v37 = vpop.f32.mrf.mxu0  ;;  %v2686_v10 = vpack.c.bf16 %v2472_v50, %v2471_v15 }
 0x212   :  { %v2687_v24 = vpack.c.bf16 %v2474_v31, %v2473_v21  ;;  %v2300_v33 = vadd.f32 %v2299_v37, %v4600_v54 }
 0x213   :  { %3030 = vst [vmem:[%s5245_s3 + $0x120] sm:$0xff] %v2686_v10 }
 0x214   :  { %v2241_v34 = vpop.f32.mrf.mxu2  ;;  %3031 = vst [vmem:[%s5245_s3 + $0x128] sm:$0xff] %v2687_v24  ;;  %v2492_v44 = vmax.f32 %v2300_v33, 0.0  ;;  %v2543_v24 = vmax.f32 %v2221_v38, 0.0 }
 0x215   :  { %v2242_v52 = vadd.f32 %v2241_v34, %v4600_v54  ;;  %v2270_v23 = vpop.f32.mrf.mxu3  ;;  %v5036_v46 = vpop.f32.mrf.mxu1 }
 0x216   :  { %v2271_v51 = vadd.f32 %v2270_v23, %v4600_v54  ;;  %v2223_v23 = vadd.f32 %v4980_v49, %v4816_v16 }
 0x217   :  { %v2490_v42 = vmax.f32 %v2242_v52, 0.0 }
 0x218   :  { %v2491_v3 = vmax.f32 %v2271_v51, 0.0 }
 0x219   :  { %v2302_v40 = vpop.f32.mrf.mxu0  ;;  %v2691_v59 = vpack.c.bf16 %v2490_v42, %v2489_v39 }
 0x21a   :  { %v2692_v43 = vpack.c.bf16 %v2492_v44, %v2491_v3  ;;  %v2303_v60 = vadd.f32 %v2302_v40, %v4758_v8 }
 0x21b   :  { %3035 = vst [vmem:[%s5245_s3 + $0x144] sm:$0xff] %v2691_v59  ;;  %v2561_v59 = vmax.f32 %v2223_v23, 0.0 }
 0x21c   :  { %v2244_v47 = vpop.f32.mrf.mxu2  ;;  %3036 = vst [vmem:[%s5245_s3 + $0x14c] sm:$0xff] %v2692_v43  ;;  %v2510_v55 = vmax.f32 %v2303_v60, 0.0 }
 0x21d   :  { %v2245_v9 = vadd.f32 %v2244_v47, %v4758_v8  ;;  %v2273_v2 = vpop.f32.mrf.mxu3  ;;  %v5049_v35 = vpop.f32.mrf.mxu1 }
 0x21e   :  { %v2274_v25 = vadd.f32 %v2273_v2, %v4758_v8 }
 0x21f   :  { %v2508_v7 = vmax.f32 %v2245_v9, 0.0 }
 0x220   :  { %v2509_v20 = vmax.f32 %v2274_v25, 0.0  ;;  %v2226_v25 = vadd.f32 %v4997_v5, %v4685_v29 }
 0x221   :  { %v2304_v12 = vpop.f32.mrf.mxu0  ;;  %v2696_v32 = vpack.c.bf16 %v2508_v7, %v2507_v36 }
 0x222   :  { %v2697_v61 = vpack.c.bf16 %v2510_v55, %v2509_v20  ;;  %v2305_v17 = vadd.f32 %v2304_v12, %v4778_v19 }
 0x223   :  { %3040 = vst [vmem:[%s5245_s3 + $0x168] sm:$0xff] %v2696_v32 }
 0x224   :  { %v2246_v14 = vpop.f32.mrf.mxu2  ;;  %3041 = vst [vmem:[%s5245_s3 + $0x170] sm:$0xff] %v2697_v61  ;;  %v2528_v1 = vmax.f32 %v2305_v17, 0.0  ;;  %v2579_v61 = vmax.f32 %v2226_v25, 0.0 }
 0x225   :  { %v2247_v41 = vadd.f32 %v2246_v14, %v4778_v19  ;;  %v2275_v26 = vpop.f32.mrf.mxu3  ;;  %v5062_v0 = vpop.f32.mrf.mxu1 }
 0x226   :  { %v2276_v63 = vadd.f32 %v2275_v26, %v4778_v19  ;;  %v2228_v26 = vadd.f32 %v5010_v27, %v4800_v62 }
 0x227   :  { %v2526_v45 = vmax.f32 %v2247_v41, 0.0 }
 0x228   :  { %v2527_v53 = vmax.f32 %v2276_v63, 0.0 }
 0x229   :  { %v2307_v30 = vpop.f32.mrf.mxu0  ;;  %v2701_v58 = vpack.c.bf16 %v2526_v45, %v2525_v22 }
 0x22a   :  { %v2702_v28 = vpack.c.bf16 %v2528_v1, %v2527_v53  ;;  %v2308_v6 = vadd.f32 %v2307_v30, %v4643_v4 }
 0x22b   :  { %3045 = vst [vmem:[%s5245_s3 + $0x18c] sm:$0xff] %v2701_v58  ;;  %v2597_v58 = vmax.f32 %v2228_v26, 0.0 }
 0x22c   :  { %v2249_v31 = vpop.f32.mrf.mxu2  ;;  %3046 = vst [vmem:[%s5245_s3 + $0x194] sm:$0xff] %v2702_v28  ;;  %v2546_v37 = vmax.f32 %v2308_v6, 0.0 }
 0x22d   :  { %v2250_v15 = vadd.f32 %v2249_v31, %v4643_v4  ;;  %v2278_v50 = vpop.f32.mrf.mxu3  ;;  %v5075_v10 = vpop.f32.mrf.mxu1 }
 0x22e   :  { %v2279_v21 = vadd.f32 %v2278_v50, %v4643_v4 }
 0x22f   :  { %v2544_v57 = vmax.f32 %v2250_v15, 0.0 }
 0x230   :  { %v2545_v48 = vmax.f32 %v2279_v21, 0.0  ;;  %v2327_v21 = vadd.f32 %v5023_v13, %v4740_v56 }
 0x231   :  { %v2309_v34 = vpop.f32.mrf.mxu0  ;;  %v2706_v33 = vpack.c.bf16 %v2544_v57, %v2543_v24 }
 0x232   :  { %v2707_v52 = vpack.c.bf16 %v2546_v37, %v2545_v48  ;;  %v2310_v39 = vadd.f32 %v2309_v34, %v4816_v16 }
 0x233   :  { %3050 = vst [vmem:[%s5245_s3 + $0x1b0] sm:$0xff] %v2706_v33 }
 0x234   :  { %v2251_v51 = vpop.f32.mrf.mxu2  ;;  %3051 = vst [vmem:[%s5245_s3 + $0x1b8] sm:$0xff] %v2707_v52  ;;  %v2564_v60 = vmax.f32 %v2310_v39, 0.0  ;;  %v2475_v52 = vmax.f32 %v2327_v21, 0.0 }
 0x235   :  { %v2252_v42 = vadd.f32 %v2251_v51, %v4816_v16  ;;  %v2280_v3 = vpop.f32.mrf.mxu3  ;;  %v5088_v40 = vpop.f32.mrf.mxu1 }
 0x236   :  { %v2281_v44 = vadd.f32 %v2280_v3, %v4816_v16 }
 0x237   :  { %v2562_v49 = vmax.f32 %v2252_v42, 0.0 }
 0x238   :  { %v2563_v43 = vmax.f32 %v2281_v44, 0.0 }
 0x239   :  { %v2312_v11 = vpop.f32.mrf.mxu0  ;;  %v2711_v47 = vpack.c.bf16 %v2562_v49, %v2561_v59  ;;  %v2329_v59 = vadd.f32 %v5036_v46, %v4600_v54 }
 0x23a   :  { %v2712_v9 = vpack.c.bf16 %v2564_v60, %v2563_v43  ;;  %v2313_v2 = vadd.f32 %v2312_v11, %v4685_v29 }
 0x23b   :  { %3055 = vst [vmem:[%s5245_s3 + $0x1d4] sm:$0xff] %v2711_v47 }
 0x23c   :  { %v2254_v55 = vpop.f32.mrf.mxu2  ;;  %3056 = vst [vmem:[%s5245_s3 + $0x1dc] sm:$0xff] %v2712_v9  ;;  %v2582_v12 = vmax.f32 %v2313_v2, 0.0  ;;  %v2493_v9 = vmax.f32 %v2329_v59, 0.0 }
 0x23d   :  { %v2255_v36 = vadd.f32 %v2254_v55, %v4685_v29  ;;  %v2283_v7 = vpop.f32.mrf.mxu3  ;;  %v5101_v32 = vpop.f32.mrf.mxu1 }
 0x23e   :  { %v2284_v20 = vadd.f32 %v2283_v7, %v4685_v29 }
 0x23f   :  { %v2580_v18 = vmax.f32 %v2255_v36, 0.0 }
 0x240   :  { %v2581_v5 = vmax.f32 %v2284_v20, 0.0 }
 0x241   :  { %v2314_v14 = vpop.f32.mrf.mxu0  ;;  %v2716_v17 = vpack.c.bf16 %v2580_v18, %v2579_v61 }
 0x242   :  { %v2717_v41 = vpack.c.bf16 %v2582_v12, %v2581_v5  ;;  %v2315_v22 = vadd.f32 %v2314_v14, %v4800_v62  ;;  %v2332_v5 = vadd.f32 %v5049_v35, %v4758_v8 }
 0x243   :  { %3060 = vst [vmem:[%s5245_s3 + $0x1f8] sm:$0xff] %v2716_v17 }
 0x244   :  { %v2256_v63 = vpop.f32.mrf.mxu2  ;;  %3061 = vst [vmem:[%s5245_s3 + $0x200] sm:$0xff] %v2717_v41  ;;  %v2600_v6 = vmax.f32 %v2315_v22, 0.0  ;;  %v2511_v22 = vmax.f32 %v2332_v5, 0.0 }
 0x245   :  { %v2257_v45 = vadd.f32 %v2256_v63, %v4800_v62  ;;  %v2285_v53 = vpop.f32.mrf.mxu3  ;;  %v5114_v30 = vpop.f32.mrf.mxu1 }
 0x246   :  { %v2286_v1 = vadd.f32 %v2285_v53, %v4800_v62 }
 0x247   :  { %v2598_v27 = vmax.f32 %v2257_v45, 0.0 }
 0x248   :  { %v2599_v28 = vmax.f32 %v2286_v1, 0.0 }
 0x249   :  { %v2413_v38 = vpop.f32.mrf.mxu0  ;;  %v2721_v31 = vpack.c.bf16 %v2598_v27, %v2597_v58 }
 0x24a   :  { %v2722_v15 = vpack.c.bf16 %v2600_v6, %v2599_v28  ;;  %v2414_v50 = vadd.f32 %v2413_v38, %v4740_v56  ;;  %v2334_v38 = vadd.f32 %v5062_v0, %v4778_v19 }
 0x24b   :  { %3065 = vst [vmem:[%s5245_s3 + $0x21c] sm:$0xff] %v2721_v31 }
 0x24c   :  { %v2355_v37 = vpop.f32.mrf.mxu2  ;;  %3066 = vst [vmem:[%s5245_s3 + $0x224] sm:$0xff] %v2722_v15  ;;  %v2478_v34 = vmax.f32 %v2414_v50, 0.0 }
 0x24d   :  { %v2356_v24 = vadd.f32 %v2355_v37, %v4740_v56  ;;  %v2384_v57 = vpop.f32.mrf.mxu3  ;;  %v2442_v33 = vpop.f32.mrf.mxu1 }
 0x24e   :  { %v2385_v48 = vadd.f32 %v2384_v57, %v4740_v56  ;;  %v2443_v13 = vadd.f32 %v2442_v33, %v4740_v56 }
 0x24f   :  { %v2476_v23 = vmax.f32 %v2356_v24, 0.0  ;;  %v2529_v24 = vmax.f32 %v2334_v38, 0.0 }
 0x250   :  { %v2477_v51 = vmax.f32 %v2385_v48, 0.0  ;;  %v2479_v3 = vmax.f32 %v2443_v13, 0.0 }
 0x251   :  { %v2415_v39 = vpop.f32.mrf.mxu0  ;;  %v2688_v42 = vpack.c.bf16 %v2476_v23, %v2475_v52 }
 0x252   :  { %v2689_v44 = vpack.c.bf16 %v2478_v34, %v2477_v51  ;;  %v2690_v49 = vpack.c.bf16 %v2479_v3, %v2479_v3  ;;  %v2416_v56 = vadd.f32 %v2415_v39, %v4600_v54 }
 0x253   :  { %3032 = vst [vmem:[%s5245_s3 + $0x130] sm:$0xff] %v2688_v42  ;;  %v2337_v42 = vadd.f32 %v5075_v10, %v4643_v4 }
 0x254   :  { %v2357_v43 = vpop.f32.mrf.mxu2  ;;  %3033 = vst [vmem:[%s5245_s3 + $0x138] sm:$0xff] %v2689_v44  ;;  %v2496_v36 = vmax.f32 %v2416_v56, 0.0 }
 0x255   :  { %v2358_v60 = vadd.f32 %v2357_v43, %v4600_v54  ;;  %3034 = vst [vmem:[%s5245_s3 + $0x140] sm:$0xf] %v2690_v49  ;;  %v2386_v11 = vpop.f32.mrf.mxu3  ;;  %v2444_v47 = vpop.f32.mrf.mxu1  ;;  %v2547_v56 = vmax.f32 %v2337_v42, 0.0 }
 0x256   :  { %v2387_v46 = vadd.f32 %v2386_v11, %v4600_v54  ;;  %v2445_v25 = vadd.f32 %v2444_v47, %v4600_v54 }
 0x257   :  { %v2494_v2 = vmax.f32 %v2358_v60, 0.0 }
 0x258   :  { %v2495_v55 = vmax.f32 %v2387_v46, 0.0  ;;  %v2497_v12 = vmax.f32 %v2445_v25, 0.0 }
 0x259   :  { %v2418_v7 = vpop.f32.mrf.mxu0  ;;  %v2693_v20 = vpack.c.bf16 %v2494_v2, %v2493_v9 }
 0x25a   :  { %v2694_v61 = vpack.c.bf16 %v2496_v36, %v2495_v55  ;;  %v2419_v18 = vadd.f32 %v2418_v7, %v4758_v8  ;;  %v2695_v14 = vpack.c.bf16 %v2497_v12, %v2497_v12  ;;  %v2339_v55 = vadd.f32 %v5088_v40, %v4816_v16 }
 0x25b   :  { %3037 = vst [vmem:[%s5245_s3 + $0x154] sm:$0xff] %v2693_v20 }
 0x25c   :  { %v2360_v17 = vpop.f32.mrf.mxu2  ;;  %3038 = vst [vmem:[%s5245_s3 + $0x15c] sm:$0xff] %v2694_v61  ;;  %v2514_v35 = vmax.f32 %v2419_v18, 0.0  ;;  %v2565_v18 = vmax.f32 %v2339_v55, 0.0 }
 0x25d   :  { %v2361_v54 = vadd.f32 %v2360_v17, %v4758_v8  ;;  %3039 = vst [vmem:[%s5245_s3 + $0x164] sm:$0xf] %v2695_v14  ;;  %v2389_v41 = vpop.f32.mrf.mxu3  ;;  %v2447_v63 = vpop.f32.mrf.mxu1 }
 0x25e   :  { %v2390_v26 = vadd.f32 %v2389_v41, %v4758_v8  ;;  %v2448_v53 = vadd.f32 %v2447_v63, %v4758_v8 }
 0x25f   :  { %v2512_v45 = vmax.f32 %v2361_v54, 0.0 }
 0x260   :  { %v2513_v1 = vmax.f32 %v2390_v26, 0.0  ;;  %v2515_v28 = vmax.f32 %v2448_v53, 0.0 }
 0x261   :  { %v2420_v58 = vpop.f32.mrf.mxu0  ;;  %v2698_v27 = vpack.c.bf16 %v2512_v45, %v2511_v22  ;;  %v2342_v22 = vadd.f32 %v5101_v32, %v4685_v29 }
 0x262   :  { %v2699_v6 = vpack.c.bf16 %v2514_v35, %v2513_v1  ;;  %v2700_v31 = vpack.c.bf16 %v2515_v28, %v2515_v28  ;;  %v2421_v8 = vadd.f32 %v2420_v58, %v4778_v19 }
 0x263   :  { %3042 = vst [vmem:[%s5245_s3 + $0x178] sm:$0xff] %v2698_v27  ;;  %v2583_v28 = vmax.f32 %v2342_v22, 0.0 }
 0x264   :  { %v2362_v15 = vpop.f32.mrf.mxu2  ;;  %3043 = vst [vmem:[%s5245_s3 + $0x180] sm:$0xff] %v2699_v6  ;;  %v2532_v33 = vmax.f32 %v2421_v8, 0.0 }
 0x265   :  { %v2363_v50 = vadd.f32 %v2362_v15, %v4778_v19  ;;  %3044 = vst [vmem:[%s5245_s3 + $0x188] sm:$0xf] %v2700_v31  ;;  %v2391_v21 = vpop.f32.mrf.mxu3  ;;  %v2449_v37 = vpop.f32.mrf.mxu1 }
 0x266   :  { %v2392_v0 = vadd.f32 %v2391_v21, %v4778_v19  ;;  %v2450_v48 = vadd.f32 %v2449_v37, %v4778_v19  ;;  %v2344_v37 = vadd.f32 %v5114_v30, %v4800_v62 }
 0x267   :  { %v2530_v57 = vmax.f32 %v2363_v50, 0.0 }
 0x268   :  { %v2531_v34 = vmax.f32 %v2392_v0, 0.0  ;;  %v2533_v13 = vmax.f32 %v2450_v48, 0.0 }
 0x269   :  { %v2423_v52 = vpop.f32.mrf.mxu0  ;;  %v2703_v23 = vpack.c.bf16 %v2530_v57, %v2529_v24 }
 0x26a   :  { %v2704_v51 = vpack.c.bf16 %v2532_v33, %v2531_v34  ;;  %v2424_v39 = vadd.f32 %v2423_v52, %v4643_v4  ;;  %v2705_v3 = vpack.c.bf16 %v2533_v13, %v2533_v13  ;;  %v2601_v52 = vmax.f32 %v2344_v37, 0.0 }
 0x26b   :  { %3047 = vst [vmem:[%s5245_s3 + $0x19c] sm:$0xff] %v2703_v23 }
 0x26c   :  { %v2365_v44 = vpop.f32.mrf.mxu2  ;;  %3048 = vst [vmem:[%s5245_s3 + $0x1a4] sm:$0xff] %v2704_v51  ;;  %v2550_v10 = vmax.f32 %v2424_v39, 0.0 }
 0x26d   :  { %v2366_v19 = vadd.f32 %v2365_v44, %v4643_v4  ;;  %3049 = vst [vmem:[%s5245_s3 + $0x1ac] sm:$0xf] %v2705_v3  ;;  %v2394_v59 = vpop.f32.mrf.mxu3  ;;  %v2452_v43 = vpop.f32.mrf.mxu1 }
 0x26e   :  { %v2395_v49 = vadd.f32 %v2394_v59, %v4643_v4  ;;  %v2453_v11 = vadd.f32 %v2452_v43, %v4643_v4 }
 0x26f   :  { %v2548_v60 = vmax.f32 %v2366_v19, 0.0 }
 0x270   :  { %v2549_v46 = vmax.f32 %v2395_v49, 0.0  ;;  %v2551_v2 = vmax.f32 %v2453_v11, 0.0 }
 0x271   :  { %v2425_v47 = vpop.f32.mrf.mxu0  ;;  %v2708_v9 = vpack.c.bf16 %v2548_v60, %v2547_v56 }
 0x272   :  { %v2709_v25 = vpack.c.bf16 %v2550_v10, %v2549_v46  ;;  %v2710_v36 = vpack.c.bf16 %v2551_v2, %v2551_v2  ;;  %v2426_v4 = vadd.f32 %v2425_v47, %v4816_v16 }
 0x273   :  { %3052 = vst [vmem:[%s5245_s3 + $0x1c0] sm:$0xff] %v2708_v9 }
 0x274   :  { %v2367_v7 = vpop.f32.mrf.mxu2  ;;  %3053 = vst [vmem:[%s5245_s3 + $0x1c8] sm:$0xff] %v2709_v25  ;;  %v2568_v54 = vmax.f32 %v2426_v4, 0.0 }
 0x275   :  { %v2368_v20 = vadd.f32 %v2367_v7, %v4816_v16  ;;  %3054 = vst [vmem:[%s5245_s3 + $0x1d0] sm:$0xf] %v2710_v36  ;;  %v2396_v12 = vpop.f32.mrf.mxu3  ;;  %v2454_v61 = vpop.f32.mrf.mxu1 }
 0x276   :  { %v2397_v40 = vadd.f32 %v2396_v12, %v4816_v16  ;;  %v2455_v14 = vadd.f32 %v2454_v61, %v4816_v16 }
 0x277   :  { %v2566_v5 = vmax.f32 %v2368_v20, 0.0 }
 0x278   :  { %v2567_v17 = vmax.f32 %v2397_v40, 0.0  ;;  %v2569_v35 = vmax.f32 %v2455_v14, 0.0 }
 0x279   :  { %v2428_v41 = vpop.f32.mrf.mxu0  ;;  %v2713_v26 = vpack.c.bf16 %v2566_v5, %v2565_v18 }
 0x27a   :  { %v2714_v63 = vpack.c.bf16 %v2568_v54, %v2567_v17  ;;  %v2715_v45 = vpack.c.bf16 %v2569_v35, %v2569_v35  ;;  %v2429_v16 = vadd.f32 %v2428_v41, %v4685_v29 }
 0x27b   :  { %3057 = vst [vmem:[%s5245_s3 + $0x1e4] sm:$0xff] %v2713_v26 }
 0x27c   :  { %v2370_v53 = vpop.f32.mrf.mxu2  ;;  %3058 = vst [vmem:[%s5245_s3 + $0x1ec] sm:$0xff] %v2714_v63  ;;  %v2586_v15 = vmax.f32 %v2429_v16, 0.0 }
 0x27d   :  { %v2371_v1 = vadd.f32 %v2370_v53, %v4685_v29  ;;  %3059 = vst [vmem:[%s5245_s3 + $0x1f4] sm:$0xf] %v2715_v45  ;;  %v2399_v58 = vpop.f32.mrf.mxu3  ;;  %v2457_v27 = vpop.f32.mrf.mxu1 }
 0x27e   :  { %v2400_v32 = vadd.f32 %v2399_v58, %v4685_v29  ;;  %v2458_v38 = vadd.f32 %v2457_v27, %v4685_v29 }
 0x27f   :  { %v2584_v6 = vmax.f32 %v2371_v1, 0.0 }
 0x280   :  { %v2585_v31 = vmax.f32 %v2400_v32, 0.0  ;;  %v2587_v50 = vmax.f32 %v2458_v38, 0.0 }
 0x281   :  { %v2718_v8 = vpack.c.bf16 %v2584_v6, %v2583_v28  ;;  %v2430_v21 = vpop.f32.mrf.mxu0 }
 0x282   :  { %v2719_v0 = vpack.c.bf16 %v2586_v15, %v2585_v31  ;;  %v2720_v24 = vpack.c.bf16 %v2587_v50, %v2587_v50  ;;  %v2431_v29 = vadd.f32 %v2430_v21, %v4800_v62 }
 0x283   :  { %3062 = vst [vmem:[%s5245_s3 + $0x208] sm:$0xff] %v2718_v8 }
 0x284   :  { %v2372_v57 = vpop.f32.mrf.mxu2  ;;  %3063 = vst [vmem:[%s5245_s3 + $0x210] sm:$0xff] %v2719_v0  ;;  %v2604_v39 = vmax.f32 %v2431_v29, 0.0 }
 0x285   :  { %v2373_v48 = vadd.f32 %v2372_v57, %v4800_v62  ;;  %3064 = vst [vmem:[%s5245_s3 + $0x218] sm:$0xf] %v2720_v24  ;;  %v2401_v34 = vpop.f32.mrf.mxu3  ;;  %v2459_v33 = vpop.f32.mrf.mxu1 }
 0x286   :  { %v2402_v30 = vadd.f32 %v2401_v34, %v4800_v62  ;;  %v2460_v13 = vadd.f32 %v2459_v33, %v4800_v62 }
 0x287   :  { %v2602_v23 = vmax.f32 %v2373_v48, 0.0 }
 0x288   :  { %v2603_v51 = vmax.f32 %v2402_v30, 0.0  ;;  %v2605_v3 = vmax.f32 %v2460_v13, 0.0 }
 0x289   :  { %v2723_v42 = vpack.c.bf16 %v2602_v23, %v2601_v52 }
 0x28a   :  { %v2724_v44 = vpack.c.bf16 %v2604_v39, %v2603_v51  ;;  %v2725_v19 = vpack.c.bf16 %v2605_v3, %v2605_v3 }
 0x28b   :  { %3067 = vst [vmem:[%s5245_s3 + $0x22c] sm:$0xff] %v2723_v42 }
 0x28c   :  { %3068 = vst [vmem:[%s5245_s3 + $0x234] sm:$0xff] %v2724_v44 }
 0x28d   :  { %3069 = vst [vmem:[%s5245_s3 + $0x23c] sm:$0xf] %v2725_v19 }

// kernel: resnet18_forward.3
= control target key start
LH: loop header
LB: loop body
LE: loop exit
PB: predicated region body
PF: predicated region fallthrough
CT: control target
= control target key end

     0   :  { %8 = vsyncpa [#allocation5], 0  ;;  %s4573_s12 = smov 0   ;;  %s4575_s13 = smov 0   ;;  %s5251_s0 = inlined_call_operand.vmem [shape: bf16[2,73728], index: 0, kind: input, shape index: {}]   ;;  %s5252_s1 = inlined_call_operand.vmem [shape: bf16[10,73728], index: 1, kind: input, shape index: {}]   ;;  %s5253_s2 = inlined_call_operand.vmem [shape: f32[1,10], index: 2, kind: input, shape index: {}]   ;;  %s5254_s3 = inlined_call_operand.hbm [shape: f32[2,10], index: 3, kind: output, shape index: {}]  }
   0x1   :  { %s4577_s14 = smov 0   ;;  %s4579_s15 = smov 0  }
   0x2   :  { %s4581_s16 = smov 0  }
   0x3 LB: > { %s3696_s17 = sadd.s32 4294967295, %s4549_s16   ;;  %s23_s18 = sadd.s32 1, %s4545_s15  ;;  %s4549_s16 = sphi %s4581_s16, %s14_s16   ;;  %s4545_s15 = sphi %s4579_s15, %s5258_s15   ;;  %s4541_s14 = sphi %s4577_s14, %s5257_s14   ;;  %s4537_s13 = sphi %s4575_s13, %s5256_s13   ;;  %s4533_s12 = sphi %s4573_s12, %s5255_s12  }
   0x4   : > { %p24_p0 = scmp.ge.s32.totalorder %s23_s18, 4  ;;  %p68_p1 = scmp.ne.s32.totalorder %s4537_s13, %s4533_s12 }
   0x5   : > { %p69_p2 = scmp.eq.s32.totalorder %s4549_s16, 0  ;;  %s61_s20 = sadd.s32 1, %s4537_s13 }
   0x6   : > { %s5260_s18 = smov (%p24_p0, %s23_s18), 0  ;;  %p3698_p5 = scmp.ge.s32.totalorder %s4549_s16, 4 }
   0x7   : > { %p70_p3 = por %p69_p2, %p68_p1  ;;  %s58_s19 = ssub.s32 %s4545_s15, %s5260_s18 }
   0x8   : > { %p59_p4 = scmp.eq.s32.totalorder %s58_s19, 0  ;;  %144 = sbr.rel (%p3698_p5) target bundleno = 162 (0xa2), region = 20 }
   0xa   : > { %s4609_s21 = scalar_select %p59_p4, %s4537_s13, %s61_s20  }
   0xd   : > { %159 = sbr.rel (!%p70_p3) target bundleno = 162 (0xa2), region = 28  ;;  %s161_s22 = sand.u32 (%p70_p3), 1, %s4537_s13  }
   0xe   : > { %s4283_s23 = smul.u32 (%p70_p3), 576, %s4545_s15 }
   0xf   : > { %s4428_s24 = smul.u32 (%p70_p3), 1152, %s161_s22 }
  0x10   : > { %s4617_s27 = scalar_lea.vmem (%p70_p3), %s5252_s1, %s4283_s23 }
  0x11   : > { %v179_v0 = vld [vmem:[%s4617_s27] sm:$0xff] (%p70_p3)  ;;  %v181_v1 = vld [vmem:[%s4617_s27 + $0x8] sm:$0xff] (%p70_p3)  ;;  %v183_v2 = vld [vmem:[%s4617_s27 + $0x10] sm:$0xff] (%p70_p3)  ;;  %s4622_s28 = scalar_lea.vmem (%p70_p3), [#allocation3], %s4428_s24 }
  0x12   : > { %180 = vst [vmem:[%s4622_s28] sm:$0xff] %v179_v0  ;;  %v185_v3 = vld [vmem:[%s4617_s27 + $0x18] sm:$0xff]  ;;  %v187_v4 = vld [vmem:[%s4617_s27 + $0x20] sm:$0xff]  ;;  %v189_v5 = vld [vmem:[%s4617_s27 + $0x28] sm:$0xff] }
  0x13   : > { %182 = vst [vmem:[%s4622_s28 + $0x8] sm:$0xff] %v181_v1  ;;  %v191_v6 = vld [vmem:[%s4617_s27 + $0x30] sm:$0xff]  ;;  %v193_v7 = vld [vmem:[%s4617_s27 + $0x38] sm:$0xff]  ;;  %v195_v8 = vld [vmem:[%s4617_s27 + $0x40] sm:$0xff] }
  0x14   : > { %184 = vst [vmem:[%s4622_s28 + $0x10] sm:$0xff] %v183_v2  ;;  %v197_v9 = vld [vmem:[%s4617_s27 + $0x48] sm:$0xff]  ;;  %v199_v10 = vld [vmem:[%s4617_s27 + $0x50] sm:$0xff]  ;;  %v201_v11 = vld [vmem:[%s4617_s27 + $0x58] sm:$0xff] }
  0x15   : > { %186 = vst [vmem:[%s4622_s28 + $0x18] sm:$0xff] %v185_v3  ;;  %v203_v12 = vld [vmem:[%s4617_s27 + $0x60] sm:$0xff]  ;;  %v205_v13 = vld [vmem:[%s4617_s27 + $0x68] sm:$0xff]  ;;  %v207_v14 = vld [vmem:[%s4617_s27 + $0x70] sm:$0xff] }
  0x16   : > { %188 = vst [vmem:[%s4622_s28 + $0x20] sm:$0xff] %v187_v4  ;;  %v209_v15 = vld [vmem:[%s4617_s27 + $0x78] sm:$0xff]  ;;  %v211_v16 = vld [vmem:[%s4617_s27 + $0x80] sm:$0xff]  ;;  %v213_v17 = vld [vmem:[%s4617_s27 + $0x88] sm:$0xff] }
  0x17   : > { %190 = vst [vmem:[%s4622_s28 + $0x28] sm:$0xff] %v189_v5  ;;  %v215_v18 = vld [vmem:[%s4617_s27 + $0x90] sm:$0xff]  ;;  %v217_v19 = vld [vmem:[%s4617_s27 + $0x98] sm:$0xff]  ;;  %v219_v20 = vld [vmem:[%s4617_s27 + $0xa0] sm:$0xff] }
  0x18   : > { %192 = vst [vmem:[%s4622_s28 + $0x30] sm:$0xff] %v191_v6  ;;  %v221_v21 = vld [vmem:[%s4617_s27 + $0xa8] sm:$0xff]  ;;  %v223_v22 = vld [vmem:[%s4617_s27 + $0xb0] sm:$0xff]  ;;  %v225_v23 = vld [vmem:[%s4617_s27 + $0xb8] sm:$0xff] }
  0x19   : > { %194 = vst [vmem:[%s4622_s28 + $0x38] sm:$0xff] %v193_v7  ;;  %v227_v24 = vld [vmem:[%s4617_s27 + $0xc0] sm:$0xff]  ;;  %v229_v25 = vld [vmem:[%s4617_s27 + $0xc8] sm:$0xff]  ;;  %v231_v26 = vld [vmem:[%s4617_s27 + $0xd0] sm:$0xff] }
  0x1a   : > { %196 = vst [vmem:[%s4622_s28 + $0x40] sm:$0xff] %v195_v8  ;;  %v233_v27 = vld [vmem:[%s4617_s27 + $0xd8] sm:$0xff]  ;;  %v235_v28 = vld [vmem:[%s4617_s27 + $0xe0] sm:$0xff]  ;;  %v237_v29 = vld [vmem:[%s4617_s27 + $0xe8] sm:$0xff] }
  0x1b   : > { %198 = vst [vmem:[%s4622_s28 + $0x48] sm:$0xff] %v197_v9  ;;  %v239_v30 = vld [vmem:[%s4617_s27 + $0xf0] sm:$0xff]  ;;  %v241_v31 = vld [vmem:[%s4617_s27 + $0xf8] sm:$0xff]  ;;  %v243_v32 = vld [vmem:[%s4617_s27 + $0x100] sm:$0xff] }
  0x1c   : > { %200 = vst [vmem:[%s4622_s28 + $0x50] sm:$0xff] %v199_v10  ;;  %v245_v33 = vld [vmem:[%s4617_s27 + $0x108] sm:$0xff]  ;;  %v247_v34 = vld [vmem:[%s4617_s27 + $0x110] sm:$0xff]  ;;  %v249_v35 = vld [vmem:[%s4617_s27 + $0x118] sm:$0xff] }
  0x1d   : > { %202 = vst [vmem:[%s4622_s28 + $0x58] sm:$0xff] %v201_v11  ;;  %v251_v36 = vld [vmem:[%s4617_s27 + $0x120] sm:$0xff]  ;;  %v253_v37 = vld [vmem:[%s4617_s27 + $0x128] sm:$0xff]  ;;  %v255_v38 = vld [vmem:[%s4617_s27 + $0x130] sm:$0xff] }
  0x1e   : > { %204 = vst [vmem:[%s4622_s28 + $0x60] sm:$0xff] %v203_v12  ;;  %v257_v39 = vld [vmem:[%s4617_s27 + $0x138] sm:$0xff]  ;;  %v259_v40 = vld [vmem:[%s4617_s27 + $0x140] sm:$0xff]  ;;  %v261_v41 = vld [vmem:[%s4617_s27 + $0x148] sm:$0xff] }
  0x1f   : > { %206 = vst [vmem:[%s4622_s28 + $0x68] sm:$0xff] %v205_v13  ;;  %v263_v42 = vld [vmem:[%s4617_s27 + $0x150] sm:$0xff]  ;;  %v265_v43 = vld [vmem:[%s4617_s27 + $0x158] sm:$0xff]  ;;  %v267_v44 = vld [vmem:[%s4617_s27 + $0x160] sm:$0xff] }
  0x20   : > { %208 = vst [vmem:[%s4622_s28 + $0x70] sm:$0xff] %v207_v14  ;;  %v269_v45 = vld [vmem:[%s4617_s27 + $0x168] sm:$0xff]  ;;  %v271_v46 = vld [vmem:[%s4617_s27 + $0x170] sm:$0xff]  ;;  %v273_v47 = vld [vmem:[%s4617_s27 + $0x178] sm:$0xff] }
  0x21   : > { %210 = vst [vmem:[%s4622_s28 + $0x78] sm:$0xff] %v209_v15  ;;  %v275_v48 = vld [vmem:[%s4617_s27 + $0x180] sm:$0xff]  ;;  %v277_v49 = vld [vmem:[%s4617_s27 + $0x188] sm:$0xff]  ;;  %v279_v50 = vld [vmem:[%s4617_s27 + $0x190] sm:$0xff] }
  0x22   : > { %212 = vst [vmem:[%s4622_s28 + $0x80] sm:$0xff] %v211_v16  ;;  %v281_v51 = vld [vmem:[%s4617_s27 + $0x198] sm:$0xff]  ;;  %v283_v52 = vld [vmem:[%s4617_s27 + $0x1a0] sm:$0xff]  ;;  %v285_v53 = vld [vmem:[%s4617_s27 + $0x1a8] sm:$0xff] }
  0x23   : > { %214 = vst [vmem:[%s4622_s28 + $0x88] sm:$0xff] %v213_v17  ;;  %v287_v54 = vld [vmem:[%s4617_s27 + $0x1b0] sm:$0xff]  ;;  %v289_v55 = vld [vmem:[%s4617_s27 + $0x1b8] sm:$0xff]  ;;  %v291_v56 = vld [vmem:[%s4617_s27 + $0x1c0] sm:$0xff] }
  0x24   : > { %216 = vst [vmem:[%s4622_s28 + $0x90] sm:$0xff] %v215_v18  ;;  %v293_v57 = vld [vmem:[%s4617_s27 + $0x1c8] sm:$0xff]  ;;  %v295_v58 = vld [vmem:[%s4617_s27 + $0x1d0] sm:$0xff]  ;;  %v297_v59 = vld [vmem:[%s4617_s27 + $0x1d8] sm:$0xff] }
  0x25   : > { %218 = vst [vmem:[%s4622_s28 + $0x98] sm:$0xff] %v217_v19  ;;  %v299_v60 = vld [vmem:[%s4617_s27 + $0x1e0] sm:$0xff]  ;;  %v301_v61 = vld [vmem:[%s4617_s27 + $0x1e8] sm:$0xff]  ;;  %v303_v62 = vld [vmem:[%s4617_s27 + $0x1f0] sm:$0xff] }
  0x26   : > { %220 = vst [vmem:[%s4622_s28 + $0xa0] sm:$0xff] %v219_v20  ;;  %v305_v63 = vld [vmem:[%s4617_s27 + $0x1f8] sm:$0xff]  ;;  %v307_v0 = vld [vmem:[%s4617_s27 + $0x200] sm:$0xff]  ;;  %v309_v1 = vld [vmem:[%s4617_s27 + $0x208] sm:$0xff] }
  0x27   : > { %222 = vst [vmem:[%s4622_s28 + $0xa8] sm:$0xff] %v221_v21  ;;  %v311_v2 = vld [vmem:[%s4617_s27 + $0x210] sm:$0xff]  ;;  %v313_v3 = vld [vmem:[%s4617_s27 + $0x218] sm:$0xff]  ;;  %v315_v4 = vld [vmem:[%s4617_s27 + $0x220] sm:$0xff] }
  0x28   : > { %224 = vst [vmem:[%s4622_s28 + $0xb0] sm:$0xff] %v223_v22  ;;  %v317_v5 = vld [vmem:[%s4617_s27 + $0x228] sm:$0xff]  ;;  %v319_v6 = vld [vmem:[%s4617_s27 + $0x230] sm:$0xff]  ;;  %v321_v7 = vld [vmem:[%s4617_s27 + $0x238] sm:$0xff] }
  0x29   : > { %226 = vst [vmem:[%s4622_s28 + $0xb8] sm:$0xff] %v225_v23  ;;  %v323_v8 = vld [vmem:[%s4617_s27 + $0x900] sm:$0xff]  ;;  %v325_v9 = vld [vmem:[%s4617_s27 + $0x908] sm:$0xff]  ;;  %v327_v10 = vld [vmem:[%s4617_s27 + $0x910] sm:$0xff] }
  0x2a   : > { %228 = vst [vmem:[%s4622_s28 + $0xc0] sm:$0xff] %v227_v24  ;;  %v329_v11 = vld [vmem:[%s4617_s27 + $0x918] sm:$0xff]  ;;  %v331_v12 = vld [vmem:[%s4617_s27 + $0x920] sm:$0xff]  ;;  %v333_v13 = vld [vmem:[%s4617_s27 + $0x928] sm:$0xff] }
  0x2b   : > { %230 = vst [vmem:[%s4622_s28 + $0xc8] sm:$0xff] %v229_v25  ;;  %v335_v14 = vld [vmem:[%s4617_s27 + $0x930] sm:$0xff]  ;;  %v337_v15 = vld [vmem:[%s4617_s27 + $0x938] sm:$0xff]  ;;  %v339_v16 = vld [vmem:[%s4617_s27 + $0x940] sm:$0xff] }
  0x2c   : > { %232 = vst [vmem:[%s4622_s28 + $0xd0] sm:$0xff] %v231_v26  ;;  %v341_v17 = vld [vmem:[%s4617_s27 + $0x948] sm:$0xff]  ;;  %v343_v18 = vld [vmem:[%s4617_s27 + $0x950] sm:$0xff]  ;;  %v345_v19 = vld [vmem:[%s4617_s27 + $0x958] sm:$0xff] }
  0x2d   : > { %234 = vst [vmem:[%s4622_s28 + $0xd8] sm:$0xff] %v233_v27  ;;  %v347_v20 = vld [vmem:[%s4617_s27 + $0x960] sm:$0xff]  ;;  %v349_v21 = vld [vmem:[%s4617_s27 + $0x968] sm:$0xff]  ;;  %v351_v22 = vld [vmem:[%s4617_s27 + $0x970] sm:$0xff] }
  0x2e   : > { %236 = vst [vmem:[%s4622_s28 + $0xe0] sm:$0xff] %v235_v28  ;;  %v353_v23 = vld [vmem:[%s4617_s27 + $0x978] sm:$0xff]  ;;  %v355_v24 = vld [vmem:[%s4617_s27 + $0x980] sm:$0xff]  ;;  %v357_v25 = vld [vmem:[%s4617_s27 + $0x988] sm:$0xff] }
  0x2f   : > { %238 = vst [vmem:[%s4622_s28 + $0xe8] sm:$0xff] %v237_v29  ;;  %v359_v26 = vld [vmem:[%s4617_s27 + $0x990] sm:$0xff]  ;;  %v361_v27 = vld [vmem:[%s4617_s27 + $0x998] sm:$0xff]  ;;  %v363_v28 = vld [vmem:[%s4617_s27 + $0x9a0] sm:$0xff] }
  0x30   : > { %240 = vst [vmem:[%s4622_s28 + $0xf0] sm:$0xff] %v239_v30  ;;  %v365_v29 = vld [vmem:[%s4617_s27 + $0x9a8] sm:$0xff]  ;;  %v367_v30 = vld [vmem:[%s4617_s27 + $0x9b0] sm:$0xff] }
  0x31   : > { %242 = vst [vmem:[%s4622_s28 + $0xf8] sm:$0xff] %v241_v31  ;;  %v369_v31 = vld [vmem:[%s4617_s27 + $0x9b8] sm:$0xff] }
  0x32   : > { %244 = vst [vmem:[%s4622_s28 + $0x100] sm:$0xff] %v243_v32  ;;  %v371_v32 = vld [vmem:[%s4617_s27 + $0x9c0] sm:$0xff] }
  0x33   : > { %246 = vst [vmem:[%s4622_s28 + $0x108] sm:$0xff] %v245_v33  ;;  %v373_v33 = vld [vmem:[%s4617_s27 + $0x9c8] sm:$0xff] }
  0x34   : > { %248 = vst [vmem:[%s4622_s28 + $0x110] sm:$0xff] %v247_v34  ;;  %v375_v34 = vld [vmem:[%s4617_s27 + $0x9d0] sm:$0xff] }
  0x35   : > { %250 = vst [vmem:[%s4622_s28 + $0x118] sm:$0xff] %v249_v35  ;;  %v377_v35 = vld [vmem:[%s4617_s27 + $0x9d8] sm:$0xff] }
  0x36   : > { %252 = vst [vmem:[%s4622_s28 + $0x120] sm:$0xff] %v251_v36  ;;  %v379_v36 = vld [vmem:[%s4617_s27 + $0x9e0] sm:$0xff] }
  0x37   : > { %254 = vst [vmem:[%s4622_s28 + $0x128] sm:$0xff] %v253_v37  ;;  %v381_v37 = vld [vmem:[%s4617_s27 + $0x9e8] sm:$0xff] }
  0x38   : > { %256 = vst [vmem:[%s4622_s28 + $0x130] sm:$0xff] %v255_v38  ;;  %v383_v38 = vld [vmem:[%s4617_s27 + $0x9f0] sm:$0xff] }
  0x39   : > { %258 = vst [vmem:[%s4622_s28 + $0x138] sm:$0xff] %v257_v39  ;;  %v385_v39 = vld [vmem:[%s4617_s27 + $0x9f8] sm:$0xff] }
  0x3a   : > { %260 = vst [vmem:[%s4622_s28 + $0x140] sm:$0xff] %v259_v40  ;;  %v387_v40 = vld [vmem:[%s4617_s27 + $0xa00] sm:$0xff] }
  0x3b   : > { %262 = vst [vmem:[%s4622_s28 + $0x148] sm:$0xff] %v261_v41  ;;  %v389_v41 = vld [vmem:[%s4617_s27 + $0xa08] sm:$0xff] }
  0x3c   : > { %264 = vst [vmem:[%s4622_s28 + $0x150] sm:$0xff] %v263_v42  ;;  %v391_v42 = vld [vmem:[%s4617_s27 + $0xa10] sm:$0xff] }
  0x3d   : > { %266 = vst [vmem:[%s4622_s28 + $0x158] sm:$0xff] %v265_v43  ;;  %v393_v43 = vld [vmem:[%s4617_s27 + $0xa18] sm:$0xff] }
  0x3e   : > { %268 = vst [vmem:[%s4622_s28 + $0x160] sm:$0xff] %v267_v44  ;;  %v395_v44 = vld [vmem:[%s4617_s27 + $0xa20] sm:$0xff] }
  0x3f   : > { %270 = vst [vmem:[%s4622_s28 + $0x168] sm:$0xff] %v269_v45  ;;  %v397_v45 = vld [vmem:[%s4617_s27 + $0xa28] sm:$0xff] }
  0x40   : > { %272 = vst [vmem:[%s4622_s28 + $0x170] sm:$0xff] %v271_v46  ;;  %v399_v46 = vld [vmem:[%s4617_s27 + $0xa30] sm:$0xff] }
  0x41   : > { %274 = vst [vmem:[%s4622_s28 + $0x178] sm:$0xff] %v273_v47  ;;  %v401_v47 = vld [vmem:[%s4617_s27 + $0xa38] sm:$0xff] }
  0x42   : > { %276 = vst [vmem:[%s4622_s28 + $0x180] sm:$0xff] %v275_v48  ;;  %v403_v48 = vld [vmem:[%s4617_s27 + $0xa40] sm:$0xff] }
  0x43   : > { %278 = vst [vmem:[%s4622_s28 + $0x188] sm:$0xff] %v277_v49  ;;  %v405_v49 = vld [vmem:[%s4617_s27 + $0xa48] sm:$0xff] }
  0x44   : > { %280 = vst [vmem:[%s4622_s28 + $0x190] sm:$0xff] %v279_v50  ;;  %v407_v50 = vld [vmem:[%s4617_s27 + $0xa50] sm:$0xff] }
  0x45   : > { %282 = vst [vmem:[%s4622_s28 + $0x198] sm:$0xff] %v281_v51  ;;  %v409_v51 = vld [vmem:[%s4617_s27 + $0xa58] sm:$0xff] }
  0x46   : > { %284 = vst [vmem:[%s4622_s28 + $0x1a0] sm:$0xff] %v283_v52  ;;  %v411_v52 = vld [vmem:[%s4617_s27 + $0xa60] sm:$0xff] }
  0x47   : > { %286 = vst [vmem:[%s4622_s28 + $0x1a8] sm:$0xff] %v285_v53  ;;  %v413_v53 = vld [vmem:[%s4617_s27 + $0xa68] sm:$0xff] }
  0x48   : > { %288 = vst [vmem:[%s4622_s28 + $0x1b0] sm:$0xff] %v287_v54  ;;  %v415_v54 = vld [vmem:[%s4617_s27 + $0xa70] sm:$0xff] }
  0x49   : > { %290 = vst [vmem:[%s4622_s28 + $0x1b8] sm:$0xff] %v289_v55  ;;  %v417_v55 = vld [vmem:[%s4617_s27 + $0xa78] sm:$0xff] }
  0x4a   : > { %292 = vst [vmem:[%s4622_s28 + $0x1c0] sm:$0xff] %v291_v56  ;;  %v419_v56 = vld [vmem:[%s4617_s27 + $0xa80] sm:$0xff] }
  0x4b   : > { %294 = vst [vmem:[%s4622_s28 + $0x1c8] sm:$0xff] %v293_v57  ;;  %v421_v57 = vld [vmem:[%s4617_s27 + $0xa88] sm:$0xff] }
  0x4c   : > { %296 = vst [vmem:[%s4622_s28 + $0x1d0] sm:$0xff] %v295_v58  ;;  %v423_v58 = vld [vmem:[%s4617_s27 + $0xa90] sm:$0xff] }
  0x4d   : > { %298 = vst [vmem:[%s4622_s28 + $0x1d8] sm:$0xff] %v297_v59  ;;  %v425_v59 = vld [vmem:[%s4617_s27 + $0xa98] sm:$0xff] }
  0x4e   : > { %300 = vst [vmem:[%s4622_s28 + $0x1e0] sm:$0xff] %v299_v60  ;;  %v427_v60 = vld [vmem:[%s4617_s27 + $0xaa0] sm:$0xff] }
  0x4f   : > { %302 = vst [vmem:[%s4622_s28 + $0x1e8] sm:$0xff] %v301_v61  ;;  %v429_v61 = vld [vmem:[%s4617_s27 + $0xaa8] sm:$0xff] }
  0x50   : > { %304 = vst [vmem:[%s4622_s28 + $0x1f0] sm:$0xff] %v303_v62  ;;  %v431_v62 = vld [vmem:[%s4617_s27 + $0xab0] sm:$0xff] }
  0x51   : > { %306 = vst [vmem:[%s4622_s28 + $0x1f8] sm:$0xff] %v305_v63  ;;  %v433_v63 = vld [vmem:[%s4617_s27 + $0xab8] sm:$0xff] }
  0x52   : > { %308 = vst [vmem:[%s4622_s28 + $0x200] sm:$0xff] %v307_v0  ;;  %v435_v0 = vld [vmem:[%s4617_s27 + $0xac0] sm:$0xff] }
  0x53   : > { %310 = vst [vmem:[%s4622_s28 + $0x208] sm:$0xff] %v309_v1  ;;  %v437_v1 = vld [vmem:[%s4617_s27 + $0xac8] sm:$0xff] }
  0x54   : > { %312 = vst [vmem:[%s4622_s28 + $0x210] sm:$0xff] %v311_v2  ;;  %v439_v2 = vld [vmem:[%s4617_s27 + $0xad0] sm:$0xff] }
  0x55   : > { %314 = vst [vmem:[%s4622_s28 + $0x218] sm:$0xff] %v313_v3  ;;  %v441_v3 = vld [vmem:[%s4617_s27 + $0xad8] sm:$0xff] }
  0x56   : > { %316 = vst [vmem:[%s4622_s28 + $0x220] sm:$0xff] %v315_v4  ;;  %v443_v4 = vld [vmem:[%s4617_s27 + $0xae0] sm:$0xff] }
  0x57   : > { %318 = vst [vmem:[%s4622_s28 + $0x228] sm:$0xff] %v317_v5  ;;  %v445_v5 = vld [vmem:[%s4617_s27 + $0xae8] sm:$0xff] }
  0x58   : > { %320 = vst [vmem:[%s4622_s28 + $0x230] sm:$0xff] %v319_v6  ;;  %v447_v6 = vld [vmem:[%s4617_s27 + $0xaf0] sm:$0xff] }
  0x59   : > { %322 = vst [vmem:[%s4622_s28 + $0x238] sm:$0xff] %v321_v7  ;;  %v449_v7 = vld [vmem:[%s4617_s27 + $0xaf8] sm:$0xff] }
  0x5a   : > { %324 = vst [vmem:[%s4622_s28 + $0x240] sm:$0xff] %v323_v8  ;;  %v451_v8 = vld [vmem:[%s4617_s27 + $0xb00] sm:$0xff] }
  0x5b   : > { %326 = vst [vmem:[%s4622_s28 + $0x248] sm:$0xff] %v325_v9  ;;  %v453_v9 = vld [vmem:[%s4617_s27 + $0xb08] sm:$0xff] }
  0x5c   : > { %328 = vst [vmem:[%s4622_s28 + $0x250] sm:$0xff] %v327_v10  ;;  %v455_v10 = vld [vmem:[%s4617_s27 + $0xb10] sm:$0xff] }
  0x5d   : > { %330 = vst [vmem:[%s4622_s28 + $0x258] sm:$0xff] %v329_v11  ;;  %v457_v11 = vld [vmem:[%s4617_s27 + $0xb18] sm:$0xff] }
  0x5e   : > { %332 = vst [vmem:[%s4622_s28 + $0x260] sm:$0xff] %v331_v12  ;;  %v459_v12 = vld [vmem:[%s4617_s27 + $0xb20] sm:$0xff] }
  0x5f   : > { %334 = vst [vmem:[%s4622_s28 + $0x268] sm:$0xff] %v333_v13  ;;  %v461_v13 = vld [vmem:[%s4617_s27 + $0xb28] sm:$0xff] }
  0x60   : > { %336 = vst [vmem:[%s4622_s28 + $0x270] sm:$0xff] %v335_v14  ;;  %v463_v14 = vld [vmem:[%s4617_s27 + $0xb30] sm:$0xff] }
  0x61   : > { %338 = vst [vmem:[%s4622_s28 + $0x278] sm:$0xff] %v337_v15  ;;  %v465_v15 = vld [vmem:[%s4617_s27 + $0xb38] sm:$0xff] }
  0x62   : > { %340 = vst [vmem:[%s4622_s28 + $0x280] sm:$0xff] %v339_v16 }
  0x63   : > { %342 = vst [vmem:[%s4622_s28 + $0x288] sm:$0xff] %v341_v17 }
  0x64   : > { %344 = vst [vmem:[%s4622_s28 + $0x290] sm:$0xff] %v343_v18 }
  0x65   : > { %346 = vst [vmem:[%s4622_s28 + $0x298] sm:$0xff] %v345_v19 }
  0x66   : > { %348 = vst [vmem:[%s4622_s28 + $0x2a0] sm:$0xff] %v347_v20 }
  0x67   : > { %350 = vst [vmem:[%s4622_s28 + $0x2a8] sm:$0xff] %v349_v21 }
  0x68   : > { %352 = vst [vmem:[%s4622_s28 + $0x2b0] sm:$0xff] %v351_v22 }
  0x69   : > { %354 = vst [vmem:[%s4622_s28 + $0x2b8] sm:$0xff] %v353_v23 }
  0x6a   : > { %356 = vst [vmem:[%s4622_s28 + $0x2c0] sm:$0xff] %v355_v24 }
  0x6b   : > { %358 = vst [vmem:[%s4622_s28 + $0x2c8] sm:$0xff] %v357_v25 }
  0x6c   : > { %360 = vst [vmem:[%s4622_s28 + $0x2d0] sm:$0xff] %v359_v26 }
  0x6d   : > { %362 = vst [vmem:[%s4622_s28 + $0x2d8] sm:$0xff] %v361_v27 }
  0x6e   : > { %364 = vst [vmem:[%s4622_s28 + $0x2e0] sm:$0xff] %v363_v28 }
  0x6f   : > { %366 = vst [vmem:[%s4622_s28 + $0x2e8] sm:$0xff] %v365_v29 }
  0x70   : > { %368 = vst [vmem:[%s4622_s28 + $0x2f0] sm:$0xff] %v367_v30 }
  0x71   : > { %370 = vst [vmem:[%s4622_s28 + $0x2f8] sm:$0xff] %v369_v31 }
  0x72   : > { %372 = vst [vmem:[%s4622_s28 + $0x300] sm:$0xff] %v371_v32 }
  0x73   : > { %374 = vst [vmem:[%s4622_s28 + $0x308] sm:$0xff] %v373_v33 }
  0x74   : > { %376 = vst [vmem:[%s4622_s28 + $0x310] sm:$0xff] %v375_v34 }
  0x75   : > { %378 = vst [vmem:[%s4622_s28 + $0x318] sm:$0xff] %v377_v35 }
  0x76   : > { %380 = vst [vmem:[%s4622_s28 + $0x320] sm:$0xff] %v379_v36 }
  0x77   : > { %382 = vst [vmem:[%s4622_s28 + $0x328] sm:$0xff] %v381_v37 }
  0x78   : > { %384 = vst [vmem:[%s4622_s28 + $0x330] sm:$0xff] %v383_v38 }
  0x79   : > { %386 = vst [vmem:[%s4622_s28 + $0x338] sm:$0xff] %v385_v39 }
  0x7a   : > { %388 = vst [vmem:[%s4622_s28 + $0x340] sm:$0xff] %v387_v40 }
  0x7b   : > { %390 = vst [vmem:[%s4622_s28 + $0x348] sm:$0xff] %v389_v41 }
  0x7c   : > { %392 = vst [vmem:[%s4622_s28 + $0x350] sm:$0xff] %v391_v42 }
  0x7d   : > { %394 = vst [vmem:[%s4622_s28 + $0x358] sm:$0xff] %v393_v43 }
  0x7e   : > { %396 = vst [vmem:[%s4622_s28 + $0x360] sm:$0xff] %v395_v44 }
  0x7f   : > { %398 = vst [vmem:[%s4622_s28 + $0x368] sm:$0xff] %v397_v45 }
  0x80   : > { %400 = vst [vmem:[%s4622_s28 + $0x370] sm:$0xff] %v399_v46 }
  0x81   : > { %402 = vst [vmem:[%s4622_s28 + $0x378] sm:$0xff] %v401_v47 }
  0x82   : > { %404 = vst [vmem:[%s4622_s28 + $0x380] sm:$0xff] %v403_v48 }
  0x83   : > { %406 = vst [vmem:[%s4622_s28 + $0x388] sm:$0xff] %v405_v49 }
  0x84   : > { %408 = vst [vmem:[%s4622_s28 + $0x390] sm:$0xff] %v407_v50 }
  0x85   : > { %410 = vst [vmem:[%s4622_s28 + $0x398] sm:$0xff] %v409_v51 }
  0x86   : > { %412 = vst [vmem:[%s4622_s28 + $0x3a0] sm:$0xff] %v411_v52 }
  0x87   : > { %414 = vst [vmem:[%s4622_s28 + $0x3a8] sm:$0xff] %v413_v53 }
  0x88   : > { %416 = vst [vmem:[%s4622_s28 + $0x3b0] sm:$0xff] %v415_v54 }
  0x89   : > { %418 = vst [vmem:[%s4622_s28 + $0x3b8] sm:$0xff] %v417_v55 }
  0x8a   : > { %420 = vst [vmem:[%s4622_s28 + $0x3c0] sm:$0xff] %v419_v56 }
  0x8b   : > { %422 = vst [vmem:[%s4622_s28 + $0x3c8] sm:$0xff] %v421_v57 }
  0x8c   : > { %424 = vst [vmem:[%s4622_s28 + $0x3d0] sm:$0xff] %v423_v58 }
  0x8d   : > { %426 = vst [vmem:[%s4622_s28 + $0x3d8] sm:$0xff] %v425_v59 }
  0x8e   : > { %428 = vst [vmem:[%s4622_s28 + $0x3e0] sm:$0xff] %v427_v60 }
  0x8f   : > { %430 = vst [vmem:[%s4622_s28 + $0x3e8] sm:$0xff] %v429_v61 }
  0x90   : > { %432 = vst [vmem:[%s4622_s28 + $0x3f0] sm:$0xff] %v431_v62 }
  0x91   : > { %434 = vst [vmem:[%s4622_s28 + $0x3f8] sm:$0xff] %v433_v63 }
  0x92   : > { %436 = vst [vmem:[%s4622_s28 + $0x400] sm:$0xff] %v435_v0 }
  0x93   : > { %438 = vst [vmem:[%s4622_s28 + $0x408] sm:$0xff] %v437_v1 }
  0x94   : > { %440 = vst [vmem:[%s4622_s28 + $0x410] sm:$0xff] %v439_v2 }
  0x95   : > { %442 = vst [vmem:[%s4622_s28 + $0x418] sm:$0xff] %v441_v3 }
  0x96   : > { %444 = vst [vmem:[%s4622_s28 + $0x420] sm:$0xff] %v443_v4 }
  0x97   : > { %446 = vst [vmem:[%s4622_s28 + $0x428] sm:$0xff] %v445_v5 }
  0x98   : > { %448 = vst [vmem:[%s4622_s28 + $0x430] sm:$0xff] %v447_v6 }
  0x99   : > { %450 = vst [vmem:[%s4622_s28 + $0x438] sm:$0xff] %v449_v7 }
  0x9a   : > { %452 = vst [vmem:[%s4622_s28 + $0x440] sm:$0xff] %v451_v8 }
  0x9b   : > { %454 = vst [vmem:[%s4622_s28 + $0x448] sm:$0xff] %v453_v9 }
  0x9c   : > { %456 = vst [vmem:[%s4622_s28 + $0x450] sm:$0xff] %v455_v10 }
  0x9d   : > { %458 = vst [vmem:[%s4622_s28 + $0x458] sm:$0xff] %v457_v11 }
  0x9e   : > { %460 = vst [vmem:[%s4622_s28 + $0x460] sm:$0xff] %v459_v12 }
  0x9f   : > { %462 = vst [vmem:[%s4622_s28 + $0x468] sm:$0xff] %v461_v13 }
  0xa0   : > { %464 = vst [vmem:[%s4622_s28 + $0x470] sm:$0xff] %v463_v14 }
  0xa1   : > { %466 = vst [vmem:[%s4622_s28 + $0x478] sm:$0xff] %v465_v15 }
  0xa2 PF: > { %p3700_p6 = scmp.ge.s32.totalorder %s4549_s16, 1  ;;  %p471_p7 = scmp.lt.s32.totalorder %s4549_s16, 5 }
  0xa4   : > { %p472_p8 = pnand %p3700_p6, %p471_p7 }
  0xa5   : > { %s478_s29 = sand.u32 (!%p472_p8), 1, %s4533_s12   ;;  %s504_s30 = smul.u32 (!%p472_p8), 144, %s4541_s14 }
  0xa6   : > { %475 = sbr.rel (%p472_p8) target bundleno = 907 (0x38b), region = 51  ;;  %p3701_p10 = scmp.ne.s32.totalorder (!%p472_p8), %s4541_s14, 0 }
  0xa7   : > { %s4429_s4 = smul.u32 (!%p472_p8), 1152, %s478_s29  ;;  %p507_p9 = scmp.lt.s32.totalorder (!%p472_p8), %s504_s30, 575 }
  0xa9   : > { %s4918_s8 = scalar_lea.vmem (!%p472_p8), [#allocation3], %s4429_s4 }
  0xab   : > { %s5262_s30 = smov (!%p507_p9, %s504_s30), 575  ;;  %518 = sbr.rel (%p3701_p10) target bundleno = 178 (0xb2), region = 59 }
  0xac   : > { %s4916_s7 = scalar_lea.vmem %s5251_s0, %s5262_s30 }
  0xb0   : > { %vm519_vm0 = vcmask 74752   ;;  %v4551_v16 = vmov 0.0  }
  0xb1   : > { %520 = vst.msk [vmem:[#allocation2] sm:$0x3] %vm519_vm0, %v4551_v16 }
  0xb2 PF: > { %v3704_v17 = vld [vmem:[%s4918_s8] sm:$0xf]  ;;  %v4284_v19 = vld [vmem:[%s4918_s8 + $0x4] sm:$0xf]  ;;  %v3712_v22 = vld [vmem:[%s4918_s8 + $0x8] sm:$0xf] }
  0xb3   : > { %v4356_v18 = vld [vmem:[%s4918_s8 + $0x23c] sm:$0x10]  ;;  %v3706_v21 = vld [vmem:[%s4918_s8 + $0x240] sm:$0x10]  ;;  %v4357_v23 = vld [vmem:[%s4918_s8 + $0x244] sm:$0x10] }
  0xb4   : > { %v3705_v20 = vor.u32 %v4356_v18, %v3704_v17  ;;  %v3709_v24 = vor.u32 %v4284_v19, %v3706_v21  ;;  %v3713_v25 = vor.u32 %v4357_v23, %v3712_v22  ;;  %v4285_v26 = vld [vmem:[%s4918_s8 + $0xc] sm:$0xf]  ;;  %v522_v28 = vld [vmem:[%s4916_s7] sm:$0xff]  ;;  %v3720_v35 = vld [vmem:[%s4918_s8 + $0x10] sm:$0xf]  ;;  %vm3601_vm1 = vcmask 74752  }
  0xb5   : > { %v3714_v27 = vld [vmem:[%s4918_s8 + $0x248] sm:$0x10]  ;;  %685 = vst [vmem:[#allocation1] ss:$9 sm:$0xff] %v522_v28  ;;  %v3728_v30 = vld [vmem:[%s4918_s8 + $0x18] sm:$0xf] }
  0xb6   : > { %1735 = vmatpush.bf16.xpose.msra.mxu0 %v3705_v20  ;;  %v3717_v29 = vor.u32 %v4285_v26, %v3714_v27  ;;  %v4359_v31 = vld [vmem:[%s4918_s8 + $0x254] sm:$0x10]  ;;  %1748 = vmatpush.bf16.xpose.msra.mxu1 %v3709_v24  ;;  %v4287_v33 = vld [vmem:[%s4918_s8 + $0x1c] sm:$0xf]  ;;  %v4358_v37 = vld [vmem:[%s4918_s8 + $0x24c] sm:$0x10] }
  0xb7   : > { %1761 = vmatpush.bf16.xpose.msra.mxu2 %v3713_v25  ;;  %v3729_v32 = vor.u32 %v4359_v31, %v3728_v30  ;;  %v3730_v34 = vld [vmem:[%s4918_s8 + $0x258] sm:$0x10]  ;;  %v4286_v38 = vld [vmem:[%s4918_s8 + $0x14] sm:$0xf]  ;;  %v3721_v40 = vor.u32 %v4358_v37, %v3720_v35  ;;  %v3744_v42 = vld [vmem:[%s4918_s8 + $0x28] sm:$0xf] }
  0xb8   : > { %1774 = vmatpush.bf16.xpose.msra.mxu3 %v3717_v29  ;;  %v3733_v36 = vor.u32 %v4287_v33, %v3730_v34  ;;  %v3722_v39 = vld [vmem:[%s4918_s8 + $0x250] sm:$0x10]  ;;  %v4361_v43 = vld [vmem:[%s4918_s8 + $0x264] sm:$0x10]  ;;  %v4289_v44 = vld [vmem:[%s4918_s8 + $0x2c] sm:$0xf] }
  0xb9   : > { %v3725_v41 = vor.u32 %v4286_v38, %v3722_v39  ;;  %v3746_v45 = vld [vmem:[%s4918_s8 + $0x268] sm:$0x10]  ;;  %v3736_v46 = vld [vmem:[%s4918_s8 + $0x20] sm:$0xf]  ;;  %v4288_v48 = vld [vmem:[%s4918_s8 + $0x24] sm:$0xf]  ;;  %v3745_v50 = vor.u32 %v4361_v43, %v3744_v42 }
  0xba   : > { %v4360_v47 = vld [vmem:[%s4918_s8 + $0x25c] sm:$0x10]  ;;  %v3738_v49 = vld [vmem:[%s4918_s8 + $0x260] sm:$0x10]  ;;  %v3749_v51 = vor.u32 %v4289_v44, %v3746_v45  ;;  %v3760_v63 = vld [vmem:[%s4918_s8 + $0x38] sm:$0xf] }
  0xbb   : > { %v523_v52 = vld [vmem:[%s4916_s7 + $0x8] sm:$0xff]  ;;  %v3737_v56 = vor.u32 %v4360_v47, %v3736_v46  ;;  %v3741_v57 = vor.u32 %v4288_v48, %v3738_v49  ;;  %v4363_v0 = vld [vmem:[%s4918_s8 + $0x274] sm:$0x10]  ;;  %v3762_v2 = vld [vmem:[%s4918_s8 + $0x278] sm:$0x10]  ;;  %p4278_p11 = scmp.ne.s32.totalorder %s4541_s14, 3 }
  0xbc   : > { %v686_v53 = vld [vmem:[#allocation1] sm:$0xff]  ;;  %v687_v54 = vld [vmem:[#allocation1 + $0x9] sm:$0xff]  ;;  %v688_v55 = vld [vmem:[#allocation1 + $0x12] sm:$0xff]  ;;  %v3761_v7 = vor.u32 %v4363_v0, %v3760_v63 }
  0xbd   : > { %1736 = vmatmul.bf16.vlgmr.msra.gmra.mxu0 %v686_v53  ;;  %1749 = vmatmul.bf16.vlgmr.msra.gmra.mxu1 %v687_v54  ;;  %v689_v58 = vld [vmem:[#allocation1 + $0x1b] sm:$0xff]  ;;  %v690_v59 = vld [vmem:[#allocation1 + $0x24] sm:$0xff]  ;;  %v691_v60 = vld [vmem:[#allocation1 + $0x2d] sm:$0xff] }
  0xbe   : > { %1787 = vmatpush.bf16.xpose.msrb.mxu0 %v3721_v40  ;;  %1800 = vmatpush.bf16.xpose.msrb.mxu1 %v3725_v41  ;;  %v692_v61 = vld [vmem:[#allocation1 + $0x36] sm:$0xff]  ;;  %v693_v62 = vld [vmem:[#allocation1 + $0x3f] sm:$0xff]  ;;  %v3754_v6 = vld [vmem:[%s4918_s8 + $0x270] sm:$0x10] }
  0xbf   : > { %1813 = vmatpush.bf16.xpose.msrb.mxu2 %v3729_v32  ;;  %1775 = vmatmul.bf16.vlgmr.msra.gmra.mxu3 %v689_v58  ;;  %695 = vst [vmem:[#allocation1] ss:$9 sm:$0xff] %v523_v52  ;;  %v4291_v1 = vld [vmem:[%s4918_s8 + $0x3c] sm:$0xf]  ;;  %v3752_v3 = vld [vmem:[%s4918_s8 + $0x30] sm:$0xf] }
  0xc0   : > { %1826 = vmatpush.bf16.xpose.msrb.mxu3 %v3733_v36  ;;  %1762 = vmatmul.bf16.vlgmr.msra.gmra.mxu2 %v688_v55  ;;  %v4362_v4 = vld [vmem:[%s4918_s8 + $0x26c] sm:$0x10]  ;;  %v4290_v5 = vld [vmem:[%s4918_s8 + $0x34] sm:$0xf]  ;;  %v3765_v8 = vor.u32 %v4291_v1, %v3762_v2  ;;  %v524_v19 = vld [vmem:[%s4916_s7 + $0x10] sm:$0xff] }
  0xc1   : > { %v3753_v9 = vor.u32 %v4362_v4, %v3752_v3  ;;  %v3757_v10 = vor.u32 %v4290_v5, %v3754_v6  ;;  %v3776_v20 = vld [vmem:[%s4918_s8 + $0x48] sm:$0xf]  ;;  %v4293_v22 = vld [vmem:[%s4918_s8 + $0x4c] sm:$0xf]  ;;  %v3768_v24 = vld [vmem:[%s4918_s8 + $0x40] sm:$0xf] }
  0xc2   : > { %v4365_v21 = vld [vmem:[%s4918_s8 + $0x284] sm:$0x10]  ;;  %v3778_v23 = vld [vmem:[%s4918_s8 + $0x288] sm:$0x10]  ;;  %v4364_v25 = vld [vmem:[%s4918_s8 + $0x27c] sm:$0x10] }
  0xc3   : > { %v4292_v26 = vld [vmem:[%s4918_s8 + $0x44] sm:$0xf]  ;;  %v3777_v28 = vor.u32 %v4365_v21, %v3776_v20  ;;  %v3781_v29 = vor.u32 %v4293_v22, %v3778_v23  ;;  %v3769_v30 = vor.u32 %v4364_v25, %v3768_v24  ;;  %v3792_v32 = vld [vmem:[%s4918_s8 + $0x58] sm:$0xf]  ;;  %v4295_v34 = vld [vmem:[%s4918_s8 + $0x5c] sm:$0xf] }
  0xc4   : > { %v3770_v27 = vld [vmem:[%s4918_s8 + $0x280] sm:$0x10]  ;;  %v4367_v33 = vld [vmem:[%s4918_s8 + $0x294] sm:$0x10]  ;;  %v3794_v35 = vld [vmem:[%s4918_s8 + $0x298] sm:$0x10] }
  0xc5   : > { %v3773_v31 = vor.u32 %v4292_v26, %v3770_v27  ;;  %v3784_v36 = vld [vmem:[%s4918_s8 + $0x50] sm:$0xf]  ;;  %v4294_v38 = vld [vmem:[%s4918_s8 + $0x54] sm:$0xf]  ;;  %v3793_v40 = vor.u32 %v4367_v33, %v3792_v32  ;;  %v3797_v41 = vor.u32 %v4295_v34, %v3794_v35  ;;  %v3808_v53 = vld [vmem:[%s4918_s8 + $0x68] sm:$0xf] }
  0xc6   : > { %1839 = vmatpush.bf16.xpose.msra.mxu0 %v3737_v56  ;;  %1852 = vmatpush.bf16.xpose.msra.mxu1 %v3741_v57  ;;  %v696_v11 = vld [vmem:[#allocation1] sm:$0xff]  ;;  %v697_v12 = vld [vmem:[#allocation1 + $0x9] sm:$0xff]  ;;  %v698_v13 = vld [vmem:[#allocation1 + $0x12] sm:$0xff] }
  0xc7   : > { %1865 = vmatpush.bf16.xpose.msra.mxu2 %v3745_v50  ;;  %v699_v14 = vld [vmem:[#allocation1 + $0x1b] sm:$0xff]  ;;  %v700_v15 = vld [vmem:[#allocation1 + $0x24] sm:$0xff]  ;;  %v701_v16 = vld [vmem:[#allocation1 + $0x2d] sm:$0xff] }
  0xc8   : > { %1878 = vmatpush.bf16.xpose.msra.mxu3 %v3749_v51  ;;  %v702_v17 = vld [vmem:[#allocation1 + $0x36] sm:$0xff]  ;;  %v703_v18 = vld [vmem:[#allocation1 + $0x3f] sm:$0xff]  ;;  %v3786_v39 = vld [vmem:[%s4918_s8 + $0x290] sm:$0x10] }
  0xc9   : > { %705 = vst [vmem:[#allocation1] ss:$9 sm:$0xff] %v524_v19  ;;  %v4366_v37 = vld [vmem:[%s4918_s8 + $0x28c] sm:$0x10]  ;;  %v3789_v43 = vor.u32 %v4294_v38, %v3786_v39  ;;  %v4369_v54 = vld [vmem:[%s4918_s8 + $0x2a4] sm:$0x10] }
  0xca   : > { %v3785_v42 = vor.u32 %v4366_v37, %v3784_v36  ;;  %v525_v52 = vld [vmem:[%s4916_s7 + $0x18] sm:$0xff]  ;;  %v3810_v56 = vld [vmem:[%s4918_s8 + $0x2a8] sm:$0x10]  ;;  %v3800_v57 = vld [vmem:[%s4918_s8 + $0x60] sm:$0xf] }
  0xcb   : > { %v4297_v55 = vld [vmem:[%s4918_s8 + $0x6c] sm:$0xf]  ;;  %v4368_v58 = vld [vmem:[%s4918_s8 + $0x29c] sm:$0x10]  ;;  %v3824_v1 = vld [vmem:[%s4918_s8 + $0x78] sm:$0xf] }
  0xcc   : > { %v3801_v63 = vor.u32 %v4368_v58, %v3800_v57  ;;  %v4371_v2 = vld [vmem:[%s4918_s8 + $0x2b4] sm:$0x10]  ;;  %v4299_v3 = vld [vmem:[%s4918_s8 + $0x7c] sm:$0xf]  ;;  %v3816_v5 = vld [vmem:[%s4918_s8 + $0x70] sm:$0xf] }
  0xcd   : > { %1788 = vmatmul.bf16.vlgmr.msrb.gmra.mxu0 %v690_v59  ;;  %1801 = vmatmul.bf16.vlgmr.msrb.gmra.mxu1 %v691_v60  ;;  %v4296_v59 = vld [vmem:[%s4918_s8 + $0x64] sm:$0xf]  ;;  %v3826_v4 = vld [vmem:[%s4918_s8 + $0x2b8] sm:$0x10]  ;;  %v4370_v6 = vld [vmem:[%s4918_s8 + $0x2ac] sm:$0x10] }
  0xce   : > { %1891 = vmatpush.bf16.xpose.msrb.mxu0 %v3753_v9  ;;  %1904 = vmatpush.bf16.xpose.msrb.mxu1 %v3757_v10  ;;  %v3802_v60 = vld [vmem:[%s4918_s8 + $0x2a0] sm:$0x10]  ;;  %v3825_v9 = vor.u32 %v4371_v2, %v3824_v1  ;;  %v3829_v10 = vor.u32 %v4299_v3, %v3826_v4  ;;  %v526_v21 = vld [vmem:[%s4916_s7 + $0x20] sm:$0xff]  ;;  %v3840_v22 = vld [vmem:[%s4918_s8 + $0x88] sm:$0xf] }
  0xcf   : > { %1827 = vmatmul.bf16.vlgmr.msrb.gmra.mxu3 %v693_v62  ;;  %v3813_v62 = vor.u32 %v4297_v55, %v3810_v56  ;;  %v3805_v0 = vor.u32 %v4296_v59, %v3802_v60  ;;  %v4373_v23 = vld [vmem:[%s4918_s8 + $0x2c4] sm:$0x10]  ;;  %v4301_v24 = vld [vmem:[%s4918_s8 + $0x8c] sm:$0xf]  ;;  %v3832_v26 = vld [vmem:[%s4918_s8 + $0x80] sm:$0xf] }
  0xd0   : > { %1814 = vmatmul.bf16.vlgmr.msrb.gmra.mxu2 %v692_v61  ;;  %1930 = vmatpush.bf16.xpose.msrb.mxu3 %v3765_v8  ;;  %v706_v44 = vld [vmem:[#allocation1] sm:$0xff]  ;;  %v707_v45 = vld [vmem:[#allocation1 + $0x9] sm:$0xff]  ;;  %v708_v46 = vld [vmem:[#allocation1 + $0x12] sm:$0xff]  ;;  %v3809_v61 = vor.u32 %v4369_v54, %v3808_v53 }
  0xd1   : > { %1917 = vmatpush.bf16.xpose.msrb.mxu2 %v3761_v7  ;;  %v709_v47 = vld [vmem:[#allocation1 + $0x1b] sm:$0xff]  ;;  %v710_v48 = vld [vmem:[#allocation1 + $0x24] sm:$0xff]  ;;  %v711_v49 = vld [vmem:[#allocation1 + $0x2d] sm:$0xff] }
  0xd2   : > { %v712_v50 = vld [vmem:[#allocation1 + $0x36] sm:$0xff]  ;;  %v713_v51 = vld [vmem:[#allocation1 + $0x3f] sm:$0xff]  ;;  %v3818_v8 = vld [vmem:[%s4918_s8 + $0x2b0] sm:$0x10] }
  0xd3   : > { %715 = vst [vmem:[#allocation1] ss:$9 sm:$0xff] %v525_v52  ;;  %v4298_v7 = vld [vmem:[%s4918_s8 + $0x74] sm:$0xf]  ;;  %v3842_v25 = vld [vmem:[%s4918_s8 + $0x2c8] sm:$0x10] }
  0xd4   : > { %v4372_v27 = vld [vmem:[%s4918_s8 + $0x2bc] sm:$0x10]  ;;  %v3856_v34 = vld [vmem:[%s4918_s8 + $0x98] sm:$0xf]  ;;  %v4303_v36 = vld [vmem:[%s4918_s8 + $0x9c] sm:$0xf] }
  0xd5   : > { %v3833_v32 = vor.u32 %v4372_v27, %v3832_v26  ;;  %v4375_v35 = vld [vmem:[%s4918_s8 + $0x2d4] sm:$0x10]  ;;  %v3858_v37 = vld [vmem:[%s4918_s8 + $0x2d8] sm:$0x10]  ;;  %v3848_v38 = vld [vmem:[%s4918_s8 + $0x90] sm:$0xf] }
  0xd6   : > { %v4374_v39 = vld [vmem:[%s4918_s8 + $0x2cc] sm:$0x10]  ;;  %v527_v54 = vld [vmem:[%s4916_s7 + $0x28] sm:$0xff]  ;;  %v3872_v55 = vld [vmem:[%s4918_s8 + $0xa8] sm:$0xf] }
  0xd7   : > { %v4377_v56 = vld [vmem:[%s4918_s8 + $0x2e4] sm:$0x10]  ;;  %v4305_v57 = vld [vmem:[%s4918_s8 + $0xac] sm:$0xf]  ;;  %v3864_v59 = vld [vmem:[%s4918_s8 + $0xa0] sm:$0xf] }
  0xd8   : > { %v3874_v58 = vld [vmem:[%s4918_s8 + $0x2e8] sm:$0x10]  ;;  %v4376_v60 = vld [vmem:[%s4918_s8 + $0x2dc] sm:$0x10]  ;;  %v3873_v2 = vor.u32 %v4377_v56, %v3872_v55 }
  0xd9   : > { %v3877_v3 = vor.u32 %v4305_v57, %v3874_v58  ;;  %v3865_v4 = vor.u32 %v4376_v60, %v3864_v59 }
  0xda   : > { %v722_v19 = vld [vmem:[#allocation1 + $0x36] sm:$0xff]  ;;  %v723_v20 = vld [vmem:[#allocation1 + $0x3f] sm:$0xff] }
  0xdd   : > { %1840 = vmatmul.bf16.vlgmr.msra.gmra.mxu0 %v696_v11  ;;  %1853 = vmatmul.bf16.vlgmr.msra.gmra.mxu1 %v697_v12  ;;  %v3817_v11 = vor.u32 %v4370_v6, %v3816_v5  ;;  %v3821_v12 = vor.u32 %v4298_v7, %v3818_v8 }
  0xde   : > { %1943 = vmatpush.bf16.xpose.msra.mxu0 %v3769_v30  ;;  %1956 = vmatpush.bf16.xpose.msra.mxu1 %v3773_v31  ;;  %v3841_v30 = vor.u32 %v4373_v23, %v3840_v22  ;;  %v3845_v31 = vor.u32 %v4301_v24, %v3842_v25 }
  0xdf   : > { %1879 = vmatmul.bf16.vlgmr.msra.gmra.mxu3 %v699_v14  ;;  %v717_v14 = vld [vmem:[#allocation1 + $0x9] sm:$0xff] }
  0xe0   : > { %1866 = vmatmul.bf16.vlgmr.msra.gmra.mxu2 %v698_v13  ;;  %1982 = vmatpush.bf16.xpose.msra.mxu3 %v3781_v29  ;;  %v716_v13 = vld [vmem:[#allocation1] sm:$0xff]  ;;  %v3834_v29 = vld [vmem:[%s4918_s8 + $0x2c0] sm:$0x10] }
  0xe1   : > { %1969 = vmatpush.bf16.xpose.msra.mxu2 %v3777_v28  ;;  %v4300_v28 = vld [vmem:[%s4918_s8 + $0x84] sm:$0xf] }
  0xe2   : > { %v3837_v33 = vor.u32 %v4300_v28, %v3834_v29 }
  0xed   : > { %1892 = vmatmul.bf16.vlgmr.msrb.gmra.mxu0 %v700_v15  ;;  %1905 = vmatmul.bf16.vlgmr.msrb.gmra.mxu1 %v701_v16  ;;  %v718_v15 = vld [vmem:[#allocation1 + $0x12] sm:$0xff]  ;;  %v719_v16 = vld [vmem:[#allocation1 + $0x1b] sm:$0xff] }
  0xee   : > { %1995 = vmatpush.bf16.xpose.msrb.mxu0 %v3785_v42  ;;  %2008 = vmatpush.bf16.xpose.msrb.mxu1 %v3789_v43  ;;  %v3857_v42 = vor.u32 %v4375_v35, %v3856_v34  ;;  %v3861_v43 = vor.u32 %v4303_v36, %v3858_v37 }
  0xef   : > { %1931 = vmatmul.bf16.vlgmr.msrb.gmra.mxu3 %v703_v18  ;;  %v721_v18 = vld [vmem:[#allocation1 + $0x2d] sm:$0xff] }
  0xf0   : > { %1918 = vmatmul.bf16.vlgmr.msrb.gmra.mxu2 %v702_v17  ;;  %2034 = vmatpush.bf16.xpose.msrb.mxu3 %v3797_v41  ;;  %v720_v17 = vld [vmem:[#allocation1 + $0x24] sm:$0xff]  ;;  %v3850_v41 = vld [vmem:[%s4918_s8 + $0x2d0] sm:$0x10] }
  0xf1   : > { %2021 = vmatpush.bf16.xpose.msrb.mxu2 %v3793_v40  ;;  %725 = vst [vmem:[#allocation1] ss:$9 sm:$0xff] %v526_v21  ;;  %v4302_v40 = vld [vmem:[%s4918_s8 + $0x94] sm:$0xf] }
  0xf2   : > { %v3882_v21 = vld [vmem:[%s4918_s8 + $0x2f0] sm:$0x10] }
  0xf8   : > { %v732_v52 = vld [vmem:[#allocation1 + $0x36] sm:$0xff]  ;;  %v733_v53 = vld [vmem:[#allocation1 + $0x3f] sm:$0xff] }
  0xfd   : > { %1944 = vmatmul.bf16.vlgmr.msra.gmra.mxu0 %v706_v44  ;;  %1957 = vmatmul.bf16.vlgmr.msra.gmra.mxu1 %v707_v45  ;;  %v3849_v44 = vor.u32 %v4374_v39, %v3848_v38  ;;  %v3853_v45 = vor.u32 %v4302_v40, %v3850_v41 }
  0xfe   : > { %2047 = vmatpush.bf16.xpose.msra.mxu0 %v3801_v63  ;;  %2060 = vmatpush.bf16.xpose.msra.mxu1 %v3805_v0 }
  0xff   : > { %1983 = vmatmul.bf16.vlgmr.msra.gmra.mxu3 %v709_v47  ;;  %v727_v47 = vld [vmem:[#allocation1 + $0x9] sm:$0xff] }
 0x100   : > { %1970 = vmatmul.bf16.vlgmr.msra.gmra.mxu2 %v708_v46  ;;  %2086 = vmatpush.bf16.xpose.msra.mxu3 %v3813_v62  ;;  %v726_v46 = vld [vmem:[#allocation1] sm:$0xff]  ;;  %v3866_v62 = vld [vmem:[%s4918_s8 + $0x2e0] sm:$0x10] }
 0x101   : > { %2073 = vmatpush.bf16.xpose.msra.mxu2 %v3809_v61  ;;  %v4304_v61 = vld [vmem:[%s4918_s8 + $0xa4] sm:$0xf] }
 0x102   : > { %v3869_v5 = vor.u32 %v4304_v61, %v3866_v62 }
 0x10d   : > { %1996 = vmatmul.bf16.vlgmr.msrb.gmra.mxu0 %v710_v48  ;;  %2009 = vmatmul.bf16.vlgmr.msrb.gmra.mxu1 %v711_v49  ;;  %v728_v48 = vld [vmem:[#allocation1 + $0x12] sm:$0xff]  ;;  %v729_v49 = vld [vmem:[#allocation1 + $0x1b] sm:$0xff] }
 0x10e   : > { %2099 = vmatpush.bf16.xpose.msrb.mxu0 %v3817_v11  ;;  %2112 = vmatpush.bf16.xpose.msrb.mxu1 %v3821_v12  ;;  %v3888_v12 = vld [vmem:[%s4918_s8 + $0xb8] sm:$0xf] }
 0x10f   : > { %2035 = vmatmul.bf16.vlgmr.msrb.gmra.mxu3 %v713_v51  ;;  %v731_v51 = vld [vmem:[#allocation1 + $0x2d] sm:$0xff] }
 0x110   : > { %2022 = vmatmul.bf16.vlgmr.msrb.gmra.mxu2 %v712_v50  ;;  %2138 = vmatpush.bf16.xpose.msrb.mxu3 %v3829_v10  ;;  %v730_v50 = vld [vmem:[#allocation1 + $0x24] sm:$0xff] }
 0x111   : > { %2125 = vmatpush.bf16.xpose.msrb.mxu2 %v3825_v9  ;;  %735 = vst [vmem:[#allocation1] ss:$9 sm:$0xff] %v527_v54  ;;  %v3898_v54 = vld [vmem:[%s4918_s8 + $0x300] sm:$0x10] }
 0x118   : > { %v736_v35 = vld [vmem:[#allocation1] sm:$0xff]  ;;  %v737_v36 = vld [vmem:[#allocation1 + $0x9] sm:$0xff]  ;;  %v738_v37 = vld [vmem:[#allocation1 + $0x12] sm:$0xff] }
 0x119   : > { %v739_v39 = vld [vmem:[#allocation1 + $0x1b] sm:$0xff]  ;;  %v740_v40 = vld [vmem:[#allocation1 + $0x24] sm:$0xff]  ;;  %v741_v41 = vld [vmem:[#allocation1 + $0x2d] sm:$0xff] }
 0x11d   : > { %2048 = vmatmul.bf16.vlgmr.msra.gmra.mxu0 %v716_v13  ;;  %2061 = vmatmul.bf16.vlgmr.msra.gmra.mxu1 %v717_v14  ;;  %v4379_v13 = vld [vmem:[%s4918_s8 + $0x2f4] sm:$0x10]  ;;  %v4307_v14 = vld [vmem:[%s4918_s8 + $0xbc] sm:$0xf] }
 0x11e   : > { %2151 = vmatpush.bf16.xpose.msra.mxu0 %v3833_v32  ;;  %2164 = vmatpush.bf16.xpose.msra.mxu1 %v3837_v33  ;;  %v3889_v25 = vor.u32 %v4379_v13, %v3888_v12  ;;  %v4382_v12 = vld [vmem:[%s4918_s8 + $0x30c] sm:$0x10]  ;;  %v4310_v13 = vld [vmem:[%s4918_s8 + $0xd4] sm:$0xf] }
 0x11f   : > { %2087 = vmatmul.bf16.vlgmr.msra.gmra.mxu3 %v719_v16  ;;  %v3880_v16 = vld [vmem:[%s4918_s8 + $0xb0] sm:$0xf] }
 0x120   : > { %2074 = vmatmul.bf16.vlgmr.msra.gmra.mxu2 %v718_v15  ;;  %2190 = vmatpush.bf16.xpose.msra.mxu3 %v3845_v31  ;;  %v3890_v15 = vld [vmem:[%s4918_s8 + $0x2f8] sm:$0x10] }
 0x121   : > { %2177 = vmatpush.bf16.xpose.msra.mxu2 %v3841_v30  ;;  %v3893_v26 = vor.u32 %v4307_v14, %v3890_v15  ;;  %v3914_v14 = vld [vmem:[%s4918_s8 + $0x310] sm:$0x10] }
 0x12d   : > { %2100 = vmatmul.bf16.vlgmr.msrb.gmra.mxu0 %v720_v17  ;;  %2113 = vmatmul.bf16.vlgmr.msrb.gmra.mxu1 %v721_v18 }
 0x12e   : > { %2203 = vmatpush.bf16.xpose.msrb.mxu0 %v3849_v44  ;;  %2216 = vmatpush.bf16.xpose.msrb.mxu1 %v3853_v45  ;;  %v528_v44 = vld [vmem:[%s4916_s7 + $0x30] sm:$0xff] }
 0x12f   : > { %2139 = vmatmul.bf16.vlgmr.msrb.gmra.mxu3 %v723_v20  ;;  %v4306_v20 = vld [vmem:[%s4918_s8 + $0xb4] sm:$0xf]  ;;  %v3904_v45 = vld [vmem:[%s4918_s8 + $0xc8] sm:$0xf] }
 0x130   : > { %2126 = vmatmul.bf16.vlgmr.msrb.gmra.mxu2 %v722_v19  ;;  %2242 = vmatpush.bf16.xpose.msrb.mxu3 %v3861_v43  ;;  %v4378_v19 = vld [vmem:[%s4918_s8 + $0x2ec] sm:$0x10]  ;;  %v3885_v28 = vor.u32 %v4306_v20, %v3882_v21  ;;  %v743_v43 = vld [vmem:[#allocation1 + $0x3f] sm:$0xff]  ;;  %v3917_v21 = vor.u32 %v4310_v13, %v3914_v14 }
 0x131   : > { %2229 = vmatpush.bf16.xpose.msrb.mxu2 %v3857_v42  ;;  %v3881_v27 = vor.u32 %v4378_v19, %v3880_v16  ;;  %v742_v42 = vld [vmem:[#allocation1 + $0x36] sm:$0xff] }
 0x132   : > { %745 = vst [vmem:[#allocation1] ss:$9 sm:$0xff] %v528_v44 }
 0x13a   : > { %v1737_v63 = vpop.f32.mrf.mxu0  ;;  %v1750_v0 = vpop.f32.mrf.mxu1 }
 0x13b   : > { %v1751_v1 = vadd.f32 %v1750_v0, %v1737_v63 }
 0x13d   : > { %2152 = vmatmul.bf16.vlgmr.msra.gmra.mxu0 %v726_v46  ;;  %2165 = vmatmul.bf16.vlgmr.msra.gmra.mxu1 %v727_v47  ;;  %v4381_v46 = vld [vmem:[%s4918_s8 + $0x304] sm:$0x10]  ;;  %v4309_v47 = vld [vmem:[%s4918_s8 + $0xcc] sm:$0xf] }
 0x13e   : > { %2255 = vmatpush.bf16.xpose.msra.mxu0 %v3865_v4  ;;  %2268 = vmatpush.bf16.xpose.msra.mxu1 %v3869_v5  ;;  %v3905_v58 = vor.u32 %v4381_v46, %v3904_v45  ;;  %v3920_v5 = vld [vmem:[%s4918_s8 + $0xd8] sm:$0xf]  ;;  %v4384_v45 = vld [vmem:[%s4918_s8 + $0x31c] sm:$0x10]  ;;  %v4312_v46 = vld [vmem:[%s4918_s8 + $0xe4] sm:$0xf] }
 0x13f   : > { %2191 = vmatmul.bf16.vlgmr.msra.gmra.mxu3 %v729_v49  ;;  %v3896_v49 = vld [vmem:[%s4918_s8 + $0xc0] sm:$0xf] }
 0x140   : > { %2178 = vmatmul.bf16.vlgmr.msra.gmra.mxu2 %v728_v48  ;;  %2294 = vmatpush.bf16.xpose.msra.mxu3 %v3877_v3  ;;  %v3906_v48 = vld [vmem:[%s4918_s8 + $0x308] sm:$0x10] }
 0x141   : > { %2281 = vmatpush.bf16.xpose.msra.mxu2 %v3873_v2  ;;  %v3909_v59 = vor.u32 %v4309_v47, %v3906_v48  ;;  %v3930_v47 = vld [vmem:[%s4918_s8 + $0x320] sm:$0x10] }
 0x142   : > { %v1776_v7 = vpop.f32.mrf.mxu3  ;;  %v1739_v9 = vpop.f32.mrf.mxu0 }
 0x143   : > { %v1763_v6 = vpop.f32.mrf.mxu2  ;;  %v1752_v10 = vpop.f32.mrf.mxu1  ;;  %v3912_v9 = vld [vmem:[%s4918_s8 + $0xd0] sm:$0xf] }
 0x144   : > { %v1764_v8 = vadd.f32 %v1763_v6, %v1751_v1  ;;  %v4383_v6 = vld [vmem:[%s4918_s8 + $0x314] sm:$0x10]  ;;  %v3913_v20 = vor.u32 %v4382_v12, %v3912_v9 }
 0x146   : > { %v1777_v11 = vadd.f32 %v1776_v7, %v1764_v8  ;;  %v4311_v7 = vld [vmem:[%s4918_s8 + $0xdc] sm:$0xf] }
 0x147   : > { %v3922_v8 = vld [vmem:[%s4918_s8 + $0x318] sm:$0x10] }
 0x148   : > { %v3925_v19 = vor.u32 %v4311_v7, %v3922_v8  ;;  %v3946_v7 = vld [vmem:[%s4918_s8 + $0x330] sm:$0x10] }
 0x14a   : > { %v1778_v18 = vpop.f32.mrf.mxu3  ;;  %v1789_v22 = vpop.f32.mrf.mxu0 }
 0x14b   : > { %v1765_v17 = vpop.f32.mrf.mxu2  ;;  %v1802_v23 = vpop.f32.mrf.mxu1  ;;  %v1790_v24 = vadd.f32 %v1789_v22, %v1777_v11  ;;  %v3921_v18 = vor.u32 %v4383_v6, %v3920_v5  ;;  %v4386_v5 = vld [vmem:[%s4918_s8 + $0x32c] sm:$0x10]  ;;  %v4314_v6 = vld [vmem:[%s4918_s8 + $0xf4] sm:$0xf] }
 0x14c   : > { %v3949_v14 = vor.u32 %v4314_v6, %v3946_v7 }
 0x14d   : > { %v1803_v29 = vadd.f32 %v1802_v23, %v1790_v24  ;;  %2204 = vmatmul.bf16.vlgmr.msrb.gmra.mxu0 %v730_v50  ;;  %2217 = vmatmul.bf16.vlgmr.msrb.gmra.mxu1 %v731_v51 }
 0x14e   : > { %2307 = vmatpush.bf16.xpose.msrb.mxu0 %v3881_v27  ;;  %2320 = vmatpush.bf16.xpose.msrb.mxu1 %v3885_v28  ;;  %v746_v28 = vld [vmem:[#allocation1] sm:$0xff] }
 0x14f   : > { %2243 = vmatmul.bf16.vlgmr.msrb.gmra.mxu3 %v733_v53  ;;  %v4308_v53 = vld [vmem:[%s4918_s8 + $0xc4] sm:$0xf] }
 0x150   : > { %2230 = vmatmul.bf16.vlgmr.msrb.gmra.mxu2 %v732_v52  ;;  %2346 = vmatpush.bf16.xpose.msrb.mxu3 %v3893_v26  ;;  %v4380_v52 = vld [vmem:[%s4918_s8 + $0x2fc] sm:$0x10]  ;;  %v3901_v61 = vor.u32 %v4308_v53, %v3898_v54  ;;  %v3933_v54 = vor.u32 %v4312_v46, %v3930_v47 }
 0x151   : > { %2333 = vmatpush.bf16.xpose.msrb.mxu2 %v3889_v25  ;;  %v3897_v60 = vor.u32 %v4380_v52, %v3896_v49 }
 0x152   : > { %v1828_v31 = vpop.f32.mrf.mxu3  ;;  %v1791_v33 = vpop.f32.mrf.mxu0 }
 0x153   : > { %v1815_v30 = vpop.f32.mrf.mxu2  ;;  %v1804_v34 = vpop.f32.mrf.mxu1  ;;  %v750_v33 = vld [vmem:[#allocation1 + $0x24] sm:$0xff] }
 0x154   : > { %v1816_v32 = vadd.f32 %v1815_v30, %v1803_v29  ;;  %v747_v29 = vld [vmem:[#allocation1 + $0x9] sm:$0xff]  ;;  %v748_v30 = vld [vmem:[#allocation1 + $0x12] sm:$0xff] }
 0x155   : > { %v751_v34 = vld [vmem:[#allocation1 + $0x2d] sm:$0xff] }
 0x156   : > { %v1829_v38 = vadd.f32 %v1828_v31, %v1816_v32  ;;  %v749_v32 = vld [vmem:[#allocation1 + $0x1b] sm:$0xff] }
 0x15a   : > { %v1830_v51 = vpop.f32.mrf.mxu3  ;;  %v1841_v55 = vpop.f32.mrf.mxu0 }
 0x15b   : > { %v1817_v50 = vpop.f32.mrf.mxu2  ;;  %v1854_v56 = vpop.f32.mrf.mxu1  ;;  %v1842_v57 = vadd.f32 %v1841_v55, %v1829_v38  ;;  %v3936_v38 = vld [vmem:[%s4918_s8 + $0xe8] sm:$0xf] }
 0x15d   : > { %v1855_v62 = vadd.f32 %v1854_v56, %v1842_v57  ;;  %2256 = vmatmul.bf16.vlgmr.msra.gmra.mxu0 %v736_v35  ;;  %2269 = vmatmul.bf16.vlgmr.msra.gmra.mxu1 %v737_v36  ;;  %v752_v35 = vld [vmem:[#allocation1 + $0x36] sm:$0xff]  ;;  %v753_v36 = vld [vmem:[#allocation1 + $0x3f] sm:$0xff] }
 0x15e   : > { %2359 = vmatpush.bf16.xpose.msra.mxu0 %v3897_v60  ;;  %2372 = vmatpush.bf16.xpose.msra.mxu1 %v3901_v61 }
 0x15f   : > { %2295 = vmatmul.bf16.vlgmr.msra.gmra.mxu3 %v739_v39  ;;  %v4385_v39 = vld [vmem:[%s4918_s8 + $0x324] sm:$0x10] }
 0x160   : > { %2282 = vmatmul.bf16.vlgmr.msra.gmra.mxu2 %v738_v37  ;;  %2398 = vmatpush.bf16.xpose.msra.mxu3 %v3909_v59  ;;  %v529_v37 = vld [vmem:[%s4916_s7 + $0x38] sm:$0xff]  ;;  %v3937_v51 = vor.u32 %v4385_v39, %v3936_v38  ;;  %v4388_v38 = vld [vmem:[%s4918_s8 + $0x33c] sm:$0x10]  ;;  %v4316_v39 = vld [vmem:[%s4918_s8 + $0x104] sm:$0xf] }
 0x161   : > { %2385 = vmatpush.bf16.xpose.msra.mxu2 %v3905_v58  ;;  %755 = vst [vmem:[#allocation1] ss:$9 sm:$0xff] %v529_v37 }
 0x162   : > { %v1880_v0 = vpop.f32.mrf.mxu3  ;;  %v1843_v2 = vpop.f32.mrf.mxu0 }
 0x163   : > { %v1867_v63 = vpop.f32.mrf.mxu2  ;;  %v1856_v3 = vpop.f32.mrf.mxu1  ;;  %v3944_v2 = vld [vmem:[%s4918_s8 + $0xf0] sm:$0xf] }
 0x164   : > { %v1868_v1 = vadd.f32 %v1867_v63, %v1855_v62  ;;  %v3952_v62 = vld [vmem:[%s4918_s8 + $0xf8] sm:$0xf]  ;;  %v3945_v13 = vor.u32 %v4386_v5, %v3944_v2 }
 0x165   : > { %v4387_v63 = vld [vmem:[%s4918_s8 + $0x334] sm:$0x10] }
 0x166   : > { %v1881_v4 = vadd.f32 %v1880_v0, %v1868_v1  ;;  %v4315_v0 = vld [vmem:[%s4918_s8 + $0xfc] sm:$0xf] }
 0x167   : > { %v3954_v1 = vld [vmem:[%s4918_s8 + $0x338] sm:$0x10] }
 0x168   : > { %v3957_v12 = vor.u32 %v4315_v0, %v3954_v1  ;;  %v3978_v0 = vld [vmem:[%s4918_s8 + $0x350] sm:$0x10] }
 0x16a   : > { %v1882_v11 = vpop.f32.mrf.mxu3  ;;  %v1893_v15 = vpop.f32.mrf.mxu0 }
 0x16b   : > { %v1869_v10 = vpop.f32.mrf.mxu2  ;;  %v1906_v16 = vpop.f32.mrf.mxu1  ;;  %v1894_v17 = vadd.f32 %v1893_v15, %v1881_v4  ;;  %v3953_v11 = vor.u32 %v4387_v63, %v3952_v62  ;;  %v4390_v62 = vld [vmem:[%s4918_s8 + $0x34c] sm:$0x10]  ;;  %v4318_v63 = vld [vmem:[%s4918_s8 + $0x114] sm:$0xf] }
 0x16c   : > { %v3981_v7 = vor.u32 %v4318_v63, %v3978_v0 }
 0x16d   : > { %v1907_v22 = vadd.f32 %v1906_v16, %v1894_v17  ;;  %2308 = vmatmul.bf16.vlgmr.msrb.gmra.mxu0 %v740_v40  ;;  %2321 = vmatmul.bf16.vlgmr.msrb.gmra.mxu1 %v741_v41  ;;  %v4313_v40 = vld [vmem:[%s4918_s8 + $0xec] sm:$0xf] }
 0x16e   : > { %2411 = vmatpush.bf16.xpose.msrb.mxu0 %v3913_v20  ;;  %2424 = vmatpush.bf16.xpose.msrb.mxu1 %v3917_v21  ;;  %v3938_v41 = vld [vmem:[%s4918_s8 + $0x328] sm:$0x10]  ;;  %v756_v21 = vld [vmem:[#allocation1] sm:$0xff] }
 0x16f   : > { %2347 = vmatmul.bf16.vlgmr.msrb.gmra.mxu3 %v743_v43  ;;  %v3941_v52 = vor.u32 %v4313_v40, %v3938_v41  ;;  %v3962_v40 = vld [vmem:[%s4918_s8 + $0x340] sm:$0x10] }
 0x170   : > { %2334 = vmatmul.bf16.vlgmr.msrb.gmra.mxu2 %v742_v42  ;;  %2450 = vmatpush.bf16.xpose.msrb.mxu3 %v3925_v19  ;;  %v3928_v42 = vld [vmem:[%s4918_s8 + $0xe0] sm:$0xf]  ;;  %v3965_v47 = vor.u32 %v4316_v39, %v3962_v40 }
 0x171   : > { %2437 = vmatpush.bf16.xpose.msrb.mxu2 %v3921_v18  ;;  %v3929_v53 = vor.u32 %v4384_v45, %v3928_v42 }
 0x172   : > { %v1932_v24 = vpop.f32.mrf.mxu3  ;;  %v1895_v26 = vpop.f32.mrf.mxu0 }
 0x173   : > { %v1919_v23 = vpop.f32.mrf.mxu2  ;;  %v1908_v27 = vpop.f32.mrf.mxu1  ;;  %v760_v26 = vld [vmem:[#allocation1 + $0x24] sm:$0xff] }
 0x174   : > { %v1920_v25 = vadd.f32 %v1919_v23, %v1907_v22  ;;  %v757_v22 = vld [vmem:[#allocation1 + $0x9] sm:$0xff]  ;;  %v758_v23 = vld [vmem:[#allocation1 + $0x12] sm:$0xff] }
 0x175   : > { %v761_v27 = vld [vmem:[#allocation1 + $0x2d] sm:$0xff] }
 0x176   : > { %v1933_v31 = vadd.f32 %v1932_v24, %v1920_v25  ;;  %v759_v25 = vld [vmem:[#allocation1 + $0x1b] sm:$0xff] }
 0x17a   : > { %v1934_v44 = vpop.f32.mrf.mxu3  ;;  %v1945_v48 = vpop.f32.mrf.mxu0 }
 0x17b   : > { %v1921_v43 = vpop.f32.mrf.mxu2  ;;  %v1958_v49 = vpop.f32.mrf.mxu1  ;;  %v1946_v50 = vadd.f32 %v1945_v48, %v1933_v31  ;;  %v3968_v31 = vld [vmem:[%s4918_s8 + $0x108] sm:$0xf] }
 0x17d   : > { %v1959_v55 = vadd.f32 %v1958_v49, %v1946_v50  ;;  %2360 = vmatmul.bf16.vlgmr.msra.gmra.mxu0 %v746_v28  ;;  %2373 = vmatmul.bf16.vlgmr.msra.gmra.mxu1 %v747_v29  ;;  %v762_v28 = vld [vmem:[#allocation1 + $0x36] sm:$0xff]  ;;  %v763_v29 = vld [vmem:[#allocation1 + $0x3f] sm:$0xff] }
 0x17e   : > { %2463 = vmatpush.bf16.xpose.msra.mxu0 %v3929_v53  ;;  %2476 = vmatpush.bf16.xpose.msra.mxu1 %v3933_v54 }
 0x17f   : > { %2399 = vmatmul.bf16.vlgmr.msra.gmra.mxu3 %v749_v32  ;;  %v4389_v32 = vld [vmem:[%s4918_s8 + $0x344] sm:$0x10] }
 0x180   : > { %2386 = vmatmul.bf16.vlgmr.msra.gmra.mxu2 %v748_v30  ;;  %2502 = vmatpush.bf16.xpose.msra.mxu3 %v3941_v52  ;;  %v530_v30 = vld [vmem:[%s4916_s7 + $0x40] sm:$0xff]  ;;  %v3969_v44 = vor.u32 %v4389_v32, %v3968_v31  ;;  %v4392_v31 = vld [vmem:[%s4918_s8 + $0x35c] sm:$0x10]  ;;  %v4320_v32 = vld [vmem:[%s4918_s8 + $0x124] sm:$0xf] }
 0x181   : > { %2489 = vmatpush.bf16.xpose.msra.mxu2 %v3937_v51  ;;  %765 = vst [vmem:[#allocation1] ss:$9 sm:$0xff] %v530_v30 }
 0x182   : > { %v1984_v57 = vpop.f32.mrf.mxu3  ;;  %v1947_v59 = vpop.f32.mrf.mxu0 }
 0x183   : > { %v1971_v56 = vpop.f32.mrf.mxu2  ;;  %v1960_v60 = vpop.f32.mrf.mxu1  ;;  %v3976_v59 = vld [vmem:[%s4918_s8 + $0x110] sm:$0xf] }
 0x184   : > { %v1972_v58 = vadd.f32 %v1971_v56, %v1959_v55  ;;  %v3984_v55 = vld [vmem:[%s4918_s8 + $0x118] sm:$0xf]  ;;  %v3977_v6 = vor.u32 %v4390_v62, %v3976_v59 }
 0x185   : > { %v4391_v56 = vld [vmem:[%s4918_s8 + $0x354] sm:$0x10] }
 0x186   : > { %v1985_v61 = vadd.f32 %v1984_v57, %v1972_v58  ;;  %v4319_v57 = vld [vmem:[%s4918_s8 + $0x11c] sm:$0xf] }
 0x187   : > { %v3986_v58 = vld [vmem:[%s4918_s8 + $0x358] sm:$0x10] }
 0x188   : > { %v3989_v5 = vor.u32 %v4319_v57, %v3986_v58  ;;  %v4010_v57 = vld [vmem:[%s4918_s8 + $0x370] sm:$0x10] }
 0x18a   : > { %v1986_v4 = vpop.f32.mrf.mxu3  ;;  %v1997_v8 = vpop.f32.mrf.mxu0 }
 0x18b   : > { %v1973_v3 = vpop.f32.mrf.mxu2  ;;  %v2010_v9 = vpop.f32.mrf.mxu1  ;;  %v1998_v10 = vadd.f32 %v1997_v8, %v1985_v61  ;;  %v3985_v4 = vor.u32 %v4391_v56, %v3984_v55  ;;  %v4394_v55 = vld [vmem:[%s4918_s8 + $0x36c] sm:$0x10]  ;;  %v4322_v56 = vld [vmem:[%s4918_s8 + $0x134] sm:$0xf] }
 0x18c   : > { %v4013_v0 = vor.u32 %v4322_v56, %v4010_v57 }
 0x18d   : > { %v2011_v15 = vadd.f32 %v2010_v9, %v1998_v10  ;;  %2412 = vmatmul.bf16.vlgmr.msrb.gmra.mxu0 %v750_v33  ;;  %2425 = vmatmul.bf16.vlgmr.msrb.gmra.mxu1 %v751_v34  ;;  %v4317_v33 = vld [vmem:[%s4918_s8 + $0x10c] sm:$0xf] }
 0x18e   : > { %2515 = vmatpush.bf16.xpose.msrb.mxu0 %v3945_v13  ;;  %2528 = vmatpush.bf16.xpose.msrb.mxu1 %v3949_v14  ;;  %v3970_v34 = vld [vmem:[%s4918_s8 + $0x348] sm:$0x10]  ;;  %v766_v14 = vld [vmem:[#allocation1] sm:$0xff] }
 0x18f   : > { %2451 = vmatmul.bf16.vlgmr.msrb.gmra.mxu3 %v753_v36  ;;  %v3973_v45 = vor.u32 %v4317_v33, %v3970_v34  ;;  %v3994_v33 = vld [vmem:[%s4918_s8 + $0x360] sm:$0x10] }
 0x190   : > { %2438 = vmatmul.bf16.vlgmr.msrb.gmra.mxu2 %v752_v35  ;;  %2554 = vmatpush.bf16.xpose.msrb.mxu3 %v3957_v12  ;;  %v3960_v35 = vld [vmem:[%s4918_s8 + $0x100] sm:$0xf]  ;;  %v3997_v40 = vor.u32 %v4320_v32, %v3994_v33 }
 0x191   : > { %2541 = vmatpush.bf16.xpose.msrb.mxu2 %v3953_v11  ;;  %v3961_v46 = vor.u32 %v4388_v38, %v3960_v35 }
 0x192   : > { %v2036_v17 = vpop.f32.mrf.mxu3  ;;  %v1999_v19 = vpop.f32.mrf.mxu0 }
 0x193   : > { %v2023_v16 = vpop.f32.mrf.mxu2  ;;  %v2012_v20 = vpop.f32.mrf.mxu1  ;;  %v770_v19 = vld [vmem:[#allocation1 + $0x24] sm:$0xff] }
 0x194   : > { %v2024_v18 = vadd.f32 %v2023_v16, %v2011_v15  ;;  %v767_v15 = vld [vmem:[#allocation1 + $0x9] sm:$0xff]  ;;  %v768_v16 = vld [vmem:[#allocation1 + $0x12] sm:$0xff] }
 0x195   : > { %v771_v20 = vld [vmem:[#allocation1 + $0x2d] sm:$0xff] }
 0x196   : > { %v2037_v24 = vadd.f32 %v2036_v17, %v2024_v18  ;;  %v769_v18 = vld [vmem:[#allocation1 + $0x1b] sm:$0xff] }
 0x19a   : > { %v2038_v37 = vpop.f32.mrf.mxu3  ;;  %v2049_v41 = vpop.f32.mrf.mxu0 }
 0x19b   : > { %v2025_v36 = vpop.f32.mrf.mxu2  ;;  %v2062_v42 = vpop.f32.mrf.mxu1  ;;  %v2050_v43 = vadd.f32 %v2049_v41, %v2037_v24  ;;  %v4000_v24 = vld [vmem:[%s4918_s8 + $0x128] sm:$0xf] }
 0x19d   : > { %v2063_v48 = vadd.f32 %v2062_v42, %v2050_v43  ;;  %2464 = vmatmul.bf16.vlgmr.msra.gmra.mxu0 %v756_v21  ;;  %2477 = vmatmul.bf16.vlgmr.msra.gmra.mxu1 %v757_v22  ;;  %v772_v21 = vld [vmem:[#allocation1 + $0x36] sm:$0xff]  ;;  %v773_v22 = vld [vmem:[#allocation1 + $0x3f] sm:$0xff] }
 0x19e   : > { %2567 = vmatpush.bf16.xpose.msra.mxu0 %v3961_v46  ;;  %2580 = vmatpush.bf16.xpose.msra.mxu1 %v3965_v47 }
 0x19f   : > { %2503 = vmatmul.bf16.vlgmr.msra.gmra.mxu3 %v759_v25  ;;  %v4393_v25 = vld [vmem:[%s4918_s8 + $0x364] sm:$0x10] }
 0x1a0   : > { %2490 = vmatmul.bf16.vlgmr.msra.gmra.mxu2 %v758_v23  ;;  %2606 = vmatpush.bf16.xpose.msra.mxu3 %v3973_v45  ;;  %v531_v23 = vld [vmem:[%s4916_s7 + $0x48] sm:$0xff]  ;;  %v4001_v37 = vor.u32 %v4393_v25, %v4000_v24 }
 0x1a1   : > { %2593 = vmatpush.bf16.xpose.msra.mxu2 %v3969_v44  ;;  %775 = vst [vmem:[#allocation1] ss:$9 sm:$0xff] %v531_v23  ;;  %v4396_v24 = vld [vmem:[%s4918_s8 + $0x37c] sm:$0x10]  ;;  %v4324_v25 = vld [vmem:[%s4918_s8 + $0x144] sm:$0xf] }
 0x1a2   : > { %v2088_v50 = vpop.f32.mrf.mxu3  ;;  %v2051_v52 = vpop.f32.mrf.mxu0 }
 0x1a3   : > { %v2075_v49 = vpop.f32.mrf.mxu2  ;;  %v2064_v53 = vpop.f32.mrf.mxu1  ;;  %v4008_v52 = vld [vmem:[%s4918_s8 + $0x130] sm:$0xf] }
 0x1a4   : > { %v2076_v51 = vadd.f32 %v2075_v49, %v2063_v48  ;;  %v4016_v48 = vld [vmem:[%s4918_s8 + $0x138] sm:$0xf]  ;;  %v4009_v63 = vor.u32 %v4394_v55, %v4008_v52 }
 0x1a5   : > { %v4395_v49 = vld [vmem:[%s4918_s8 + $0x374] sm:$0x10] }
 0x1a6   : > { %v2089_v54 = vadd.f32 %v2088_v50, %v2076_v51  ;;  %v4323_v50 = vld [vmem:[%s4918_s8 + $0x13c] sm:$0xf] }
 0x1a7   : > { %v4018_v51 = vld [vmem:[%s4918_s8 + $0x378] sm:$0x10] }
 0x1a8   : > { %v4021_v62 = vor.u32 %v4323_v50, %v4018_v51  ;;  %v4042_v50 = vld [vmem:[%s4918_s8 + $0x390] sm:$0x10] }
 0x1aa   : > { %v2090_v61 = vpop.f32.mrf.mxu3  ;;  %v2101_v1 = vpop.f32.mrf.mxu0 }
 0x1ab   : > { %v2077_v60 = vpop.f32.mrf.mxu2  ;;  %v2114_v2 = vpop.f32.mrf.mxu1  ;;  %v2102_v3 = vadd.f32 %v2101_v1, %v2089_v54  ;;  %v4017_v61 = vor.u32 %v4395_v49, %v4016_v48  ;;  %v4398_v48 = vld [vmem:[%s4918_s8 + $0x38c] sm:$0x10]  ;;  %v4326_v49 = vld [vmem:[%s4918_s8 + $0x154] sm:$0xf] }
 0x1ac   : > { %v4045_v57 = vor.u32 %v4326_v49, %v4042_v50 }
 0x1ad   : > { %v2115_v8 = vadd.f32 %v2114_v2, %v2102_v3  ;;  %2516 = vmatmul.bf16.vlgmr.msrb.gmra.mxu0 %v760_v26  ;;  %2529 = vmatmul.bf16.vlgmr.msrb.gmra.mxu1 %v761_v27  ;;  %v4321_v26 = vld [vmem:[%s4918_s8 + $0x12c] sm:$0xf] }
 0x1ae   : > { %2619 = vmatpush.bf16.xpose.msrb.mxu0 %v3977_v6  ;;  %2632 = vmatpush.bf16.xpose.msrb.mxu1 %v3981_v7  ;;  %v4002_v27 = vld [vmem:[%s4918_s8 + $0x368] sm:$0x10]  ;;  %v776_v7 = vld [vmem:[#allocation1] sm:$0xff] }
 0x1af   : > { %2555 = vmatmul.bf16.vlgmr.msrb.gmra.mxu3 %v763_v29  ;;  %v4005_v38 = vor.u32 %v4321_v26, %v4002_v27  ;;  %v4026_v26 = vld [vmem:[%s4918_s8 + $0x380] sm:$0x10] }
 0x1b0   : > { %2542 = vmatmul.bf16.vlgmr.msrb.gmra.mxu2 %v762_v28  ;;  %2658 = vmatpush.bf16.xpose.msrb.mxu3 %v3989_v5  ;;  %v3992_v28 = vld [vmem:[%s4918_s8 + $0x120] sm:$0xf]  ;;  %v4029_v33 = vor.u32 %v4324_v25, %v4026_v26 }
 0x1b1   : > { %2645 = vmatpush.bf16.xpose.msrb.mxu2 %v3985_v4  ;;  %v3993_v39 = vor.u32 %v4392_v31, %v3992_v28 }
 0x1b2   : > { %v2140_v10 = vpop.f32.mrf.mxu3  ;;  %v2103_v12 = vpop.f32.mrf.mxu0 }
 0x1b3   : > { %v2127_v9 = vpop.f32.mrf.mxu2  ;;  %v2116_v13 = vpop.f32.mrf.mxu1  ;;  %v780_v12 = vld [vmem:[#allocation1 + $0x24] sm:$0xff] }
 0x1b4   : > { %v2128_v11 = vadd.f32 %v2127_v9, %v2115_v8  ;;  %v777_v8 = vld [vmem:[#allocation1 + $0x9] sm:$0xff]  ;;  %v778_v9 = vld [vmem:[#allocation1 + $0x12] sm:$0xff] }
 0x1b5   : > { %v781_v13 = vld [vmem:[#allocation1 + $0x2d] sm:$0xff] }
 0x1b6   : > { %v2141_v17 = vadd.f32 %v2140_v10, %v2128_v11  ;;  %v779_v11 = vld [vmem:[#allocation1 + $0x1b] sm:$0xff] }
 0x1ba   : > { %v2142_v30 = vpop.f32.mrf.mxu3  ;;  %v2153_v34 = vpop.f32.mrf.mxu0 }
 0x1bb   : > { %v2129_v29 = vpop.f32.mrf.mxu2  ;;  %v2166_v35 = vpop.f32.mrf.mxu1  ;;  %v2154_v36 = vadd.f32 %v2153_v34, %v2141_v17  ;;  %v4032_v17 = vld [vmem:[%s4918_s8 + $0x148] sm:$0xf] }
 0x1bd   : > { %v2167_v41 = vadd.f32 %v2166_v35, %v2154_v36  ;;  %2568 = vmatmul.bf16.vlgmr.msra.gmra.mxu0 %v766_v14  ;;  %2581 = vmatmul.bf16.vlgmr.msra.gmra.mxu1 %v767_v15  ;;  %v782_v14 = vld [vmem:[#allocation1 + $0x36] sm:$0xff]  ;;  %v783_v15 = vld [vmem:[#allocation1 + $0x3f] sm:$0xff] }
 0x1be   : > { %2671 = vmatpush.bf16.xpose.msra.mxu0 %v3993_v39  ;;  %2684 = vmatpush.bf16.xpose.msra.mxu1 %v3997_v40 }
 0x1bf   : > { %2607 = vmatmul.bf16.vlgmr.msra.gmra.mxu3 %v769_v18  ;;  %v4397_v18 = vld [vmem:[%s4918_s8 + $0x384] sm:$0x10] }
 0x1c0   : > { %2594 = vmatmul.bf16.vlgmr.msra.gmra.mxu2 %v768_v16  ;;  %2710 = vmatpush.bf16.xpose.msra.mxu3 %v4005_v38  ;;  %v532_v16 = vld [vmem:[%s4916_s7 + $0x50] sm:$0xff]  ;;  %v4033_v30 = vor.u32 %v4397_v18, %v4032_v17  ;;  %v4400_v17 = vld [vmem:[%s4918_s8 + $0x39c] sm:$0x10] }
 0x1c1   : > { %2697 = vmatpush.bf16.xpose.msra.mxu2 %v4001_v37  ;;  %785 = vst [vmem:[#allocation1] ss:$9 sm:$0xff] %v532_v16  ;;  %v4328_v18 = vld [vmem:[%s4918_s8 + $0x164] sm:$0xf] }
 0x1c2   : > { %v2192_v43 = vpop.f32.mrf.mxu3  ;;  %v2155_v45 = vpop.f32.mrf.mxu0 }
 0x1c3   : > { %v2179_v42 = vpop.f32.mrf.mxu2  ;;  %v2168_v46 = vpop.f32.mrf.mxu1  ;;  %v4040_v45 = vld [vmem:[%s4918_s8 + $0x150] sm:$0xf] }
 0x1c4   : > { %v2180_v44 = vadd.f32 %v2179_v42, %v2167_v41  ;;  %v4048_v41 = vld [vmem:[%s4918_s8 + $0x158] sm:$0xf]  ;;  %v4041_v56 = vor.u32 %v4398_v48, %v4040_v45 }
 0x1c5   : > { %v4399_v42 = vld [vmem:[%s4918_s8 + $0x394] sm:$0x10] }
 0x1c6   : > { %v2193_v47 = vadd.f32 %v2192_v43, %v2180_v44  ;;  %v4327_v43 = vld [vmem:[%s4918_s8 + $0x15c] sm:$0xf] }
 0x1c7   : > { %v4050_v44 = vld [vmem:[%s4918_s8 + $0x398] sm:$0x10] }
 0x1c8   : > { %v4053_v55 = vor.u32 %v4327_v43, %v4050_v44  ;;  %v4074_v43 = vld [vmem:[%s4918_s8 + $0x3b0] sm:$0x10] }
 0x1ca   : > { %v2194_v54 = vpop.f32.mrf.mxu3  ;;  %v2205_v58 = vpop.f32.mrf.mxu0 }
 0x1cb   : > { %v2181_v53 = vpop.f32.mrf.mxu2  ;;  %v2218_v59 = vpop.f32.mrf.mxu1  ;;  %v2206_v60 = vadd.f32 %v2205_v58, %v2193_v47  ;;  %v4049_v54 = vor.u32 %v4399_v42, %v4048_v41  ;;  %v4402_v41 = vld [vmem:[%s4918_s8 + $0x3ac] sm:$0x10]  ;;  %v4330_v42 = vld [vmem:[%s4918_s8 + $0x174] sm:$0xf] }
 0x1cc   : > { %v4077_v50 = vor.u32 %v4330_v42, %v4074_v43 }
 0x1cd   : > { %v2219_v1 = vadd.f32 %v2218_v59, %v2206_v60  ;;  %2620 = vmatmul.bf16.vlgmr.msrb.gmra.mxu0 %v770_v19  ;;  %2633 = vmatmul.bf16.vlgmr.msrb.gmra.mxu1 %v771_v20  ;;  %v4325_v19 = vld [vmem:[%s4918_s8 + $0x14c] sm:$0xf] }
 0x1ce   : > { %2723 = vmatpush.bf16.xpose.msrb.mxu0 %v4009_v63  ;;  %2736 = vmatpush.bf16.xpose.msrb.mxu1 %v4013_v0  ;;  %v4034_v20 = vld [vmem:[%s4918_s8 + $0x388] sm:$0x10]  ;;  %v786_v0 = vld [vmem:[#allocation1] sm:$0xff] }
 0x1cf   : > { %2659 = vmatmul.bf16.vlgmr.msrb.gmra.mxu3 %v773_v22  ;;  %v4037_v31 = vor.u32 %v4325_v19, %v4034_v20  ;;  %v4058_v19 = vld [vmem:[%s4918_s8 + $0x3a0] sm:$0x10] }
 0x1d0   : > { %2646 = vmatmul.bf16.vlgmr.msrb.gmra.mxu2 %v772_v21  ;;  %2762 = vmatpush.bf16.xpose.msrb.mxu3 %v4021_v62  ;;  %v4024_v21 = vld [vmem:[%s4918_s8 + $0x140] sm:$0xf]  ;;  %v4061_v26 = vor.u32 %v4328_v18, %v4058_v19 }
 0x1d1   : > { %2749 = vmatpush.bf16.xpose.msrb.mxu2 %v4017_v61  ;;  %v4025_v32 = vor.u32 %v4396_v24, %v4024_v21 }
 0x1d2   : > { %v2244_v3 = vpop.f32.mrf.mxu3  ;;  %v2207_v5 = vpop.f32.mrf.mxu0 }
 0x1d3   : > { %v2231_v2 = vpop.f32.mrf.mxu2  ;;  %v2220_v6 = vpop.f32.mrf.mxu1  ;;  %v790_v5 = vld [vmem:[#allocation1 + $0x24] sm:$0xff] }
 0x1d4   : > { %v2232_v4 = vadd.f32 %v2231_v2, %v2219_v1  ;;  %v787_v1 = vld [vmem:[#allocation1 + $0x9] sm:$0xff]  ;;  %v788_v2 = vld [vmem:[#allocation1 + $0x12] sm:$0xff] }
 0x1d5   : > { %v791_v6 = vld [vmem:[#allocation1 + $0x2d] sm:$0xff] }
 0x1d6   : > { %v2245_v10 = vadd.f32 %v2244_v3, %v2232_v4  ;;  %v789_v4 = vld [vmem:[#allocation1 + $0x1b] sm:$0xff] }
 0x1da   : > { %v2246_v23 = vpop.f32.mrf.mxu3  ;;  %v2257_v27 = vpop.f32.mrf.mxu0 }
 0x1db   : > { %v2233_v22 = vpop.f32.mrf.mxu2  ;;  %v2270_v28 = vpop.f32.mrf.mxu1  ;;  %v2258_v29 = vadd.f32 %v2257_v27, %v2245_v10  ;;  %v4064_v10 = vld [vmem:[%s4918_s8 + $0x168] sm:$0xf] }
 0x1dd   : > { %v2271_v34 = vadd.f32 %v2270_v28, %v2258_v29  ;;  %2672 = vmatmul.bf16.vlgmr.msra.gmra.mxu0 %v776_v7  ;;  %2685 = vmatmul.bf16.vlgmr.msra.gmra.mxu1 %v777_v8  ;;  %v792_v7 = vld [vmem:[#allocation1 + $0x36] sm:$0xff]  ;;  %v793_v8 = vld [vmem:[#allocation1 + $0x3f] sm:$0xff] }
 0x1de   : > { %2775 = vmatpush.bf16.xpose.msra.mxu0 %v4025_v32  ;;  %2788 = vmatpush.bf16.xpose.msra.mxu1 %v4029_v33 }
 0x1df   : > { %2711 = vmatmul.bf16.vlgmr.msra.gmra.mxu3 %v779_v11  ;;  %v4401_v11 = vld [vmem:[%s4918_s8 + $0x3a4] sm:$0x10] }
 0x1e0   : > { %2698 = vmatmul.bf16.vlgmr.msra.gmra.mxu2 %v778_v9  ;;  %2814 = vmatpush.bf16.xpose.msra.mxu3 %v4037_v31  ;;  %v533_v9 = vld [vmem:[%s4916_s7 + $0x58] sm:$0xff]  ;;  %v4065_v23 = vor.u32 %v4401_v11, %v4064_v10  ;;  %v4404_v10 = vld [vmem:[%s4918_s8 + $0x3bc] sm:$0x10]  ;;  %v4332_v11 = vld [vmem:[%s4918_s8 + $0x184] sm:$0xf] }
 0x1e1   : > { %2801 = vmatpush.bf16.xpose.msra.mxu2 %v4033_v30  ;;  %795 = vst [vmem:[#allocation1] ss:$9 sm:$0xff] %v533_v9 }
 0x1e2   : > { %v2296_v36 = vpop.f32.mrf.mxu3  ;;  %v2259_v38 = vpop.f32.mrf.mxu0 }
 0x1e3   : > { %v2283_v35 = vpop.f32.mrf.mxu2  ;;  %v2272_v39 = vpop.f32.mrf.mxu1  ;;  %v4072_v38 = vld [vmem:[%s4918_s8 + $0x170] sm:$0xf] }
 0x1e4   : > { %v2284_v37 = vadd.f32 %v2283_v35, %v2271_v34  ;;  %v4080_v34 = vld [vmem:[%s4918_s8 + $0x178] sm:$0xf]  ;;  %v4073_v49 = vor.u32 %v4402_v41, %v4072_v38 }
 0x1e5   : > { %v4403_v35 = vld [vmem:[%s4918_s8 + $0x3b4] sm:$0x10] }
 0x1e6   : > { %v2297_v40 = vadd.f32 %v2296_v36, %v2284_v37  ;;  %v4331_v36 = vld [vmem:[%s4918_s8 + $0x17c] sm:$0xf] }
 0x1e7   : > { %v4082_v37 = vld [vmem:[%s4918_s8 + $0x3b8] sm:$0x10] }
 0x1e8   : > { %v4085_v48 = vor.u32 %v4331_v36, %v4082_v37  ;;  %v4106_v36 = vld [vmem:[%s4918_s8 + $0x3d0] sm:$0x10] }
 0x1ea   : > { %v2298_v47 = vpop.f32.mrf.mxu3  ;;  %v2309_v51 = vpop.f32.mrf.mxu0 }
 0x1eb   : > { %v2285_v46 = vpop.f32.mrf.mxu2  ;;  %v2322_v52 = vpop.f32.mrf.mxu1  ;;  %v2310_v53 = vadd.f32 %v2309_v51, %v2297_v40  ;;  %v4081_v47 = vor.u32 %v4403_v35, %v4080_v34  ;;  %v4406_v34 = vld [vmem:[%s4918_s8 + $0x3cc] sm:$0x10]  ;;  %v4334_v35 = vld [vmem:[%s4918_s8 + $0x194] sm:$0xf] }
 0x1ec   : > { %v4109_v43 = vor.u32 %v4334_v35, %v4106_v36 }
 0x1ed   : > { %v2323_v58 = vadd.f32 %v2322_v52, %v2310_v53  ;;  %2724 = vmatmul.bf16.vlgmr.msrb.gmra.mxu0 %v780_v12  ;;  %2737 = vmatmul.bf16.vlgmr.msrb.gmra.mxu1 %v781_v13  ;;  %v4329_v12 = vld [vmem:[%s4918_s8 + $0x16c] sm:$0xf] }
 0x1ee   : > { %2827 = vmatpush.bf16.xpose.msrb.mxu0 %v4041_v56  ;;  %2840 = vmatpush.bf16.xpose.msrb.mxu1 %v4045_v57  ;;  %v4066_v13 = vld [vmem:[%s4918_s8 + $0x3a8] sm:$0x10]  ;;  %v796_v57 = vld [vmem:[#allocation1] sm:$0xff] }
 0x1ef   : > { %2763 = vmatmul.bf16.vlgmr.msrb.gmra.mxu3 %v783_v15  ;;  %v4069_v24 = vor.u32 %v4329_v12, %v4066_v13  ;;  %v4090_v12 = vld [vmem:[%s4918_s8 + $0x3c0] sm:$0x10] }
 0x1f0   : > { %2750 = vmatmul.bf16.vlgmr.msrb.gmra.mxu2 %v782_v14  ;;  %2866 = vmatpush.bf16.xpose.msrb.mxu3 %v4053_v55  ;;  %v4056_v14 = vld [vmem:[%s4918_s8 + $0x160] sm:$0xf]  ;;  %v4093_v19 = vor.u32 %v4332_v11, %v4090_v12 }
 0x1f1   : > { %2853 = vmatpush.bf16.xpose.msrb.mxu2 %v4049_v54  ;;  %v4057_v25 = vor.u32 %v4400_v17, %v4056_v14 }
 0x1f2   : > { %v2348_v60 = vpop.f32.mrf.mxu3  ;;  %v2311_v62 = vpop.f32.mrf.mxu0 }
 0x1f3   : > { %v2335_v59 = vpop.f32.mrf.mxu2  ;;  %v2324_v63 = vpop.f32.mrf.mxu1  ;;  %v800_v62 = vld [vmem:[#allocation1 + $0x24] sm:$0xff] }
 0x1f4   : > { %v2336_v61 = vadd.f32 %v2335_v59, %v2323_v58  ;;  %v797_v58 = vld [vmem:[#allocation1 + $0x9] sm:$0xff]  ;;  %v798_v59 = vld [vmem:[#allocation1 + $0x12] sm:$0xff] }
 0x1f5   : > { %v801_v63 = vld [vmem:[#allocation1 + $0x2d] sm:$0xff] }
 0x1f6   : > { %v2349_v3 = vadd.f32 %v2348_v60, %v2336_v61  ;;  %v799_v61 = vld [vmem:[#allocation1 + $0x1b] sm:$0xff] }
 0x1fa   : > { %v2350_v16 = vpop.f32.mrf.mxu3  ;;  %v2361_v20 = vpop.f32.mrf.mxu0 }
 0x1fb   : > { %v2337_v15 = vpop.f32.mrf.mxu2  ;;  %v2374_v21 = vpop.f32.mrf.mxu1  ;;  %v2362_v22 = vadd.f32 %v2361_v20, %v2349_v3  ;;  %v4096_v3 = vld [vmem:[%s4918_s8 + $0x188] sm:$0xf] }
 0x1fd   : > { %v2375_v27 = vadd.f32 %v2374_v21, %v2362_v22  ;;  %2776 = vmatmul.bf16.vlgmr.msra.gmra.mxu0 %v786_v0  ;;  %2789 = vmatmul.bf16.vlgmr.msra.gmra.mxu1 %v787_v1  ;;  %v802_v0 = vld [vmem:[#allocation1 + $0x36] sm:$0xff]  ;;  %v803_v1 = vld [vmem:[#allocation1 + $0x3f] sm:$0xff] }
 0x1fe   : > { %2879 = vmatpush.bf16.xpose.msra.mxu0 %v4057_v25  ;;  %2892 = vmatpush.bf16.xpose.msra.mxu1 %v4061_v26 }
 0x1ff   : > { %2815 = vmatmul.bf16.vlgmr.msra.gmra.mxu3 %v789_v4  ;;  %v4405_v4 = vld [vmem:[%s4918_s8 + $0x3c4] sm:$0x10] }
 0x200   : > { %2802 = vmatmul.bf16.vlgmr.msra.gmra.mxu2 %v788_v2  ;;  %2918 = vmatpush.bf16.xpose.msra.mxu3 %v4069_v24  ;;  %v534_v2 = vld [vmem:[%s4916_s7 + $0x60] sm:$0xff]  ;;  %v4097_v16 = vor.u32 %v4405_v4, %v4096_v3  ;;  %v4408_v3 = vld [vmem:[%s4918_s8 + $0x3dc] sm:$0x10]  ;;  %v4336_v4 = vld [vmem:[%s4918_s8 + $0x1a4] sm:$0xf] }
 0x201   : > { %2905 = vmatpush.bf16.xpose.msra.mxu2 %v4065_v23  ;;  %805 = vst [vmem:[#allocation1] ss:$9 sm:$0xff] %v534_v2 }
 0x202   : > { %v2400_v29 = vpop.f32.mrf.mxu3  ;;  %v2363_v31 = vpop.f32.mrf.mxu0 }
 0x203   : > { %v2387_v28 = vpop.f32.mrf.mxu2  ;;  %v2376_v32 = vpop.f32.mrf.mxu1  ;;  %v4104_v31 = vld [vmem:[%s4918_s8 + $0x190] sm:$0xf] }
 0x204   : > { %v2388_v30 = vadd.f32 %v2387_v28, %v2375_v27  ;;  %v4112_v27 = vld [vmem:[%s4918_s8 + $0x198] sm:$0xf]  ;;  %v4105_v42 = vor.u32 %v4406_v34, %v4104_v31 }
 0x205   : > { %v4407_v28 = vld [vmem:[%s4918_s8 + $0x3d4] sm:$0x10] }
 0x206   : > { %v2401_v33 = vadd.f32 %v2400_v29, %v2388_v30  ;;  %v4335_v29 = vld [vmem:[%s4918_s8 + $0x19c] sm:$0xf] }
 0x207   : > { %v4114_v30 = vld [vmem:[%s4918_s8 + $0x3d8] sm:$0x10] }
 0x208   : > { %v4117_v41 = vor.u32 %v4335_v29, %v4114_v30  ;;  %v4138_v29 = vld [vmem:[%s4918_s8 + $0x3f0] sm:$0x10] }
 0x20a   : > { %v2402_v40 = vpop.f32.mrf.mxu3  ;;  %v2413_v44 = vpop.f32.mrf.mxu0 }
 0x20b   : > { %v2389_v39 = vpop.f32.mrf.mxu2  ;;  %v2426_v45 = vpop.f32.mrf.mxu1  ;;  %v2414_v46 = vadd.f32 %v2413_v44, %v2401_v33  ;;  %v4113_v40 = vor.u32 %v4407_v28, %v4112_v27  ;;  %v4410_v27 = vld [vmem:[%s4918_s8 + $0x3ec] sm:$0x10]  ;;  %v4338_v28 = vld [vmem:[%s4918_s8 + $0x1b4] sm:$0xf] }
 0x20c   : > { %v4141_v36 = vor.u32 %v4338_v28, %v4138_v29 }
 0x20d   : > { %v2427_v51 = vadd.f32 %v2426_v45, %v2414_v46  ;;  %2828 = vmatmul.bf16.vlgmr.msrb.gmra.mxu0 %v790_v5  ;;  %2841 = vmatmul.bf16.vlgmr.msrb.gmra.mxu1 %v791_v6  ;;  %v4333_v5 = vld [vmem:[%s4918_s8 + $0x18c] sm:$0xf] }
 0x20e   : > { %2931 = vmatpush.bf16.xpose.msrb.mxu0 %v4073_v49  ;;  %2944 = vmatpush.bf16.xpose.msrb.mxu1 %v4077_v50  ;;  %v4098_v6 = vld [vmem:[%s4918_s8 + $0x3c8] sm:$0x10]  ;;  %v806_v50 = vld [vmem:[#allocation1] sm:$0xff] }
 0x20f   : > { %2867 = vmatmul.bf16.vlgmr.msrb.gmra.mxu3 %v793_v8  ;;  %v4101_v17 = vor.u32 %v4333_v5, %v4098_v6  ;;  %v4122_v5 = vld [vmem:[%s4918_s8 + $0x3e0] sm:$0x10] }
 0x210   : > { %2854 = vmatmul.bf16.vlgmr.msrb.gmra.mxu2 %v792_v7  ;;  %2970 = vmatpush.bf16.xpose.msrb.mxu3 %v4085_v48  ;;  %v4088_v7 = vld [vmem:[%s4918_s8 + $0x180] sm:$0xf]  ;;  %v4125_v12 = vor.u32 %v4336_v4, %v4122_v5 }
 0x211   : > { %2957 = vmatpush.bf16.xpose.msrb.mxu2 %v4081_v47  ;;  %v4089_v18 = vor.u32 %v4404_v10, %v4088_v7 }
 0x212   : > { %v2452_v53 = vpop.f32.mrf.mxu3  ;;  %v2415_v55 = vpop.f32.mrf.mxu0 }
 0x213   : > { %v2439_v52 = vpop.f32.mrf.mxu2  ;;  %v2428_v56 = vpop.f32.mrf.mxu1  ;;  %v810_v55 = vld [vmem:[#allocation1 + $0x24] sm:$0xff] }
 0x214   : > { %v2440_v54 = vadd.f32 %v2439_v52, %v2427_v51  ;;  %v807_v51 = vld [vmem:[#allocation1 + $0x9] sm:$0xff]  ;;  %v808_v52 = vld [vmem:[#allocation1 + $0x12] sm:$0xff] }
 0x215   : > { %v811_v56 = vld [vmem:[#allocation1 + $0x2d] sm:$0xff] }
 0x216   : > { %v2453_v60 = vadd.f32 %v2452_v53, %v2440_v54  ;;  %v809_v54 = vld [vmem:[#allocation1 + $0x1b] sm:$0xff] }
 0x21a   : > { %v2454_v9 = vpop.f32.mrf.mxu3  ;;  %v2465_v13 = vpop.f32.mrf.mxu0 }
 0x21b   : > { %v2441_v8 = vpop.f32.mrf.mxu2  ;;  %v2478_v14 = vpop.f32.mrf.mxu1  ;;  %v2466_v15 = vadd.f32 %v2465_v13, %v2453_v60  ;;  %v4128_v60 = vld [vmem:[%s4918_s8 + $0x1a8] sm:$0xf] }
 0x21d   : > { %v2479_v20 = vadd.f32 %v2478_v14, %v2466_v15  ;;  %2880 = vmatmul.bf16.vlgmr.msra.gmra.mxu0 %v796_v57  ;;  %2893 = vmatmul.bf16.vlgmr.msra.gmra.mxu1 %v797_v58  ;;  %v812_v57 = vld [vmem:[#allocation1 + $0x36] sm:$0xff]  ;;  %v813_v58 = vld [vmem:[#allocation1 + $0x3f] sm:$0xff] }
 0x21e   : > { %2983 = vmatpush.bf16.xpose.msra.mxu0 %v4089_v18  ;;  %2996 = vmatpush.bf16.xpose.msra.mxu1 %v4093_v19 }
 0x21f   : > { %2919 = vmatmul.bf16.vlgmr.msra.gmra.mxu3 %v799_v61  ;;  %v4409_v61 = vld [vmem:[%s4918_s8 + $0x3e4] sm:$0x10] }
 0x220   : > { %2906 = vmatmul.bf16.vlgmr.msra.gmra.mxu2 %v798_v59  ;;  %3022 = vmatpush.bf16.xpose.msra.mxu3 %v4101_v17  ;;  %v535_v59 = vld [vmem:[%s4916_s7 + $0x68] sm:$0xff]  ;;  %v4129_v9 = vor.u32 %v4409_v61, %v4128_v60 }
 0x221   : > { %3009 = vmatpush.bf16.xpose.msra.mxu2 %v4097_v16  ;;  %815 = vst [vmem:[#allocation1] ss:$9 sm:$0xff] %v535_v59  ;;  %v4412_v60 = vld [vmem:[%s4918_s8 + $0x3fc] sm:$0x10]  ;;  %v4340_v61 = vld [vmem:[%s4918_s8 + $0x1c4] sm:$0xf] }
 0x222   : > { %v2504_v22 = vpop.f32.mrf.mxu3  ;;  %v2467_v24 = vpop.f32.mrf.mxu0 }
 0x223   : > { %v2491_v21 = vpop.f32.mrf.mxu2  ;;  %v2480_v25 = vpop.f32.mrf.mxu1  ;;  %v4136_v24 = vld [vmem:[%s4918_s8 + $0x1b0] sm:$0xf] }
 0x224   : > { %v2492_v23 = vadd.f32 %v2491_v21, %v2479_v20  ;;  %v4144_v20 = vld [vmem:[%s4918_s8 + $0x1b8] sm:$0xf]  ;;  %v4137_v35 = vor.u32 %v4410_v27, %v4136_v24 }
 0x225   : > { %v4411_v21 = vld [vmem:[%s4918_s8 + $0x3f4] sm:$0x10] }
 0x226   : > { %v2505_v26 = vadd.f32 %v2504_v22, %v2492_v23  ;;  %v4339_v22 = vld [vmem:[%s4918_s8 + $0x1bc] sm:$0xf] }
 0x227   : > { %v4146_v23 = vld [vmem:[%s4918_s8 + $0x3f8] sm:$0x10] }
 0x228   : > { %v4149_v34 = vor.u32 %v4339_v22, %v4146_v23  ;;  %v4170_v22 = vld [vmem:[%s4918_s8 + $0x410] sm:$0x10] }
 0x22a   : > { %v2506_v33 = vpop.f32.mrf.mxu3  ;;  %v2517_v37 = vpop.f32.mrf.mxu0 }
 0x22b   : > { %v2493_v32 = vpop.f32.mrf.mxu2  ;;  %v2530_v38 = vpop.f32.mrf.mxu1  ;;  %v2518_v39 = vadd.f32 %v2517_v37, %v2505_v26  ;;  %v4145_v33 = vor.u32 %v4411_v21, %v4144_v20  ;;  %v4414_v20 = vld [vmem:[%s4918_s8 + $0x40c] sm:$0x10]  ;;  %v4342_v21 = vld [vmem:[%s4918_s8 + $0x1d4] sm:$0xf] }
 0x22c   : > { %v4173_v29 = vor.u32 %v4342_v21, %v4170_v22 }
 0x22d   : > { %v2531_v44 = vadd.f32 %v2530_v38, %v2518_v39  ;;  %2932 = vmatmul.bf16.vlgmr.msrb.gmra.mxu0 %v800_v62  ;;  %2945 = vmatmul.bf16.vlgmr.msrb.gmra.mxu1 %v801_v63  ;;  %v4337_v62 = vld [vmem:[%s4918_s8 + $0x1ac] sm:$0xf] }
 0x22e   : > { %3035 = vmatpush.bf16.xpose.msrb.mxu0 %v4105_v42  ;;  %3048 = vmatpush.bf16.xpose.msrb.mxu1 %v4109_v43  ;;  %v4130_v63 = vld [vmem:[%s4918_s8 + $0x3e8] sm:$0x10]  ;;  %v816_v43 = vld [vmem:[#allocation1] sm:$0xff] }
 0x22f   : > { %2971 = vmatmul.bf16.vlgmr.msrb.gmra.mxu3 %v803_v1  ;;  %v4133_v10 = vor.u32 %v4337_v62, %v4130_v63  ;;  %v4154_v62 = vld [vmem:[%s4918_s8 + $0x400] sm:$0x10] }
 0x230   : > { %2958 = vmatmul.bf16.vlgmr.msrb.gmra.mxu2 %v802_v0  ;;  %3074 = vmatpush.bf16.xpose.msrb.mxu3 %v4117_v41  ;;  %v4120_v0 = vld [vmem:[%s4918_s8 + $0x1a0] sm:$0xf]  ;;  %v4157_v5 = vor.u32 %v4340_v61, %v4154_v62 }
 0x231   : > { %3061 = vmatpush.bf16.xpose.msrb.mxu2 %v4113_v40  ;;  %v4121_v11 = vor.u32 %v4408_v3, %v4120_v0 }
 0x232   : > { %v2556_v46 = vpop.f32.mrf.mxu3  ;;  %v2519_v48 = vpop.f32.mrf.mxu0 }
 0x233   : > { %v2543_v45 = vpop.f32.mrf.mxu2  ;;  %v2532_v49 = vpop.f32.mrf.mxu1  ;;  %v820_v48 = vld [vmem:[#allocation1 + $0x24] sm:$0xff] }
 0x234   : > { %v2544_v47 = vadd.f32 %v2543_v45, %v2531_v44  ;;  %v817_v44 = vld [vmem:[#allocation1 + $0x9] sm:$0xff]  ;;  %v818_v45 = vld [vmem:[#allocation1 + $0x12] sm:$0xff] }
 0x235   : > { %v821_v49 = vld [vmem:[#allocation1 + $0x2d] sm:$0xff] }
 0x236   : > { %v2557_v53 = vadd.f32 %v2556_v46, %v2544_v47  ;;  %v819_v47 = vld [vmem:[#allocation1 + $0x1b] sm:$0xff] }
 0x23a   : > { %v2558_v2 = vpop.f32.mrf.mxu3  ;;  %v2569_v6 = vpop.f32.mrf.mxu0 }
 0x23b   : > { %v2545_v1 = vpop.f32.mrf.mxu2  ;;  %v2582_v7 = vpop.f32.mrf.mxu1  ;;  %v2570_v8 = vadd.f32 %v2569_v6, %v2557_v53  ;;  %v4160_v53 = vld [vmem:[%s4918_s8 + $0x1c8] sm:$0xf] }
 0x23d   : > { %v2583_v13 = vadd.f32 %v2582_v7, %v2570_v8  ;;  %2984 = vmatmul.bf16.vlgmr.msra.gmra.mxu0 %v806_v50  ;;  %2997 = vmatmul.bf16.vlgmr.msra.gmra.mxu1 %v807_v51  ;;  %v822_v50 = vld [vmem:[#allocation1 + $0x36] sm:$0xff]  ;;  %v823_v51 = vld [vmem:[#allocation1 + $0x3f] sm:$0xff] }
 0x23e   : > { %3087 = vmatpush.bf16.xpose.msra.mxu0 %v4121_v11  ;;  %3100 = vmatpush.bf16.xpose.msra.mxu1 %v4125_v12 }
 0x23f   : > { %3023 = vmatmul.bf16.vlgmr.msra.gmra.mxu3 %v809_v54  ;;  %v4413_v54 = vld [vmem:[%s4918_s8 + $0x404] sm:$0x10] }
 0x240   : > { %3010 = vmatmul.bf16.vlgmr.msra.gmra.mxu2 %v808_v52  ;;  %3126 = vmatpush.bf16.xpose.msra.mxu3 %v4133_v10  ;;  %v536_v52 = vld [vmem:[%s4916_s7 + $0x70] sm:$0xff]  ;;  %v4161_v2 = vor.u32 %v4413_v54, %v4160_v53  ;;  %v4416_v53 = vld [vmem:[%s4918_s8 + $0x41c] sm:$0x10] }
 0x241   : > { %3113 = vmatpush.bf16.xpose.msra.mxu2 %v4129_v9  ;;  %825 = vst [vmem:[#allocation1] ss:$9 sm:$0xff] %v536_v52  ;;  %v4344_v54 = vld [vmem:[%s4918_s8 + $0x1e4] sm:$0xf] }
 0x242   : > { %v2608_v15 = vpop.f32.mrf.mxu3  ;;  %v2571_v17 = vpop.f32.mrf.mxu0 }
 0x243   : > { %v2595_v14 = vpop.f32.mrf.mxu2  ;;  %v2584_v18 = vpop.f32.mrf.mxu1  ;;  %v4168_v17 = vld [vmem:[%s4918_s8 + $0x1d0] sm:$0xf] }
 0x244   : > { %v2596_v16 = vadd.f32 %v2595_v14, %v2583_v13  ;;  %v4176_v13 = vld [vmem:[%s4918_s8 + $0x1d8] sm:$0xf]  ;;  %v4169_v28 = vor.u32 %v4414_v20, %v4168_v17 }
 0x245   : > { %v4415_v14 = vld [vmem:[%s4918_s8 + $0x414] sm:$0x10] }
 0x246   : > { %v2609_v19 = vadd.f32 %v2608_v15, %v2596_v16  ;;  %v4343_v15 = vld [vmem:[%s4918_s8 + $0x1dc] sm:$0xf] }
 0x247   : > { %v4178_v16 = vld [vmem:[%s4918_s8 + $0x418] sm:$0x10] }
 0x248   : > { %v4181_v27 = vor.u32 %v4343_v15, %v4178_v16  ;;  %v4202_v15 = vld [vmem:[%s4918_s8 + $0x430] sm:$0x10] }
 0x24a   : > { %v2610_v26 = vpop.f32.mrf.mxu3  ;;  %v2621_v30 = vpop.f32.mrf.mxu0 }
 0x24b   : > { %v2597_v25 = vpop.f32.mrf.mxu2  ;;  %v2634_v31 = vpop.f32.mrf.mxu1  ;;  %v2622_v32 = vadd.f32 %v2621_v30, %v2609_v19  ;;  %v4177_v26 = vor.u32 %v4415_v14, %v4176_v13  ;;  %v4418_v13 = vld [vmem:[%s4918_s8 + $0x42c] sm:$0x10]  ;;  %v4346_v14 = vld [vmem:[%s4918_s8 + $0x1f4] sm:$0xf] }
 0x24c   : > { %v4205_v22 = vor.u32 %v4346_v14, %v4202_v15 }
 0x24d   : > { %v2635_v37 = vadd.f32 %v2634_v31, %v2622_v32  ;;  %3036 = vmatmul.bf16.vlgmr.msrb.gmra.mxu0 %v810_v55  ;;  %3049 = vmatmul.bf16.vlgmr.msrb.gmra.mxu1 %v811_v56  ;;  %v4341_v55 = vld [vmem:[%s4918_s8 + $0x1cc] sm:$0xf] }
 0x24e   : > { %3139 = vmatpush.bf16.xpose.msrb.mxu0 %v4137_v35  ;;  %3152 = vmatpush.bf16.xpose.msrb.mxu1 %v4141_v36  ;;  %v4162_v56 = vld [vmem:[%s4918_s8 + $0x408] sm:$0x10]  ;;  %v826_v36 = vld [vmem:[#allocation1] sm:$0xff] }
 0x24f   : > { %3075 = vmatmul.bf16.vlgmr.msrb.gmra.mxu3 %v813_v58  ;;  %v4165_v3 = vor.u32 %v4341_v55, %v4162_v56  ;;  %v4186_v55 = vld [vmem:[%s4918_s8 + $0x420] sm:$0x10] }
 0x250   : > { %3062 = vmatmul.bf16.vlgmr.msrb.gmra.mxu2 %v812_v57  ;;  %3178 = vmatpush.bf16.xpose.msrb.mxu3 %v4149_v34  ;;  %v4152_v57 = vld [vmem:[%s4918_s8 + $0x1c0] sm:$0xf]  ;;  %v4189_v62 = vor.u32 %v4344_v54, %v4186_v55 }
 0x251   : > { %3165 = vmatpush.bf16.xpose.msrb.mxu2 %v4145_v33  ;;  %v4153_v4 = vor.u32 %v4412_v60, %v4152_v57 }
 0x252   : > { %v2660_v39 = vpop.f32.mrf.mxu3  ;;  %v2623_v41 = vpop.f32.mrf.mxu0 }
 0x253   : > { %v2647_v38 = vpop.f32.mrf.mxu2  ;;  %v2636_v42 = vpop.f32.mrf.mxu1  ;;  %v830_v41 = vld [vmem:[#allocation1 + $0x24] sm:$0xff] }
 0x254   : > { %v2648_v40 = vadd.f32 %v2647_v38, %v2635_v37  ;;  %v827_v37 = vld [vmem:[#allocation1 + $0x9] sm:$0xff]  ;;  %v828_v38 = vld [vmem:[#allocation1 + $0x12] sm:$0xff] }
 0x255   : > { %v831_v42 = vld [vmem:[#allocation1 + $0x2d] sm:$0xff] }
 0x256   : > { %v2661_v46 = vadd.f32 %v2660_v39, %v2648_v40  ;;  %v829_v40 = vld [vmem:[#allocation1 + $0x1b] sm:$0xff] }
 0x25a   : > { %v2662_v59 = vpop.f32.mrf.mxu3  ;;  %v2673_v63 = vpop.f32.mrf.mxu0 }
 0x25b   : > { %v2649_v58 = vpop.f32.mrf.mxu2  ;;  %v2686_v0 = vpop.f32.mrf.mxu1  ;;  %v2674_v1 = vadd.f32 %v2673_v63, %v2661_v46  ;;  %v4192_v46 = vld [vmem:[%s4918_s8 + $0x1e8] sm:$0xf] }
 0x25d   : > { %v2687_v6 = vadd.f32 %v2686_v0, %v2674_v1  ;;  %3088 = vmatmul.bf16.vlgmr.msra.gmra.mxu0 %v816_v43  ;;  %3101 = vmatmul.bf16.vlgmr.msra.gmra.mxu1 %v817_v44  ;;  %v832_v43 = vld [vmem:[#allocation1 + $0x36] sm:$0xff]  ;;  %v833_v44 = vld [vmem:[#allocation1 + $0x3f] sm:$0xff] }
 0x25e   : > { %3191 = vmatpush.bf16.xpose.msra.mxu0 %v4153_v4  ;;  %3204 = vmatpush.bf16.xpose.msra.mxu1 %v4157_v5 }
 0x25f   : > { %3127 = vmatmul.bf16.vlgmr.msra.gmra.mxu3 %v819_v47  ;;  %v4417_v47 = vld [vmem:[%s4918_s8 + $0x424] sm:$0x10] }
 0x260   : > { %3114 = vmatmul.bf16.vlgmr.msra.gmra.mxu2 %v818_v45  ;;  %3230 = vmatpush.bf16.xpose.msra.mxu3 %v4165_v3  ;;  %v537_v45 = vld [vmem:[%s4916_s7 + $0x78] sm:$0xff]  ;;  %v4193_v59 = vor.u32 %v4417_v47, %v4192_v46  ;;  %v4420_v46 = vld [vmem:[%s4918_s8 + $0x43c] sm:$0x10]  ;;  %v4348_v47 = vld [vmem:[%s4918_s8 + $0x204] sm:$0xf] }
 0x261   : > { %3217 = vmatpush.bf16.xpose.msra.mxu2 %v4161_v2  ;;  %835 = vst [vmem:[#allocation1] ss:$9 sm:$0xff] %v537_v45 }
 0x262   : > { %v2712_v8 = vpop.f32.mrf.mxu3  ;;  %v2675_v10 = vpop.f32.mrf.mxu0 }
 0x263   : > { %v2699_v7 = vpop.f32.mrf.mxu2  ;;  %v2688_v11 = vpop.f32.mrf.mxu1  ;;  %v4200_v10 = vld [vmem:[%s4918_s8 + $0x1f0] sm:$0xf] }
 0x264   : > { %v2700_v9 = vadd.f32 %v2699_v7, %v2687_v6  ;;  %v4208_v6 = vld [vmem:[%s4918_s8 + $0x1f8] sm:$0xf]  ;;  %v4201_v21 = vor.u32 %v4418_v13, %v4200_v10 }
 0x265   : > { %v4419_v7 = vld [vmem:[%s4918_s8 + $0x434] sm:$0x10] }
 0x266   : > { %v2713_v12 = vadd.f32 %v2712_v8, %v2700_v9  ;;  %v4347_v8 = vld [vmem:[%s4918_s8 + $0x1fc] sm:$0xf] }
 0x267   : > { %v4210_v9 = vld [vmem:[%s4918_s8 + $0x438] sm:$0x10] }
 0x268   : > { %v4213_v20 = vor.u32 %v4347_v8, %v4210_v9  ;;  %v4234_v8 = vld [vmem:[%s4918_s8 + $0x450] sm:$0x10] }
 0x26a   : > { %v2714_v19 = vpop.f32.mrf.mxu3  ;;  %v2725_v23 = vpop.f32.mrf.mxu0 }
 0x26b   : > { %v2701_v18 = vpop.f32.mrf.mxu2  ;;  %v2738_v24 = vpop.f32.mrf.mxu1  ;;  %v2726_v25 = vadd.f32 %v2725_v23, %v2713_v12  ;;  %v4209_v19 = vor.u32 %v4419_v7, %v4208_v6  ;;  %v4422_v6 = vld [vmem:[%s4918_s8 + $0x44c] sm:$0x10]  ;;  %v4350_v7 = vld [vmem:[%s4918_s8 + $0x214] sm:$0xf] }
 0x26c   : > { %v4237_v15 = vor.u32 %v4350_v7, %v4234_v8 }
 0x26d   : > { %v2739_v30 = vadd.f32 %v2738_v24, %v2726_v25  ;;  %3140 = vmatmul.bf16.vlgmr.msrb.gmra.mxu0 %v820_v48  ;;  %3153 = vmatmul.bf16.vlgmr.msrb.gmra.mxu1 %v821_v49  ;;  %v4345_v48 = vld [vmem:[%s4918_s8 + $0x1ec] sm:$0xf] }
 0x26e   : > { %3243 = vmatpush.bf16.xpose.msrb.mxu0 %v4169_v28  ;;  %3256 = vmatpush.bf16.xpose.msrb.mxu1 %v4173_v29  ;;  %v4194_v49 = vld [vmem:[%s4918_s8 + $0x428] sm:$0x10]  ;;  %v836_v29 = vld [vmem:[#allocation1] sm:$0xff] }
 0x26f   : > { %3179 = vmatmul.bf16.vlgmr.msrb.gmra.mxu3 %v823_v51  ;;  %v4197_v60 = vor.u32 %v4345_v48, %v4194_v49  ;;  %v4218_v48 = vld [vmem:[%s4918_s8 + $0x440] sm:$0x10] }
 0x270   : > { %3166 = vmatmul.bf16.vlgmr.msrb.gmra.mxu2 %v822_v50  ;;  %3282 = vmatpush.bf16.xpose.msrb.mxu3 %v4181_v27  ;;  %v4184_v50 = vld [vmem:[%s4918_s8 + $0x1e0] sm:$0xf]  ;;  %v4221_v55 = vor.u32 %v4348_v47, %v4218_v48 }
 0x271   : > { %3269 = vmatpush.bf16.xpose.msrb.mxu2 %v4177_v26  ;;  %v4185_v61 = vor.u32 %v4416_v53, %v4184_v50 }
 0x272   : > { %v2764_v32 = vpop.f32.mrf.mxu3  ;;  %v2727_v34 = vpop.f32.mrf.mxu0 }
 0x273   : > { %v2751_v31 = vpop.f32.mrf.mxu2  ;;  %v2740_v35 = vpop.f32.mrf.mxu1  ;;  %v840_v34 = vld [vmem:[#allocation1 + $0x24] sm:$0xff] }
 0x274   : > { %v2752_v33 = vadd.f32 %v2751_v31, %v2739_v30  ;;  %v837_v30 = vld [vmem:[#allocation1 + $0x9] sm:$0xff]  ;;  %v838_v31 = vld [vmem:[#allocation1 + $0x12] sm:$0xff] }
 0x275   : > { %v841_v35 = vld [vmem:[#allocation1 + $0x2d] sm:$0xff] }
 0x276   : > { %v2765_v39 = vadd.f32 %v2764_v32, %v2752_v33  ;;  %v839_v33 = vld [vmem:[#allocation1 + $0x1b] sm:$0xff] }
 0x27a   : > { %v2766_v52 = vpop.f32.mrf.mxu3  ;;  %v2777_v56 = vpop.f32.mrf.mxu0 }
 0x27b   : > { %v2753_v51 = vpop.f32.mrf.mxu2  ;;  %v2790_v57 = vpop.f32.mrf.mxu1  ;;  %v2778_v58 = vadd.f32 %v2777_v56, %v2765_v39  ;;  %v4224_v39 = vld [vmem:[%s4918_s8 + $0x208] sm:$0xf] }
 0x27d   : > { %v2791_v63 = vadd.f32 %v2790_v57, %v2778_v58  ;;  %3192 = vmatmul.bf16.vlgmr.msra.gmra.mxu0 %v826_v36  ;;  %3205 = vmatmul.bf16.vlgmr.msra.gmra.mxu1 %v827_v37  ;;  %v842_v36 = vld [vmem:[#allocation1 + $0x36] sm:$0xff]  ;;  %v843_v37 = vld [vmem:[#allocation1 + $0x3f] sm:$0xff] }
 0x27e   : > { %3295 = vmatpush.bf16.xpose.msra.mxu0 %v4185_v61  ;;  %3308 = vmatpush.bf16.xpose.msra.mxu1 %v4189_v62 }
 0x27f   : > { %3231 = vmatmul.bf16.vlgmr.msra.gmra.mxu3 %v829_v40  ;;  %v4421_v40 = vld [vmem:[%s4918_s8 + $0x444] sm:$0x10] }
 0x280   : > { %3218 = vmatmul.bf16.vlgmr.msra.gmra.mxu2 %v828_v38  ;;  %3334 = vmatpush.bf16.xpose.msra.mxu3 %v4197_v60  ;;  %v538_v38 = vld [vmem:[%s4916_s7 + $0x80] sm:$0xff]  ;;  %v4225_v52 = vor.u32 %v4421_v40, %v4224_v39  ;;  %v4424_v39 = vld [vmem:[%s4918_s8 + $0x45c] sm:$0x10]  ;;  %v4352_v40 = vld [vmem:[%s4918_s8 + $0x224] sm:$0xf] }
 0x281   : > { %3321 = vmatpush.bf16.xpose.msra.mxu2 %v4193_v59  ;;  %845 = vst [vmem:[#allocation1] ss:$9 sm:$0xff] %v538_v38 }
 0x282   : > { %v2816_v1 = vpop.f32.mrf.mxu3  ;;  %v2779_v3 = vpop.f32.mrf.mxu0 }
 0x283   : > { %v2803_v0 = vpop.f32.mrf.mxu2  ;;  %v2792_v4 = vpop.f32.mrf.mxu1  ;;  %v4232_v3 = vld [vmem:[%s4918_s8 + $0x210] sm:$0xf] }
 0x284   : > { %v2804_v2 = vadd.f32 %v2803_v0, %v2791_v63  ;;  %v4240_v63 = vld [vmem:[%s4918_s8 + $0x218] sm:$0xf]  ;;  %v4233_v14 = vor.u32 %v4422_v6, %v4232_v3 }
 0x285   : > { %v4423_v0 = vld [vmem:[%s4918_s8 + $0x454] sm:$0x10] }
 0x286   : > { %v2817_v5 = vadd.f32 %v2816_v1, %v2804_v2  ;;  %v4351_v1 = vld [vmem:[%s4918_s8 + $0x21c] sm:$0xf] }
 0x287   : > { %v4242_v2 = vld [vmem:[%s4918_s8 + $0x458] sm:$0x10] }
 0x288   : > { %v4245_v13 = vor.u32 %v4351_v1, %v4242_v2  ;;  %v4266_v1 = vld [vmem:[%s4918_s8 + $0x470] sm:$0x10] }
 0x28a   : > { %v2818_v12 = vpop.f32.mrf.mxu3  ;;  %v2829_v16 = vpop.f32.mrf.mxu0 }
 0x28b   : > { %v2805_v11 = vpop.f32.mrf.mxu2  ;;  %v2842_v17 = vpop.f32.mrf.mxu1  ;;  %v2830_v18 = vadd.f32 %v2829_v16, %v2817_v5  ;;  %v4241_v12 = vor.u32 %v4423_v0, %v4240_v63  ;;  %v4426_v63 = vld [vmem:[%s4918_s8 + $0x46c] sm:$0x10]  ;;  %v4354_v0 = vld [vmem:[%s4918_s8 + $0x234] sm:$0xf] }
 0x28c   : > { %v4269_v8 = vor.u32 %v4354_v0, %v4266_v1 }
 0x28d   : > { %v2843_v23 = vadd.f32 %v2842_v17, %v2830_v18  ;;  %3244 = vmatmul.bf16.vlgmr.msrb.gmra.mxu0 %v830_v41  ;;  %3257 = vmatmul.bf16.vlgmr.msrb.gmra.mxu1 %v831_v42  ;;  %v4349_v41 = vld [vmem:[%s4918_s8 + $0x20c] sm:$0xf] }
 0x28e   : > { %3347 = vmatpush.bf16.xpose.msrb.mxu0 %v4201_v21  ;;  %3360 = vmatpush.bf16.xpose.msrb.mxu1 %v4205_v22  ;;  %v4226_v42 = vld [vmem:[%s4918_s8 + $0x448] sm:$0x10]  ;;  %v846_v22 = vld [vmem:[#allocation1] sm:$0xff] }
 0x28f   : > { %3283 = vmatmul.bf16.vlgmr.msrb.gmra.mxu3 %v833_v44  ;;  %v4229_v53 = vor.u32 %v4349_v41, %v4226_v42  ;;  %v4250_v41 = vld [vmem:[%s4918_s8 + $0x460] sm:$0x10] }
 0x290   : > { %3270 = vmatmul.bf16.vlgmr.msrb.gmra.mxu2 %v832_v43  ;;  %3386 = vmatpush.bf16.xpose.msrb.mxu3 %v4213_v20  ;;  %v4216_v43 = vld [vmem:[%s4918_s8 + $0x200] sm:$0xf]  ;;  %v4253_v48 = vor.u32 %v4352_v40, %v4250_v41 }
 0x291   : > { %3373 = vmatpush.bf16.xpose.msrb.mxu2 %v4209_v19  ;;  %v4217_v54 = vor.u32 %v4420_v46, %v4216_v43 }
 0x292   : > { %v2868_v25 = vpop.f32.mrf.mxu3  ;;  %v2831_v27 = vpop.f32.mrf.mxu0 }
 0x293   : > { %v2855_v24 = vpop.f32.mrf.mxu2  ;;  %v2844_v28 = vpop.f32.mrf.mxu1  ;;  %v850_v27 = vld [vmem:[#allocation1 + $0x24] sm:$0xff] }
 0x294   : > { %v2856_v26 = vadd.f32 %v2855_v24, %v2843_v23  ;;  %v847_v23 = vld [vmem:[#allocation1 + $0x9] sm:$0xff]  ;;  %v848_v24 = vld [vmem:[#allocation1 + $0x12] sm:$0xff] }
 0x295   : > { %v851_v28 = vld [vmem:[#allocation1 + $0x2d] sm:$0xff] }
 0x296   : > { %v2869_v32 = vadd.f32 %v2868_v25, %v2856_v26  ;;  %v849_v26 = vld [vmem:[#allocation1 + $0x1b] sm:$0xff] }
 0x29a   : > { %v2870_v45 = vpop.f32.mrf.mxu3  ;;  %v2881_v49 = vpop.f32.mrf.mxu0 }
 0x29b   : > { %v2857_v44 = vpop.f32.mrf.mxu2  ;;  %v2894_v50 = vpop.f32.mrf.mxu1  ;;  %v2882_v51 = vadd.f32 %v2881_v49, %v2869_v32  ;;  %v4256_v32 = vld [vmem:[%s4918_s8 + $0x228] sm:$0xf] }
 0x29d   : > { %v2895_v56 = vadd.f32 %v2894_v50, %v2882_v51  ;;  %3296 = vmatmul.bf16.vlgmr.msra.gmra.mxu0 %v836_v29  ;;  %3309 = vmatmul.bf16.vlgmr.msra.gmra.mxu1 %v837_v30  ;;  %v852_v29 = vld [vmem:[#allocation1 + $0x36] sm:$0xff]  ;;  %v853_v30 = vld [vmem:[#allocation1 + $0x3f] sm:$0xff] }
 0x29e   : > { %3399 = vmatpush.bf16.xpose.msra.mxu0 %v4217_v54  ;;  %3412 = vmatpush.bf16.xpose.msra.mxu1 %v4221_v55 }
 0x29f   : > { %3335 = vmatmul.bf16.vlgmr.msra.gmra.mxu3 %v839_v33  ;;  %v4425_v33 = vld [vmem:[%s4918_s8 + $0x464] sm:$0x10] }
 0x2a0   : > { %3322 = vmatmul.bf16.vlgmr.msra.gmra.mxu2 %v838_v31  ;;  %3438 = vmatpush.bf16.xpose.msra.mxu3 %v4229_v53  ;;  %v539_v31 = vld [vmem:[%s4916_s7 + $0x88] sm:$0xff]  ;;  %v4257_v45 = vor.u32 %v4425_v33, %v4256_v32 }
 0x2a1   : > { %3425 = vmatpush.bf16.xpose.msra.mxu2 %v4225_v52  ;;  %855 = vst [vmem:[#allocation1] ss:$9 sm:$0xff] %v539_v31 }
 0x2a2   : > { %v2920_v58 = vpop.f32.mrf.mxu3  ;;  %v2883_v60 = vpop.f32.mrf.mxu0 }
 0x2a3   : > { %v2907_v57 = vpop.f32.mrf.mxu2  ;;  %v2896_v61 = vpop.f32.mrf.mxu1  ;;  %v4264_v60 = vld [vmem:[%s4918_s8 + $0x230] sm:$0xf] }
 0x2a4   : > { %v2908_v59 = vadd.f32 %v2907_v57, %v2895_v56  ;;  %v4272_v56 = vld [vmem:[%s4918_s8 + $0x238] sm:$0xf]  ;;  %v4265_v7 = vor.u32 %v4426_v63, %v4264_v60 }
 0x2a5   : > { %v4427_v57 = vld [vmem:[%s4918_s8 + $0x474] sm:$0x10] }
 0x2a6   : > { %v2921_v62 = vadd.f32 %v2920_v58, %v2908_v59  ;;  %v4355_v58 = vld [vmem:[%s4918_s8 + $0x23c] sm:$0xf] }
 0x2a7   : > { %v4274_v59 = vld [vmem:[%s4918_s8 + $0x478] sm:$0x10] }
 0x2a8   : > { %v4277_v6 = vor.u32 %v4355_v58, %v4274_v59  ;;  %v863_v40 = vld [vmem:[#allocation1 + $0x3f] sm:$0xff] }
 0x2aa   : > { %v2922_v5 = vpop.f32.mrf.mxu3  ;;  %v2933_v9 = vpop.f32.mrf.mxu0 }
 0x2ab   : > { %v2909_v4 = vpop.f32.mrf.mxu2  ;;  %v2946_v10 = vpop.f32.mrf.mxu1  ;;  %v2934_v11 = vadd.f32 %v2933_v9, %v2921_v62  ;;  %v4273_v5 = vor.u32 %v4427_v57, %v4272_v56 }
 0x2ad   : > { %v2947_v16 = vadd.f32 %v2946_v10, %v2934_v11  ;;  %3348 = vmatmul.bf16.vlgmr.msrb.gmra.mxu0 %v840_v34  ;;  %3361 = vmatmul.bf16.vlgmr.msrb.gmra.mxu1 %v841_v35  ;;  %v4353_v34 = vld [vmem:[%s4918_s8 + $0x22c] sm:$0xf] }
 0x2ae   : > { %3451 = vmatpush.bf16.xpose.msrb.mxu0 %v4233_v14  ;;  %3464 = vmatpush.bf16.xpose.msrb.mxu1 %v4237_v15  ;;  %v4258_v35 = vld [vmem:[%s4918_s8 + $0x468] sm:$0x10] }
 0x2af   : > { %3387 = vmatmul.bf16.vlgmr.msrb.gmra.mxu3 %v843_v37  ;;  %v4261_v46 = vor.u32 %v4353_v34, %v4258_v35 }
 0x2b0   : > { %3374 = vmatmul.bf16.vlgmr.msrb.gmra.mxu2 %v842_v36  ;;  %3490 = vmatpush.bf16.xpose.msrb.mxu3 %v4245_v13  ;;  %v4248_v36 = vld [vmem:[%s4918_s8 + $0x220] sm:$0xf] }
 0x2b1   : > { %3477 = vmatpush.bf16.xpose.msrb.mxu2 %v4241_v12  ;;  %v4249_v47 = vor.u32 %v4424_v39, %v4248_v36  ;;  %v860_v36 = vld [vmem:[#allocation1 + $0x24] sm:$0xff]  ;;  %v862_v39 = vld [vmem:[#allocation1 + $0x36] sm:$0xff] }
 0x2b2   : > { %v2972_v18 = vpop.f32.mrf.mxu3  ;;  %v2935_v20 = vpop.f32.mrf.mxu0 }
 0x2b3   : > { %v2959_v17 = vpop.f32.mrf.mxu2  ;;  %v2948_v21 = vpop.f32.mrf.mxu1  ;;  %v856_v20 = vld [vmem:[#allocation1] sm:$0xff] }
 0x2b4   : > { %v2960_v19 = vadd.f32 %v2959_v17, %v2947_v16  ;;  %v857_v21 = vld [vmem:[#allocation1 + $0x9] sm:$0xff] }
 0x2b6   : > { %v2973_v25 = vadd.f32 %v2972_v18, %v2960_v19 }
 0x2ba   : > { %v2974_v38 = vpop.f32.mrf.mxu3  ;;  %v2985_v42 = vpop.f32.mrf.mxu0 }
 0x2bb   : > { %v2961_v37 = vpop.f32.mrf.mxu2  ;;  %v2998_v43 = vpop.f32.mrf.mxu1  ;;  %v2986_v44 = vadd.f32 %v2985_v42, %v2973_v25 }
 0x2bc   : > { %v861_v37 = vld [vmem:[#allocation1 + $0x2d] sm:$0xff] }
 0x2bd   : > { %v2999_v49 = vadd.f32 %v2998_v43, %v2986_v44  ;;  %3400 = vmatmul.bf16.vlgmr.msra.gmra.mxu0 %v846_v22  ;;  %3413 = vmatmul.bf16.vlgmr.msra.gmra.mxu1 %v847_v23  ;;  %v858_v23 = vld [vmem:[#allocation1 + $0x12] sm:$0xff] }
 0x2be   : > { %3503 = vmatpush.bf16.xpose.msra.mxu0 %v4249_v47  ;;  %3516 = vmatpush.bf16.xpose.msra.mxu1 %v4253_v48 }
 0x2bf   : > { %3439 = vmatmul.bf16.vlgmr.msra.gmra.mxu3 %v849_v26 }
 0x2c0   : > { %3426 = vmatmul.bf16.vlgmr.msra.gmra.mxu2 %v848_v24  ;;  %3542 = vmatpush.bf16.xpose.msra.mxu3 %v4261_v46  ;;  %v859_v24 = vld [vmem:[#allocation1 + $0x1b] sm:$0xff] }
 0x2c1   : > { %3529 = vmatpush.bf16.xpose.msra.mxu2 %v4257_v45 }
 0x2c2   : > { %v3024_v51 = vpop.f32.mrf.mxu3  ;;  %v2987_v53 = vpop.f32.mrf.mxu0 }
 0x2c3   : > { %v3011_v50 = vpop.f32.mrf.mxu2  ;;  %v3000_v54 = vpop.f32.mrf.mxu1 }
 0x2c4   : > { %v3012_v52 = vadd.f32 %v3011_v50, %v2999_v49 }
 0x2c6   : > { %v3025_v55 = vadd.f32 %v3024_v51, %v3012_v52 }
 0x2ca   : > { %v3026_v62 = vpop.f32.mrf.mxu3  ;;  %v3037_v2 = vpop.f32.mrf.mxu0 }
 0x2cb   : > { %v3013_v61 = vpop.f32.mrf.mxu2  ;;  %v3050_v3 = vpop.f32.mrf.mxu1  ;;  %v3038_v4 = vadd.f32 %v3037_v2, %v3025_v55 }
 0x2cd   : > { %v3051_v9 = vadd.f32 %v3050_v3, %v3038_v4  ;;  %3452 = vmatmul.bf16.vlgmr.msrb.gmra.mxu0 %v850_v27  ;;  %3465 = vmatmul.bf16.vlgmr.msrb.gmra.mxu1 %v851_v28 }
 0x2ce   : > { %3555 = vmatpush.bf16.xpose.msrb.mxu0 %v4265_v7  ;;  %3568 = vmatpush.bf16.xpose.msrb.mxu1 %v4269_v8 }
 0x2cf   : > { %3491 = vmatmul.bf16.vlgmr.msrb.gmra.mxu3 %v853_v30 }
 0x2d0   : > { %3478 = vmatmul.bf16.vlgmr.msrb.gmra.mxu2 %v852_v29  ;;  %3594 = vmatpush.bf16.xpose.msrb.mxu3 %v4277_v6 }
 0x2d1   : > { %3581 = vmatpush.bf16.xpose.msrb.mxu2 %v4273_v5 }
 0x2d2   : > { %v3076_v11 = vpop.f32.mrf.mxu3  ;;  %v3039_v13 = vpop.f32.mrf.mxu0 }
 0x2d3   : > { %v3063_v10 = vpop.f32.mrf.mxu2  ;;  %v3052_v14 = vpop.f32.mrf.mxu1 }
 0x2d4   : > { %v3064_v12 = vadd.f32 %v3063_v10, %v3051_v9 }
 0x2d6   : > { %v3077_v15 = vadd.f32 %v3076_v11, %v3064_v12 }
 0x2da   : > { %v3078_v17 = vpop.f32.mrf.mxu3  ;;  %v3089_v18 = vpop.f32.mrf.mxu0 }
 0x2db   : > { %v3065_v16 = vpop.f32.mrf.mxu2  ;;  %v3102_v19 = vpop.f32.mrf.mxu1  ;;  %v3090_v22 = vadd.f32 %v3089_v18, %v3077_v15 }
 0x2dd   : > { %v3103_v25 = vadd.f32 %v3102_v19, %v3090_v22  ;;  %3504 = vmatmul.bf16.vlgmr.msra.gmra.mxu0 %v856_v20  ;;  %3517 = vmatmul.bf16.vlgmr.msra.gmra.mxu1 %v857_v21 }
 0x2df   : > { %3543 = vmatmul.bf16.vlgmr.msra.gmra.mxu3 %v859_v24 }
 0x2e0   : > { %3530 = vmatmul.bf16.vlgmr.msra.gmra.mxu2 %v858_v23 }
 0x2e2   : > { %v3128_v27 = vpop.f32.mrf.mxu3  ;;  %v3091_v29 = vpop.f32.mrf.mxu0 }
 0x2e3   : > { %v3115_v26 = vpop.f32.mrf.mxu2  ;;  %v3104_v30 = vpop.f32.mrf.mxu1 }
 0x2e4   : > { %v3116_v28 = vadd.f32 %v3115_v26, %v3103_v25 }
 0x2e6   : > { %v3129_v31 = vadd.f32 %v3128_v27, %v3116_v28 }
 0x2ea   : > { %v3130_v33 = vpop.f32.mrf.mxu3  ;;  %v3141_v34 = vpop.f32.mrf.mxu0 }
 0x2eb   : > { %v3117_v32 = vpop.f32.mrf.mxu2  ;;  %v3154_v35 = vpop.f32.mrf.mxu1  ;;  %v3142_v38 = vadd.f32 %v3141_v34, %v3129_v31 }
 0x2ed   : > { %v3155_v41 = vadd.f32 %v3154_v35, %v3142_v38  ;;  %3556 = vmatmul.bf16.vlgmr.msrb.gmra.mxu0 %v860_v36  ;;  %3569 = vmatmul.bf16.vlgmr.msrb.gmra.mxu1 %v861_v37 }
 0x2ef   : > { %3595 = vmatmul.bf16.vlgmr.msrb.gmra.mxu3 %v863_v40 }
 0x2f0   : > { %3582 = vmatmul.bf16.vlgmr.msrb.gmra.mxu2 %v862_v39 }
 0x2f2   : > { %v3180_v43 = vpop.f32.mrf.mxu3  ;;  %v3143_v45 = vpop.f32.mrf.mxu0 }
 0x2f3   : > { %v3167_v42 = vpop.f32.mrf.mxu2  ;;  %v3156_v46 = vpop.f32.mrf.mxu1 }
 0x2f4   : > { %v3168_v44 = vadd.f32 %v3167_v42, %v3155_v41 }
 0x2f6   : > { %v3181_v47 = vadd.f32 %v3180_v43, %v3168_v44 }
 0x2fa   : > { %v3182_v49 = vpop.f32.mrf.mxu3  ;;  %v3193_v50 = vpop.f32.mrf.mxu0 }
 0x2fb   : > { %v3169_v48 = vpop.f32.mrf.mxu2  ;;  %v3206_v51 = vpop.f32.mrf.mxu1  ;;  %v3194_v0 = vadd.f32 %v3193_v50, %v3181_v47 }
 0x2fd   : > { %v3207_v5 = vadd.f32 %v3206_v51, %v3194_v0 }
 0x302   : > { %v3232_v53 = vpop.f32.mrf.mxu3  ;;  %v3195_v54 = vpop.f32.mrf.mxu0 }
 0x303   : > { %v3219_v52 = vpop.f32.mrf.mxu2  ;;  %v3208_v55 = vpop.f32.mrf.mxu1 }
 0x304   : > { %v3220_v6 = vadd.f32 %v3219_v52, %v3207_v5 }
 0x306   : > { %v3233_v9 = vadd.f32 %v3232_v53, %v3220_v6 }
 0x30a   : > { %v3234_v57 = vpop.f32.mrf.mxu3  ;;  %v3245_v58 = vpop.f32.mrf.mxu0 }
 0x30b   : > { %v3221_v56 = vpop.f32.mrf.mxu2  ;;  %v3258_v59 = vpop.f32.mrf.mxu1  ;;  %v3246_v12 = vadd.f32 %v3245_v58, %v3233_v9 }
 0x30d   : > { %v3259_v13 = vadd.f32 %v3258_v59, %v3246_v12 }
 0x312   : > { %v3284_v61 = vpop.f32.mrf.mxu3  ;;  %v3247_v62 = vpop.f32.mrf.mxu0 }
 0x313   : > { %v3271_v60 = vpop.f32.mrf.mxu2  ;;  %v3260_v63 = vpop.f32.mrf.mxu1 }
 0x314   : > { %v3272_v16 = vadd.f32 %v3271_v60, %v3259_v13 }
 0x316   : > { %v3285_v19 = vadd.f32 %v3284_v61, %v3272_v16 }
 0x31a   : > { %v3286_v2 = vpop.f32.mrf.mxu3  ;;  %v3297_v3 = vpop.f32.mrf.mxu0 }
 0x31b   : > { %v3273_v1 = vpop.f32.mrf.mxu2  ;;  %v3310_v4 = vpop.f32.mrf.mxu1  ;;  %v3298_v20 = vadd.f32 %v3297_v3, %v3285_v19 }
 0x31d   : > { %v3311_v25 = vadd.f32 %v3310_v4, %v3298_v20 }
 0x322   : > { %v3336_v8 = vpop.f32.mrf.mxu3  ;;  %v3299_v10 = vpop.f32.mrf.mxu0 }
 0x323   : > { %v3323_v7 = vpop.f32.mrf.mxu2  ;;  %v3312_v11 = vpop.f32.mrf.mxu1 }
 0x324   : > { %v3324_v26 = vadd.f32 %v3323_v7, %v3311_v25 }
 0x326   : > { %v3337_v29 = vadd.f32 %v3336_v8, %v3324_v26 }
 0x32a   : > { %v3338_v15 = vpop.f32.mrf.mxu3  ;;  %v3349_v17 = vpop.f32.mrf.mxu0 }
 0x32b   : > { %v3325_v14 = vpop.f32.mrf.mxu2  ;;  %v3362_v18 = vpop.f32.mrf.mxu1  ;;  %v3350_v32 = vadd.f32 %v3349_v17, %v3337_v29  ;;  %v521_v15 = vld [vmem:[#allocation2] sm:$0x3] }
 0x32d   : > { %v3363_v33 = vadd.f32 %v3362_v18, %v3350_v32 }
 0x332   : > { %v3388_v22 = vpop.f32.mrf.mxu3  ;;  %v3351_v23 = vpop.f32.mrf.mxu0 }
 0x333   : > { %v3375_v21 = vpop.f32.mrf.mxu2  ;;  %v3364_v24 = vpop.f32.mrf.mxu1 }
 0x334   : > { %v3376_v36 = vadd.f32 %v3375_v21, %v3363_v33 }
 0x336   : > { %v3389_v39 = vadd.f32 %v3388_v22, %v3376_v36 }
 0x33a   : > { %v3390_v28 = vpop.f32.mrf.mxu3  ;;  %v3401_v30 = vpop.f32.mrf.mxu0 }
 0x33b   : > { %v3377_v27 = vpop.f32.mrf.mxu2  ;;  %v3414_v31 = vpop.f32.mrf.mxu1  ;;  %v3402_v40 = vadd.f32 %v3401_v30, %v3389_v39 }
 0x33d   : > { %v3415_v45 = vadd.f32 %v3414_v31, %v3402_v40 }
 0x342   : > { %v3440_v35 = vpop.f32.mrf.mxu3  ;;  %v3403_v37 = vpop.f32.mrf.mxu0 }
 0x343   : > { %v3427_v34 = vpop.f32.mrf.mxu2  ;;  %v3416_v38 = vpop.f32.mrf.mxu1 }
 0x344   : > { %v3428_v46 = vadd.f32 %v3427_v34, %v3415_v45 }
 0x346   : > { %v3441_v49 = vadd.f32 %v3440_v35, %v3428_v46 }
 0x34a   : > { %v3442_v42 = vpop.f32.mrf.mxu3  ;;  %v3453_v43 = vpop.f32.mrf.mxu0 }
 0x34b   : > { %v3429_v41 = vpop.f32.mrf.mxu2  ;;  %v3466_v44 = vpop.f32.mrf.mxu1  ;;  %v3454_v52 = vadd.f32 %v3453_v43, %v3441_v49 }
 0x34d   : > { %v3467_v53 = vadd.f32 %v3466_v44, %v3454_v52 }
 0x352   : > { %v3492_v48 = vpop.f32.mrf.mxu3  ;;  %v3455_v50 = vpop.f32.mrf.mxu0 }
 0x353   : > { %v3479_v47 = vpop.f32.mrf.mxu2  ;;  %v3468_v51 = vpop.f32.mrf.mxu1 }
 0x354   : > { %v3480_v56 = vadd.f32 %v3479_v47, %v3467_v53 }
 0x356   : > { %v3493_v59 = vadd.f32 %v3492_v48, %v3480_v56 }
 0x35a   : > { %v3494_v55 = vpop.f32.mrf.mxu3  ;;  %v3505_v57 = vpop.f32.mrf.mxu0 }
 0x35b   : > { %v3481_v54 = vpop.f32.mrf.mxu2  ;;  %v3518_v58 = vpop.f32.mrf.mxu1  ;;  %v3506_v60 = vadd.f32 %v3505_v57, %v3493_v59 }
 0x35d   : > { %v3519_v1 = vadd.f32 %v3518_v58, %v3506_v60 }
 0x362   : > { %v3544_v62 = vpop.f32.mrf.mxu3  ;;  %v3507_v63 = vpop.f32.mrf.mxu0 }
 0x363   : > { %v3531_v61 = vpop.f32.mrf.mxu2  ;;  %v3520_v0 = vpop.f32.mrf.mxu1 }
 0x364   : > { %v3532_v2 = vadd.f32 %v3531_v61, %v3519_v1 }
 0x366   : > { %v3545_v5 = vadd.f32 %v3544_v62, %v3532_v2 }
 0x36a   : > { %v3546_v4 = vpop.f32.mrf.mxu3  ;;  %v3557_v6 = vpop.f32.mrf.mxu0 }
 0x36b   : > { %v3533_v3 = vpop.f32.mrf.mxu2  ;;  %v3570_v7 = vpop.f32.mrf.mxu1  ;;  %v3558_v8 = vadd.f32 %v3557_v6, %v3545_v5 }
 0x36d   : > { %v3571_v9 = vadd.f32 %v3570_v7, %v3558_v8 }
 0x372   : > { %v3596_v11 = vpop.f32.mrf.mxu3  ;;  %v3559_v13 = vpop.f32.mrf.mxu0 }
 0x373   : > { %v3583_v10 = vpop.f32.mrf.mxu2  ;;  %v3572_v14 = vpop.f32.mrf.mxu1 }
 0x374   : > { %v3584_v12 = vadd.f32 %v3583_v10, %v3571_v9 }
 0x376   : > { %v3597_v16 = vadd.f32 %v3596_v11, %v3584_v12 }
 0x377   : > { %3606 = sbr.rel (%p4278_p11) target bundleno = 901 (0x385), region = 63 }
 0x378   : > { %v3600_v17 = vadd.f32 %v3597_v16, %v521_v15 }
 0x37a   : > { %3602 = vst.msk [vmem:[#allocation2] sm:$0x3] %vm3601_vm1, %v3600_v17  ;;  %v3598_v19 = vpop.f32.mrf.mxu3 }
 0x37b   : > { %v3585_v18 = vpop.f32.mrf.mxu2 }
 0x37c   : > { %v4478_v21 = vld [vmem:[%s5253_s2] ss:$0 sm:$0xff] }
 0x381   : > { %v3607_v20 = vld [vmem:[#allocation2] sm:$0x3] }
 0x382   : > { %v3612_v22 = vadd.f32 %v4478_v21, %v3607_v20 }
 0x384   : > { %3613 = vst.msk [vmem:[#allocation4] sm:$0x3] %vm3601_vm1, %v3612_v22 }
 0x385 PF: > { %p4434_p12 = scmp.eq.s32.totalorder %s3696_s17, 3  ;;  %s3624_s19 = sshll.u32 %s5254_s3, 4  ;;  %s3625_s19 = int_to_ptr.hbm [resolvable:$true] %s3624_s19 }
 0x386   : > { %s4552_s20 = smov [#allocation4]  }
 0x387   : > { %s3622_s22 = sshll.u32 %s4552_s20, 4  ;;  %s3623_s22 = int_to_ptr.vmem [resolvable:$true] %s3622_s22 }
 0x388   : > { %4431 = dma.vmem_to_hbm [thread:$0]  (%p4434_p12), %s3623_s22, 32, %s3625_s19, [#allocation5]  }
 0x389   : > { %4528 = dma.done.wait (%p4434_p12), [#allocation5], 32  }
 0x38a   : > { %4530 = vsyncadd (%p4434_p12), [#allocation5], 4294967264 }
 0x38b PF: > { %s14_s16 = sadd.s32 1, %s4549_s16   ;;  %s5255_s12 = smov %s4537_s13 }
 0x38c   : > { %p11_p13 = scmp.ge.s32.totalorder %s14_s16, 6   ;;  %s5256_s13 = smov %s4609_s21 }
 0x38d   : > { %s5257_s14 = smov %s4545_s15  ;;  %s5258_s15 = smov %s5260_s18 }
 0x38e   :  { %13 = sbr.rel (!%p11_p13) target bundleno = 3 (0x3), region = 99 }
 0x393   :  { %3638 = vsyncpa [#allocation5], 1 }
 0x394   :  { %3640 = vsyncpa [#allocation5 + $0x1], 1 }

</bundles_post_ra>
